<compile_context>
chip_gen: v7x
topology: tpu7x:2x2x1
jax: 0.10.0
libtpu: 0.0.40
codegen_flags: <defaults>
</compile_context>

<pallas_src>
import jax
import jax.numpy as jnp
import numpy as np
from jax.experimental import pallas as pl
from jax.experimental.pallas import tpu as pltpu

KK = 5          # conv kernel size
NKP = 32        # kernel positions padded 25 -> 32  (MXU-friendly K = 32*Cin)


def _round_up(v, m):
    return (v + m - 1) // m * m


# ------------------------- fused LeNet kernel -------------------------------

def _build_patches(canvas_ref, p_ref, width):
    """im2col in VMEM: p[k*Cin + c, :] = canvas[c, shift_k : shift_k + N]."""
    cin = canvas_ref.shape[0]
    n = p_ref.shape[1]
    for k in range(NKP):
        if k < KK * KK:
            di, dj = divmod(k, KK)
            shift = di * width + dj
        else:
            shift = 0  # dummy rows; matched with zero-padded weight columns
        p_ref[k * cin:(k + 1) * cin, :] = canvas_ref[:, shift:shift + n]


def _conv_tanh(canvas_ref, p_ref, w_ref, b_ref, width):
    """One conv layer: VMEM im2col + single bf16 MXU matmul + bias + tanh.

    Output is lane-dense: (Cout, B*H*W) with the flattened-spatial dim last.
    """
    _build_patches(canvas_ref, p_ref, width)
    acc = jnp.dot(w_ref[...], p_ref[...].astype(jnp.bfloat16),
                  preferred_element_type=jnp.float32)
    return jnp.tanh(acc + b_ref[...])


def _lenet_kernel(x_ref, w1_ref, b1_ref, s1_ref, w2_ref, b2_ref, s2_ref,
                  w3_ref, b3_ref, sel_ref, wl1_ref, bl1_ref, wl2_ref, bl2_ref,
                  out_ref,
                  p1_ref, p2_ref, p3_ref, x2_ref, x3_ref):
    bf16, f32 = jnp.bfloat16, jnp.float32

    # conv1 + tanh on the 32x32 canvas -> (6, B*1024), lane-dense.
    a1 = _conv_tanh(x_ref, p1_ref, w1_ref, b1_ref, width=32)
    # avgpool 2x2 + compaction to the 14x14 canvas (trailing zero lanes give
    # head-room for conv2's shifted reads): one matmul with a 0.25 matrix.
    x2_ref[...] = jnp.dot(a1.astype(bf16), s1_ref[...],
                          preferred_element_type=f32)

    # conv2 + tanh on the 14x14 canvas -> (16, B*196).
    a2 = _conv_tanh(x2_ref, p2_ref, w2_ref, b2_ref, width=14)
    x3_ref[...] = jnp.dot(a2.astype(bf16), s2_ref[...],
                          preferred_element_type=f32)

    # conv3 + tanh on the 5x5 canvas -> (120, B*25); valid column is b*25.
    a3 = _conv_tanh(x3_ref, p3_ref, w3_ref, b3_ref, width=5)

    # flatten: select the single valid column per image -> (120, B).
    feat = jnp.dot(a3.astype(bf16), sel_ref[...], preferred_element_type=f32)

    # linear layers kept transposed (feature dim on sublanes, batch on lanes).
    h = jnp.tanh(jnp.dot(wl1_ref[...], feat.astype(bf16),
                         preferred_element_type=f32) + bl1_ref[...])
    out_ref[...] = jnp.dot(wl2_ref[...], h.astype(bf16),
                           preferred_element_type=f32) + bl2_ref[...]


# ------------------------- host-side wrappers --------------------------------

def lenet_forward(prep, x):
    """x: (B, 1, 32, 32) float32 -> logits (B, 10) float32."""
    batch = x.shape[0]
    n1 = batch * 32 * 32
    n2 = batch * 14 * 14
    n3 = batch * 5 * 5
    x1_len = _round_up(n1 + 4 * 32 + 4, 128)
    x2_len = prep["s1"].shape[1]
    x3_len = prep["s2"].shape[1]

    # Flat 32x32 canvas (Cin=1, B*1024), zero-padded so all shifted reads stay
    # in bounds.  Pure reshape + pad of the input: the 25x im2col expansion and
    # the 5-D transpose of the previous version are gone.
    xc = jnp.pad(x.astype(jnp.float32).reshape(1, n1),
                 ((0, 0), (0, x1_len - n1)))

    vmem = pl.BlockSpec(memory_space=pltpu.MemorySpace.VMEM)
    # NOTE: at B=2 the whole network uses <4 MiB of VMEM on one TensorCore.
    # If batch grows, tile the flattened-spatial (lane) dim with a grid +
    # dimension_semantics=("parallel",) and set vmem_limit_bytes for v7x.
    out_t = pl.pallas_call(
        _lenet_kernel,
        out_shape=jax.ShapeDtypeStruct((10, batch), jnp.float32),
        in_specs=[vmem] * 14,
        out_specs=vmem,
        scratch_shapes=[
            pltpu.VMEM((NKP * 1, n1), jnp.float32),    # conv1 patch matrix
            pltpu.VMEM((NKP * 6, n2), jnp.float32),    # conv2 patch matrix
            pltpu.VMEM((NKP * 16, n3), jnp.float32),   # conv3 patch matrix
            pltpu.VMEM((6, x2_len), jnp.float32),      # pooled 14x14 canvas
            pltpu.VMEM((16, x3_len), jnp.float32),     # pooled 5x5 canvas
        ],
    )(xc, prep["w1"], prep["b1"], prep["s1"],
      prep["w2"], prep["b2"], prep["s2"],
      prep["w3"], prep["b3"], prep["sel"],
      prep["wl1"], prep["bl1"], prep["wl2"], prep["bl2"])
    return out_t.T  # (B, 10)


def _pool_matrix(batch, cw, valid, out_len):
    """AvgPool(2,2) + re-compaction expressed as one matmul.

    Maps a flat (b, i, j) canvas of width `cw` per image (valid conv output in
    the top-left `valid` x `valid` corner) to the next layer's flat canvas of
    width `valid // 2`, averaging each 2x2 block.  Extra output columns are
    zeros (padding for the next conv's shifted reads)."""
    pw = valid // 2
    mat = np.zeros((batch * cw * cw, out_len), np.float32)
    for b in range(batch):
        for i2 in range(pw):
            for j2 in range(pw):
                q = b * pw * pw + i2 * pw + j2
                for a in range(2):
                    for d in range(2):
                        p = b * cw * cw + (2 * i2 + a) * cw + (2 * j2 + d)
                        mat[p, q] = 0.25
    return mat


def prepare_params(params, batch):
    """One-time repack: weight reordering/transposes/padding and the pooling /
    selection matrices are hoisted out of the per-call forward pass."""
    bf16 = jnp.bfloat16

    def conv_w(w):
        cout, cin, kh, kw = w.shape
        # (Cout, Cin, KH, KW) -> (Cout, kpos, Cin), kpos = di*KW + dj, then
        # zero-pad kpos 25 -> NKP and flatten so K = NKP*Cin (multiple of 8).
        wk = jnp.transpose(w, (0, 2, 3, 1)).reshape(cout, kh * kw, cin)
        wk = jnp.pad(wk, ((0, 0), (0, NKP - kh * kw), (0, 0)))
        return wk.reshape(cout, NKP * cin).astype(bf16)

    def col(b):
        return b.reshape(-1, 1).astype(jnp.float32)

    x2_len = _round_up(batch * 14 * 14 + 4 * 14 + 4, 128)
    x3_len = _round_up(batch * 5 * 5 + 4 * 5 + 4, 128)
    s1 = _pool_matrix(batch, 32, 28, x2_len)   # 28x28 valid -> 14x14 canvas
    s2 = _pool_matrix(batch, 14, 10, x3_len)   # 10x10 valid -> 5x5 canvas
    sel = np.zeros((batch * 25, batch), np.float32)
    for b in range(batch):
        sel[b * 25, b] = 1.0                   # valid conv3 column per image

    return {
        "w1": conv_w(params["conv1_w"]), "b1": col(params["conv1_b"]),
        "w2": conv_w(params["conv2_w"]), "b2": col(params["conv2_b"]),
        "w3": conv_w(params["conv3_w"]), "b3": col(params["conv3_b"]),
        "s1": jnp.asarray(s1, bf16), "s2": jnp.asarray(s2, bf16),
        "sel": jnp.asarray(sel, bf16),
        "wl1": params["lin1_w"].astype(bf16), "bl1": col(params["lin1_b"]),
        "wl2": params["lin2_w"].astype(bf16), "bl2": col(params["lin2_b"]),
    }


# ------------------------- deterministic parameter init ----------------------

def init_params(key):
    ks = jax.random.split(key, 10)

    def u(k, shape, fan_in):
        bound = 1.0 / jnp.sqrt(jnp.float32(fan_in))
        return jax.random.uniform(k, shape, jnp.float32, -bound, bound)

    return {
        "conv1_w": u(ks[0], (6, 1, 5, 5), 1 * 25),
        "conv1_b": u(ks[1], (6,), 1 * 25),
        "conv2_w": u(ks[2], (16, 6, 5, 5), 6 * 25),
        "conv2_b": u(ks[3], (16,), 6 * 25),
        "conv3_w": u(ks[4], (120, 16, 5, 5), 16 * 25),
        "conv3_b": u(ks[5], (120,), 16 * 25),
        "lin1_w": u(ks[6], (84, 120), 120),
        "lin1_b": u(ks[7], (84,), 120),
        "lin2_w": u(ks[8], (10, 84), 84),
        "lin2_b": u(ks[9], (10,), 84),
    }


if __name__ == "__main__":
    key = jax.random.PRNGKey(0)
    pkey, xkey = jax.random.split(key)
    params = init_params(pkey)
    # LeNet's forward implies a 1x32x32 input (conv3 reduces 5x5 -> 1x1, so the
    # flatten yields exactly 120 features for linear1).
    x = jax.random.normal(xkey, (2, 1, 32, 32), jnp.float32)
    prep = prepare_params(params, batch=x.shape[0])
    out = jax.jit(lenet_forward)(prep, x)
    jax.block_until_ready(out)
    assert out.shape == (2, 10) and out.dtype == jnp.float32
    assert bool(jnp.all(jnp.isfinite(out)))
    print("KERNEL_OK")
</pallas_src>

<mosaic_0001>
module attributes {stable_mosaic.version = 11 : i64} {
  func.func @_lenet_kernel(%arg0: memref<1x2304xf32, #tpu.memory_space<vmem>>, %arg1: memref<6x32xbf16, #tpu.memory_space<vmem>>, %arg2: memref<6x1xf32, #tpu.memory_space<vmem>>, %arg3: memref<2048x512xbf16, #tpu.memory_space<vmem>>, %arg4: memref<16x192xbf16, #tpu.memory_space<vmem>>, %arg5: memref<16x1xf32, #tpu.memory_space<vmem>>, %arg6: memref<392x128xbf16, #tpu.memory_space<vmem>>, %arg7: memref<120x512xbf16, #tpu.memory_space<vmem>>, %arg8: memref<120x1xf32, #tpu.memory_space<vmem>>, %arg9: memref<50x2xbf16, #tpu.memory_space<vmem>>, %arg10: memref<84x120xbf16, #tpu.memory_space<vmem>>, %arg11: memref<84x1xf32, #tpu.memory_space<vmem>>, %arg12: memref<10x84xbf16, #tpu.memory_space<vmem>>, %arg13: memref<10x1xf32, #tpu.memory_space<vmem>>, %arg14: memref<10x2xf32, #tpu.memory_space<vmem>>, %arg15: memref<32x2048xf32, #tpu.memory_space<vmem>>, %arg16: memref<192x392xf32, #tpu.memory_space<vmem>>, %arg17: memref<512x50xf32, #tpu.memory_space<vmem>>, %arg18: memref<6x512xf32, #tpu.memory_space<vmem>>, %arg19: memref<16x128xf32, #tpu.memory_space<vmem>>) attributes {dimension_semantics = [], scalar_prefetch = 0 : i64, scratch_operands = 5 : i64, tpu.core_type = #tpu.core_type<tc>} {
    %c0 = arith.constant 0 : index
    %c0_0 = arith.constant 0 : index
    %0 = vector.load %arg0[%c0, %c0_0] : memref<1x2304xf32, #tpu.memory_space<vmem>>, vector<1x2048xf32>
    %c0_1 = arith.constant 0 : index
    %c0_2 = arith.constant 0 : index
    %1 = vector.load %arg15[%c0_1, %c0_2] : memref<32x2048xf32, #tpu.memory_space<vmem>>, vector<1x2048xf32>
    tpu.vector_store %arg15[%c0_1, %c0_2], %0 {strides = array<i32>} : memref<32x2048xf32, #tpu.memory_space<vmem>>, vector<1x2048xf32>,
    %c0_3 = arith.constant 0 : index
    %c1 = arith.constant 1 : index
    %2 = vector.load %arg0[%c0_3, %c1] : memref<1x2304xf32, #tpu.memory_space<vmem>>, vector<1x2048xf32>
    %c1_4 = arith.constant 1 : index
    %c0_5 = arith.constant 0 : index
    %3 = vector.load %arg15[%c1_4, %c0_5] : memref<32x2048xf32, #tpu.memory_space<vmem>>, vector<1x2048xf32>
    tpu.vector_store %arg15[%c1_4, %c0_5], %2 {strides = array<i32>} : memref<32x2048xf32, #tpu.memory_space<vmem>>, vector<1x2048xf32>,
    %c0_6 = arith.constant 0 : index
    %c2 = arith.constant 2 : index
    %4 = vector.load %arg0[%c0_6, %c2] : memref<1x2304xf32, #tpu.memory_space<vmem>>, vector<1x2048xf32>
    %c2_7 = arith.constant 2 : index
    %c0_8 = arith.constant 0 : index
    %5 = vector.load %arg15[%c2_7, %c0_8] : memref<32x2048xf32, #tpu.memory_space<vmem>>, vector<1x2048xf32>
    tpu.vector_store %arg15[%c2_7, %c0_8], %4 {strides = array<i32>} : memref<32x2048xf32, #tpu.memory_space<vmem>>, vector<1x2048xf32>,
    %c0_9 = arith.constant 0 : index
    %c3 = arith.constant 3 : index
    %6 = vector.load %arg0[%c0_9, %c3] : memref<1x2304xf32, #tpu.memory_space<vmem>>, vector<1x2048xf32>
    %c3_10 = arith.constant 3 : index
    %c0_11 = arith.constant 0 : index
    %7 = vector.load %arg15[%c3_10, %c0_11] : memref<32x2048xf32, #tpu.memory_space<vmem>>, vector<1x2048xf32>
    tpu.vector_store %arg15[%c3_10, %c0_11], %6 {strides = array<i32>} : memref<32x2048xf32, #tpu.memory_space<vmem>>, vector<1x2048xf32>,
    %c0_12 = arith.constant 0 : index
    %c4 = arith.constant 4 : index
    %8 = vector.load %arg0[%c0_12, %c4] : memref<1x2304xf32, #tpu.memory_space<vmem>>, vector<1x2048xf32>
    %c4_13 = arith.constant 4 : index
    %c0_14 = arith.constant 0 : index
    %9 = vector.load %arg15[%c4_13, %c0_14] : memref<32x2048xf32, #tpu.memory_space<vmem>>, vector<1x2048xf32>
    tpu.vector_store %arg15[%c4_13, %c0_14], %8 {strides = array<i32>} : memref<32x2048xf32, #tpu.memory_space<vmem>>, vector<1x2048xf32>,
    %c0_15 = arith.constant 0 : index
    %c32 = arith.constant 32 : index
    %10 = vector.load %arg0[%c0_15, %c32] : memref<1x2304xf32, #tpu.memory_space<vmem>>, vector<1x2048xf32>
    %c5 = arith.constant 5 : index
    %c0_16 = arith.constant 0 : index
    %11 = vector.load %arg15[%c5, %c0_16] : memref<32x2048xf32, #tpu.memory_space<vmem>>, vector<1x2048xf32>
    tpu.vector_store %arg15[%c5, %c0_16], %10 {strides = array<i32>} : memref<32x2048xf32, #tpu.memory_space<vmem>>, vector<1x2048xf32>,
    %c0_17 = arith.constant 0 : index
    %c33 = arith.constant 33 : index
    %12 = vector.load %arg0[%c0_17, %c33] : memref<1x2304xf32, #tpu.memory_space<vmem>>, vector<1x2048xf32>
    %c6 = arith.constant 6 : index
    %c0_18 = arith.constant 0 : index
    %13 = vector.load %arg15[%c6, %c0_18] : memref<32x2048xf32, #tpu.memory_space<vmem>>, vector<1x2048xf32>
    tpu.vector_store %arg15[%c6, %c0_18], %12 {strides = array<i32>} : memref<32x2048xf32, #tpu.memory_space<vmem>>, vector<1x2048xf32>,
    %c0_19 = arith.constant 0 : index
    %c34 = arith.constant 34 : index
    %14 = vector.load %arg0[%c0_19, %c34] : memref<1x2304xf32, #tpu.memory_space<vmem>>, vector<1x2048xf32>
    %c7 = arith.constant 7 : index
    %c0_20 = arith.constant 0 : index
    %15 = vector.load %arg15[%c7, %c0_20] : memref<32x2048xf32, #tpu.memory_space<vmem>>, vector<1x2048xf32>
    tpu.vector_store %arg15[%c7, %c0_20], %14 {strides = array<i32>} : memref<32x2048xf32, #tpu.memory_space<vmem>>, vector<1x2048xf32>,
    %c0_21 = arith.constant 0 : index
    %c35 = arith.constant 35 : index
    %16 = vector.load %arg0[%c0_21, %c35] : memref<1x2304xf32, #tpu.memory_space<vmem>>, vector<1x2048xf32>
    %c8 = arith.constant 8 : index
    %c0_22 = arith.constant 0 : index
    %17 = vector.load %arg15[%c8, %c0_22] : memref<32x2048xf32, #tpu.memory_space<vmem>>, vector<1x2048xf32>
    tpu.vector_store %arg15[%c8, %c0_22], %16 {strides = array<i32>} : memref<32x2048xf32, #tpu.memory_space<vmem>>, vector<1x2048xf32>,
    %c0_23 = arith.constant 0 : index
    %c36 = arith.constant 36 : index
    %18 = vector.load %arg0[%c0_23, %c36] : memref<1x2304xf32, #tpu.memory_space<vmem>>, vector<1x2048xf32>
    %c9 = arith.constant 9 : index
    %c0_24 = arith.constant 0 : index
    %19 = vector.load %arg15[%c9, %c0_24] : memref<32x2048xf32, #tpu.memory_space<vmem>>, vector<1x2048xf32>
    tpu.vector_store %arg15[%c9, %c0_24], %18 {strides = array<i32>} : memref<32x2048xf32, #tpu.memory_space<vmem>>, vector<1x2048xf32>,
    %c0_25 = arith.constant 0 : index
    %c64 = arith.constant 64 : index
    %20 = vector.load %arg0[%c0_25, %c64] : memref<1x2304xf32, #tpu.memory_space<vmem>>, vector<1x2048xf32>
    %c10 = arith.constant 10 : index
    %c0_26 = arith.constant 0 : index
    %21 = vector.load %arg15[%c10, %c0_26] : memref<32x2048xf32, #tpu.memory_space<vmem>>, vector<1x2048xf32>
    tpu.vector_store %arg15[%c10, %c0_26], %20 {strides = array<i32>} : memref<32x2048xf32, #tpu.memory_space<vmem>>, vector<1x2048xf32>,
    %c0_27 = arith.constant 0 : index
    %c65 = arith.constant 65 : index
    %22 = vector.load %arg0[%c0_27, %c65] : memref<1x2304xf32, #tpu.memory_space<vmem>>, vector<1x2048xf32>
    %c11 = arith.constant 11 : index
    %c0_28 = arith.constant 0 : index
    %23 = vector.load %arg15[%c11, %c0_28] : memref<32x2048xf32, #tpu.memory_space<vmem>>, vector<1x2048xf32>
    tpu.vector_store %arg15[%c11, %c0_28], %22 {strides = array<i32>} : memref<32x2048xf32, #tpu.memory_space<vmem>>, vector<1x2048xf32>,
    %c0_29 = arith.constant 0 : index
    %c66 = arith.constant 66 : index
    %24 = vector.load %arg0[%c0_29, %c66] : memref<1x2304xf32, #tpu.memory_space<vmem>>, vector<1x2048xf32>
    %c12 = arith.constant 12 : index
    %c0_30 = arith.constant 0 : index
    %25 = vector.load %arg15[%c12, %c0_30] : memref<32x2048xf32, #tpu.memory_space<vmem>>, vector<1x2048xf32>
    tpu.vector_store %arg15[%c12, %c0_30], %24 {strides = array<i32>} : memref<32x2048xf32, #tpu.memory_space<vmem>>, vector<1x2048xf32>,
    %c0_31 = arith.constant 0 : index
    %c67 = arith.constant 67 : index
    %26 = vector.load %arg0[%c0_31, %c67] : memref<1x2304xf32, #tpu.memory_space<vmem>>, vector<1x2048xf32>
    %c13 = arith.constant 13 : index
    %c0_32 = arith.constant 0 : index
    %27 = vector.load %arg15[%c13, %c0_32] : memref<32x2048xf32, #tpu.memory_space<vmem>>, vector<1x2048xf32>
    tpu.vector_store %arg15[%c13, %c0_32], %26 {strides = array<i32>} : memref<32x2048xf32, #tpu.memory_space<vmem>>, vector<1x2048xf32>,
    %c0_33 = arith.constant 0 : index
    %c68 = arith.constant 68 : index
    %28 = vector.load %arg0[%c0_33, %c68] : memref<1x2304xf32, #tpu.memory_space<vmem>>, vector<1x2048xf32>
    %c14 = arith.constant 14 : index
    %c0_34 = arith.constant 0 : index
    %29 = vector.load %arg15[%c14, %c0_34] : memref<32x2048xf32, #tpu.memory_space<vmem>>, vector<1x2048xf32>
    tpu.vector_store %arg15[%c14, %c0_34], %28 {strides = array<i32>} : memref<32x2048xf32, #tpu.memory_space<vmem>>, vector<1x2048xf32>,
    %c0_35 = arith.constant 0 : index
    %c96 = arith.constant 96 : index
    %30 = vector.load %arg0[%c0_35, %c96] : memref<1x2304xf32, #tpu.memory_space<vmem>>, vector<1x2048xf32>
    %c15 = arith.constant 15 : index
    %c0_36 = arith.constant 0 : index
    %31 = vector.load %arg15[%c15, %c0_36] : memref<32x2048xf32, #tpu.memory_space<vmem>>, vector<1x2048xf32>
    tpu.vector_store %arg15[%c15, %c0_36], %30 {strides = array<i32>} : memref<32x2048xf32, #tpu.memory_space<vmem>>, vector<1x2048xf32>,
    %c0_37 = arith.constant 0 : index
    %c97 = arith.constant 97 : index
    %32 = vector.load %arg0[%c0_37, %c97] : memref<1x2304xf32, #tpu.memory_space<vmem>>, vector<1x2048xf32>
    %c16 = arith.constant 16 : index
    %c0_38 = arith.constant 0 : index
    %33 = vector.load %arg15[%c16, %c0_38] : memref<32x2048xf32, #tpu.memory_space<vmem>>, vector<1x2048xf32>
    tpu.vector_store %arg15[%c16, %c0_38], %32 {strides = array<i32>} : memref<32x2048xf32, #tpu.memory_space<vmem>>, vector<1x2048xf32>,
    %c0_39 = arith.constant 0 : index
    %c98 = arith.constant 98 : index
    %34 = vector.load %arg0[%c0_39, %c98] : memref<1x2304xf32, #tpu.memory_space<vmem>>, vector<1x2048xf32>
    %c17 = arith.constant 17 : index
    %c0_40 = arith.constant 0 : index
    %35 = vector.load %arg15[%c17, %c0_40] : memref<32x2048xf32, #tpu.memory_space<vmem>>, vector<1x2048xf32>
    tpu.vector_store %arg15[%c17, %c0_40], %34 {strides = array<i32>} : memref<32x2048xf32, #tpu.memory_space<vmem>>, vector<1x2048xf32>,
    %c0_41 = arith.constant 0 : index
    %c99 = arith.constant 99 : index
    %36 = vector.load %arg0[%c0_41, %c99] : memref<1x2304xf32, #tpu.memory_space<vmem>>, vector<1x2048xf32>
    %c18 = arith.constant 18 : index
    %c0_42 = arith.constant 0 : index
    %37 = vector.load %arg15[%c18, %c0_42] : memref<32x2048xf32, #tpu.memory_space<vmem>>, vector<1x2048xf32>
    tpu.vector_store %arg15[%c18, %c0_42], %36 {strides = array<i32>} : memref<32x2048xf32, #tpu.memory_space<vmem>>, vector<1x2048xf32>,
    %c0_43 = arith.constant 0 : index
    %c100 = arith.constant 100 : index
    %38 = vector.load %arg0[%c0_43, %c100] : memref<1x2304xf32, #tpu.memory_space<vmem>>, vector<1x2048xf32>
    %c19 = arith.constant 19 : index
    %c0_44 = arith.constant 0 : index
    %39 = vector.load %arg15[%c19, %c0_44] : memref<32x2048xf32, #tpu.memory_space<vmem>>, vector<1x2048xf32>
    tpu.vector_store %arg15[%c19, %c0_44], %38 {strides = array<i32>} : memref<32x2048xf32, #tpu.memory_space<vmem>>, vector<1x2048xf32>,
    %c0_45 = arith.constant 0 : index
    %c128 = arith.constant 128 : index
    %40 = vector.load %arg0[%c0_45, %c128] : memref<1x2304xf32, #tpu.memory_space<vmem>>, vector<1x2048xf32>
    %c20 = arith.constant 20 : index
    %c0_46 = arith.constant 0 : index
    %41 = vector.load %arg15[%c20, %c0_46] : memref<32x2048xf32, #tpu.memory_space<vmem>>, vector<1x2048xf32>
    tpu.vector_store %arg15[%c20, %c0_46], %40 {strides = array<i32>} : memref<32x2048xf32, #tpu.memory_space<vmem>>, vector<1x2048xf32>,
    %c0_47 = arith.constant 0 : index
    %c129 = arith.constant 129 : index
    %42 = vector.load %arg0[%c0_47, %c129] : memref<1x2304xf32, #tpu.memory_space<vmem>>, vector<1x2048xf32>
    %c21 = arith.constant 21 : index
    %c0_48 = arith.constant 0 : index
    %43 = vector.load %arg15[%c21, %c0_48] : memref<32x2048xf32, #tpu.memory_space<vmem>>, vector<1x2048xf32>
    tpu.vector_store %arg15[%c21, %c0_48], %42 {strides = array<i32>} : memref<32x2048xf32, #tpu.memory_space<vmem>>, vector<1x2048xf32>,
    %c0_49 = arith.constant 0 : index
    %c130 = arith.constant 130 : index
    %44 = vector.load %arg0[%c0_49, %c130] : memref<1x2304xf32, #tpu.memory_space<vmem>>, vector<1x2048xf32>
    %c22 = arith.constant 22 : index
    %c0_50 = arith.constant 0 : index
    %45 = vector.load %arg15[%c22, %c0_50] : memref<32x2048xf32, #tpu.memory_space<vmem>>, vector<1x2048xf32>
    tpu.vector_store %arg15[%c22, %c0_50], %44 {strides = array<i32>} : memref<32x2048xf32, #tpu.memory_space<vmem>>, vector<1x2048xf32>,
    %c0_51 = arith.constant 0 : index
    %c131 = arith.constant 131 : index
    %46 = vector.load %arg0[%c0_51, %c131] : memref<1x2304xf32, #tpu.memory_space<vmem>>, vector<1x2048xf32>
    %c23 = arith.constant 23 : index
    %c0_52 = arith.constant 0 : index
    %47 = vector.load %arg15[%c23, %c0_52] : memref<32x2048xf32, #tpu.memory_space<vmem>>, vector<1x2048xf32>
    tpu.vector_store %arg15[%c23, %c0_52], %46 {strides = array<i32>} : memref<32x2048xf32, #tpu.memory_space<vmem>>, vector<1x2048xf32>,
    %c0_53 = arith.constant 0 : index
    %c132 = arith.constant 132 : index
    %48 = vector.load %arg0[%c0_53, %c132] : memref<1x2304xf32, #tpu.memory_space<vmem>>, vector<1x2048xf32>
    %c24 = arith.constant 24 : index
    %c0_54 = arith.constant 0 : index
    %49 = vector.load %arg15[%c24, %c0_54] : memref<32x2048xf32, #tpu.memory_space<vmem>>, vector<1x2048xf32>
    tpu.vector_store %arg15[%c24, %c0_54], %48 {strides = array<i32>} : memref<32x2048xf32, #tpu.memory_space<vmem>>, vector<1x2048xf32>,
    %c0_55 = arith.constant 0 : index
    %c0_56 = arith.constant 0 : index
    %50 = vector.load %arg0[%c0_55, %c0_56] : memref<1x2304xf32, #tpu.memory_space<vmem>>, vector<1x2048xf32>
    %c25 = arith.constant 25 : index
    %c0_57 = arith.constant 0 : index
    %51 = vector.load %arg15[%c25, %c0_57] : memref<32x2048xf32, #tpu.memory_space<vmem>>, vector<1x2048xf32>
    tpu.vector_store %arg15[%c25, %c0_57], %50 {strides = array<i32>} : memref<32x2048xf32, #tpu.memory_space<vmem>>, vector<1x2048xf32>,
    %c0_58 = arith.constant 0 : index
    %c0_59 = arith.constant 0 : index
    %52 = vector.load %arg0[%c0_58, %c0_59] : memref<1x2304xf32, #tpu.memory_space<vmem>>, vector<1x2048xf32>
    %c26 = arith.constant 26 : index
    %c0_60 = arith.constant 0 : index
    %53 = vector.load %arg15[%c26, %c0_60] : memref<32x2048xf32, #tpu.memory_space<vmem>>, vector<1x2048xf32>
    tpu.vector_store %arg15[%c26, %c0_60], %52 {strides = array<i32>} : memref<32x2048xf32, #tpu.memory_space<vmem>>, vector<1x2048xf32>,
    %c0_61 = arith.constant 0 : index
    %c0_62 = arith.constant 0 : index
    %54 = vector.load %arg0[%c0_61, %c0_62] : memref<1x2304xf32, #tpu.memory_space<vmem>>, vector<1x2048xf32>
    %c27 = arith.constant 27 : index
    %c0_63 = arith.constant 0 : index
    %55 = vector.load %arg15[%c27, %c0_63] : memref<32x2048xf32, #tpu.memory_space<vmem>>, vector<1x2048xf32>
    tpu.vector_store %arg15[%c27, %c0_63], %54 {strides = array<i32>} : memref<32x2048xf32, #tpu.memory_space<vmem>>, vector<1x2048xf32>,
    %c0_64 = arith.constant 0 : index
    %c0_65 = arith.constant 0 : index
    %56 = vector.load %arg0[%c0_64, %c0_65] : memref<1x2304xf32, #tpu.memory_space<vmem>>, vector<1x2048xf32>
    %c28 = arith.constant 28 : index
    %c0_66 = arith.constant 0 : index
    %57 = vector.load %arg15[%c28, %c0_66] : memref<32x2048xf32, #tpu.memory_space<vmem>>, vector<1x2048xf32>
    tpu.vector_store %arg15[%c28, %c0_66], %56 {strides = array<i32>} : memref<32x2048xf32, #tpu.memory_space<vmem>>, vector<1x2048xf32>,
    %c0_67 = arith.constant 0 : index
    %c0_68 = arith.constant 0 : index
    %58 = vector.load %arg0[%c0_67, %c0_68] : memref<1x2304xf32, #tpu.memory_space<vmem>>, vector<1x2048xf32>
    %c29 = arith.constant 29 : index
    %c0_69 = arith.constant 0 : index
    %59 = vector.load %arg15[%c29, %c0_69] : memref<32x2048xf32, #tpu.memory_space<vmem>>, vector<1x2048xf32>
    tpu.vector_store %arg15[%c29, %c0_69], %58 {strides = array<i32>} : memref<32x2048xf32, #tpu.memory_space<vmem>>, vector<1x2048xf32>,
    %c0_70 = arith.constant 0 : index
    %c0_71 = arith.constant 0 : index
    %60 = vector.load %arg0[%c0_70, %c0_71] : memref<1x2304xf32, #tpu.memory_space<vmem>>, vector<1x2048xf32>
    %c30 = arith.constant 30 : index
    %c0_72 = arith.constant 0 : index
    %61 = vector.load %arg15[%c30, %c0_72] : memref<32x2048xf32, #tpu.memory_space<vmem>>, vector<1x2048xf32>
    tpu.vector_store %arg15[%c30, %c0_72], %60 {strides = array<i32>} : memref<32x2048xf32, #tpu.memory_space<vmem>>, vector<1x2048xf32>,
    %c0_73 = arith.constant 0 : index
    %c0_74 = arith.constant 0 : index
    %62 = vector.load %arg0[%c0_73, %c0_74] : memref<1x2304xf32, #tpu.memory_space<vmem>>, vector<1x2048xf32>
    %c31 = arith.constant 31 : index
    %c0_75 = arith.constant 0 : index
    %63 = vector.load %arg15[%c31, %c0_75] : memref<32x2048xf32, #tpu.memory_space<vmem>>, vector<1x2048xf32>
    tpu.vector_store %arg15[%c31, %c0_75], %62 {strides = array<i32>} : memref<32x2048xf32, #tpu.memory_space<vmem>>, vector<1x2048xf32>,
    %c0_76 = arith.constant 0 : index
    %c0_77 = arith.constant 0 : index
    %64 = vector.load %arg1[%c0_76, %c0_77] : memref<6x32xbf16, #tpu.memory_space<vmem>>, vector<6x32xbf16>
    %c0_78 = arith.constant 0 : index
    %c0_79 = arith.constant 0 : index
    %65 = vector.load %arg15[%c0_78, %c0_79] : memref<32x2048xf32, #tpu.memory_space<vmem>>, vector<32x2048xf32>
    %66 = arith.truncf %65 : vector<32x2048xf32> to vector<32x2048xbf16>
    %cst = arith.constant dense<0.000000e+00> : vector<6x2048xf32>
    %67 = tpu.matmul %64, %66, %cst {dimension_numbers = #tpu.dot_dimension_numbers<[1], [0], [0], [1], [0, 0, 1, 1], [], []>} : vector<6x32xbf16>, vector<32x2048xbf16>, vector<6x2048xf32> -> vector<6x2048xf32>
    %c0_80 = arith.constant 0 : index
    %c0_81 = arith.constant 0 : index
    %68 = vector.load %arg2[%c0_80, %c0_81] : memref<6x1xf32, #tpu.memory_space<vmem>>, vector<6x1xf32>
    %69 = vector.broadcast %68 : vector<6x1xf32> to vector<6x2048xf32>
    %70 = arith.addf %67, %69 : vector<6x2048xf32>
    %71 = math.tanh %70 : vector<6x2048xf32>
    %72 = arith.truncf %71 : vector<6x2048xf32> to vector<6x2048xbf16>
    %c0_82 = arith.constant 0 : index
    %c0_83 = arith.constant 0 : index
    %73 = vector.load %arg3[%c0_82, %c0_83] : memref<2048x512xbf16, #tpu.memory_space<vmem>>, vector<2048x512xbf16>
    %cst_84 = arith.constant dense<0.000000e+00> : vector<6x512xf32>
    %74 = tpu.matmul %72, %73, %cst_84 {dimension_numbers = #tpu.dot_dimension_numbers<[1], [0], [0], [1], [0, 0, 1, 1], [], []>} : vector<6x2048xbf16>, vector<2048x512xbf16>, vector<6x512xf32> -> vector<6x512xf32>
    %c0_85 = arith.constant 0 : index
    %c0_86 = arith.constant 0 : index
    %75 = vector.load %arg18[%c0_85, %c0_86] : memref<6x512xf32, #tpu.memory_space<vmem>>, vector<6x512xf32>
    tpu.vector_store %arg18[%c0_85, %c0_86], %74 {strides = array<i32>} : memref<6x512xf32, #tpu.memory_space<vmem>>, vector<6x512xf32>,
    %c0_87 = arith.constant 0 : index
    %c0_88 = arith.constant 0 : index
    %76 = vector.load %arg18[%c0_87, %c0_88] : memref<6x512xf32, #tpu.memory_space<vmem>>, vector<6x392xf32>
    %c0_89 = arith.constant 0 : index
    %c0_90 = arith.constant 0 : index
    %77 = vector.load %arg16[%c0_89, %c0_90] : memref<192x392xf32, #tpu.memory_space<vmem>>, vector<6x392xf32>
    tpu.vector_store %arg16[%c0_89, %c0_90], %76 {strides = array<i32>} : memref<192x392xf32, #tpu.memory_space<vmem>>, vector<6x392xf32>,
    %c0_91 = arith.constant 0 : index
    %c1_92 = arith.constant 1 : index
    %78 = vector.load %arg18[%c0_91, %c1_92] : memref<6x512xf32, #tpu.memory_space<vmem>>, vector<6x392xf32>
    %c6_93 = arith.constant 6 : index
    %c0_94 = arith.constant 0 : index
    %79 = vector.load %arg16[%c6_93, %c0_94] : memref<192x392xf32, #tpu.memory_space<vmem>>, vector<6x392xf32>
    tpu.vector_store %arg16[%c6_93, %c0_94], %78 {strides = array<i32>} : memref<192x392xf32, #tpu.memory_space<vmem>>, vector<6x392xf32>,
    %c0_95 = arith.constant 0 : index
    %c2_96 = arith.constant 2 : index
    %80 = vector.load %arg18[%c0_95, %c2_96] : memref<6x512xf32, #tpu.memory_space<vmem>>, vector<6x392xf32>
    %c12_97 = arith.constant 12 : index
    %c0_98 = arith.constant 0 : index
    %81 = vector.load %arg16[%c12_97, %c0_98] : memref<192x392xf32, #tpu.memory_space<vmem>>, vector<6x392xf32>
    tpu.vector_store %arg16[%c12_97, %c0_98], %80 {strides = array<i32>} : memref<192x392xf32, #tpu.memory_space<vmem>>, vector<6x392xf32>,
    %c0_99 = arith.constant 0 : index
    %c3_100 = arith.constant 3 : index
    %82 = vector.load %arg18[%c0_99, %c3_100] : memref<6x512xf32, #tpu.memory_space<vmem>>, vector<6x392xf32>
    %c18_101 = arith.constant 18 : index
    %c0_102 = arith.constant 0 : index
    %83 = vector.load %arg16[%c18_101, %c0_102] : memref<192x392xf32, #tpu.memory_space<vmem>>, vector<6x392xf32>
    tpu.vector_store %arg16[%c18_101, %c0_102], %82 {strides = array<i32>} : memref<192x392xf32, #tpu.memory_space<vmem>>, vector<6x392xf32>,
    %c0_103 = arith.constant 0 : index
    %c4_104 = arith.constant 4 : index
    %84 = vector.load %arg18[%c0_103, %c4_104] : memref<6x512xf32, #tpu.memory_space<vmem>>, vector<6x392xf32>
    %c24_105 = arith.constant 24 : index
    %c0_106 = arith.constant 0 : index
    %85 = vector.load %arg16[%c24_105, %c0_106] : memref<192x392xf32, #tpu.memory_space<vmem>>, vector<6x392xf32>
    tpu.vector_store %arg16[%c24_105, %c0_106], %84 {strides = array<i32>} : memref<192x392xf32, #tpu.memory_space<vmem>>, vector<6x392xf32>,
    %c0_107 = arith.constant 0 : index
    %c14_108 = arith.constant 14 : index
    %86 = vector.load %arg18[%c0_107, %c14_108] : memref<6x512xf32, #tpu.memory_space<vmem>>, vector<6x392xf32>
    %c30_109 = arith.constant 30 : index
    %c0_110 = arith.constant 0 : index
    %87 = vector.load %arg16[%c30_109, %c0_110] : memref<192x392xf32, #tpu.memory_space<vmem>>, vector<6x392xf32>
    tpu.vector_store %arg16[%c30_109, %c0_110], %86 {strides = array<i32>} : memref<192x392xf32, #tpu.memory_space<vmem>>, vector<6x392xf32>,
    %c0_111 = arith.constant 0 : index
    %c15_112 = arith.constant 15 : index
    %88 = vector.load %arg18[%c0_111, %c15_112] : memref<6x512xf32, #tpu.memory_space<vmem>>, vector<6x392xf32>
    %c36_113 = arith.constant 36 : index
    %c0_114 = arith.constant 0 : index
    %89 = vector.load %arg16[%c36_113, %c0_114] : memref<192x392xf32, #tpu.memory_space<vmem>>, vector<6x392xf32>
    tpu.vector_store %arg16[%c36_113, %c0_114], %88 {strides = array<i32>} : memref<192x392xf32, #tpu.memory_space<vmem>>, vector<6x392xf32>,
    %c0_115 = arith.constant 0 : index
    %c16_116 = arith.constant 16 : index
    %90 = vector.load %arg18[%c0_115, %c16_116] : memref<6x512xf32, #tpu.memory_space<vmem>>, vector<6x392xf32>
    %c42 = arith.constant 42 : index
    %c0_117 = arith.constant 0 : index
    %91 = vector.load %arg16[%c42, %c0_117] : memref<192x392xf32, #tpu.memory_space<vmem>>, vector<6x392xf32>
    tpu.vector_store %arg16[%c42, %c0_117], %90 {strides = array<i32>} : memref<192x392xf32, #tpu.memory_space<vmem>>, vector<6x392xf32>,
    %c0_118 = arith.constant 0 : index
    %c17_119 = arith.constant 17 : index
    %92 = vector.load %arg18[%c0_118, %c17_119] : memref<6x512xf32, #tpu.memory_space<vmem>>, vector<6x392xf32>
    %c48 = arith.constant 48 : index
    %c0_120 = arith.constant 0 : index
    %93 = vector.load %arg16[%c48, %c0_120] : memref<192x392xf32, #tpu.memory_space<vmem>>, vector<6x392xf32>
    tpu.vector_store %arg16[%c48, %c0_120], %92 {strides = array<i32>} : memref<192x392xf32, #tpu.memory_space<vmem>>, vector<6x392xf32>,
    %c0_121 = arith.constant 0 : index
    %c18_122 = arith.constant 18 : index
    %94 = vector.load %arg18[%c0_121, %c18_122] : memref<6x512xf32, #tpu.memory_space<vmem>>, vector<6x392xf32>
    %c54 = arith.constant 54 : index
    %c0_123 = arith.constant 0 : index
    %95 = vector.load %arg16[%c54, %c0_123] : memref<192x392xf32, #tpu.memory_space<vmem>>, vector<6x392xf32>
    tpu.vector_store %arg16[%c54, %c0_123], %94 {strides = array<i32>} : memref<192x392xf32, #tpu.memory_space<vmem>>, vector<6x392xf32>,
    %c0_124 = arith.constant 0 : index
    %c28_125 = arith.constant 28 : index
    %96 = vector.load %arg18[%c0_124, %c28_125] : memref<6x512xf32, #tpu.memory_space<vmem>>, vector<6x392xf32>
    %c60 = arith.constant 60 : index
    %c0_126 = arith.constant 0 : index
    %97 = vector.load %arg16[%c60, %c0_126] : memref<192x392xf32, #tpu.memory_space<vmem>>, vector<6x392xf32>
    tpu.vector_store %arg16[%c60, %c0_126], %96 {strides = array<i32>} : memref<192x392xf32, #tpu.memory_space<vmem>>, vector<6x392xf32>,
    %c0_127 = arith.constant 0 : index
    %c29_128 = arith.constant 29 : index
    %98 = vector.load %arg18[%c0_127, %c29_128] : memref<6x512xf32, #tpu.memory_space<vmem>>, vector<6x392xf32>
    %c66_129 = arith.constant 66 : index
    %c0_130 = arith.constant 0 : index
    %99 = vector.load %arg16[%c66_129, %c0_130] : memref<192x392xf32, #tpu.memory_space<vmem>>, vector<6x392xf32>
    tpu.vector_store %arg16[%c66_129, %c0_130], %98 {strides = array<i32>} : memref<192x392xf32, #tpu.memory_space<vmem>>, vector<6x392xf32>,
    %c0_131 = arith.constant 0 : index
    %c30_132 = arith.constant 30 : index
    %100 = vector.load %arg18[%c0_131, %c30_132] : memref<6x512xf32, #tpu.memory_space<vmem>>, vector<6x392xf32>
    %c72 = arith.constant 72 : index
    %c0_133 = arith.constant 0 : index
    %101 = vector.load %arg16[%c72, %c0_133] : memref<192x392xf32, #tpu.memory_space<vmem>>, vector<6x392xf32>
    tpu.vector_store %arg16[%c72, %c0_133], %100 {strides = array<i32>} : memref<192x392xf32, #tpu.memory_space<vmem>>, vector<6x392xf32>,
    %c0_134 = arith.constant 0 : index
    %c31_135 = arith.constant 31 : index
    %102 = vector.load %arg18[%c0_134, %c31_135] : memref<6x512xf32, #tpu.memory_space<vmem>>, vector<6x392xf32>
    %c78 = arith.constant 78 : index
    %c0_136 = arith.constant 0 : index
    %103 = vector.load %arg16[%c78, %c0_136] : memref<192x392xf32, #tpu.memory_space<vmem>>, vector<6x392xf32>
    tpu.vector_store %arg16[%c78, %c0_136], %102 {strides = array<i32>} : memref<192x392xf32, #tpu.memory_space<vmem>>, vector<6x392xf32>,
    %c0_137 = arith.constant 0 : index
    %c32_138 = arith.constant 32 : index
    %104 = vector.load %arg18[%c0_137, %c32_138] : memref<6x512xf32, #tpu.memory_space<vmem>>, vector<6x392xf32>
    %c84 = arith.constant 84 : index
    %c0_139 = arith.constant 0 : index
    %105 = vector.load %arg16[%c84, %c0_139] : memref<192x392xf32, #tpu.memory_space<vmem>>, vector<6x392xf32>
    tpu.vector_store %arg16[%c84, %c0_139], %104 {strides = array<i32>} : memref<192x392xf32, #tpu.memory_space<vmem>>, vector<6x392xf32>,
    %c0_140 = arith.constant 0 : index
    %c42_141 = arith.constant 42 : index
    %106 = vector.load %arg18[%c0_140, %c42_141] : memref<6x512xf32, #tpu.memory_space<vmem>>, vector<6x392xf32>
    %c90 = arith.constant 90 : index
    %c0_142 = arith.constant 0 : index
    %107 = vector.load %arg16[%c90, %c0_142] : memref<192x392xf32, #tpu.memory_space<vmem>>, vector<6x392xf32>
    tpu.vector_store %arg16[%c90, %c0_142], %106 {strides = array<i32>} : memref<192x392xf32, #tpu.memory_space<vmem>>, vector<6x392xf32>,
    %c0_143 = arith.constant 0 : index
    %c43 = arith.constant 43 : index
    %108 = vector.load %arg18[%c0_143, %c43] : memref<6x512xf32, #tpu.memory_space<vmem>>, vector<6x392xf32>
    %c96_144 = arith.constant 96 : index
    %c0_145 = arith.constant 0 : index
    %109 = vector.load %arg16[%c96_144, %c0_145] : memref<192x392xf32, #tpu.memory_space<vmem>>, vector<6x392xf32>
    tpu.vector_store %arg16[%c96_144, %c0_145], %108 {strides = array<i32>} : memref<192x392xf32, #tpu.memory_space<vmem>>, vector<6x392xf32>,
    %c0_146 = arith.constant 0 : index
    %c44 = arith.constant 44 : index
    %110 = vector.load %arg18[%c0_146, %c44] : memref<6x512xf32, #tpu.memory_space<vmem>>, vector<6x392xf32>
    %c102 = arith.constant 102 : index
    %c0_147 = arith.constant 0 : index
    %111 = vector.load %arg16[%c102, %c0_147] : memref<192x392xf32, #tpu.memory_space<vmem>>, vector<6x392xf32>
    tpu.vector_store %arg16[%c102, %c0_147], %110 {strides = array<i32>} : memref<192x392xf32, #tpu.memory_space<vmem>>, vector<6x392xf32>,
    %c0_148 = arith.constant 0 : index
    %c45 = arith.constant 45 : index
    %112 = vector.load %arg18[%c0_148, %c45] : memref<6x512xf32, #tpu.memory_space<vmem>>, vector<6x392xf32>
    %c108 = arith.constant 108 : index
    %c0_149 = arith.constant 0 : index
    %113 = vector.load %arg16[%c108, %c0_149] : memref<192x392xf32, #tpu.memory_space<vmem>>, vector<6x392xf32>
    tpu.vector_store %arg16[%c108, %c0_149], %112 {strides = array<i32>} : memref<192x392xf32, #tpu.memory_space<vmem>>, vector<6x392xf32>,
    %c0_150 = arith.constant 0 : index
    %c46 = arith.constant 46 : index
    %114 = vector.load %arg18[%c0_150, %c46] : memref<6x512xf32, #tpu.memory_space<vmem>>, vector<6x392xf32>
    %c114 = arith.constant 114 : index
    %c0_151 = arith.constant 0 : index
    %115 = vector.load %arg16[%c114, %c0_151] : memref<192x392xf32, #tpu.memory_space<vmem>>, vector<6x392xf32>
    tpu.vector_store %arg16[%c114, %c0_151], %114 {strides = array<i32>} : memref<192x392xf32, #tpu.memory_space<vmem>>, vector<6x392xf32>,
    %c0_152 = arith.constant 0 : index
    %c56 = arith.constant 56 : index
    %116 = vector.load %arg18[%c0_152, %c56] : memref<6x512xf32, #tpu.memory_space<vmem>>, vector<6x392xf32>
    %c120 = arith.constant 120 : index
    %c0_153 = arith.constant 0 : index
    %117 = vector.load %arg16[%c120, %c0_153] : memref<192x392xf32, #tpu.memory_space<vmem>>, vector<6x392xf32>
    tpu.vector_store %arg16[%c120, %c0_153], %116 {strides = array<i32>} : memref<192x392xf32, #tpu.memory_space<vmem>>, vector<6x392xf32>,
    %c0_154 = arith.constant 0 : index
    %c57 = arith.constant 57 : index
    %118 = vector.load %arg18[%c0_154, %c57] : memref<6x512xf32, #tpu.memory_space<vmem>>, vector<6x392xf32>
    %c126 = arith.constant 126 : index
    %c0_155 = arith.constant 0 : index
    %119 = vector.load %arg16[%c126, %c0_155] : memref<192x392xf32, #tpu.memory_space<vmem>>, vector<6x392xf32>
    tpu.vector_store %arg16[%c126, %c0_155], %118 {strides = array<i32>} : memref<192x392xf32, #tpu.memory_space<vmem>>, vector<6x392xf32>,
    %c0_156 = arith.constant 0 : index
    %c58 = arith.constant 58 : index
    %120 = vector.load %arg18[%c0_156, %c58] : memref<6x512xf32, #tpu.memory_space<vmem>>, vector<6x392xf32>
    %c132_157 = arith.constant 132 : index
    %c0_158 = arith.constant 0 : index
    %121 = vector.load %arg16[%c132_157, %c0_158] : memref<192x392xf32, #tpu.memory_space<vmem>>, vector<6x392xf32>
    tpu.vector_store %arg16[%c132_157, %c0_158], %120 {strides = array<i32>} : memref<192x392xf32, #tpu.memory_space<vmem>>, vector<6x392xf32>,
    %c0_159 = arith.constant 0 : index
    %c59 = arith.constant 59 : index
    %122 = vector.load %arg18[%c0_159, %c59] : memref<6x512xf32, #tpu.memory_space<vmem>>, vector<6x392xf32>
    %c138 = arith.constant 138 : index
    %c0_160 = arith.constant 0 : index
    %123 = vector.load %arg16[%c138, %c0_160] : memref<192x392xf32, #tpu.memory_space<vmem>>, vector<6x392xf32>
    tpu.vector_store %arg16[%c138, %c0_160], %122 {strides = array<i32>} : memref<192x392xf32, #tpu.memory_space<vmem>>, vector<6x392xf32>,
    %c0_161 = arith.constant 0 : index
    %c60_162 = arith.constant 60 : index
    %124 = vector.load %arg18[%c0_161, %c60_162] : memref<6x512xf32, #tpu.memory_space<vmem>>, vector<6x392xf32>
    %c144 = arith.constant 144 : index
    %c0_163 = arith.constant 0 : index
    %125 = vector.load %arg16[%c144, %c0_163] : memref<192x392xf32, #tpu.memory_space<vmem>>, vector<6x392xf32>
    tpu.vector_store %arg16[%c144, %c0_163], %124 {strides = array<i32>} : memref<192x392xf32, #tpu.memory_space<vmem>>, vector<6x392xf32>,
    %c0_164 = arith.constant 0 : index
    %c0_165 = arith.constant 0 : index
    %126 = vector.load %arg18[%c0_164, %c0_165] : memref<6x512xf32, #tpu.memory_space<vmem>>, vector<6x392xf32>
    %c150 = arith.constant 150 : index
    %c0_166 = arith.constant 0 : index
    %127 = vector.load %arg16[%c150, %c0_166] : memref<192x392xf32, #tpu.memory_space<vmem>>, vector<6x392xf32>
    tpu.vector_store %arg16[%c150, %c0_166], %126 {strides = array<i32>} : memref<192x392xf32, #tpu.memory_space<vmem>>, vector<6x392xf32>,
    %c0_167 = arith.constant 0 : index
    %c0_168 = arith.constant 0 : index
    %128 = vector.load %arg18[%c0_167, %c0_168] : memref<6x512xf32, #tpu.memory_space<vmem>>, vector<6x392xf32>
    %c156 = arith.constant 156 : index
    %c0_169 = arith.constant 0 : index
    %129 = vector.load %arg16[%c156, %c0_169] : memref<192x392xf32, #tpu.memory_space<vmem>>, vector<6x392xf32>
    tpu.vector_store %arg16[%c156, %c0_169], %128 {strides = array<i32>} : memref<192x392xf32, #tpu.memory_space<vmem>>, vector<6x392xf32>,
    %c0_170 = arith.constant 0 : index
    %c0_171 = arith.constant 0 : index
    %130 = vector.load %arg18[%c0_170, %c0_171] : memref<6x512xf32, #tpu.memory_space<vmem>>, vector<6x392xf32>
    %c162 = arith.constant 162 : index
    %c0_172 = arith.constant 0 : index
    %131 = vector.load %arg16[%c162, %c0_172] : memref<192x392xf32, #tpu.memory_space<vmem>>, vector<6x392xf32>
    tpu.vector_store %arg16[%c162, %c0_172], %130 {strides = array<i32>} : memref<192x392xf32, #tpu.memory_space<vmem>>, vector<6x392xf32>,
    %c0_173 = arith.constant 0 : index
    %c0_174 = arith.constant 0 : index
    %132 = vector.load %arg18[%c0_173, %c0_174] : memref<6x512xf32, #tpu.memory_space<vmem>>, vector<6x392xf32>
    %c168 = arith.constant 168 : index
    %c0_175 = arith.constant 0 : index
    %133 = vector.load %arg16[%c168, %c0_175] : memref<192x392xf32, #tpu.memory_space<vmem>>, vector<6x392xf32>
    tpu.vector_store %arg16[%c168, %c0_175], %132 {strides = array<i32>} : memref<192x392xf32, #tpu.memory_space<vmem>>, vector<6x392xf32>,
    %c0_176 = arith.constant 0 : index
    %c0_177 = arith.constant 0 : index
    %134 = vector.load %arg18[%c0_176, %c0_177] : memref<6x512xf32, #tpu.memory_space<vmem>>, vector<6x392xf32>
    %c174 = arith.constant 174 : index
    %c0_178 = arith.constant 0 : index
    %135 = vector.load %arg16[%c174, %c0_178] : memref<192x392xf32, #tpu.memory_space<vmem>>, vector<6x392xf32>
    tpu.vector_store %arg16[%c174, %c0_178], %134 {strides = array<i32>} : memref<192x392xf32, #tpu.memory_space<vmem>>, vector<6x392xf32>,
    %c0_179 = arith.constant 0 : index
    %c0_180 = arith.constant 0 : index
    %136 = vector.load %arg18[%c0_179, %c0_180] : memref<6x512xf32, #tpu.memory_space<vmem>>, vector<6x392xf32>
    %c180 = arith.constant 180 : index
    %c0_181 = arith.constant 0 : index
    %137 = vector.load %arg16[%c180, %c0_181] : memref<192x392xf32, #tpu.memory_space<vmem>>, vector<6x392xf32>
    tpu.vector_store %arg16[%c180, %c0_181], %136 {strides = array<i32>} : memref<192x392xf32, #tpu.memory_space<vmem>>, vector<6x392xf32>,
    %c0_182 = arith.constant 0 : index
    %c0_183 = arith.constant 0 : index
    %138 = vector.load %arg18[%c0_182, %c0_183] : memref<6x512xf32, #tpu.memory_space<vmem>>, vector<6x392xf32>
    %c186 = arith.constant 186 : index
    %c0_184 = arith.constant 0 : index
    %139 = vector.load %arg16[%c186, %c0_184] : memref<192x392xf32, #tpu.memory_space<vmem>>, vector<6x392xf32>
    tpu.vector_store %arg16[%c186, %c0_184], %138 {strides = array<i32>} : memref<192x392xf32, #tpu.memory_space<vmem>>, vector<6x392xf32>,
    %c0_185 = arith.constant 0 : index
    %c0_186 = arith.constant 0 : index
    %140 = vector.load %arg4[%c0_185, %c0_186] : memref<16x192xbf16, #tpu.memory_space<vmem>>, vector<16x192xbf16>
    %c0_187 = arith.constant 0 : index
    %c0_188 = arith.constant 0 : index
    %141 = vector.load %arg16[%c0_187, %c0_188] : memref<192x392xf32, #tpu.memory_space<vmem>>, vector<192x392xf32>
    %142 = arith.truncf %141 : vector<192x392xf32> to vector<192x392xbf16>
    %cst_189 = arith.constant dense<0.000000e+00> : vector<16x392xf32>
    %143 = tpu.matmul %140, %142, %cst_189 {dimension_numbers = #tpu.dot_dimension_numbers<[1], [0], [0], [1], [0, 0, 1, 1], [], []>} : vector<16x192xbf16>, vector<192x392xbf16>, vector<16x392xf32> -> vector<16x392xf32>
    %c0_190 = arith.constant 0 : index
    %c0_191 = arith.constant 0 : index
    %144 = vector.load %arg5[%c0_190, %c0_191] : memref<16x1xf32, #tpu.memory_space<vmem>>, vector<16x1xf32>
    %145 = vector.broadcast %144 : vector<16x1xf32> to vector<16x392xf32>
    %146 = arith.addf %143, %145 : vector<16x392xf32>
    %147 = math.tanh %146 : vector<16x392xf32>
    %148 = arith.truncf %147 : vector<16x392xf32> to vector<16x392xbf16>
    %c0_192 = arith.constant 0 : index
    %c0_193 = arith.constant 0 : index
    %149 = vector.load %arg6[%c0_192, %c0_193] : memref<392x128xbf16, #tpu.memory_space<vmem>>, vector<392x128xbf16>
    %cst_194 = arith.constant dense<0.000000e+00> : vector<16x128xf32>
    %150 = tpu.matmul %148, %149, %cst_194 {dimension_numbers = #tpu.dot_dimension_numbers<[1], [0], [0], [1], [0, 0, 1, 1], [], []>} : vector<16x392xbf16>, vector<392x128xbf16>, vector<16x128xf32> -> vector<16x128xf32>
    %c0_195 = arith.constant 0 : index
    %c0_196 = arith.constant 0 : index
    %151 = vector.load %arg19[%c0_195, %c0_196] : memref<16x128xf32, #tpu.memory_space<vmem>>, vector<16x128xf32>
    tpu.vector_store %arg19[%c0_195, %c0_196], %150 {strides = array<i32>} : memref<16x128xf32, #tpu.memory_space<vmem>>, vector<16x128xf32>,
    %c0_197 = arith.constant 0 : index
    %c0_198 = arith.constant 0 : index
    %152 = vector.load %arg19[%c0_197, %c0_198] : memref<16x128xf32, #tpu.memory_space<vmem>>, vector<16x50xf32>
    %c0_199 = arith.constant 0 : index
    %c0_200 = arith.constant 0 : index
    %153 = vector.load %arg17[%c0_199, %c0_200] : memref<512x50xf32, #tpu.memory_space<vmem>>, vector<16x50xf32>
    tpu.vector_store %arg17[%c0_199, %c0_200], %152 {strides = array<i32>} : memref<512x50xf32, #tpu.memory_space<vmem>>, vector<16x50xf32>,
    %c0_201 = arith.constant 0 : index
    %c1_202 = arith.constant 1 : index
    %154 = vector.load %arg19[%c0_201, %c1_202] : memref<16x128xf32, #tpu.memory_space<vmem>>, vector<16x50xf32>
    %c16_203 = arith.constant 16 : index
    %c0_204 = arith.constant 0 : index
    %155 = vector.load %arg17[%c16_203, %c0_204] : memref<512x50xf32, #tpu.memory_space<vmem>>, vector<16x50xf32>
    tpu.vector_store %arg17[%c16_203, %c0_204], %154 {strides = array<i32>} : memref<512x50xf32, #tpu.memory_space<vmem>>, vector<16x50xf32>,
    %c0_205 = arith.constant 0 : index
    %c2_206 = arith.constant 2 : index
    %156 = vector.load %arg19[%c0_205, %c2_206] : memref<16x128xf32, #tpu.memory_space<vmem>>, vector<16x50xf32>
    %c32_207 = arith.constant 32 : index
    %c0_208 = arith.constant 0 : index
    %157 = vector.load %arg17[%c32_207, %c0_208] : memref<512x50xf32, #tpu.memory_space<vmem>>, vector<16x50xf32>
    tpu.vector_store %arg17[%c32_207, %c0_208], %156 {strides = array<i32>} : memref<512x50xf32, #tpu.memory_space<vmem>>, vector<16x50xf32>,
    %c0_209 = arith.constant 0 : index
    %c3_210 = arith.constant 3 : index
    %158 = vector.load %arg19[%c0_209, %c3_210] : memref<16x128xf32, #tpu.memory_space<vmem>>, vector<16x50xf32>
    %c48_211 = arith.constant 48 : index
    %c0_212 = arith.constant 0 : index
    %159 = vector.load %arg17[%c48_211, %c0_212] : memref<512x50xf32, #tpu.memory_space<vmem>>, vector<16x50xf32>
    tpu.vector_store %arg17[%c48_211, %c0_212], %158 {strides = array<i32>} : memref<512x50xf32, #tpu.memory_space<vmem>>, vector<16x50xf32>,
    %c0_213 = arith.constant 0 : index
    %c4_214 = arith.constant 4 : index
    %160 = vector.load %arg19[%c0_213, %c4_214] : memref<16x128xf32, #tpu.memory_space<vmem>>, vector<16x50xf32>
    %c64_215 = arith.constant 64 : index
    %c0_216 = arith.constant 0 : index
    %161 = vector.load %arg17[%c64_215, %c0_216] : memref<512x50xf32, #tpu.memory_space<vmem>>, vector<16x50xf32>
    tpu.vector_store %arg17[%c64_215, %c0_216], %160 {strides = array<i32>} : memref<512x50xf32, #tpu.memory_space<vmem>>, vector<16x50xf32>,
    %c0_217 = arith.constant 0 : index
    %c5_218 = arith.constant 5 : index
    %162 = vector.load %arg19[%c0_217, %c5_218] : memref<16x128xf32, #tpu.memory_space<vmem>>, vector<16x50xf32>
    %c80 = arith.constant 80 : index
    %c0_219 = arith.constant 0 : index
    %163 = vector.load %arg17[%c80, %c0_219] : memref<512x50xf32, #tpu.memory_space<vmem>>, vector<16x50xf32>
    tpu.vector_store %arg17[%c80, %c0_219], %162 {strides = array<i32>} : memref<512x50xf32, #tpu.memory_space<vmem>>, vector<16x50xf32>,
    %c0_220 = arith.constant 0 : index
    %c6_221 = arith.constant 6 : index
    %164 = vector.load %arg19[%c0_220, %c6_221] : memref<16x128xf32, #tpu.memory_space<vmem>>, vector<16x50xf32>
    %c96_222 = arith.constant 96 : index
    %c0_223 = arith.constant 0 : index
    %165 = vector.load %arg17[%c96_222, %c0_223] : memref<512x50xf32, #tpu.memory_space<vmem>>, vector<16x50xf32>
    tpu.vector_store %arg17[%c96_222, %c0_223], %164 {strides = array<i32>} : memref<512x50xf32, #tpu.memory_space<vmem>>, vector<16x50xf32>,
    %c0_224 = arith.constant 0 : index
    %c7_225 = arith.constant 7 : index
    %166 = vector.load %arg19[%c0_224, %c7_225] : memref<16x128xf32, #tpu.memory_space<vmem>>, vector<16x50xf32>
    %c112 = arith.constant 112 : index
    %c0_226 = arith.constant 0 : index
    %167 = vector.load %arg17[%c112, %c0_226] : memref<512x50xf32, #tpu.memory_space<vmem>>, vector<16x50xf32>
    tpu.vector_store %arg17[%c112, %c0_226], %166 {strides = array<i32>} : memref<512x50xf32, #tpu.memory_space<vmem>>, vector<16x50xf32>,
    %c0_227 = arith.constant 0 : index
    %c8_228 = arith.constant 8 : index
    %168 = vector.load %arg19[%c0_227, %c8_228] : memref<16x128xf32, #tpu.memory_space<vmem>>, vector<16x50xf32>
    %c128_229 = arith.constant 128 : index
    %c0_230 = arith.constant 0 : index
    %169 = vector.load %arg17[%c128_229, %c0_230] : memref<512x50xf32, #tpu.memory_space<vmem>>, vector<16x50xf32>
    tpu.vector_store %arg17[%c128_229, %c0_230], %168 {strides = array<i32>} : memref<512x50xf32, #tpu.memory_space<vmem>>, vector<16x50xf32>,
    %c0_231 = arith.constant 0 : index
    %c9_232 = arith.constant 9 : index
    %170 = vector.load %arg19[%c0_231, %c9_232] : memref<16x128xf32, #tpu.memory_space<vmem>>, vector<16x50xf32>
    %c144_233 = arith.constant 144 : index
    %c0_234 = arith.constant 0 : index
    %171 = vector.load %arg17[%c144_233, %c0_234] : memref<512x50xf32, #tpu.memory_space<vmem>>, vector<16x50xf32>
    tpu.vector_store %arg17[%c144_233, %c0_234], %170 {strides = array<i32>} : memref<512x50xf32, #tpu.memory_space<vmem>>, vector<16x50xf32>,
    %c0_235 = arith.constant 0 : index
    %c10_236 = arith.constant 10 : index
    %172 = vector.load %arg19[%c0_235, %c10_236] : memref<16x128xf32, #tpu.memory_space<vmem>>, vector<16x50xf32>
    %c160 = arith.constant 160 : index
    %c0_237 = arith.constant 0 : index
    %173 = vector.load %arg17[%c160, %c0_237] : memref<512x50xf32, #tpu.memory_space<vmem>>, vector<16x50xf32>
    tpu.vector_store %arg17[%c160, %c0_237], %172 {strides = array<i32>} : memref<512x50xf32, #tpu.memory_space<vmem>>, vector<16x50xf32>,
    %c0_238 = arith.constant 0 : index
    %c11_239 = arith.constant 11 : index
    %174 = vector.load %arg19[%c0_238, %c11_239] : memref<16x128xf32, #tpu.memory_space<vmem>>, vector<16x50xf32>
    %c176 = arith.constant 176 : index
    %c0_240 = arith.constant 0 : index
    %175 = vector.load %arg17[%c176, %c0_240] : memref<512x50xf32, #tpu.memory_space<vmem>>, vector<16x50xf32>
    tpu.vector_store %arg17[%c176, %c0_240], %174 {strides = array<i32>} : memref<512x50xf32, #tpu.memory_space<vmem>>, vector<16x50xf32>,
    %c0_241 = arith.constant 0 : index
    %c12_242 = arith.constant 12 : index
    %176 = vector.load %arg19[%c0_241, %c12_242] : memref<16x128xf32, #tpu.memory_space<vmem>>, vector<16x50xf32>
    %c192 = arith.constant 192 : index
    %c0_243 = arith.constant 0 : index
    %177 = vector.load %arg17[%c192, %c0_243] : memref<512x50xf32, #tpu.memory_space<vmem>>, vector<16x50xf32>
    tpu.vector_store %arg17[%c192, %c0_243], %176 {strides = array<i32>} : memref<512x50xf32, #tpu.memory_space<vmem>>, vector<16x50xf32>,
    %c0_244 = arith.constant 0 : index
    %c13_245 = arith.constant 13 : index
    %178 = vector.load %arg19[%c0_244, %c13_245] : memref<16x128xf32, #tpu.memory_space<vmem>>, vector<16x50xf32>
    %c208 = arith.constant 208 : index
    %c0_246 = arith.constant 0 : index
    %179 = vector.load %arg17[%c208, %c0_246] : memref<512x50xf32, #tpu.memory_space<vmem>>, vector<16x50xf32>
    tpu.vector_store %arg17[%c208, %c0_246], %178 {strides = array<i32>} : memref<512x50xf32, #tpu.memory_space<vmem>>, vector<16x50xf32>,
    %c0_247 = arith.constant 0 : index
    %c14_248 = arith.constant 14 : index
    %180 = vector.load %arg19[%c0_247, %c14_248] : memref<16x128xf32, #tpu.memory_space<vmem>>, vector<16x50xf32>
    %c224 = arith.constant 224 : index
    %c0_249 = arith.constant 0 : index
    %181 = vector.load %arg17[%c224, %c0_249] : memref<512x50xf32, #tpu.memory_space<vmem>>, vector<16x50xf32>
    tpu.vector_store %arg17[%c224, %c0_249], %180 {strides = array<i32>} : memref<512x50xf32, #tpu.memory_space<vmem>>, vector<16x50xf32>,
    %c0_250 = arith.constant 0 : index
    %c15_251 = arith.constant 15 : index
    %182 = vector.load %arg19[%c0_250, %c15_251] : memref<16x128xf32, #tpu.memory_space<vmem>>, vector<16x50xf32>
    %c240 = arith.constant 240 : index
    %c0_252 = arith.constant 0 : index
    %183 = vector.load %arg17[%c240, %c0_252] : memref<512x50xf32, #tpu.memory_space<vmem>>, vector<16x50xf32>
    tpu.vector_store %arg17[%c240, %c0_252], %182 {strides = array<i32>} : memref<512x50xf32, #tpu.memory_space<vmem>>, vector<16x50xf32>,
    %c0_253 = arith.constant 0 : index
    %c16_254 = arith.constant 16 : index
    %184 = vector.load %arg19[%c0_253, %c16_254] : memref<16x128xf32, #tpu.memory_space<vmem>>, vector<16x50xf32>
    %c256 = arith.constant 256 : index
    %c0_255 = arith.constant 0 : index
    %185 = vector.load %arg17[%c256, %c0_255] : memref<512x50xf32, #tpu.memory_space<vmem>>, vector<16x50xf32>
    tpu.vector_store %arg17[%c256, %c0_255], %184 {strides = array<i32>} : memref<512x50xf32, #tpu.memory_space<vmem>>, vector<16x50xf32>,
    %c0_256 = arith.constant 0 : index
    %c17_257 = arith.constant 17 : index
    %186 = vector.load %arg19[%c0_256, %c17_257] : memref<16x128xf32, #tpu.memory_space<vmem>>, vector<16x50xf32>
    %c272 = arith.constant 272 : index
    %c0_258 = arith.constant 0 : index
    %187 = vector.load %arg17[%c272, %c0_258] : memref<512x50xf32, #tpu.memory_space<vmem>>, vector<16x50xf32>
    tpu.vector_store %arg17[%c272, %c0_258], %186 {strides = array<i32>} : memref<512x50xf32, #tpu.memory_space<vmem>>, vector<16x50xf32>,
    %c0_259 = arith.constant 0 : index
    %c18_260 = arith.constant 18 : index
    %188 = vector.load %arg19[%c0_259, %c18_260] : memref<16x128xf32, #tpu.memory_space<vmem>>, vector<16x50xf32>
    %c288 = arith.constant 288 : index
    %c0_261 = arith.constant 0 : index
    %189 = vector.load %arg17[%c288, %c0_261] : memref<512x50xf32, #tpu.memory_space<vmem>>, vector<16x50xf32>
    tpu.vector_store %arg17[%c288, %c0_261], %188 {strides = array<i32>} : memref<512x50xf32, #tpu.memory_space<vmem>>, vector<16x50xf32>,
    %c0_262 = arith.constant 0 : index
    %c19_263 = arith.constant 19 : index
    %190 = vector.load %arg19[%c0_262, %c19_263] : memref<16x128xf32, #tpu.memory_space<vmem>>, vector<16x50xf32>
    %c304 = arith.constant 304 : index
    %c0_264 = arith.constant 0 : index
    %191 = vector.load %arg17[%c304, %c0_264] : memref<512x50xf32, #tpu.memory_space<vmem>>, vector<16x50xf32>
    tpu.vector_store %arg17[%c304, %c0_264], %190 {strides = array<i32>} : memref<512x50xf32, #tpu.memory_space<vmem>>, vector<16x50xf32>,
    %c0_265 = arith.constant 0 : index
    %c20_266 = arith.constant 20 : index
    %192 = vector.load %arg19[%c0_265, %c20_266] : memref<16x128xf32, #tpu.memory_space<vmem>>, vector<16x50xf32>
    %c320 = arith.constant 320 : index
    %c0_267 = arith.constant 0 : index
    %193 = vector.load %arg17[%c320, %c0_267] : memref<512x50xf32, #tpu.memory_space<vmem>>, vector<16x50xf32>
    tpu.vector_store %arg17[%c320, %c0_267], %192 {strides = array<i32>} : memref<512x50xf32, #tpu.memory_space<vmem>>, vector<16x50xf32>,
    %c0_268 = arith.constant 0 : index
    %c21_269 = arith.constant 21 : index
    %194 = vector.load %arg19[%c0_268, %c21_269] : memref<16x128xf32, #tpu.memory_space<vmem>>, vector<16x50xf32>
    %c336 = arith.constant 336 : index
    %c0_270 = arith.constant 0 : index
    %195 = vector.load %arg17[%c336, %c0_270] : memref<512x50xf32, #tpu.memory_space<vmem>>, vector<16x50xf32>
    tpu.vector_store %arg17[%c336, %c0_270], %194 {strides = array<i32>} : memref<512x50xf32, #tpu.memory_space<vmem>>, vector<16x50xf32>,
    %c0_271 = arith.constant 0 : index
    %c22_272 = arith.constant 22 : index
    %196 = vector.load %arg19[%c0_271, %c22_272] : memref<16x128xf32, #tpu.memory_space<vmem>>, vector<16x50xf32>
    %c352 = arith.constant 352 : index
    %c0_273 = arith.constant 0 : index
    %197 = vector.load %arg17[%c352, %c0_273] : memref<512x50xf32, #tpu.memory_space<vmem>>, vector<16x50xf32>
    tpu.vector_store %arg17[%c352, %c0_273], %196 {strides = array<i32>} : memref<512x50xf32, #tpu.memory_space<vmem>>, vector<16x50xf32>,
    %c0_274 = arith.constant 0 : index
    %c23_275 = arith.constant 23 : index
    %198 = vector.load %arg19[%c0_274, %c23_275] : memref<16x128xf32, #tpu.memory_space<vmem>>, vector<16x50xf32>
    %c368 = arith.constant 368 : index
    %c0_276 = arith.constant 0 : index
    %199 = vector.load %arg17[%c368, %c0_276] : memref<512x50xf32, #tpu.memory_space<vmem>>, vector<16x50xf32>
    tpu.vector_store %arg17[%c368, %c0_276], %198 {strides = array<i32>} : memref<512x50xf32, #tpu.memory_space<vmem>>, vector<16x50xf32>,
    %c0_277 = arith.constant 0 : index
    %c24_278 = arith.constant 24 : index
    %200 = vector.load %arg19[%c0_277, %c24_278] : memref<16x128xf32, #tpu.memory_space<vmem>>, vector<16x50xf32>
    %c384 = arith.constant 384 : index
    %c0_279 = arith.constant 0 : index
    %201 = vector.load %arg17[%c384, %c0_279] : memref<512x50xf32, #tpu.memory_space<vmem>>, vector<16x50xf32>
    tpu.vector_store %arg17[%c384, %c0_279], %200 {strides = array<i32>} : memref<512x50xf32, #tpu.memory_space<vmem>>, vector<16x50xf32>,
    %c0_280 = arith.constant 0 : index
    %c0_281 = arith.constant 0 : index
    %202 = vector.load %arg19[%c0_280, %c0_281] : memref<16x128xf32, #tpu.memory_space<vmem>>, vector<16x50xf32>
    %c400 = arith.constant 400 : index
    %c0_282 = arith.constant 0 : index
    %203 = vector.load %arg17[%c400, %c0_282] : memref<512x50xf32, #tpu.memory_space<vmem>>, vector<16x50xf32>
    tpu.vector_store %arg17[%c400, %c0_282], %202 {strides = array<i32>} : memref<512x50xf32, #tpu.memory_space<vmem>>, vector<16x50xf32>,
    %c0_283 = arith.constant 0 : index
    %c0_284 = arith.constant 0 : index
    %204 = vector.load %arg19[%c0_283, %c0_284] : memref<16x128xf32, #tpu.memory_space<vmem>>, vector<16x50xf32>
    %c416 = arith.constant 416 : index
    %c0_285 = arith.constant 0 : index
    %205 = vector.load %arg17[%c416, %c0_285] : memref<512x50xf32, #tpu.memory_space<vmem>>, vector<16x50xf32>
    tpu.vector_store %arg17[%c416, %c0_285], %204 {strides = array<i32>} : memref<512x50xf32, #tpu.memory_space<vmem>>, vector<16x50xf32>,
    %c0_286 = arith.constant 0 : index
    %c0_287 = arith.constant 0 : index
    %206 = vector.load %arg19[%c0_286, %c0_287] : memref<16x128xf32, #tpu.memory_space<vmem>>, vector<16x50xf32>
    %c432 = arith.constant 432 : index
    %c0_288 = arith.constant 0 : index
    %207 = vector.load %arg17[%c432, %c0_288] : memref<512x50xf32, #tpu.memory_space<vmem>>, vector<16x50xf32>
    tpu.vector_store %arg17[%c432, %c0_288], %206 {strides = array<i32>} : memref<512x50xf32, #tpu.memory_space<vmem>>, vector<16x50xf32>,
    %c0_289 = arith.constant 0 : index
    %c0_290 = arith.constant 0 : index
    %208 = vector.load %arg19[%c0_289, %c0_290] : memref<16x128xf32, #tpu.memory_space<vmem>>, vector<16x50xf32>
    %c448 = arith.constant 448 : index
    %c0_291 = arith.constant 0 : index
    %209 = vector.load %arg17[%c448, %c0_291] : memref<512x50xf32, #tpu.memory_space<vmem>>, vector<16x50xf32>
    tpu.vector_store %arg17[%c448, %c0_291], %208 {strides = array<i32>} : memref<512x50xf32, #tpu.memory_space<vmem>>, vector<16x50xf32>,
    %c0_292 = arith.constant 0 : index
    %c0_293 = arith.constant 0 : index
    %210 = vector.load %arg19[%c0_292, %c0_293] : memref<16x128xf32, #tpu.memory_space<vmem>>, vector<16x50xf32>
    %c464 = arith.constant 464 : index
    %c0_294 = arith.constant 0 : index
    %211 = vector.load %arg17[%c464, %c0_294] : memref<512x50xf32, #tpu.memory_space<vmem>>, vector<16x50xf32>
    tpu.vector_store %arg17[%c464, %c0_294], %210 {strides = array<i32>} : memref<512x50xf32, #tpu.memory_space<vmem>>, vector<16x50xf32>,
    %c0_295 = arith.constant 0 : index
    %c0_296 = arith.constant 0 : index
    %212 = vector.load %arg19[%c0_295, %c0_296] : memref<16x128xf32, #tpu.memory_space<vmem>>, vector<16x50xf32>
    %c480 = arith.constant 480 : index
    %c0_297 = arith.constant 0 : index
    %213 = vector.load %arg17[%c480, %c0_297] : memref<512x50xf32, #tpu.memory_space<vmem>>, vector<16x50xf32>
    tpu.vector_store %arg17[%c480, %c0_297], %212 {strides = array<i32>} : memref<512x50xf32, #tpu.memory_space<vmem>>, vector<16x50xf32>,
    %c0_298 = arith.constant 0 : index
    %c0_299 = arith.constant 0 : index
    %214 = vector.load %arg19[%c0_298, %c0_299] : memref<16x128xf32, #tpu.memory_space<vmem>>, vector<16x50xf32>
    %c496 = arith.constant 496 : index
    %c0_300 = arith.constant 0 : index
    %215 = vector.load %arg17[%c496, %c0_300] : memref<512x50xf32, #tpu.memory_space<vmem>>, vector<16x50xf32>
    tpu.vector_store %arg17[%c496, %c0_300], %214 {strides = array<i32>} : memref<512x50xf32, #tpu.memory_space<vmem>>, vector<16x50xf32>,
    %c0_301 = arith.constant 0 : index
    %c0_302 = arith.constant 0 : index
    %216 = vector.load %arg7[%c0_301, %c0_302] : memref<120x512xbf16, #tpu.memory_space<vmem>>, vector<120x512xbf16>
    %c0_303 = arith.constant 0 : index
    %c0_304 = arith.constant 0 : index
    %217 = vector.load %arg17[%c0_303, %c0_304] : memref<512x50xf32, #tpu.memory_space<vmem>>, vector<512x50xf32>
    %218 = arith.truncf %217 : vector<512x50xf32> to vector<512x50xbf16>
    %cst_305 = arith.constant dense<0.000000e+00> : vector<120x50xf32>
    %219 = tpu.matmul %216, %218, %cst_305 {dimension_numbers = #tpu.dot_dimension_numbers<[1], [0], [0], [1], [0, 0, 1, 1], [], []>} : vector<120x512xbf16>, vector<512x50xbf16>, vector<120x50xf32> -> vector<120x50xf32>
    %c0_306 = arith.constant 0 : index
    %c0_307 = arith.constant 0 : index
    %220 = vector.load %arg8[%c0_306, %c0_307] : memref<120x1xf32, #tpu.memory_space<vmem>>, vector<120x1xf32>
    %221 = vector.broadcast %220 : vector<120x1xf32> to vector<120x50xf32>
    %222 = arith.addf %219, %221 : vector<120x50xf32>
    %223 = math.tanh %222 : vector<120x50xf32>
    %224 = arith.truncf %223 : vector<120x50xf32> to vector<120x50xbf16>
    %c0_308 = arith.constant 0 : index
    %c0_309 = arith.constant 0 : index
    %225 = vector.load %arg9[%c0_308, %c0_309] : memref<50x2xbf16, #tpu.memory_space<vmem>>, vector<50x2xbf16>
    %cst_310 = arith.constant dense<0.000000e+00> : vector<120x2xf32>
    %226 = tpu.matmul %224, %225, %cst_310 {dimension_numbers = #tpu.dot_dimension_numbers<[1], [0], [0], [1], [0, 0, 1, 1], [], []>} : vector<120x50xbf16>, vector<50x2xbf16>, vector<120x2xf32> -> vector<120x2xf32>
    %c0_311 = arith.constant 0 : index
    %c0_312 = arith.constant 0 : index
    %227 = vector.load %arg10[%c0_311, %c0_312] : memref<84x120xbf16, #tpu.memory_space<vmem>>, vector<84x120xbf16>
    %228 = arith.truncf %226 : vector<120x2xf32> to vector<120x2xbf16>
    %cst_313 = arith.constant dense<0.000000e+00> : vector<84x2xf32>
    %229 = tpu.matmul %227, %228, %cst_313 {dimension_numbers = #tpu.dot_dimension_numbers<[1], [0], [0], [1], [0, 0, 1, 1], [], []>} : vector<84x120xbf16>, vector<120x2xbf16>, vector<84x2xf32> -> vector<84x2xf32>
    %c0_314 = arith.constant 0 : index
    %c0_315 = arith.constant 0 : index
    %230 = vector.load %arg11[%c0_314, %c0_315] : memref<84x1xf32, #tpu.memory_space<vmem>>, vector<84x1xf32>
    %231 = vector.broadcast %230 : vector<84x1xf32> to vector<84x2xf32>
    %232 = arith.addf %229, %231 : vector<84x2xf32>
    %233 = math.tanh %232 : vector<84x2xf32>
    %c0_316 = arith.constant 0 : index
    %c0_317 = arith.constant 0 : index
    %234 = vector.load %arg12[%c0_316, %c0_317] : memref<10x84xbf16, #tpu.memory_space<vmem>>, vector<10x84xbf16>
    %235 = arith.truncf %233 : vector<84x2xf32> to vector<84x2xbf16>
    %cst_318 = arith.constant dense<0.000000e+00> : vector<10x2xf32>
    %236 = tpu.matmul %234, %235, %cst_318 {dimension_numbers = #tpu.dot_dimension_numbers<[1], [0], [0], [1], [0, 0, 1, 1], [], []>} : vector<10x84xbf16>, vector<84x2xbf16>, vector<10x2xf32> -> vector<10x2xf32>
    %c0_319 = arith.constant 0 : index
    %c0_320 = arith.constant 0 : index
    %237 = vector.load %arg13[%c0_319, %c0_320] : memref<10x1xf32, #tpu.memory_space<vmem>>, vector<10x1xf32>
    %238 = vector.broadcast %237 : vector<10x1xf32> to vector<10x2xf32>
    %239 = arith.addf %236, %238 : vector<10x2xf32>
    %c0_321 = arith.constant 0 : index
    %c0_322 = arith.constant 0 : index
    %240 = vector.load %arg14[%c0_321, %c0_322] : memref<10x2xf32, #tpu.memory_space<vmem>>, vector<10x2xf32>
    tpu.vector_store %arg14[%c0_321, %c0_322], %239 {strides = array<i32>} : memref<10x2xf32, #tpu.memory_space<vmem>>, vector<10x2xf32>,
    return
  }
}

</mosaic_0001>

<bundles_post_ra>
// kernel: lenet_forward.1
= control target key start
LH: loop header
LB: loop body
LE: loop exit
PB: predicated region body
PF: predicated region fallthrough
CT: control target
= control target key end

     0   :  { %19 = vsyncpa [#allocation8], 0  ;;  %s11480_s0 = inlined_call_operand.vmem [shape: f32[1,2304], index: 0, kind: input, shape index: {}]   ;;  %s11481_s1 = inlined_call_operand.hbm [shape: bf16[6,32], index: 1, kind: input, shape index: {}]   ;;  %s11482_s2 = inlined_call_operand.vmem [shape: f32[6,1], index: 2, kind: input, shape index: {}]   ;;  %s11483_s3 = inlined_call_operand.hbm [shape: bf16[2048,512], index: 3, kind: input, shape index: {}]   ;;  %s11484_s4 = inlined_call_operand.hbm [shape: bf16[16,192], index: 4, kind: input, shape index: {}]   ;;  %s11485_s5 = inlined_call_operand.vmem [shape: f32[16,1], index: 5, kind: input, shape index: {}]   ;;  %s11486_s6 = inlined_call_operand.hbm [shape: bf16[392,128], index: 6, kind: input, shape index: {}]   ;;  %s11487_s7 = inlined_call_operand.hbm [shape: bf16[120,512], index: 7, kind: input, shape index: {}]   ;;  %s11488_s8 = inlined_call_operand.vmem [shape: f32[120,1], index: 8, kind: input, shape index: {}]   ;;  %s11489_s9 = inlined_call_operand.vmem [shape: bf16[50,2], index: 9, kind: input, shape index: {}]   ;;  %s11490_s10 = inlined_call_operand.hbm [shape: bf16[84,120], index: 10, kind: input, shape index: {}]   ;;  %s11491_s11 = inlined_call_operand.vmem [shape: f32[84,1], index: 11, kind: input, shape index: {}]   ;;  %s11492_s12 = inlined_call_operand.hbm [shape: bf16[10,84], index: 12, kind: input, shape index: {}]   ;;  %s11493_s13 = inlined_call_operand.vmem [shape: f32[10,1], index: 13, kind: input, shape index: {}]   ;;  %s11494_s14 = inlined_call_operand.vmem [shape: f32[10,2], index: 14, kind: output, shape index: {}]  }
   0x1   :  { %20 = vsyncpa [#allocation10], 0 }
   0x2   :  { %21 = vsyncpa [#allocation13], 0 }
   0x3   :  { %22 = vsyncpa [#allocation16], 0  ;;  %s10023_s29 = smov [#allocation9]   ;;  %s9861_s17 = scalar_lea.hbm %s11483_s3, 65536 }
   0x4   :  { %s42_s30 = sshll.u32 %s10023_s29, 4  ;;  %p9862_p0 = scmp.ne.s32.totalorder %s11483_s3, %s9861_s17  ;;  %s43_s30 = int_to_ptr.vmem [resolvable:$true] %s42_s30 }
   0x5   :  { %p9865_p1 = scmp.lt.u32.totalorder %s9861_s17, %s11483_s3 }
   0x7   :  { %p9867_p2 = pnand %p9865_p1, %p9862_p0 }
   0x9   :  { %9870 = shalt.err (!%p9867_p2)
}
   0xa   :  { %s9871_s22 = scalar_lea.vmem %s43_s30, 65536  ;;  %p9876_p4 = scmp.lt.s32.totalorder %s43_s30, %s43_s30 }
   0xb   :  { %p9872_p3 = scmp.ne.s32.totalorder %s43_s30, %s9871_s22  ;;  %p9877_p5 = scmp.lt.s32.totalorder %s9871_s22, %s9871_s22 }
   0xd   :  { %p9878_p6 = por %p9877_p5, %p9876_p4 }
   0xf   :  { %p9879_p7 = pnand %p9878_p6, %p9872_p3 }
  0x11   :  { %9882 = shalt.err (!%p9879_p7)
}
  0x12   :  { %s11495_s23 = smov 256   ;;  %s10025_s24 = smov 16  }
  0x13   :  { %48 = dma.hbm_to_vmem [thread:$0]  %s11483_s3, 65536, %s43_s30, [#allocation10], %s11495_s23, %s11495_s23, %s10025_s24  }
  0x14   :  { %s10026_s27 = smov [#allocation12]   ;;  %s9883_s16 = scalar_lea.hbm %s11486_s6, 3136 }
  0x15   :  { %s68_s28 = sshll.u32 %s10026_s27, 4  ;;  %p9884_p8 = scmp.ne.s32.totalorder %s11486_s6, %s9883_s16  ;;  %s69_s28 = int_to_ptr.vmem [resolvable:$true] %s68_s28 }
  0x16   :  { %p9887_p9 = scmp.lt.u32.totalorder %s9883_s16, %s11486_s6 }
  0x18   :  { %p9889_p10 = pnand %p9887_p9, %p9884_p8 }
  0x1a   :  { %9892 = shalt.err (!%p9889_p10)
}
  0x1b   :  { %s9893_s21 = scalar_lea.vmem %s69_s28, 3136  ;;  %p9898_p12 = scmp.lt.s32.totalorder %s69_s28, %s69_s28 }
  0x1c   :  { %p9894_p11 = scmp.ne.s32.totalorder %s69_s28, %s9893_s21  ;;  %p9899_p13 = scmp.lt.s32.totalorder %s9893_s21, %s9893_s21 }
  0x1e   :  { %p9900_p0 = por %p9899_p13, %p9898_p12 }
  0x20   :  { %p9901_p1 = pnand %p9900_p0, %p9894_p11 }
  0x22   :  { %9904 = shalt.err (!%p9901_p1)
}
  0x23   :  { %s10027_s3 = smov 64   ;;  %s10028_s30 = smov 4  }
  0x24   :  { %74 = dma.hbm_to_vmem [thread:$0]  %s11486_s6, 3136, %s69_s28, [#allocation13], %s10027_s3, %s10027_s3, %s10028_s30  }
  0x25   :  { %s10029_s26 = smov [#allocation15]   ;;  %s10030_s29 = smov [#allocation7]  }
  0x26   :  { %s96_s27 = sshll.u32 %s10029_s26, 4  ;;  %s31_s15 = sshll.u32 %s10030_s29, 4  ;;  %s97_s27 = int_to_ptr.vmem [resolvable:$true] %s96_s27  ;;  %s32_s15 = int_to_ptr.vmem [resolvable:$true] %s31_s15 }
  0x27   :  { %s9905_s18 = scalar_lea.hbm %s11490_s10, 704 }
  0x28   :  { %p9906_p2 = scmp.ne.s32.totalorder %s11490_s10, %s9905_s18  ;;  %p9909_p3 = scmp.lt.u32.totalorder %s9905_s18, %s11490_s10 }
  0x2a   :  { %p9911_p4 = pnand %p9909_p3, %p9906_p2 }
  0x2c   :  { %9914 = shalt.err (!%p9911_p4)
}
  0x2d   :  { %s9915_s6 = scalar_lea.vmem %s97_s27, 704  ;;  %p9920_p6 = scmp.lt.s32.totalorder %s97_s27, %s97_s27 }
  0x2e   :  { %p9916_p5 = scmp.ne.s32.totalorder %s97_s27, %s9915_s6  ;;  %p9921_p7 = scmp.lt.s32.totalorder %s9915_s6, %s9915_s6 }
  0x30   :  { %p9922_p8 = por %p9921_p7, %p9920_p6 }
  0x32   :  { %p9923_p9 = pnand %p9922_p8, %p9916_p5 }
  0x34   :  { %9926 = shalt.err (!%p9923_p9)
}
  0x35   :  { %102 = dma.hbm_to_vmem [thread:$0]  %s11490_s10, 704, %s97_s27, [#allocation16], %s10027_s3, %s10027_s3, %s10028_s30  }
  0x36   :  { %s9927_s23 = scalar_lea.hbm %s11481_s1, 64 }
  0x37   :  { %p9928_p10 = scmp.ne.s32.totalorder %s11481_s1, %s9927_s23  ;;  %p9931_p11 = scmp.lt.u32.totalorder %s9927_s23, %s11481_s1 }
  0x39   :  { %p9933_p12 = pnand %p9931_p11, %p9928_p10 }
  0x3b   :  { %9936 = shalt.err (!%p9933_p12)
}
  0x3c   :  { %s9937_s19 = scalar_lea.vmem %s32_s15, 64  ;;  %p9942_p0 = scmp.lt.s32.totalorder %s32_s15, %s32_s15 }
  0x3d   :  { %p9938_p13 = scmp.ne.s32.totalorder %s32_s15, %s9937_s19  ;;  %p9943_p1 = scmp.lt.s32.totalorder %s9937_s19, %s9937_s19 }
  0x3f   :  { %p9944_p2 = por %p9943_p1, %p9942_p0 }
  0x41   :  { %p9945_p3 = pnand %p9944_p2, %p9938_p13 }
  0x43   :  { %9948 = shalt.err (!%p9945_p3)
}
  0x44   :  { %34 = dma.hbm_to_vmem [thread:$0]  %s11481_s1, 64, %s32_s15, [#allocation8]  }
  0x45   :  { %s10031_s20 = smov [#allocation11]   ;;  %s9949_s22 = scalar_lea.hbm %s11484_s4, 256 }
  0x46   :  { %s54_s21 = sshll.u32 %s10031_s20, 4  ;;  %p9950_p4 = scmp.ne.s32.totalorder %s11484_s4, %s9949_s22  ;;  %s55_s21 = int_to_ptr.vmem [resolvable:$true] %s54_s21 }
  0x47   :  { %p9953_p5 = scmp.lt.u32.totalorder %s9949_s22, %s11484_s4 }
  0x49   :  { %p9955_p6 = pnand %p9953_p5, %p9950_p4 }
  0x4b   :  { %9958 = shalt.err (!%p9955_p6)
}
  0x4c   :  { %s9959_s16 = scalar_lea.vmem %s55_s21, 256  ;;  %p9964_p8 = scmp.lt.s32.totalorder %s55_s21, %s55_s21 }
  0x4d   :  { %p9960_p7 = scmp.ne.s32.totalorder %s55_s21, %s9959_s16  ;;  %p9965_p9 = scmp.lt.s32.totalorder %s9959_s16, %s9959_s16 }
  0x4f   :  { %p9966_p10 = por %p9965_p9, %p9964_p8 }
  0x51   :  { %p9967_p11 = pnand %p9966_p10, %p9960_p7 }
  0x53   :  { %9970 = shalt.err (!%p9967_p11)
}
  0x54   :  { %s10032_s1 = smov 128   ;;  %s10033_s15 = smov 8  }
  0x55   :  { %60 = dma.hbm_to_vmem [thread:$0]  %s11484_s4, 256, %s55_s21, [#allocation10], %s10032_s1, %s10032_s1, %s10033_s15  }
  0x56   :  { %s10034_s19 = smov [#allocation14]   ;;  %s10035_s27 = smov [#allocation17]  }
  0x57   :  { %s80_s10 = sshll.u32 %s10034_s19, 4  ;;  %s110_s20 = sshll.u32 %s10035_s27, 4  ;;  %s81_s10 = int_to_ptr.vmem [resolvable:$true] %s80_s10  ;;  %s111_s20 = int_to_ptr.vmem [resolvable:$true] %s110_s20 }
  0x58   :  { %s9971_s22 = scalar_lea.hbm %s11487_s7, 3840 }
  0x59   :  { %p9972_p12 = scmp.ne.s32.totalorder %s11487_s7, %s9971_s22  ;;  %p9975_p13 = scmp.lt.u32.totalorder %s9971_s22, %s11487_s7 }
  0x5b   :  { %p9977_p0 = pnand %p9975_p13, %p9972_p12 }
  0x5d   :  { %9980 = shalt.err (!%p9977_p0)
}
  0x5e   :  { %s9981_s4 = scalar_lea.vmem %s81_s10, 3840  ;;  %p9986_p2 = scmp.lt.s32.totalorder %s81_s10, %s81_s10 }
  0x5f   :  { %p9982_p1 = scmp.ne.s32.totalorder %s81_s10, %s9981_s4  ;;  %p9987_p3 = scmp.lt.s32.totalorder %s9981_s4, %s9981_s4 }
  0x61   :  { %p9988_p4 = por %p9987_p3, %p9986_p2 }
  0x63   :  { %p9989_p5 = pnand %p9988_p4, %p9982_p1 }
  0x65   :  { %9992 = shalt.err (!%p9989_p5)
}
  0x66   :  { %s11508_s21 = smov 256   ;;  %s9993_s18 = scalar_lea.hbm %s11492_s12, 128 }
  0x67   :  { %86 = dma.hbm_to_vmem [thread:$0]  %s11487_s7, 3840, %s81_s10, [#allocation13], %s11508_s21, %s11508_s21, %s10025_s24  }
  0x68   :  { %p9994_p6 = scmp.ne.s32.totalorder %s11492_s12, %s9993_s18  ;;  %p9997_p7 = scmp.lt.u32.totalorder %s9993_s18, %s11492_s12 }
  0x6a   :  { %p9999_p8 = pnand %p9997_p7, %p9994_p6 }
  0x6c   :  { %10002 = shalt.err (!%p9999_p8)
}
  0x6d   :  { %s10003_s22 = scalar_lea.vmem %s111_s20, 128  ;;  %p10008_p10 = scmp.lt.s32.totalorder %s111_s20, %s111_s20 }
  0x6e   :  { %p10004_p9 = scmp.ne.s32.totalorder %s111_s20, %s10003_s22  ;;  %p10009_p11 = scmp.lt.s32.totalorder %s10003_s22, %s10003_s22 }
  0x70   :  { %p10010_p12 = por %p10009_p11, %p10008_p10 }
  0x72   :  { %p10011_p13 = pnand %p10010_p12, %p10004_p9 }
  0x74   :  { %10014 = shalt.err (!%p10011_p13)
}
  0x75   :  { %116 = dma.hbm_to_vmem [thread:$0]  %s11492_s12, 128, %s111_s20, [#allocation16], %s10027_s3, %s10027_s3, %s10028_s30  }
  0x76   :  { %10015 = dma.done.wait [#allocation8], 64  }
  0x77   :  { %10016 = vsyncadd [#allocation8], 4294967232 }
  0x78   :  { %10017 = dma.done.wait [#allocation10], 65792  }
  0x79   :  { %10018 = vsyncadd [#allocation10], 4294901504 }
  0x7a   :  { %10019 = dma.done.wait [#allocation13], 6976  }
  0x7b   :  { %10020 = vsyncadd [#allocation13], 4294960320 }
  0x7c   :  { %10021 = dma.done.wait [#allocation16], 832  }
  0x7d   :  { %10022 = vsyncadd [#allocation16], 4294966464  ;;  %v10268_v0 = vld [vmem:[%s11480_s0] sm:$0xff]  ;;  %s10036_s26 = smov 126   ;;  %s10037_s23 = smov 127   ;;  %v178_v2 = vld [vmem:[%s11480_s0 + $0x8] sm:$0xff] }
  0x7e   :  { %183 = vrot.lane.b32.xlu1 %v10268_v0, %s10036_s26  ;;  %154 = vrot.lane.b32.xlu0 %v10268_v0, %s10037_s23  ;;  %v10277_v1 = vld [vmem:[%s11480_s0 + $0x1] sm:$0xff]  ;;  %143 = vst [vmem:[#allocation2] ss:$8 sm:$0xf] %v10268_v0  ;;  %s10038_s4 = smov 125   ;;  %s11499_s21 = smov 124  }
  0x7f   :  { %144 = vst [vmem:[#allocation2] ss:$8 sm:$0xf0] %v10268_v0  ;;  %800 = vst [vmem:[#allocation2 + $0x181] ss:$8 sm:$0xf] %v10268_v0 }
  0x80   :  { %808 = vst [vmem:[#allocation2 + $0x182] ss:$8 sm:$0xf] %v10268_v0  ;;  %816 = vst [vmem:[#allocation2 + $0x183] ss:$8 sm:$0xf] %v10268_v0 }
  0x81   :  { %824 = vst [vmem:[#allocation2 + $0x184] ss:$8 sm:$0xf] %v10268_v0  ;;  %832 = vst [vmem:[#allocation2 + $0x185] ss:$8 sm:$0xf] %v10268_v0 }
  0x82   :  { %840 = vst [vmem:[#allocation2 + $0x186] ss:$8 sm:$0xf] %v10268_v0  ;;  %848 = vst [vmem:[#allocation2 + $0x187] ss:$8 sm:$0xf] %v10268_v0  ;;  %185 = vrot.lane.b32.xlu1 %v178_v2, %s10036_s26  ;;  %156 = vrot.lane.b32.xlu0 %v178_v2, %s10037_s23 }
  0x83   :  { %801 = vst [vmem:[#allocation2 + $0x181] ss:$8 sm:$0xf0] %v10268_v0  ;;  %809 = vst [vmem:[#allocation2 + $0x182] ss:$8 sm:$0xf0] %v10268_v0 }
  0x84   :  { %817 = vst [vmem:[#allocation2 + $0x183] ss:$8 sm:$0xf0] %v10268_v0  ;;  %825 = vst [vmem:[#allocation2 + $0x184] ss:$8 sm:$0xf0] %v10268_v0 }
  0x85   :  { %833 = vst [vmem:[#allocation2 + $0x185] ss:$8 sm:$0xf0] %v10268_v0  ;;  %841 = vst [vmem:[#allocation2 + $0x186] ss:$8 sm:$0xf0] %v10268_v0 }
  0x86   :  { %849 = vst [vmem:[#allocation2 + $0x187] ss:$8 sm:$0xf0] %v10268_v0  ;;  %684 = vst [vmem:[#allocation2 + $0x104] ss:$8 sm:$0xf] %v10277_v1  ;;  %213 = vrot.lane.b32.xlu1 %v178_v2, %s10038_s4  ;;  %211 = vrot.lane.b32.xlu0 %v10268_v0, %s10038_s4 }
  0x87   :  { %685 = vst [vmem:[#allocation2 + $0x104] ss:$8 sm:$0xf0] %v10277_v1  ;;  %s10040_s16 = smov 96   ;;  %s10041_s1 = smov 95   ;;  %v690_v3 = vld [vmem:[%s11480_s0 + $0x9] sm:$0xff] }
  0x88   :  { %s10042_s15 = smov 94   ;;  %s10043_s17 = smov 93   ;;  %v179_v4 = vld [vmem:[%s11480_s0 + $0x10] sm:$0x1]  ;;  %v10054_v8 = vmov 0   ;;  %v142_v11 = vld [vmem:[%s11480_s0 + $0x8] sm:$0xff] }
  0x89   :  { %s10044_s18 = smov 92   ;;  %s10045_s19 = smov 63   ;;  %v150_v5 = vld [vmem:[%s11480_s0 + $0x10] sm:$0x1]  ;;  %991 = vmatprep.mubr.bf16.mxu0 %v10054_v8  ;;  %1032 = vmatprep.mubr.bf16.mxu1 %v10054_v8  ;;  %vm163_vm0 = vcmask 1046528   ;;  %vm193_vm1 = vcmask 1031168  }
  0x8a   :  { %241 = vrot.lane.b32.xlu1 %v178_v2, %s11499_s21  ;;  %239 = vrot.lane.b32.xlu0 %v10268_v0, %s11499_s21  ;;  %s10046_s27 = smov 62   ;;  %s10047_s6 = smov 61   ;;  %v235_v6 = vld [vmem:[%s11480_s0 + $0x10] sm:$0x1]  ;;  %vm165_vm2 = vcmask 1039360   ;;  %vm221_vm3 = vcmask 1022976  }
  0x8b   :  { %s10048_s28 = smov 60   ;;  %s10049_s22 = smov 32   ;;  %v207_v7 = vld [vmem:[%s11480_s0 + $0x10] sm:$0x1]  ;;  %8906 = vset.pattern.permute.xlu1 %v10054_v8  ;;  %8907 = vset.pattern.permute.xlu0 %v10054_v8  ;;  %v691_v40 = vld [vmem:[%s11480_s0 + $0x11] sm:$0x1] }
  0x8c   :  { %s10050_s7 = smov 31   ;;  %s11497_s24 = smov 30   ;;  %v291_v9 = vld [vmem:[%s11480_s0 + $0x10] sm:$0x1]  ;;  %vm249_vm4 = vcmask 1014784   ;;  %vm277_vm5 = vcmask 785408  }
  0x8d   :  { %s11498_s10 = smov 29   ;;  %s11496_s30 = smov 28   ;;  %v263_v10 = vld [vmem:[%s11480_s0 + $0x10] sm:$0x1]  ;;  %v745_v49 = vld [vmem:[%s11480_s0 + $0x11] sm:$0x1] }
  0x8e   :  { %269 = vrot.lane.b32.xlu1 %v178_v2, %s10040_s16  ;;  %267 = vrot.lane.b32.xlu0 %v10268_v0, %s10040_s16  ;;  %146 = vst [vmem:[#allocation2 + $0x40] ss:$8 sm:$0xf] %v142_v11  ;;  %147 = vst [vmem:[#allocation2 + $0x40] ss:$8 sm:$0xf0] %v142_v11 }
  0x8f   :  { %803 = vst [vmem:[#allocation2 + $0x1c1] ss:$8 sm:$0xf] %v142_v11  ;;  %811 = vst [vmem:[#allocation2 + $0x1c2] ss:$8 sm:$0xf] %v142_v11 }
  0x90   :  { %819 = vst [vmem:[#allocation2 + $0x1c3] ss:$8 sm:$0xf] %v142_v11  ;;  %827 = vst [vmem:[#allocation2 + $0x1c4] ss:$8 sm:$0xf] %v142_v11 }
  0x91   :  { %835 = vst [vmem:[#allocation2 + $0x1c5] ss:$8 sm:$0xf] %v142_v11  ;;  %843 = vst [vmem:[#allocation2 + $0x1c6] ss:$8 sm:$0xf] %v142_v11 }
  0x92   :  { %297 = vrot.lane.b32.xlu1 %v178_v2, %s10041_s1  ;;  %295 = vrot.lane.b32.xlu0 %v10268_v0, %s10041_s1  ;;  %851 = vst [vmem:[#allocation2 + $0x1c7] ss:$8 sm:$0xf] %v142_v11  ;;  %804 = vst [vmem:[#allocation2 + $0x1c1] ss:$8 sm:$0xf0] %v142_v11 }
  0x93   :  { %812 = vst [vmem:[#allocation2 + $0x1c2] ss:$8 sm:$0xf0] %v142_v11  ;;  %820 = vst [vmem:[#allocation2 + $0x1c3] ss:$8 sm:$0xf0] %v142_v11 }
  0x94   :  { %828 = vst [vmem:[#allocation2 + $0x1c4] ss:$8 sm:$0xf0] %v142_v11  ;;  %836 = vst [vmem:[#allocation2 + $0x1c5] ss:$8 sm:$0xf0] %v142_v11 }
  0x95   :  { %844 = vst [vmem:[#allocation2 + $0x1c6] ss:$8 sm:$0xf0] %v142_v11  ;;  %852 = vst [vmem:[#allocation2 + $0x1c7] ss:$8 sm:$0xf0] %v142_v11 }
  0x96   :  { %325 = vrot.lane.b32.xlu1 %v178_v2, %s10042_s15  ;;  %323 = vrot.lane.b32.xlu0 %v10268_v0, %s10042_s15  ;;  %v347_v12 = vld [vmem:[%s11480_s0 + $0x10] sm:$0x1]  ;;  %s11509_s29 = smov 29   ;;  %v718_v50 = vld [vmem:[%s11480_s0 + $0x11] sm:$0x1]  ;;  %vm305_vm6 = vcmask 777216  }
  0x97   :  { %v319_v13 = vld [vmem:[%s11480_s0 + $0x10] sm:$0x1]  ;;  %v772_v57 = vld [vmem:[%s11480_s0 + $0x11] sm:$0x1]  ;;  %vm333_vm7 = vcmask 769024   ;;  %vm361_vm8 = vcmask 760832  }
  0x98   :  { %v403_v14 = vld [vmem:[%s11480_s0 + $0x10] sm:$0x1]  ;;  %vm389_vm9 = vcmask 752640   ;;  %vm417_vm10 = vcmask 523264   ;;  %vm445_vm11 = vcmask 515072   ;;  %vm473_vm12 = vcmask 506880  }
  0x99   :  { %v375_v15 = vld [vmem:[%s11480_s0 + $0x10] sm:$0x1]  ;;  %vm11501_vm13 = vcmask 498688   ;;  %vm11502_vm14 = vcmask 490496   ;;  %vm557_vm15 = vcmask 261120   ;;  %s10057_s12 = smov 98  }
  0x9a   :  { %353 = vrot.lane.b32.xlu1 %v178_v2, %s10043_s17  ;;  %351 = vrot.lane.b32.xlu0 %v10268_v0, %s10043_s17  ;;  %v459_v16 = vld [vmem:[%s11480_s0 + $0x10] sm:$0x1]  ;;  %s10061_s20 = smov 113   ;;  %s10066_s25 = smov 83  }
  0x9b   :  { %v431_v17 = vld [vmem:[%s11480_s0 + $0x10] sm:$0x1] }
  0x9c   :  { %v515_v18 = vld [vmem:[%s11480_s0 + $0x10] sm:$0x1] }
  0x9d   :  { %v487_v19 = vld [vmem:[%s11480_s0 + $0x10] sm:$0x1] }
  0x9e   :  { %381 = vrot.lane.b32.xlu1 %v178_v2, %s10044_s18  ;;  %379 = vrot.lane.b32.xlu0 %v10268_v0, %s10044_s18  ;;  %v571_v22 = vld [vmem:[%s11480_s0 + $0x10] sm:$0x1] }
  0x9f   :  { %v543_v23 = vld [vmem:[%s11480_s0 + $0x10] sm:$0x1] }
  0xa0   :  { %v627_v30 = vld [vmem:[%s11480_s0 + $0x10] sm:$0x1] }
  0xa1   :  { %v599_v31 = vld [vmem:[%s11480_s0 + $0x10] sm:$0x1] }
  0xa2   :  { %409 = vrot.lane.b32.xlu1 %v178_v2, %s10027_s3  ;;  %407 = vrot.lane.b32.xlu0 %v10268_v0, %s10027_s3  ;;  %v655_v41 = vld [vmem:[%s11480_s0 + $0x10] sm:$0x1] }
  0xa3   :  { %v682_v43 = vld [vmem:[%s11480_s0 + $0x9] sm:$0xff]  ;;  %s11512_s0 = smov 124  }
  0xa4   :  { %687 = vst [vmem:[#allocation2 + $0x144] ss:$8 sm:$0xf] %v682_v43  ;;  %688 = vst [vmem:[#allocation2 + $0x144] ss:$8 sm:$0xf0] %v682_v43 }
  0xa6   :  { %437 = vrot.lane.b32.xlu1 %v178_v2, %s10045_s19  ;;  %435 = vrot.lane.b32.xlu0 %v10268_v0, %s10045_s19 }
  0xaa   :  { %465 = vrot.lane.b32.xlu1 %v178_v2, %s10046_s27  ;;  %463 = vrot.lane.b32.xlu0 %v10268_v0, %s10046_s27 }
  0xae   :  { %493 = vrot.lane.b32.xlu1 %v178_v2, %s10047_s6  ;;  %491 = vrot.lane.b32.xlu0 %v10268_v0, %s10047_s6 }
  0xb2   :  { %521 = vrot.lane.b32.xlu1 %v178_v2, %s10048_s28  ;;  %519 = vrot.lane.b32.xlu0 %v10268_v0, %s10048_s28 }
  0xb6   :  { %549 = vrot.lane.b32.xlu1 %v178_v2, %s10049_s22  ;;  %547 = vrot.lane.b32.xlu0 %v10268_v0, %s10049_s22 }
  0xba   :  { %577 = vrot.lane.b32.xlu1 %v178_v2, %s10050_s7  ;;  %575 = vrot.lane.b32.xlu0 %v10268_v0, %s10050_s7 }
  0xbe   :  { %605 = vrot.lane.b32.xlu1 %v178_v2, %s11497_s24  ;;  %603 = vrot.lane.b32.xlu0 %v10268_v0, %s11497_s24  ;;  %s11510_s24 = smov 30  }
  0xc2   :  { %633 = vrot.lane.b32.xlu1 %v178_v2, %s11498_s10  ;;  %631 = vrot.lane.b32.xlu0 %v10268_v0, %s11498_s10  ;;  %s11511_s10 = smov 28  }
  0xc6   :  { %661 = vrot.lane.b32.xlu1 %v178_v2, %s11496_s30  ;;  %659 = vrot.lane.b32.xlu0 %v10268_v0, %s11496_s30  ;;  %s10065_s30 = smov 112  }
  0xca   :  { %697 = vrot.lane.b32.xlu1 %v690_v3, %s10037_s23  ;;  %695 = vrot.lane.b32.xlu0 %v10277_v1, %s10037_s23 }
  0xce   :  { %724 = vrot.lane.b32.xlu1 %v690_v3, %s10036_s26  ;;  %722 = vrot.lane.b32.xlu0 %v10277_v1, %s10036_s26 }
  0xd2   :  { %751 = vrot.lane.b32.xlu1 %v690_v3, %s10038_s4  ;;  %749 = vrot.lane.b32.xlu0 %v10277_v1, %s10038_s4 }
  0xd6   :  { %778 = vrot.lane.b32.xlu1 %v690_v3, %s11499_s21  ;;  %776 = vrot.lane.b32.xlu0 %v10277_v1, %s11499_s21 }
  0xda   :  { %187 = vrot.lane.b32.xlu1 %v179_v4, %s10036_s26  ;;  %158 = vrot.lane.b32.xlu0 %v150_v5, %s10037_s23 }
  0xde   :  { %243 = vrot.lane.b32.xlu1 %v235_v6, %s11499_s21  ;;  %215 = vrot.lane.b32.xlu0 %v207_v7, %s10038_s4  ;;  %s10067_s21 = smov 110  }
  0xe2   :  { %299 = vrot.lane.b32.xlu1 %v291_v9, %s10041_s1  ;;  %271 = vrot.lane.b32.xlu0 %v263_v10, %s10040_s16  ;;  %s10064_s1 = smov 97  }
  0xe6   :  { %355 = vrot.lane.b32.xlu1 %v347_v12, %s10043_s17  ;;  %327 = vrot.lane.b32.xlu0 %v319_v13, %s10042_s15  ;;  %s10068_s17 = smov 82   ;;  %s10069_s15 = smov 71  }
  0xea   :  { %411 = vrot.lane.b32.xlu1 %v403_v14, %s10027_s3  ;;  %383 = vrot.lane.b32.xlu0 %v375_v15, %s10044_s18  ;;  %s10071_s3 = smov 86   ;;  %s10072_s18 = smov 84  }
  0xee   :  { %467 = vrot.lane.b32.xlu1 %v459_v16, %s10046_s27  ;;  %439 = vrot.lane.b32.xlu0 %v431_v17, %s10045_s19  ;;  %s10073_s19 = smov 69  }
  0xf0   :  { %v184_v20 = vpop.permute.xlu1 %183  ;;  %v155_v21 = vpop.permute.xlu0 %154 }
  0xf1   :  { %v189_v24 = vrot.slane %v184_v20, 1  ;;  %v160_v27 = vrot.slane %v155_v21, 1 }
  0xf2   :  { %523 = vrot.lane.b32.xlu1 %v515_v18, %s10048_s28  ;;  %495 = vrot.lane.b32.xlu0 %v487_v19, %s10047_s6  ;;  %s10056_s28 = smov 85   ;;  %s10058_s6 = smov 72  }
  0xf4   :  { %v10437_v25 = vpop.permute.xlu1 %185  ;;  %v10439_v26 = vpop.permute.xlu0 %156 }
  0xf5   :  { %v190_v28 = vrot.slane %v10437_v25, 1  ;;  %v161_v29 = vrot.slane %v10439_v26, 1 }
  0xf6   :  { %579 = vrot.lane.b32.xlu1 %v571_v22, %s10050_s7  ;;  %551 = vrot.lane.b32.xlu0 %v543_v23, %s10049_s22  ;;  %s10059_s22 = smov 68   ;;  %s10060_s7 = smov 114  }
  0xf7   :  { %v192_v32 = vsel %vm163_vm0, %v189_v24, %v190_v28  ;;  %v164_v33 = vsel %vm163_vm0, %v160_v27, %v161_v29 }
  0xf8   :  { %v194_v34 = vsel %vm193_vm1, %v184_v20, %v192_v32  ;;  %v166_v35 = vsel %vm165_vm2, %v155_v21, %v164_v33  ;;  %v10459_v36 = vpop.permute.xlu1 %213  ;;  %v212_v37 = vpop.permute.xlu0 %211  ;;  %v950_v20 = vld [vmem:[%s11482_s2] sm:$0x3f]  ;;  %s10055_s2 = smov 111  }
  0xf9   :  { %200 = vst [vmem:[#allocation2 + $0x2] ss:$8 sm:$0xf] %v194_v34  ;;  %201 = vst [vmem:[#allocation2 + $0x2] ss:$8 sm:$0xf0] %v194_v34 }
  0xfa   :  { %172 = vst [vmem:[#allocation2 + $0x1] ss:$8 sm:$0xf] %v166_v35  ;;  %173 = vst [vmem:[#allocation2 + $0x1] ss:$8 sm:$0xf0] %v166_v35  ;;  %635 = vrot.lane.b32.xlu1 %v627_v30, %s11509_s29  ;;  %607 = vrot.lane.b32.xlu0 %v599_v31, %s11510_s24 }
  0xfb   :  { %v218_v38 = vrot.slane %v10459_v36, 1  ;;  %v217_v39 = vrot.slane %v212_v37, 1  ;;  %s10062_s29 = smov 100   ;;  %s10063_s24 = smov 99  }
  0xfc   :  { %v10477_v45 = vpop.permute.xlu1 %241  ;;  %v240_v46 = vpop.permute.xlu0 %239 }
  0xfd   :  { %v220_v42 = vsel %vm163_vm0, %v217_v39, %v218_v38  ;;  %v246_v47 = vrot.slane %v10477_v45, 1  ;;  %v245_v48 = vrot.slane %v240_v46, 1 }
  0xfe   :  { %v222_v44 = vsel %vm221_vm3, %v212_v37, %v220_v42  ;;  %699 = vrot.lane.b32.xlu1 %v691_v40, %s10037_s23  ;;  %663 = vrot.lane.b32.xlu0 %v655_v41, %s11511_s10  ;;  %s10070_s10 = smov 70  }
  0xff   :  { %228 = vst [vmem:[#allocation2 + $0x3] ss:$8 sm:$0xf] %v222_v44  ;;  %229 = vst [vmem:[#allocation2 + $0x3] ss:$8 sm:$0xf0] %v222_v44  ;;  %v248_v51 = vsel %vm163_vm0, %v245_v48, %v246_v47 }
 0x100   :  { %v250_v52 = vsel %vm249_vm4, %v240_v46, %v248_v51  ;;  %v10492_v53 = vpop.permute.xlu1 %269  ;;  %v268_v54 = vpop.permute.xlu0 %267 }
 0x101   :  { %256 = vst [vmem:[#allocation2 + $0x4] ss:$8 sm:$0xf] %v250_v52  ;;  %257 = vst [vmem:[#allocation2 + $0x4] ss:$8 sm:$0xf0] %v250_v52 }
 0x102   :  { %v274_v55 = vrot.slane %v10492_v53, 1  ;;  %v273_v56 = vrot.slane %v268_v54, 1  ;;  %753 = vrot.lane.b32.xlu1 %v745_v49, %s10038_s4  ;;  %726 = vrot.lane.b32.xlu0 %v718_v50, %s10036_s26 }
 0x104   :  { %v276_v58 = vsel %vm163_vm0, %v273_v56, %v274_v55  ;;  %v10504_v60 = vpop.permute.xlu1 %297  ;;  %v296_v61 = vpop.permute.xlu0 %295 }
 0x105   :  { %v278_v59 = vsel %vm277_vm5, %v268_v54, %v276_v58  ;;  %v302_v62 = vrot.slane %v10504_v60, 1  ;;  %v301_v63 = vrot.slane %v296_v61, 1 }
 0x106   :  { %284 = vst [vmem:[#allocation2 + $0x5] ss:$8 sm:$0xf] %v278_v59  ;;  %285 = vst [vmem:[#allocation2 + $0x5] ss:$8 sm:$0xf0] %v278_v59  ;;  %780 = vrot.lane.b32.xlu0 %v772_v57, %s11512_s0  ;;  %953 = vperm.xlu1 %8906, %v950_v20  }
 0x107   :  { %v304_v0 = vsel %vm163_vm0, %v301_v63, %v302_v62 }
 0x108   :  { %v306_v1 = vsel %vm305_vm6, %v296_v61, %v304_v0  ;;  %v10512_v2 = vpop.permute.xlu1 %325  ;;  %v324_v3 = vpop.permute.xlu0 %323 }
 0x109   :  { %312 = vst [vmem:[#allocation2 + $0x6] ss:$8 sm:$0xf] %v306_v1  ;;  %313 = vst [vmem:[#allocation2 + $0x6] ss:$8 sm:$0xf0] %v306_v1 }
 0x10a   :  { %v330_v4 = vrot.slane %v10512_v2, 1  ;;  %v329_v5 = vrot.slane %v324_v3, 1 }
 0x10c   :  { %v332_v6 = vsel %vm163_vm0, %v329_v5, %v330_v4  ;;  %v10519_v9 = vpop.permute.xlu1 %353  ;;  %v352_v10 = vpop.permute.xlu0 %351 }
 0x10d   :  { %v334_v7 = vsel %vm333_vm7, %v324_v3, %v332_v6  ;;  %v358_v11 = vrot.slane %v10519_v9, 1  ;;  %v357_v12 = vrot.slane %v352_v10, 1 }
 0x10e   :  { %340 = vst [vmem:[#allocation2 + $0x7] ss:$8 sm:$0xf] %v334_v7  ;;  %341 = vst [vmem:[#allocation2 + $0x7] ss:$8 sm:$0xf0] %v334_v7 }
 0x10f   :  { %v360_v13 = vsel %vm163_vm0, %v357_v12, %v358_v11 }
 0x110   :  { %v362_v14 = vsel %vm361_vm8, %v352_v10, %v360_v13  ;;  %v10526_v15 = vpop.permute.xlu1 %381  ;;  %v380_v16 = vpop.permute.xlu0 %379 }
 0x111   :  { %368 = vst [vmem:[#allocation2 + $0x80] ss:$8 sm:$0xf] %v362_v14  ;;  %369 = vst [vmem:[#allocation2 + $0x80] ss:$8 sm:$0xf0] %v362_v14 }
 0x112   :  { %v386_v17 = vrot.slane %v10526_v15, 1  ;;  %v385_v18 = vrot.slane %v380_v16, 1 }
 0x114   :  { %v388_v19 = vsel %vm163_vm0, %v385_v18, %v386_v17  ;;  %v10536_v22 = vpop.permute.xlu1 %409  ;;  %v408_v23 = vpop.permute.xlu0 %407 }
 0x115   :  { %v390_v21 = vsel %vm389_vm9, %v380_v16, %v388_v19  ;;  %v414_v24 = vrot.slane %v10536_v22, 1  ;;  %v413_v27 = vrot.slane %v408_v23, 1 }
 0x116   :  { %396 = vst [vmem:[#allocation2 + $0x81] ss:$8 sm:$0xf] %v390_v21  ;;  %397 = vst [vmem:[#allocation2 + $0x81] ss:$8 sm:$0xf0] %v390_v21 }
 0x117   :  { %v416_v30 = vsel %vm163_vm0, %v413_v27, %v414_v24  ;;  %v855_v27 = vld [vmem:[#allocation2 + $0x8] sm:$0xff] }
 0x118   :  { %v418_v31 = vsel %vm417_vm10, %v408_v23, %v416_v30  ;;  %v10543_v32 = vpop.permute.xlu1 %437  ;;  %v436_v33 = vpop.permute.xlu0 %435  ;;  %v857_v30 = vld [vmem:[#allocation2 + $0x18] sm:$0xff] }
 0x119   :  { %424 = vst [vmem:[#allocation2 + $0x82] ss:$8 sm:$0xf] %v418_v31  ;;  %425 = vst [vmem:[#allocation2 + $0x82] ss:$8 sm:$0xf0] %v418_v31 }
 0x11a   :  { %v442_v34 = vrot.slane %v10543_v32, 1  ;;  %v441_v35 = vrot.slane %v436_v33, 1 }
 0x11c   :  { %v444_v37 = vsel %vm163_vm0, %v441_v35, %v442_v34  ;;  %v10550_v40 = vpop.permute.xlu1 %465  ;;  %v464_v41 = vpop.permute.xlu0 %463 }
 0x11d   :  { %v446_v39 = vsel %vm445_vm11, %v436_v33, %v444_v37  ;;  %v470_v42 = vrot.slane %v10550_v40, 1  ;;  %v469_v43 = vrot.slane %v464_v41, 1 }
 0x11e   :  { %452 = vst [vmem:[#allocation2 + $0x83] ss:$8 sm:$0xf] %v446_v39  ;;  %453 = vst [vmem:[#allocation2 + $0x83] ss:$8 sm:$0xf0] %v446_v39 }
 0x11f   :  { %v472_v44 = vsel %vm163_vm0, %v469_v43, %v470_v42 }
 0x120   :  { %v474_v46 = vsel %vm473_vm12, %v464_v41, %v472_v44  ;;  %v10557_v48 = vpop.permute.xlu1 %493  ;;  %v492_v49 = vpop.permute.xlu0 %491 }
 0x121   :  { %480 = vst [vmem:[#allocation2 + $0x84] ss:$8 sm:$0xf] %v474_v46  ;;  %481 = vst [vmem:[#allocation2 + $0x84] ss:$8 sm:$0xf0] %v474_v46 }
 0x122   :  { %v498_v50 = vrot.slane %v10557_v48, 1  ;;  %v497_v51 = vrot.slane %v492_v49, 1 }
 0x124   :  { %v500_v52 = vsel %vm163_vm0, %v497_v51, %v498_v50  ;;  %v10564_v56 = vpop.permute.xlu1 %521  ;;  %v520_v57 = vpop.permute.xlu0 %519 }
 0x125   :  { %v502_v54 = vsel %vm11501_vm13, %v492_v49, %v500_v52  ;;  %v526_v58 = vrot.slane %v10564_v56, 1  ;;  %v525_v59 = vrot.slane %v520_v57, 1  ;;  %vm11503_vm13 = vcmask 252928   ;;  %v854_v52 = vld [vmem:[#allocation2] sm:$0xff] }
 0x126   :  { %508 = vst [vmem:[#allocation2 + $0x85] ss:$8 sm:$0xf] %v502_v54  ;;  %509 = vst [vmem:[#allocation2 + $0x85] ss:$8 sm:$0xf0] %v502_v54 }
 0x127   :  { %v528_v61 = vsel %vm163_vm0, %v525_v59, %v526_v58  ;;  %v856_v54 = vld [vmem:[#allocation2 + $0x10] sm:$0xff] }
 0x128   :  { %v530_v63 = vsel %vm11502_vm14, %v520_v57, %v528_v61  ;;  %v10571_v0 = vpop.permute.xlu1 %549  ;;  %v548_v1 = vpop.permute.xlu0 %547  ;;  %vm11504_vm14 = vcmask 244736  }
 0x129   :  { %536 = vst [vmem:[#allocation2 + $0x86] ss:$8 sm:$0xf] %v530_v63  ;;  %537 = vst [vmem:[#allocation2 + $0x86] ss:$8 sm:$0xf0] %v530_v63 }
 0x12a   :  { %v554_v3 = vrot.slane %v10571_v0, 1  ;;  %v553_v5 = vrot.slane %v548_v1, 1 }
 0x12c   :  { %v556_v6 = vsel %vm163_vm0, %v553_v5, %v554_v3  ;;  %v10578_v10 = vpop.permute.xlu1 %577  ;;  %v576_v12 = vpop.permute.xlu0 %575 }
 0x12d   :  { %v558_v7 = vsel %vm557_vm15, %v548_v1, %v556_v6  ;;  %v582_v13 = vrot.slane %v10578_v10, 1  ;;  %v581_v14 = vrot.slane %v576_v12, 1 }
 0x12e   :  { %564 = vst [vmem:[#allocation2 + $0x87] ss:$8 sm:$0xf] %v558_v7  ;;  %565 = vst [vmem:[#allocation2 + $0x87] ss:$8 sm:$0xf0] %v558_v7 }
 0x12f   :  { %v584_v16 = vsel %vm163_vm0, %v581_v14, %v582_v13 }
 0x130   :  { %v586_v18 = vsel %vm11503_vm13, %v576_v12, %v584_v16  ;;  %v10585_v19 = vpop.permute.xlu1 %605  ;;  %v604_v20 = vpop.permute.xlu0 %603  ;;  %vm641_vm13 = vcmask 236544  }
 0x131   :  { %592 = vst [vmem:[#allocation2 + $0x100] ss:$8 sm:$0xf] %v586_v18  ;;  %593 = vst [vmem:[#allocation2 + $0x100] ss:$8 sm:$0xf0] %v586_v18 }
 0x132   :  { %v610_v21 = vrot.slane %v10585_v19, 1  ;;  %v609_v23 = vrot.slane %v604_v20, 1 }
 0x134   :  { %v612_v31 = vsel %vm163_vm0, %v609_v23, %v610_v21  ;;  %v10592_v35 = vpop.permute.xlu1 %633  ;;  %v632_v37 = vpop.permute.xlu0 %631 }
 0x135   :  { %v614_v33 = vsel %vm11504_vm14, %v604_v20, %v612_v31  ;;  %v871_v39 = vld [vmem:[#allocation2 + $0x88] sm:$0xff]  ;;  %v873_v41 = vld [vmem:[#allocation2 + $0x98] sm:$0xff]  ;;  %v870_v43 = vld [vmem:[#allocation2 + $0x80] sm:$0xff]  ;;  %v638_v44 = vrot.slane %v10592_v35, 1  ;;  %v637_v46 = vrot.slane %v632_v37, 1  ;;  %vm669_vm14 = vcmask 228352  }
 0x136   :  { %620 = vst [vmem:[#allocation2 + $0x101] ss:$8 sm:$0xf] %v614_v33  ;;  %621 = vst [vmem:[#allocation2 + $0x101] ss:$8 sm:$0xf0] %v614_v33  ;;  %v919_v49 = vpack.c.bf16 %v871_v39, %v855_v27  ;;  %v921_v51 = vpack.c.bf16 %v873_v41, %v857_v30  ;;  %v918_v59 = vpack.c.bf16 %v870_v43, %v854_v52 }
 0x137   :  { %v872_v57 = vld [vmem:[#allocation2 + $0x90] sm:$0xff]  ;;  %v640_v63 = vsel %vm163_vm0, %v637_v46, %v638_v44 }
 0x138   :  { %v920_v61 = vpack.c.bf16 %v872_v57, %v856_v54  ;;  %959 = vmatprep.subr.bf16.mxu0 %v919_v49  ;;  %1000 = vmatprep.subr.bf16.mxu1 %v921_v51  ;;  %v642_v1 = vsel %vm641_vm13, %v632_v37, %v640_v63  ;;  %v10599_v5 = vpop.permute.xlu1 %661  ;;  %v660_v6 = vpop.permute.xlu0 %659 }
 0x139   :  { %960 = vmatpush1.bf16.msra.mxu0 %v918_v59  ;;  %648 = vst [vmem:[#allocation2 + $0x102] ss:$8 sm:$0xf] %v642_v1  ;;  %649 = vst [vmem:[#allocation2 + $0x102] ss:$8 sm:$0xf0] %v642_v1 }
 0x13a   :  { %1001 = vmatpush1.bf16.msra.mxu1 %v920_v61  ;;  %v666_v7 = vrot.slane %v10599_v5, 1  ;;  %v665_v12 = vrot.slane %v660_v6, 1 }
 0x13c   :  { %v668_v14 = vsel %vm163_vm0, %v665_v12, %v666_v7  ;;  %v10606_v18 = vpop.permute.xlu1 %697  ;;  %v696_v20 = vpop.permute.xlu0 %695 }
 0x13d   :  { %v670_v16 = vsel %vm669_vm14, %v660_v6, %v668_v14  ;;  %v702_v23 = vrot.slane %v10606_v18, 1  ;;  %v701_v27 = vrot.slane %v696_v20, 1 }
 0x13e   :  { %676 = vst [vmem:[#allocation2 + $0x103] ss:$8 sm:$0xf] %v670_v16  ;;  %677 = vst [vmem:[#allocation2 + $0x103] ss:$8 sm:$0xf0] %v670_v16 }
 0x13f   :  { %v704_v30 = vsel %vm163_vm0, %v701_v27, %v702_v23 }
 0x140   :  { %v705_v31 = vsel %vm165_vm2, %v696_v20, %v704_v30  ;;  %v10613_v33 = vpop.permute.xlu1 %724  ;;  %v723_v37 = vpop.permute.xlu0 %722 }
 0x141   :  { %711 = vst [vmem:[#allocation2 + $0x105] ss:$8 sm:$0xf] %v705_v31  ;;  %712 = vst [vmem:[#allocation2 + $0x105] ss:$8 sm:$0xf0] %v705_v31 }
 0x142   :  { %v11506_v39 = vrot.slane %v10613_v33, 1  ;;  %v728_v41 = vrot.slane %v723_v37, 1 }
 0x144   :  { %v731_v43 = vsel %vm163_vm0, %v728_v41, %v11506_v39  ;;  %v10620_v49 = vpop.permute.xlu1 %751  ;;  %v750_v51 = vpop.permute.xlu0 %749 }
 0x145   :  { %v732_v46 = vsel %vm193_vm1, %v723_v37, %v731_v43  ;;  %v11507_v52 = vrot.slane %v10620_v49, 1  ;;  %v755_v54 = vrot.slane %v750_v51, 1 }
 0x146   :  { %738 = vst [vmem:[#allocation2 + $0x106] ss:$8 sm:$0xf] %v732_v46  ;;  %739 = vst [vmem:[#allocation2 + $0x106] ss:$8 sm:$0xf0] %v732_v46 }
 0x147   :  { %v758_v57 = vsel %vm163_vm0, %v755_v54, %v11507_v52 }
 0x148   :  { %v759_v59 = vsel %vm221_vm3, %v750_v51, %v758_v57  ;;  %v10627_v61 = vpop.permute.xlu1 %778  ;;  %v777_v63 = vpop.permute.xlu0 %776 }
 0x149   :  { %765 = vst [vmem:[#allocation2 + $0x107] ss:$8 sm:$0xf] %v759_v59  ;;  %766 = vst [vmem:[#allocation2 + $0x107] ss:$8 sm:$0xf0] %v759_v59 }
 0x14a   :  { %v11505_v1 = vrot.slane %v10627_v61, 1  ;;  %v782_v6 = vrot.slane %v777_v63, 1  ;;  %v875_v59 = vld [vmem:[#allocation2 + $0xa8] sm:$0xff] }
 0x14c   :  { %v785_v12 = vsel %vm163_vm0, %v782_v6, %v11505_v1  ;;  %v188_v16 = vpop.permute.xlu1 %187  ;;  %v159_v20 = vpop.permute.xlu0 %158  ;;  %v877_v6 = vld [vmem:[#allocation2 + $0xb8] sm:$0xff]  ;;  %v10654_v1 = vld [vmem:[#allocation7] sm:$0x7] }
 0x14d   :  { %v786_v14 = vsel %vm249_vm4, %v777_v63, %v785_v12  ;;  %v191_v27 = vrot.slane %v188_v16, 1  ;;  %v162_v30 = vrot.slane %v159_v20, 1 }
 0x14e   :  { %792 = vst [vmem:[#allocation2 + $0x180] ss:$8 sm:$0xf] %v786_v14  ;;  %793 = vst [vmem:[#allocation2 + $0x180] ss:$8 sm:$0xf0] %v786_v14 }
 0x14f   :  { %v195_v31 = vsel %vm163_vm0, %v190_v28, %v191_v27  ;;  %v167_v37 = vsel %vm163_vm0, %v161_v29, %v162_v30 }
 0x150   :  { %v196_v41 = vsel %vm193_vm1, %v10437_v25, %v195_v31  ;;  %v168_v43 = vsel %vm165_vm2, %v10439_v26, %v167_v37  ;;  %v244_v46 = vpop.permute.xlu1 %243  ;;  %v216_v51 = vpop.permute.xlu0 %215  ;;  %v887_v28 = vld [vmem:[#allocation2 + $0x108] sm:$0xff]  ;;  %v889_v63 = vld [vmem:[#allocation2 + $0x118] sm:$0xff] }
 0x151   :  { %203 = vst [vmem:[#allocation2 + $0x42] ss:$8 sm:$0xf] %v196_v41  ;;  %204 = vst [vmem:[#allocation2 + $0x42] ss:$8 sm:$0xf0] %v196_v41 }
 0x152   :  { %175 = vst [vmem:[#allocation2 + $0x41] ss:$8 sm:$0xf] %v168_v43  ;;  %176 = vst [vmem:[#allocation2 + $0x41] ss:$8 sm:$0xf0] %v168_v43 }
 0x153   :  { %v247_v54 = vrot.slane %v244_v46, 1  ;;  %v219_v57 = vrot.slane %v216_v51, 1  ;;  %v859_v26 = vld [vmem:[#allocation2 + $0x28] sm:$0xff]  ;;  %v861_v37 = vld [vmem:[#allocation2 + $0x38] sm:$0xff]  ;;  %v886_v46 = vld [vmem:[#allocation2 + $0x100] sm:$0xff] }
 0x154   :  { %v300_v16 = vpop.permute.xlu1 %299  ;;  %v272_v20 = vpop.permute.xlu0 %271  ;;  %v888_v51 = vld [vmem:[#allocation2 + $0x110] sm:$0xff] }
 0x155   :  { %v251_v29 = vsel %vm163_vm0, %v246_v47, %v247_v54  ;;  %v223_v25 = vsel %vm163_vm0, %v218_v38, %v219_v57  ;;  %v903_v27 = vld [vmem:[#allocation2 + $0x188] sm:$0xff]  ;;  %v905_v30 = vld [vmem:[#allocation2 + $0x198] sm:$0xff]  ;;  %v902_v31 = vld [vmem:[#allocation2 + $0x180] sm:$0xff]  ;;  %v303_v47 = vrot.slane %v300_v16, 1  ;;  %v275_v41 = vrot.slane %v272_v20, 1 }
 0x156   :  { %v252_v12 = vsel %vm249_vm4, %v10477_v45, %v251_v29  ;;  %v224_v14 = vsel %vm221_vm3, %v10459_v36, %v223_v25  ;;  %v935_v38 = vpack.c.bf16 %v903_v27, %v887_v28  ;;  %v937_v43 = vpack.c.bf16 %v905_v30, %v889_v63  ;;  %v904_v45 = vld [vmem:[#allocation2 + $0x190] sm:$0xff]  ;;  %v874_v54 = vld [vmem:[#allocation2 + $0xa0] sm:$0xff]  ;;  %v907_v39 = vld [vmem:[#allocation2 + $0x1a8] sm:$0xff] }
 0x157   :  { %259 = vst [vmem:[#allocation2 + $0x44] ss:$8 sm:$0xf] %v252_v12  ;;  %260 = vst [vmem:[#allocation2 + $0x44] ss:$8 sm:$0xf0] %v252_v12  ;;  %v934_v36 = vpack.c.bf16 %v902_v31, %v886_v46  ;;  %v936_v29 = vpack.c.bf16 %v904_v45, %v888_v51  ;;  %v923_v25 = vpack.c.bf16 %v875_v59, %v859_v26 }
 0x158   :  { %231 = vst [vmem:[#allocation2 + $0x43] ss:$8 sm:$0xf] %v224_v14  ;;  %232 = vst [vmem:[#allocation2 + $0x43] ss:$8 sm:$0xf0] %v224_v14  ;;  %v307_v12 = vsel %vm163_vm0, %v302_v62, %v303_v47  ;;  %v279_v28 = vsel %vm163_vm0, %v274_v55, %v275_v41  ;;  %961 = vmatprep.subr.bf16.mxu0 %v935_v38  ;;  %1002 = vmatprep.subr.bf16.mxu1 %v937_v43  ;;  %v356_v27 = vpop.permute.xlu1 %355  ;;  %v328_v30 = vpop.permute.xlu0 %327 }
 0x159   :  { %v876_v57 = vld [vmem:[#allocation2 + $0xb0] sm:$0xff]  ;;  %v909_v52 = vld [vmem:[#allocation2 + $0x1b8] sm:$0xff]  ;;  %v925_v63 = vpack.c.bf16 %v877_v6, %v861_v37  ;;  %v858_v14 = vld [vmem:[#allocation2 + $0x20] sm:$0xff]  ;;  %v308_v59 = vsel %vm305_vm6, %v10504_v60, %v307_v12  ;;  %v280_v26 = vsel %vm277_vm5, %v10492_v53, %v279_v28  ;;  %962 = vmatpush1.bf16.msra.mxu0 %v934_v36  ;;  %1003 = vmatpush1.bf16.msra.mxu1 %v936_v29  ;;  %v359_v55 = vrot.slane %v356_v27, 1 }
 0x15a   :  { %v860_v16 = vld [vmem:[#allocation2 + $0x30] sm:$0xff]  ;;  %v891_v20 = vld [vmem:[#allocation2 + $0x128] sm:$0xff]  ;;  %v893_v62 = vld [vmem:[#allocation2 + $0x138] sm:$0xff]  ;;  %315 = vst [vmem:[#allocation2 + $0x46] ss:$8 sm:$0xf] %v308_v59  ;;  %1041 = vmatprep.subr.bf16.mxu0 %v923_v25  ;;  %v922_v47 = vpack.c.bf16 %v874_v54, %v858_v14 }
 0x15b   :  { %316 = vst [vmem:[#allocation2 + $0x46] ss:$8 sm:$0xf0] %v308_v59  ;;  %287 = vst [vmem:[#allocation2 + $0x45] ss:$8 sm:$0xf] %v280_v26  ;;  %1082 = vmatprep.subr.bf16.mxu1 %v925_v63  ;;  %v924_v60 = vpack.c.bf16 %v876_v57, %v860_v16  ;;  %v939_v41 = vpack.c.bf16 %v907_v39, %v891_v20  ;;  %v363_v53 = vsel %vm163_vm0, %v358_v11, %v359_v55 }
 0x15c   :  { %288 = vst [vmem:[#allocation2 + $0x45] ss:$8 sm:$0xf0] %v280_v26  ;;  %v331_v6 = vrot.slane %v328_v30, 1  ;;  %v906_v31 = vld [vmem:[#allocation2 + $0x1a0] sm:$0xff]  ;;  %v908_v37 = vld [vmem:[#allocation2 + $0x1b0] sm:$0xff]  ;;  %7921 = vmatmul.mubr.msk.bf16.vlgmr.msra.gmra.mrb[0].mxu0 %vm557_vm15, %v10654_v1  ;;  %7922 = vmatmul.mubr.msk.bf16.vlgmr.msra.gmra.mrb[0].mxu1 %vm557_vm15, %v10654_v1  ;;  %v941_v43 = vpack.c.bf16 %v909_v52, %v893_v62  ;;  %v364_v39 = vsel %vm361_vm8, %v10519_v9, %v363_v53  ;;  %v412_v11 = vpop.permute.xlu1 %411  ;;  %v384_v54 = vpop.permute.xlu0 %383 }
 0x15d   :  { %v890_v46 = vld [vmem:[#allocation2 + $0x120] sm:$0xff]  ;;  %v892_v51 = vld [vmem:[#allocation2 + $0x130] sm:$0xff]  ;;  %1042 = vmatpush1.bf16.msra.mxu0 %v922_v47  ;;  %1083 = vmatpush1.bf16.msra.mxu1 %v924_v60  ;;  %371 = vst [vmem:[#allocation2 + $0xc0] ss:$8 sm:$0xf] %v364_v39  ;;  %v387_v57 = vrot.slane %v384_v54, 1 }
 0x15e   :  { %v335_v38 = vsel %vm163_vm0, %v330_v4, %v331_v6  ;;  %372 = vst [vmem:[#allocation2 + $0xc0] ss:$8 sm:$0xf0] %v364_v39  ;;  %v415_v4 = vrot.slane %v412_v11, 1  ;;  %1043 = vmatprep.subr.bf16.mxu0 %v939_v41  ;;  %1084 = vmatprep.subr.bf16.mxu1 %v941_v43  ;;  %v938_v52 = vpack.c.bf16 %v906_v31, %v890_v46  ;;  %vm11513_vm6 = vcmask 490496  }
 0x15f   :  { %v336_v45 = vsel %vm333_vm7, %v10512_v2, %v335_v38  ;;  %v940_v36 = vpack.c.bf16 %v908_v37, %v892_v51  ;;  %1073 = vmatprep.mubr.bf16.mxu0 %v10054_v8  ;;  %1114 = vmatprep.mubr.bf16.mxu1 %v10054_v8  ;;  %v391_v9 = vsel %vm163_vm0, %v386_v17, %v387_v57  ;;  %vm11514_vm7 = vcmask 498688  }
 0x160   :  { %343 = vst [vmem:[#allocation2 + $0x47] ss:$8 sm:$0xf] %v336_v45  ;;  %344 = vst [vmem:[#allocation2 + $0x47] ss:$8 sm:$0xf0] %v336_v45  ;;  %v419_v2 = vsel %vm163_vm0, %v414_v24, %v415_v4  ;;  %v392_v25 = vsel %vm389_vm9, %v10526_v15, %v391_v9  ;;  %v468_v12 = vpop.permute.xlu1 %467  ;;  %v440_v28 = vpop.permute.xlu0 %439 }
 0x161   :  { %v420_v29 = vsel %vm417_vm10, %v10536_v22, %v419_v2  ;;  %1044 = vmatpush1.bf16.msra.mxu0 %v938_v52  ;;  %1085 = vmatpush1.bf16.msra.mxu1 %v940_v36  ;;  %399 = vst [vmem:[#allocation2 + $0xc1] ss:$8 sm:$0xf] %v392_v25  ;;  %400 = vst [vmem:[#allocation2 + $0xc1] ss:$8 sm:$0xf0] %v392_v25 }
 0x162   :  { %427 = vst [vmem:[#allocation2 + $0xc2] ss:$8 sm:$0xf] %v420_v29  ;;  %428 = vst [vmem:[#allocation2 + $0xc2] ss:$8 sm:$0xf0] %v420_v29 }
 0x163   :  { %v471_v63 = vrot.slane %v468_v12, 1  ;;  %v443_v24 = vrot.slane %v440_v28, 1  ;;  %vm11515_vm8 = vcmask 252928   ;;  %vm11516_vm9 = vcmask 244736  }
 0x164   :  { %7923 = vmatmul.mubr.msk.bf16.vlgmr.msra.gmra.mrb[4].mxu0 %vm557_vm15, %v10654_v1  ;;  %7924 = vmatmul.mubr.msk.bf16.vlgmr.msra.gmra.mrb[4].mxu1 %vm557_vm15, %v10654_v1  ;;  %v524_v16 = vpop.permute.xlu1 %523  ;;  %v496_v20 = vpop.permute.xlu0 %495  ;;  %v11518_v25 = vrot.slane %v10613_v33, 1 }
 0x165   :  { %v475_v17 = vsel %vm163_vm0, %v470_v42, %v471_v63  ;;  %v447_v22 = vsel %vm163_vm0, %v442_v34, %v443_v24  ;;  %1155 = vmatprep.mubr.bf16.mxu0 %v10054_v8  ;;  %1196 = vmatprep.mubr.bf16.mxu1 %v10054_v8  ;;  %v527_v34 = vrot.slane %v524_v16, 1  ;;  %v499_v42 = vrot.slane %v496_v20, 1 }
 0x166   :  { %v476_v15 = vsel %vm473_vm12, %v10550_v40, %v475_v17  ;;  %v448_v14 = vsel %vm445_vm11, %v10543_v32, %v447_v22  ;;  %v11519_v22 = vrot.slane %v10627_v61, 1  ;;  %vm5090_vm11 = vcmask 64518  }
 0x167   :  { %483 = vst [vmem:[#allocation2 + $0xc4] ss:$8 sm:$0xf] %v476_v15  ;;  %484 = vst [vmem:[#allocation2 + $0xc4] ss:$8 sm:$0xf0] %v476_v15  ;;  %v531_v59 = vsel %vm163_vm0, %v526_v58, %v527_v34  ;;  %v503_v32 = vsel %vm163_vm0, %v498_v50, %v499_v42 }
 0x168   :  { %455 = vst [vmem:[#allocation2 + $0xc3] ss:$8 sm:$0xf] %v448_v14  ;;  %456 = vst [vmem:[#allocation2 + $0xc3] ss:$8 sm:$0xf0] %v448_v14  ;;  %v532_v40 = vsel %vm11513_vm6, %v10564_v56, %v531_v59  ;;  %v504_v26 = vsel %vm11514_vm7, %v10557_v48, %v503_v32  ;;  %v580_v27 = vpop.permute.xlu1 %579  ;;  %v552_v30 = vpop.permute.xlu0 %551 }
 0x169   :  { %539 = vst [vmem:[#allocation2 + $0xc6] ss:$8 sm:$0xf] %v532_v40  ;;  %540 = vst [vmem:[#allocation2 + $0xc6] ss:$8 sm:$0xf0] %v532_v40 }
 0x16a   :  { %511 = vst [vmem:[#allocation2 + $0xc5] ss:$8 sm:$0xf] %v504_v26  ;;  %512 = vst [vmem:[#allocation2 + $0xc5] ss:$8 sm:$0xf0] %v504_v26 }
 0x16b   :  { %v583_v62 = vrot.slane %v580_v27, 1  ;;  %v555_v55 = vrot.slane %v552_v30, 1  ;;  %v863_v43 = vld [vmem:[#allocation2 + $0x48] sm:$0xff]  ;;  %v864_v36 = vld [vmem:[#allocation2 + $0x50] sm:$0xff]  ;;  %vm5095_vm12 = vcmask 60416   ;;  %vm5313_vm6 = vcmask 908288  }
 0x16c   :  { %v636_v6 = vpop.permute.xlu1 %635  ;;  %v608_v31 = vpop.permute.xlu0 %607  ;;  %vm5576_vm7 = vcmask 695296  }
 0x16d   :  { %v587_v58 = vsel %vm163_vm0, %v582_v13, %v583_v62  ;;  %v559_v50 = vsel %vm163_vm0, %v554_v3, %v555_v55  ;;  %v639_v37 = vrot.slane %v636_v6, 1  ;;  %v611_v47 = vrot.slane %v608_v31, 1 }
 0x16e   :  { %v588_v56 = vsel %vm11515_vm8, %v10578_v10, %v587_v58  ;;  %v560_v48 = vsel %vm557_vm15, %v10571_v0, %v559_v50  ;;  %v867_v58 = vld [vmem:[#allocation2 + $0x68] sm:$0xff]  ;;  %v869_v50 = vld [vmem:[#allocation2 + $0x78] sm:$0xff]  ;;  %vm5708_vm8 = vcmask 588800  }
 0x16f   :  { %595 = vst [vmem:[#allocation2 + $0x140] ss:$8 sm:$0xf] %v588_v56  ;;  %596 = vst [vmem:[#allocation2 + $0x140] ss:$8 sm:$0xf0] %v588_v56  ;;  %v643_v13 = vsel %vm163_vm0, %v638_v44, %v639_v37  ;;  %v615_v3 = vsel %vm163_vm0, %v610_v21, %v611_v47 }
 0x170   :  { %567 = vst [vmem:[#allocation2 + $0xc7] ss:$8 sm:$0xf] %v560_v48  ;;  %568 = vst [vmem:[#allocation2 + $0xc7] ss:$8 sm:$0xf0] %v560_v48  ;;  %v644_v10 = vsel %vm641_vm13, %v10592_v35, %v643_v13  ;;  %v616_v0 = vsel %vm11516_vm9, %v10585_v19, %v615_v3  ;;  %v700_v60 = vpop.permute.xlu1 %699  ;;  %v664_v41 = vpop.permute.xlu0 %663 }
 0x171   :  { %651 = vst [vmem:[#allocation2 + $0x142] ss:$8 sm:$0xf] %v644_v10  ;;  %652 = vst [vmem:[#allocation2 + $0x142] ss:$8 sm:$0xf0] %v644_v10 }
 0x172   :  { %623 = vst [vmem:[#allocation2 + $0x141] ss:$8 sm:$0xf] %v616_v0  ;;  %624 = vst [vmem:[#allocation2 + $0x141] ss:$8 sm:$0xf0] %v616_v0 }
 0x173   :  { %v703_v53 = vrot.slane %v700_v60, 1  ;;  %v667_v38 = vrot.slane %v664_v41, 1  ;;  %v865_v44 = vld [vmem:[#allocation2 + $0x58] sm:$0xff]  ;;  %v866_v47 = vld [vmem:[#allocation2 + $0x60] sm:$0xff]  ;;  %v868_v13 = vld [vmem:[#allocation2 + $0x70] sm:$0xff]  ;;  %vm5127_vm13 = vcmask 64516  }
 0x174   :  { %v754_v51 = vpop.permute.xlu1 %753  ;;  %v727_v39 = vpop.permute.xlu0 %726  ;;  %vm5840_vm9 = vcmask 556032  }
 0x175   :  { %v706_v21 = vsel %vm163_vm0, %v702_v23, %v703_v53  ;;  %v671_v35 = vsel %vm163_vm0, %v666_v7, %v667_v38  ;;  %v757_v23 = vrot.slane %v754_v51, 1  ;;  %v730_v4 = vrot.slane %v727_v39, 1  ;;  %v862_v7 = vld [vmem:[#allocation2 + $0x40] sm:$0xff] }
 0x176   :  { %v707_v19 = vsel %vm165_vm2, %v10606_v18, %v706_v21  ;;  %v672_v46 = vsel %vm669_vm14, %v10599_v5, %v671_v35  ;;  %v11517_v5 = vrot.slane %v10620_v49, 1  ;;  %v8908_v39 = vld [vmem:[#allocation9] ss:$16 sps:$4 sm:$0xff]   ;;  %vm5132_vm14 = vcmask 58368  }
 0x177   :  { %v879_v45 = vld [vmem:[#allocation2 + $0xc8] sm:$0xff]  ;;  %v881_v11 = vld [vmem:[#allocation2 + $0xd8] sm:$0xff]  ;;  %v878_v54 = vld [vmem:[#allocation2 + $0xc0] sm:$0xff]  ;;  %714 = vst [vmem:[#allocation2 + $0x145] ss:$8 sm:$0xf] %v707_v19  ;;  %v733_v12 = vsel %vm163_vm0, %v11518_v25, %v730_v4 }
 0x178   :  { %715 = vst [vmem:[#allocation2 + $0x145] ss:$8 sm:$0xf0] %v707_v19  ;;  %679 = vst [vmem:[#allocation2 + $0x143] ss:$8 sm:$0xf] %v672_v46  ;;  %v927_v57 = vpack.c.bf16 %v879_v45, %v863_v43  ;;  %v929_v52 = vpack.c.bf16 %v881_v11, %v865_v44  ;;  %v926_v18 = vpack.c.bf16 %v878_v54, %v862_v7  ;;  %v781_v24 = vpop.permute.xlu0 %780 }
 0x179   :  { %680 = vst [vmem:[#allocation2 + $0x143] ss:$8 sm:$0xf0] %v672_v46  ;;  %v880_v2 = vld [vmem:[#allocation2 + $0xd0] sm:$0xff]  ;;  %v760_v29 = vsel %vm163_vm0, %v11517_v5, %v757_v23  ;;  %v734_v63 = vsel %vm193_vm1, %v10613_v33, %v733_v12  ;;  %v784_v17 = vrot.slane %v781_v24, 1  ;;  %v885_v16 = vld [vmem:[#allocation2 + $0xf8] sm:$0xff] }
 0x17a   :  { %v928_v9 = vpack.c.bf16 %v880_v2, %v864_v36  ;;  %1123 = vmatprep.subr.bf16.mxu0 %v927_v57  ;;  %1164 = vmatprep.subr.bf16.mxu1 %v929_v52  ;;  %v761_v28 = vsel %vm221_vm3, %v10620_v49, %v760_v29  ;;  %741 = vst [vmem:[#allocation2 + $0x146] ss:$8 sm:$0xf] %v734_v63  ;;  %742 = vst [vmem:[#allocation2 + $0x146] ss:$8 sm:$0xf0] %v734_v63 }
 0x17b   :  { %1124 = vmatpush1.bf16.msra.mxu0 %v926_v18  ;;  %768 = vst [vmem:[#allocation2 + $0x147] ss:$8 sm:$0xf] %v761_v28  ;;  %769 = vst [vmem:[#allocation2 + $0x147] ss:$8 sm:$0xf0] %v761_v28  ;;  %v787_v15 = vsel %vm163_vm0, %v11519_v22, %v784_v17  ;;  %v933_v56 = vpack.c.bf16 %v885_v16, %v869_v50 }
 0x17c   :  { %1165 = vmatpush1.bf16.msra.mxu1 %v928_v9  ;;  %v788_v14 = vsel %vm249_vm4, %v10627_v61, %v787_v15  ;;  %v883_v49 = vld [vmem:[#allocation2 + $0xe8] sm:$0xff]  ;;  %v882_v48 = vld [vmem:[#allocation2 + $0xe0] sm:$0xff]  ;;  %v884_v6 = vld [vmem:[#allocation2 + $0xf0] sm:$0xff]  ;;  %vm5058_vm0 = vcmask 62464  }
 0x17d   :  { %795 = vst [vmem:[#allocation2 + $0x1c0] ss:$8 sm:$0xf] %v788_v14  ;;  %796 = vst [vmem:[#allocation2 + $0x1c0] ss:$8 sm:$0xf0] %v788_v14  ;;  %v931_v61 = vpack.c.bf16 %v883_v49, %v867_v58  ;;  %v930_v3 = vpack.c.bf16 %v882_v48, %v866_v47  ;;  %v932_v10 = vpack.c.bf16 %v884_v6, %v868_v13 }
 0x17e   :  { %v8910_v44 = vld [vmem:[#allocation9 + $0x4] ss:$16 sps:$4 sm:$0xff]   ;;  %v8913_v19 = vld [vmem:[#allocation9 + $0xc] ss:$16 sps:$4 sm:$0xff]   ;;  %v8911_v45 = vld [vmem:[#allocation9 + $0x8] ss:$16 sps:$4 sm:$0xff]  }
 0x17f   :  { %v8916_v11 = vld [vmem:[#allocation9 + $0x24] ss:$16 sps:$4 sm:$0xff]   ;;  %v8919_v54 = vld [vmem:[#allocation9 + $0x2c] ss:$16 sps:$4 sm:$0xff]   ;;  %v8914_v23 = vld [vmem:[#allocation9 + $0x20] ss:$16 sps:$4 sm:$0xff]  }
 0x180   :  { %v8917_v4 = vld [vmem:[#allocation9 + $0x28] ss:$16 sps:$4 sm:$0xff]   ;;  %v8922_v57 = vld [vmem:[#allocation9 + $0x44] ss:$16 sps:$4 sm:$0xff]   ;;  %v8925_v52 = vld [vmem:[#allocation9 + $0x4c] ss:$16 sps:$4 sm:$0xff]  }
 0x181   :  { %v8920_v7 = vld [vmem:[#allocation9 + $0x40] ss:$16 sps:$4 sm:$0xff]   ;;  %v8923_v36 = vld [vmem:[#allocation9 + $0x48] ss:$16 sps:$4 sm:$0xff]   ;;  %v8928_v2 = vld [vmem:[#allocation9 + $0x64] ss:$16 sps:$4 sm:$0xff]  }
 0x182   :  { %v895_v33 = vld [vmem:[#allocation2 + $0x148] sm:$0xff]  ;;  %v897_v20 = vld [vmem:[#allocation2 + $0x158] sm:$0xff]  ;;  %v894_v34 = vld [vmem:[#allocation2 + $0x140] sm:$0xff] }
 0x183   :  { %v896_v30 = vld [vmem:[#allocation2 + $0x150] sm:$0xff]  ;;  %v899_v0 = vld [vmem:[#allocation2 + $0x168] sm:$0xff]  ;;  %v901_v60 = vld [vmem:[#allocation2 + $0x178] sm:$0xff] }
 0x184   :  { %v911_v42 = vld [vmem:[#allocation2 + $0x1c8] sm:$0xff]  ;;  %v913_v59 = vld [vmem:[#allocation2 + $0x1d8] sm:$0xff]  ;;  %v910_v32 = vld [vmem:[#allocation2 + $0x1c0] sm:$0xff] }
 0x185   :  { %v943_v40 = vpack.c.bf16 %v911_v42, %v895_v33  ;;  %v945_v26 = vpack.c.bf16 %v913_v59, %v897_v20  ;;  %v942_v27 = vpack.c.bf16 %v910_v32, %v894_v34  ;;  %v912_v62 = vld [vmem:[#allocation2 + $0x1d0] sm:$0xff]  ;;  %v915_v31 = vld [vmem:[#allocation2 + $0x1e8] sm:$0xff]  ;;  %v917_v37 = vld [vmem:[#allocation2 + $0x1f8] sm:$0xff] }
 0x186   :  { %v944_v55 = vpack.c.bf16 %v912_v62, %v896_v30  ;;  %v947_v41 = vpack.c.bf16 %v915_v31, %v899_v0  ;;  %v949_v53 = vpack.c.bf16 %v917_v37, %v901_v60  ;;  %v914_v38 = vld [vmem:[#allocation2 + $0x1e0] sm:$0xff]  ;;  %v916_v43 = vld [vmem:[#allocation2 + $0x1f0] sm:$0xff]  ;;  %v8934_v5 = vld [vmem:[#allocation9 + $0x84] ss:$16 sps:$4 sm:$0xff]  }
 0x187   :  { %1125 = vmatprep.subr.bf16.mxu0 %v943_v40  ;;  %1166 = vmatprep.subr.bf16.mxu1 %v945_v26  ;;  %v898_v21 = vld [vmem:[#allocation2 + $0x160] sm:$0xff]  ;;  %v900_v35 = vld [vmem:[#allocation2 + $0x170] sm:$0xff]  ;;  %v8935_v12 = vld [vmem:[#allocation9 + $0x88] ss:$16 sps:$4 sm:$0xff]  }
 0x188   :  { %1126 = vmatpush1.bf16.msra.mxu0 %v942_v27  ;;  %1167 = vmatpush1.bf16.msra.mxu1 %v944_v55  ;;  %v946_v46 = vpack.c.bf16 %v914_v38, %v898_v21  ;;  %v948_v51 = vpack.c.bf16 %v916_v43, %v900_v35  ;;  %v8931_v18 = vld [vmem:[#allocation9 + $0x6c] ss:$16 sps:$4 sm:$0xff]   ;;  %v8926_v9 = vld [vmem:[#allocation9 + $0x60] ss:$16 sps:$4 sm:$0xff]   ;;  %v8940_v28 = vld [vmem:[#allocation9 + $0xa4] ss:$16 sps:$4 sm:$0xff]  }
 0x189   :  { %1205 = vmatprep.subr.bf16.mxu0 %v931_v61  ;;  %1246 = vmatprep.subr.bf16.mxu1 %v933_v56  ;;  %v8937_v29 = vld [vmem:[#allocation9 + $0x8c] ss:$16 sps:$4 sm:$0xff]   ;;  %v8932_v25 = vld [vmem:[#allocation9 + $0x80] ss:$16 sps:$4 sm:$0xff]   ;;  %v8941_v17 = vld [vmem:[#allocation9 + $0xa8] ss:$16 sps:$4 sm:$0xff]  }
 0x18a   :  { %v8943_v63 = vld [vmem:[#allocation9 + $0xac] ss:$16 sps:$4 sm:$0xff]   ;;  %v8938_v24 = vld [vmem:[#allocation9 + $0xa0] ss:$16 sps:$4 sm:$0xff]   ;;  %v8946_v22 = vld [vmem:[#allocation9 + $0xc4] ss:$16 sps:$4 sm:$0xff]  }
 0x18b   :  { %7925 = vmatmul.mubr.msk.bf16.vlgmr.msra.gmra.mrb[8].mxu0 %vm557_vm15, %v10654_v1  ;;  %7926 = vmatmul.mubr.msk.bf16.vlgmr.msra.gmra.mrb[8].mxu1 %vm557_vm15, %v10654_v1  ;;  %v8949_v15 = vld [vmem:[#allocation9 + $0xcc] ss:$16 sps:$4 sm:$0xff]   ;;  %v8944_v14 = vld [vmem:[#allocation9 + $0xc0] ss:$16 sps:$4 sm:$0xff]   ;;  %v8947_v49 = vld [vmem:[#allocation9 + $0xc8] ss:$16 sps:$4 sm:$0xff]  }
 0x18c   :  { %1206 = vmatpush1.bf16.msra.mxu0 %v930_v3  ;;  %1247 = vmatpush1.bf16.msra.mxu1 %v932_v10  ;;  %v8952_v16 = vld [vmem:[#allocation9 + $0xe4] ss:$16 sps:$4 sm:$0xff]   ;;  %v8955_v33 = vld [vmem:[#allocation9 + $0xec] ss:$16 sps:$4 sm:$0xff]   ;;  %v8950_v20 = vld [vmem:[#allocation9 + $0xe0] ss:$16 sps:$4 sm:$0xff]  }
 0x18d   :  { %1207 = vmatprep.subr.bf16.mxu0 %v947_v41  ;;  %1248 = vmatprep.subr.bf16.mxu1 %v949_v53  ;;  %v8953_v34 = vld [vmem:[#allocation9 + $0xe8] ss:$16 sps:$4 sm:$0xff]   ;;  %v8958_v42 = vld [vmem:[#allocation9 + $0x104] ss:$16 sps:$4 sm:$0xff]   ;;  %v8961_v59 = vld [vmem:[#allocation9 + $0x10c] ss:$16 sps:$4 sm:$0xff]  }
 0x18e   :  { %1237 = vmatprep.mubr.bf16.mxu0 %v10054_v8  ;;  %1278 = vmatprep.mubr.bf16.mxu1 %v10054_v8  ;;  %v8956_v32 = vld [vmem:[#allocation9 + $0x100] ss:$16 sps:$4 sm:$0xff]   ;;  %v8959_v40 = vld [vmem:[#allocation9 + $0x108] ss:$16 sps:$4 sm:$0xff]   ;;  %v8964_v26 = vld [vmem:[#allocation9 + $0x124] ss:$16 sps:$4 sm:$0xff]  }
 0x18f   :  { %v8967_v27 = vld [vmem:[#allocation9 + $0x12c] ss:$16 sps:$4 sm:$0xff]   ;;  %v8962_v30 = vld [vmem:[#allocation9 + $0x120] ss:$16 sps:$4 sm:$0xff]   ;;  %v8965_v62 = vld [vmem:[#allocation9 + $0x128] ss:$16 sps:$4 sm:$0xff]  }
 0x190   :  { %1208 = vmatpush1.bf16.msra.mxu0 %v946_v46  ;;  %1249 = vmatpush1.bf16.msra.mxu1 %v948_v51  ;;  %v8970_v55 = vld [vmem:[#allocation9 + $0x144] ss:$16 sps:$4 sm:$0xff]   ;;  %v8973_v58 = vld [vmem:[#allocation9 + $0x14c] ss:$16 sps:$4 sm:$0xff]   ;;  %v8968_v50 = vld [vmem:[#allocation9 + $0x140] ss:$16 sps:$4 sm:$0xff]  }
 0x191   :  { %4391 = vmatprep.subr.bf16.mxu0 %v8910_v44  ;;  %4719 = vmatprep.subr.bf16.mxu1 %v8913_v19  ;;  %v8971_v61 = vld [vmem:[#allocation9 + $0x148] ss:$16 sps:$4 sm:$0xff]   ;;  %v8976_v56 = vld [vmem:[#allocation9 + $0x164] ss:$16 sps:$4 sm:$0xff]   ;;  %v8979_v48 = vld [vmem:[#allocation9 + $0x16c] ss:$16 sps:$4 sm:$0xff]  }
 0x192   :  { %v8974_v6 = vld [vmem:[#allocation9 + $0x160] ss:$16 sps:$4 sm:$0xff]   ;;  %v8977_v31 = vld [vmem:[#allocation9 + $0x168] ss:$16 sps:$4 sm:$0xff]   ;;  %v8982_v37 = vld [vmem:[#allocation9 + $0x184] ss:$16 sps:$4 sm:$0xff]  }
 0x193   :  { %7927 = vmatmul.mubr.msk.bf16.vlgmr.msra.gmra.mrb[12].mxu0 %vm557_vm15, %v10654_v1  ;;  %7928 = vmatmul.mubr.msk.bf16.vlgmr.msra.gmra.mrb[12].mxu1 %vm557_vm15, %v10654_v1  ;;  %v8929_v1 = vld [vmem:[#allocation9 + $0x68] ss:$16 sps:$4 sm:$0xff]   ;;  %v8985_v47 = vld [vmem:[#allocation9 + $0x18c] ss:$16 sps:$4 sm:$0xff]   ;;  %v8980_v13 = vld [vmem:[#allocation9 + $0x180] ss:$16 sps:$4 sm:$0xff]  }
 0x194   :  { %4392 = vmatpush1.bf16.msra.mxu0 %v8908_v39  ;;  %4720 = vmatpush1.bf16.msra.mxu1 %v8911_v45  ;;  %v8983_v3 = vld [vmem:[#allocation9 + $0x188] ss:$16 sps:$4 sm:$0xff]   ;;  %v8988_v10 = vld [vmem:[#allocation9 + $0x1a4] ss:$16 sps:$4 sm:$0xff]   ;;  %v8991_v0 = vld [vmem:[#allocation9 + $0x1ac] ss:$16 sps:$4 sm:$0xff]   ;;  %v10773_v45 = vpop.permute.xlu1 %953 }
 0x195   :  { %4393 = vmatprep.subr.bf16.mxu0 %v8916_v11  ;;  %4721 = vmatprep.subr.bf16.mxu1 %v8919_v54  ;;  %v8986_v60 = vld [vmem:[#allocation9 + $0x1a0] ss:$16 sps:$4 sm:$0xff]   ;;  %v8989_v41 = vld [vmem:[#allocation9 + $0x1a8] ss:$16 sps:$4 sm:$0xff]   ;;  %v8994_v53 = vld [vmem:[#allocation9 + $0x1c4] ss:$16 sps:$4 sm:$0xff]  }
 0x196   :  { %v8997_v38 = vld [vmem:[#allocation9 + $0x1cc] ss:$16 sps:$4 sm:$0xff]   ;;  %v8992_v43 = vld [vmem:[#allocation9 + $0x1c0] ss:$16 sps:$4 sm:$0xff]   ;;  %v8995_v44 = vld [vmem:[#allocation9 + $0x1c8] ss:$16 sps:$4 sm:$0xff]  }
 0x197   :  { %v9000_v21 = vld [vmem:[#allocation9 + $0x1e4] ss:$16 sps:$4 sm:$0xff]   ;;  %v9003_v35 = vld [vmem:[#allocation9 + $0x1ec] ss:$16 sps:$4 sm:$0xff]   ;;  %v8998_v19 = vld [vmem:[#allocation9 + $0x1e0] ss:$16 sps:$4 sm:$0xff]  }
 0x198   :  { %4394 = vmatpush1.bf16.msra.mxu0 %v8914_v23  ;;  %4722 = vmatpush1.bf16.msra.mxu1 %v8917_v4  ;;  %v9001_v46 = vld [vmem:[#allocation9 + $0x1e8] ss:$16 sps:$4 sm:$0xff]   ;;  %v9006_v51 = vld [vmem:[#allocation9 + $0x204] ss:$16 sps:$4 sm:$0xff]   ;;  %v9009_v39 = vld [vmem:[#allocation9 + $0x20c] ss:$16 sps:$4 sm:$0xff]  }
 0x199   :  { %4395 = vmatprep.subr.bf16.mxu0 %v8922_v57  ;;  %4723 = vmatprep.subr.bf16.mxu1 %v8925_v52  ;;  %vm5164_vm15 = vcmask 64514  }
 0x19c   :  { %4396 = vmatpush1.bf16.msra.mxu0 %v8920_v7  ;;  %4724 = vmatpush1.bf16.msra.mxu1 %v8923_v36 }
 0x19d   :  { %4397 = vmatprep.subr.bf16.mxu0 %v8928_v2  ;;  %4725 = vmatprep.subr.bf16.mxu1 %v8931_v18 }
 0x1a0   :  { %4398 = vmatpush1.bf16.msra.mxu0 %v8926_v9  ;;  %4726 = vmatpush1.bf16.msra.mxu1 %v8929_v1 }
 0x1a1   :  { %4399 = vmatprep.subr.bf16.mxu0 %v8934_v5  ;;  %4727 = vmatprep.subr.bf16.mxu1 %v8937_v29 }
 0x1a4   :  { %4400 = vmatpush1.bf16.msra.mxu0 %v8932_v25  ;;  %4728 = vmatpush1.bf16.msra.mxu1 %v8935_v12 }
 0x1a5   :  { %4401 = vmatprep.subr.bf16.mxu0 %v8940_v28  ;;  %4729 = vmatprep.subr.bf16.mxu1 %v8943_v63 }
 0x1a8   :  { %4402 = vmatpush1.bf16.msra.mxu0 %v8938_v24  ;;  %4730 = vmatpush1.bf16.msra.mxu1 %v8941_v17 }
 0x1a9   :  { %4403 = vmatprep.subr.bf16.mxu0 %v8946_v22  ;;  %4731 = vmatprep.subr.bf16.mxu1 %v8949_v15 }
 0x1ac   :  { %4404 = vmatpush1.bf16.msra.mxu0 %v8944_v14  ;;  %4732 = vmatpush1.bf16.msra.mxu1 %v8947_v49  ;;  %v9004_v49 = vld [vmem:[#allocation9 + $0x200] ss:$16 sps:$4 sm:$0xff]  }
 0x1ad   :  { %4405 = vmatprep.subr.bf16.mxu0 %v8952_v16  ;;  %4733 = vmatprep.subr.bf16.mxu1 %v8955_v33  ;;  %v9007_v16 = vld [vmem:[#allocation9 + $0x208] ss:$16 sps:$4 sm:$0xff]  }
 0x1b0   :  { %4406 = vmatpush1.bf16.msra.mxu0 %v8950_v20  ;;  %4734 = vmatpush1.bf16.msra.mxu1 %v8953_v34  ;;  %v9012_v20 = vld [vmem:[#allocation9 + $0x224] ss:$16 sps:$4 sm:$0xff]   ;;  %v9015_v34 = vld [vmem:[#allocation9 + $0x22c] ss:$16 sps:$4 sm:$0xff]  }
 0x1b1   :  { %4407 = vmatprep.subr.bf16.mxu0 %v8958_v42  ;;  %4735 = vmatprep.subr.bf16.mxu1 %v8961_v59  ;;  %v9010_v59 = vld [vmem:[#allocation9 + $0x220] ss:$16 sps:$4 sm:$0xff]  }
 0x1b4   :  { %4408 = vmatpush1.bf16.msra.mxu0 %v8956_v32  ;;  %4736 = vmatpush1.bf16.msra.mxu1 %v8959_v40  ;;  %v9013_v32 = vld [vmem:[#allocation9 + $0x228] ss:$16 sps:$4 sm:$0xff]   ;;  %v9018_v40 = vld [vmem:[#allocation9 + $0x244] ss:$16 sps:$4 sm:$0xff]  }
 0x1b5   :  { %4409 = vmatprep.subr.bf16.mxu0 %v8964_v26  ;;  %4737 = vmatprep.subr.bf16.mxu1 %v8967_v27  ;;  %v9021_v26 = vld [vmem:[#allocation9 + $0x24c] ss:$16 sps:$4 sm:$0xff]   ;;  %v9016_v27 = vld [vmem:[#allocation9 + $0x240] ss:$16 sps:$4 sm:$0xff]  }
 0x1b8   :  { %4410 = vmatpush1.bf16.msra.mxu0 %v8962_v30  ;;  %4738 = vmatpush1.bf16.msra.mxu1 %v8965_v62  ;;  %v9019_v30 = vld [vmem:[#allocation9 + $0x248] ss:$16 sps:$4 sm:$0xff]   ;;  %v9024_v62 = vld [vmem:[#allocation9 + $0x264] ss:$16 sps:$4 sm:$0xff]  }
 0x1b9   :  { %4411 = vmatprep.subr.bf16.mxu0 %v8970_v55  ;;  %4739 = vmatprep.subr.bf16.mxu1 %v8973_v58  ;;  %v9027_v55 = vld [vmem:[#allocation9 + $0x26c] ss:$16 sps:$4 sm:$0xff]   ;;  %v9022_v58 = vld [vmem:[#allocation9 + $0x260] ss:$16 sps:$4 sm:$0xff]  }
 0x1bc   :  { %4412 = vmatpush1.bf16.msra.mxu0 %v8968_v50  ;;  %4740 = vmatpush1.bf16.msra.mxu1 %v8971_v61  ;;  %v9025_v50 = vld [vmem:[#allocation9 + $0x268] ss:$16 sps:$4 sm:$0xff]   ;;  %v9030_v61 = vld [vmem:[#allocation9 + $0x284] ss:$16 sps:$4 sm:$0xff]  }
 0x1bd   :  { %4413 = vmatprep.subr.bf16.mxu0 %v8976_v56  ;;  %4741 = vmatprep.subr.bf16.mxu1 %v8979_v48  ;;  %v9033_v56 = vld [vmem:[#allocation9 + $0x28c] ss:$16 sps:$4 sm:$0xff]   ;;  %v9028_v48 = vld [vmem:[#allocation9 + $0x280] ss:$16 sps:$4 sm:$0xff]  }
 0x1c0   :  { %4414 = vmatpush1.bf16.msra.mxu0 %v8974_v6  ;;  %4742 = vmatpush1.bf16.msra.mxu1 %v8977_v31  ;;  %v9031_v6 = vld [vmem:[#allocation9 + $0x288] ss:$16 sps:$4 sm:$0xff]   ;;  %v9036_v31 = vld [vmem:[#allocation9 + $0x2a4] ss:$16 sps:$4 sm:$0xff]  }
 0x1c1   :  { %4415 = vmatprep.subr.bf16.mxu0 %v8982_v37  ;;  %4743 = vmatprep.subr.bf16.mxu1 %v8985_v47  ;;  %v9039_v37 = vld [vmem:[#allocation9 + $0x2ac] ss:$16 sps:$4 sm:$0xff]   ;;  %v9034_v47 = vld [vmem:[#allocation9 + $0x2a0] ss:$16 sps:$4 sm:$0xff]  }
 0x1c4   :  { %4416 = vmatpush1.bf16.msra.mxu0 %v8980_v13  ;;  %4744 = vmatpush1.bf16.msra.mxu1 %v8983_v3  ;;  %v9037_v13 = vld [vmem:[#allocation9 + $0x2a8] ss:$16 sps:$4 sm:$0xff]   ;;  %v9042_v3 = vld [vmem:[#allocation9 + $0x2c4] ss:$16 sps:$4 sm:$0xff]  }
 0x1c5   :  { %4417 = vmatprep.subr.bf16.mxu0 %v8988_v10  ;;  %4745 = vmatprep.subr.bf16.mxu1 %v8991_v0  ;;  %v9045_v10 = vld [vmem:[#allocation9 + $0x2cc] ss:$16 sps:$4 sm:$0xff]   ;;  %v9040_v0 = vld [vmem:[#allocation9 + $0x2c0] ss:$16 sps:$4 sm:$0xff]  }
 0x1c8   :  { %4418 = vmatpush1.bf16.msra.mxu0 %v8986_v60  ;;  %4746 = vmatpush1.bf16.msra.mxu1 %v8989_v41  ;;  %v9043_v60 = vld [vmem:[#allocation9 + $0x2c8] ss:$16 sps:$4 sm:$0xff]   ;;  %v9048_v41 = vld [vmem:[#allocation9 + $0x2e4] ss:$16 sps:$4 sm:$0xff]  }
 0x1c9   :  { %4419 = vmatprep.subr.bf16.mxu0 %v8994_v53  ;;  %4747 = vmatprep.subr.bf16.mxu1 %v8997_v38  ;;  %v9051_v53 = vld [vmem:[#allocation9 + $0x2ec] ss:$16 sps:$4 sm:$0xff]   ;;  %v9046_v38 = vld [vmem:[#allocation9 + $0x2e0] ss:$16 sps:$4 sm:$0xff]  }
 0x1cc   :  { %4420 = vmatpush1.bf16.msra.mxu0 %v8992_v43  ;;  %4748 = vmatpush1.bf16.msra.mxu1 %v8995_v44  ;;  %v9049_v43 = vld [vmem:[#allocation9 + $0x2e8] ss:$16 sps:$4 sm:$0xff]   ;;  %v9054_v44 = vld [vmem:[#allocation9 + $0x304] ss:$16 sps:$4 sm:$0xff]  }
 0x1cd   :  { %4421 = vmatprep.subr.bf16.mxu0 %v9000_v21  ;;  %4749 = vmatprep.subr.bf16.mxu1 %v9003_v35  ;;  %v9057_v21 = vld [vmem:[#allocation9 + $0x30c] ss:$16 sps:$4 sm:$0xff]  }
 0x1d0   :  { %4422 = vmatpush1.bf16.msra.mxu0 %v8998_v19  ;;  %4750 = vmatpush1.bf16.msra.mxu1 %v9001_v46  ;;  %v9052_v46 = vld [vmem:[#allocation9 + $0x300] ss:$16 sps:$4 sm:$0xff]  }
 0x1d1   :  { %4432 = vmatprep.subr.bf16.mxu0 %v9006_v51  ;;  %4760 = vmatprep.subr.bf16.mxu1 %v9009_v39  ;;  %v9055_v51 = vld [vmem:[#allocation9 + $0x308] ss:$16 sps:$4 sm:$0xff]  }
 0x22f   :  { %v993_v11 = vpop.f32.mrb[0].mxu0  ;;  %v10775_v54 = vpop.f32.mrb[0].mxu1 }
 0x230   :  { %v994_v23 = vadd.f32 %v993_v11, %v10773_v45  ;;  %v995_v4 = vpop.f32.mrb[1].mxu0  ;;  %v1036_v57 = vpop.f32.mrb[1].mxu1 }
 0x231   :  { %v996_v52 = vadd.f32 %v995_v4, %v10773_v45  ;;  %v1037_v7 = vadd.f32 %v1036_v57, %v10773_v45  ;;  %v997_v36 = vpop.f32.mrb[2].mxu0  ;;  %v1038_v2 = vpop.f32.mrb[2].mxu1  ;;  %v9063_v4 = vld [vmem:[#allocation9 + $0x32c] ss:$16 sps:$4 sm:$0xff]  }
 0x232   :  { %v998_v18 = vpop.f32.mrb[3].mxu0  ;;  %v1039_v9 = vpop.f32.mrb[3].mxu1  ;;  %9761 = vtanh.f32 %v994_v23  ;;  %v9060_v23 = vld [vmem:[#allocation9 + $0x324] ss:$16 sps:$4 sm:$0xff]   ;;  %v9058_v2 = vld [vmem:[#allocation9 + $0x320] ss:$16 sps:$4 sm:$0xff]  }
 0x233   :  { %9763 = vtanh.f32 %v996_v52  ;;  %v9061_v18 = vld [vmem:[#allocation9 + $0x328] ss:$16 sps:$4 sm:$0xff]   ;;  %v9066_v9 = vld [vmem:[#allocation9 + $0x344] ss:$16 sps:$4 sm:$0xff]  }
 0x234   :  { %9765 = vtanh.f32 %v1037_v7 }
 0x237   :  { %v10780_v1 = vpop.f32.mrb[4].mxu0  ;;  %v10782_v5 = vpop.f32.mrb[4].mxu1 }
 0x238   :  { %v10784_v29 = vpop.f32.mrb[5].mxu0  ;;  %v10786_v25 = vpop.f32.mrb[5].mxu1 }
 0x239   :  { %v1079_v12 = vpop.f32.mrb[6].mxu0  ;;  %v1120_v28 = vpop.f32.mrb[6].mxu1 }
 0x23a   :  { %v1080_v63 = vpop.f32.mrb[7].mxu0  ;;  %v1121_v24 = vpop.f32.mrb[7].mxu1  ;;  %v9069_v12 = vld [vmem:[#allocation9 + $0x34c] ss:$16 sps:$4 sm:$0xff]  }
 0x23b   :  { %v9064_v24 = vld [vmem:[#allocation9 + $0x340] ss:$16 sps:$4 sm:$0xff]  }
 0x23c   :  { %v9762_v17 = vpop.eup %9761 }
 0x23d   :  { %v9764_v22 = vpop.eup %9763  ;;  %v1303_v33 = vpack.c.bf16 %v9762_v17, %v9762_v17  ;;  %v9067_v17 = vld [vmem:[#allocation9 + $0x348] ss:$16 sps:$4 sm:$0xff]  }
 0x23e   :  { %v9766_v15 = vpop.eup %9765  ;;  %v1304_v14 = vpack.c.bf16 %v9764_v22, %v9764_v22 }
 0x23f   :  { %v1306_v42 = vpack.c.bf16 %v9766_v15, %v9766_v15 }
 0x240   :  { %4423 = vmatprep.mubr.bf16.mxu0 %v1304_v14  ;;  %4751 = vmatprep.mubr.bf16.mxu1 %v1304_v14  ;;  %v9072_v14 = vld [vmem:[#allocation9 + $0x364] ss:$16 sps:$4 sm:$0xff]  }
 0x241   :  { %4424 = vmatmul.mubr.bf16.vlgmr.msra.gmra.mrb[16].mxu0 %v1303_v33  ;;  %4752 = vmatmul.mubr.bf16.vlgmr.msra.gmra.mrb[16].mxu1 %v1303_v33 }
 0x242   :  { %4433 = vmatpush1.bf16.msra.mxu0 %v9004_v49  ;;  %4761 = vmatpush1.bf16.msra.mxu1 %v9007_v16  ;;  %v9075_v49 = vld [vmem:[#allocation9 + $0x36c] ss:$16 sps:$4 sm:$0xff]  }
 0x243   :  { %4464 = vmatprep.mubr.bf16.mxu0 %v1306_v42  ;;  %4792 = vmatprep.mubr.bf16.mxu1 %v1306_v42  ;;  %v9070_v42 = vld [vmem:[#allocation9 + $0x360] ss:$16 sps:$4 sm:$0xff]  }
 0x244   :  { %4434 = vmatprep.subr.bf16.mxu0 %v9012_v20  ;;  %4762 = vmatprep.subr.bf16.mxu1 %v9015_v34 }
 0x246   :  { %4435 = vmatpush1.bf16.msra.mxu0 %v9010_v59  ;;  %4763 = vmatpush1.bf16.msra.mxu1 %v9013_v32  ;;  %v9073_v59 = vld [vmem:[#allocation9 + $0x368] ss:$16 sps:$4 sm:$0xff]   ;;  %v9078_v32 = vld [vmem:[#allocation9 + $0x384] ss:$16 sps:$4 sm:$0xff]  }
 0x247   :  { %4436 = vmatprep.subr.bf16.mxu0 %v9018_v40  ;;  %4764 = vmatprep.subr.bf16.mxu1 %v9021_v26  ;;  %v9081_v40 = vld [vmem:[#allocation9 + $0x38c] ss:$16 sps:$4 sm:$0xff]   ;;  %v1035_v26 = vadd.f32 %v10775_v54, %v10773_v45  ;;  %v9090_v54 = vld [vmem:[#allocation9 + $0x3c4] ss:$16 sps:$4 sm:$0xff]  }
 0x249   :  { %9767 = vtanh.f32 %v1035_v26  ;;  %v9145_v26 = vld [vmem:[#allocation9 + $0x4e8] ss:$16 sps:$4 sm:$0xff]  }
 0x24a   :  { %4437 = vmatpush1.bf16.msra.mxu0 %v9016_v27  ;;  %4765 = vmatpush1.bf16.msra.mxu1 %v9019_v30  ;;  %v9076_v27 = vld [vmem:[#allocation9 + $0x380] ss:$16 sps:$4 sm:$0xff]   ;;  %v9079_v30 = vld [vmem:[#allocation9 + $0x388] ss:$16 sps:$4 sm:$0xff]  }
 0x24b   :  { %4438 = vmatprep.subr.bf16.mxu0 %v9024_v62  ;;  %4766 = vmatprep.subr.bf16.mxu1 %v9027_v55  ;;  %v1078_v62 = vadd.f32 %v10784_v29, %v10773_v45  ;;  %v9084_v55 = vld [vmem:[#allocation9 + $0x3a4] ss:$16 sps:$4 sm:$0xff]  }
 0x24c   :  { %v9096_v29 = vld [vmem:[#allocation9 + $0x3e4] ss:$16 sps:$4 sm:$0xff]  }
 0x24d   :  { %9769 = vtanh.f32 %v1078_v62  ;;  %v9148_v62 = vld [vmem:[#allocation9 + $0x500] ss:$16 sps:$4 sm:$0xff]  }
 0x24e   :  { %4439 = vmatpush1.bf16.msra.mxu0 %v9022_v58  ;;  %4767 = vmatpush1.bf16.msra.mxu1 %v9025_v50  ;;  %v9087_v58 = vld [vmem:[#allocation9 + $0x3ac] ss:$16 sps:$4 sm:$0xff]   ;;  %v9082_v50 = vld [vmem:[#allocation9 + $0x3a0] ss:$16 sps:$4 sm:$0xff]  }
 0x24f   :  { %4440 = vmatprep.subr.bf16.mxu0 %v9030_v61  ;;  %4768 = vmatprep.subr.bf16.mxu1 %v9033_v56  ;;  %v9085_v61 = vld [vmem:[#allocation9 + $0x3a8] ss:$16 sps:$4 sm:$0xff]   ;;  %v9093_v56 = vld [vmem:[#allocation9 + $0x3cc] ss:$16 sps:$4 sm:$0xff]  }
 0x252   :  { %4441 = vmatpush1.bf16.msra.mxu0 %v9028_v48  ;;  %4769 = vmatpush1.bf16.msra.mxu1 %v9031_v6  ;;  %v9088_v48 = vld [vmem:[#allocation9 + $0x3c0] ss:$16 sps:$4 sm:$0xff]   ;;  %v9091_v6 = vld [vmem:[#allocation9 + $0x3c8] ss:$16 sps:$4 sm:$0xff]  }
 0x253   :  { %4442 = vmatprep.subr.bf16.mxu0 %v9036_v31  ;;  %4770 = vmatprep.subr.bf16.mxu1 %v9039_v37  ;;  %v9099_v31 = vld [vmem:[#allocation9 + $0x3ec] ss:$16 sps:$4 sm:$0xff]   ;;  %v9094_v37 = vld [vmem:[#allocation9 + $0x3e0] ss:$16 sps:$4 sm:$0xff]  }
 0x256   :  { %4443 = vmatpush1.bf16.msra.mxu0 %v9034_v47  ;;  %4771 = vmatpush1.bf16.msra.mxu1 %v9037_v13  ;;  %v9097_v47 = vld [vmem:[#allocation9 + $0x3e8] ss:$16 sps:$4 sm:$0xff]   ;;  %v9102_v13 = vld [vmem:[#allocation9 + $0x404] ss:$16 sps:$4 sm:$0xff]  }
 0x257   :  { %4444 = vmatprep.subr.bf16.mxu0 %v9042_v3  ;;  %4772 = vmatprep.subr.bf16.mxu1 %v9045_v10  ;;  %v9105_v3 = vld [vmem:[#allocation9 + $0x40c] ss:$16 sps:$4 sm:$0xff]   ;;  %v9768_v10 = vpop.eup %9767 }
 0x25a   :  { %4445 = vmatpush1.bf16.msra.mxu0 %v9040_v0  ;;  %4773 = vmatpush1.bf16.msra.mxu1 %v9043_v60  ;;  %v9770_v0 = vpop.eup %9769  ;;  %v9100_v60 = vld [vmem:[#allocation9 + $0x400] ss:$16 sps:$4 sm:$0xff]  }
 0x25b   :  { %4446 = vmatprep.subr.bf16.mxu0 %v9048_v41  ;;  %4774 = vmatprep.subr.bf16.mxu1 %v9051_v53  ;;  %v1305_v41 = vpack.c.bf16 %v9768_v10, %v9768_v10  ;;  %v9103_v53 = vld [vmem:[#allocation9 + $0x408] ss:$16 sps:$4 sm:$0xff]   ;;  %v9177_v10 = vld [vmem:[#allocation9 + $0x58c] ss:$16 sps:$4 sm:$0xff]  }
 0x25e   :  { %4447 = vmatpush1.bf16.msra.mxu0 %v9046_v38  ;;  %4775 = vmatpush1.bf16.msra.mxu1 %v9049_v43  ;;  %v10788_v35 = vpop.f32.mrb[8].mxu0  ;;  %v10790_v19 = vpop.f32.mrb[8].mxu1  ;;  %v1308_v38 = vpack.c.bf16 %v9770_v0, %v9770_v0  ;;  %v9108_v43 = vld [vmem:[#allocation9 + $0x424] ss:$16 sps:$4 sm:$0xff]   ;;  %v1076_v0 = vadd.f32 %v10780_v1, %v10773_v45  ;;  %v9189_v1 = vld [vmem:[#allocation9 + $0x5cc] ss:$16 sps:$4 sm:$0xff]  }
 0x25f   :  { %v10792_v39 = vpop.f32.mrb[9].mxu0  ;;  %v10794_v11 = vpop.f32.mrb[9].mxu1  ;;  %4448 = vmatprep.subr.bf16.mxu0 %v9054_v44  ;;  %4776 = vmatprep.subr.bf16.mxu1 %v9057_v21  ;;  %v9111_v44 = vld [vmem:[#allocation9 + $0x42c] ss:$16 sps:$4 sm:$0xff]   ;;  %v9106_v21 = vld [vmem:[#allocation9 + $0x420] ss:$16 sps:$4 sm:$0xff]  }
 0x260   :  { %v1161_v57 = vpop.f32.mrb[10].mxu0  ;;  %v1202_v52 = vpop.f32.mrb[10].mxu1  ;;  %9771 = vtanh.f32 %v1076_v0  ;;  %v9249_v0 = vld [vmem:[#allocation9 + $0x70c] ss:$16 sps:$4 sm:$0xff]  }
 0x261   :  { %v1162_v7 = vpop.f32.mrb[11].mxu0  ;;  %v1203_v36 = vpop.f32.mrb[11].mxu1  ;;  %v9115_v57 = vld [vmem:[#allocation9 + $0x448] ss:$16 sps:$4 sm:$0xff]   ;;  %v9120_v52 = vld [vmem:[#allocation9 + $0x464] ss:$16 sps:$4 sm:$0xff]  }
 0x262   :  { %4449 = vmatpush1.bf16.msra.mxu0 %v9052_v46  ;;  %4777 = vmatpush1.bf16.msra.mxu1 %v9055_v51  ;;  %v9109_v46 = vld [vmem:[#allocation9 + $0x428] ss:$16 sps:$4 sm:$0xff]   ;;  %v9114_v51 = vld [vmem:[#allocation9 + $0x444] ss:$16 sps:$4 sm:$0xff]   ;;  %v9123_v7 = vld [vmem:[#allocation9 + $0x46c] ss:$16 sps:$4 sm:$0xff]  }
 0x263   :  { %4450 = vmatprep.subr.bf16.mxu0 %v9060_v23  ;;  %4778 = vmatprep.subr.bf16.mxu1 %v9063_v4  ;;  %v9117_v23 = vld [vmem:[#allocation9 + $0x44c] ss:$16 sps:$4 sm:$0xff]   ;;  %v9112_v4 = vld [vmem:[#allocation9 + $0x440] ss:$16 sps:$4 sm:$0xff]  }
 0x264   :  { %v9118_v36 = vld [vmem:[#allocation9 + $0x460] ss:$16 sps:$4 sm:$0xff]  }
 0x266   :  { %4451 = vmatpush1.bf16.msra.mxu0 %v9058_v2  ;;  %4779 = vmatpush1.bf16.msra.mxu1 %v9061_v18  ;;  %v10796_v28 = vpop.f32.mrb[12].mxu0  ;;  %v10798_v63 = vpop.f32.mrb[12].mxu1  ;;  %v9121_v2 = vld [vmem:[#allocation9 + $0x468] ss:$16 sps:$4 sm:$0xff]   ;;  %v9126_v18 = vld [vmem:[#allocation9 + $0x484] ss:$16 sps:$4 sm:$0xff]  }
 0x267   :  { %v10800_v22 = vpop.f32.mrb[13].mxu0  ;;  %v10802_v15 = vpop.f32.mrb[13].mxu1  ;;  %4452 = vmatprep.subr.bf16.mxu0 %v9066_v9  ;;  %4780 = vmatprep.subr.bf16.mxu1 %v9069_v12  ;;  %v9129_v9 = vld [vmem:[#allocation9 + $0x48c] ss:$16 sps:$4 sm:$0xff]   ;;  %v9124_v12 = vld [vmem:[#allocation9 + $0x480] ss:$16 sps:$4 sm:$0xff]  }
 0x268   :  { %v1243_v16 = vpop.f32.mrb[14].mxu0  ;;  %v1284_v33 = vpop.f32.mrb[14].mxu1 }
 0x269   :  { %v1244_v20 = vpop.f32.mrb[15].mxu0  ;;  %v1285_v34 = vpop.f32.mrb[15].mxu1  ;;  %v9133_v16 = vld [vmem:[#allocation9 + $0x4a8] ss:$16 sps:$4 sm:$0xff]   ;;  %v9138_v33 = vld [vmem:[#allocation9 + $0x4c4] ss:$16 sps:$4 sm:$0xff]  }
 0x26a   :  { %4453 = vmatpush1.bf16.msra.mxu0 %v9064_v24  ;;  %4781 = vmatpush1.bf16.msra.mxu1 %v9067_v17  ;;  %v9127_v24 = vld [vmem:[#allocation9 + $0x488] ss:$16 sps:$4 sm:$0xff]   ;;  %v9132_v17 = vld [vmem:[#allocation9 + $0x4a4] ss:$16 sps:$4 sm:$0xff]   ;;  %v9141_v20 = vld [vmem:[#allocation9 + $0x4cc] ss:$16 sps:$4 sm:$0xff]  }
 0x26b   :  { %4454 = vmatprep.subr.bf16.mxu0 %v9072_v14  ;;  %4782 = vmatprep.subr.bf16.mxu1 %v9075_v49  ;;  %v9135_v14 = vld [vmem:[#allocation9 + $0x4ac] ss:$16 sps:$4 sm:$0xff]   ;;  %v9130_v49 = vld [vmem:[#allocation9 + $0x4a0] ss:$16 sps:$4 sm:$0xff]  }
 0x26c   :  { %v9136_v34 = vld [vmem:[#allocation9 + $0x4c0] ss:$16 sps:$4 sm:$0xff]  }
 0x26e   :  { %4455 = vmatpush1.bf16.msra.mxu0 %v9070_v42  ;;  %4783 = vmatpush1.bf16.msra.mxu1 %v9073_v59  ;;  %v9139_v42 = vld [vmem:[#allocation9 + $0x4c8] ss:$16 sps:$4 sm:$0xff]   ;;  %v9144_v59 = vld [vmem:[#allocation9 + $0x4e4] ss:$16 sps:$4 sm:$0xff]  }
 0x26f   :  { %4456 = vmatprep.subr.bf16.mxu0 %v9078_v32  ;;  %4784 = vmatprep.subr.bf16.mxu1 %v9081_v40  ;;  %v9147_v32 = vld [vmem:[#allocation9 + $0x4ec] ss:$16 sps:$4 sm:$0xff]   ;;  %v9142_v40 = vld [vmem:[#allocation9 + $0x4e0] ss:$16 sps:$4 sm:$0xff]  }
 0x272   :  { %4457 = vmatpush1.bf16.msra.mxu0 %v9076_v27  ;;  %4785 = vmatpush1.bf16.msra.mxu1 %v9079_v30  ;;  %v9150_v27 = vld [vmem:[#allocation9 + $0x504] ss:$16 sps:$4 sm:$0xff]   ;;  %v9153_v30 = vld [vmem:[#allocation9 + $0x50c] ss:$16 sps:$4 sm:$0xff]  }
 0x273   :  { %4458 = vmatprep.subr.bf16.mxu0 %v9084_v55  ;;  %4786 = vmatprep.subr.bf16.mxu1 %v9087_v58  ;;  %v9151_v55 = vld [vmem:[#allocation9 + $0x508] ss:$16 sps:$4 sm:$0xff]   ;;  %v9156_v58 = vld [vmem:[#allocation9 + $0x524] ss:$16 sps:$4 sm:$0xff]  }
 0x276   :  { %4459 = vmatpush1.bf16.msra.mxu0 %v9082_v50  ;;  %4787 = vmatpush1.bf16.msra.mxu1 %v9085_v61  ;;  %v9159_v50 = vld [vmem:[#allocation9 + $0x52c] ss:$16 sps:$4 sm:$0xff]   ;;  %v9154_v61 = vld [vmem:[#allocation9 + $0x520] ss:$16 sps:$4 sm:$0xff]  }
 0x277   :  { %4460 = vmatprep.subr.bf16.mxu0 %v9090_v54  ;;  %4788 = vmatprep.subr.bf16.mxu1 %v9093_v56  ;;  %v9157_v54 = vld [vmem:[#allocation9 + $0x528] ss:$16 sps:$4 sm:$0xff]   ;;  %v9162_v56 = vld [vmem:[#allocation9 + $0x544] ss:$16 sps:$4 sm:$0xff]  }
 0x27a   :  { %4461 = vmatpush1.bf16.msra.mxu0 %v9088_v48  ;;  %4789 = vmatpush1.bf16.msra.mxu1 %v9091_v6  ;;  %v9165_v48 = vld [vmem:[#allocation9 + $0x54c] ss:$16 sps:$4 sm:$0xff]   ;;  %v9160_v6 = vld [vmem:[#allocation9 + $0x540] ss:$16 sps:$4 sm:$0xff]  }
 0x27b   :  { %4462 = vmatprep.subr.bf16.mxu0 %v9096_v29  ;;  %4790 = vmatprep.subr.bf16.mxu1 %v9099_v31  ;;  %v9163_v29 = vld [vmem:[#allocation9 + $0x548] ss:$16 sps:$4 sm:$0xff]   ;;  %v9168_v31 = vld [vmem:[#allocation9 + $0x564] ss:$16 sps:$4 sm:$0xff]  }
 0x27e   :  { %4463 = vmatpush1.bf16.msra.mxu0 %v9094_v37  ;;  %4791 = vmatpush1.bf16.msra.mxu1 %v9097_v47  ;;  %v9171_v37 = vld [vmem:[#allocation9 + $0x56c] ss:$16 sps:$4 sm:$0xff]   ;;  %v9166_v47 = vld [vmem:[#allocation9 + $0x560] ss:$16 sps:$4 sm:$0xff]  }
 0x27f   :  { %4473 = vmatprep.subr.bf16.mxu0 %v9102_v13  ;;  %4801 = vmatprep.subr.bf16.mxu1 %v9105_v3  ;;  %v9169_v13 = vld [vmem:[#allocation9 + $0x568] ss:$16 sps:$4 sm:$0xff]   ;;  %v9174_v3 = vld [vmem:[#allocation9 + $0x584] ss:$16 sps:$4 sm:$0xff]  }
 0x281   :  { %4465 = vmatmul.mubr.bf16.vlgmr.msra.gmra.mrb[16].mxu0 %v1305_v41  ;;  %4793 = vmatmul.mubr.bf16.vlgmr.msra.gmra.mrb[16].mxu1 %v1305_v41  ;;  %v9175_v41 = vld [vmem:[#allocation9 + $0x588] ss:$16 sps:$4 sm:$0xff]  }
 0x282   :  { %4474 = vmatpush1.bf16.msra.mxu0 %v9100_v60  ;;  %4505 = vmatprep.mubr.bf16.mxu0 %v1308_v38  ;;  %v9172_v60 = vld [vmem:[#allocation9 + $0x580] ss:$16 sps:$4 sm:$0xff]  }
 0x283   :  { %4802 = vmatpush1.bf16.msra.mxu1 %v9103_v53  ;;  %4833 = vmatprep.mubr.bf16.mxu1 %v1308_v38  ;;  %v9180_v53 = vld [vmem:[#allocation9 + $0x5a4] ss:$16 sps:$4 sm:$0xff]   ;;  %v1119_v38 = vadd.f32 %v10786_v25, %v10773_v45  ;;  %v9195_v25 = vld [vmem:[#allocation9 + $0x5ec] ss:$16 sps:$4 sm:$0xff]  }
 0x284   :  { %4475 = vmatprep.subr.bf16.mxu0 %v9108_v43  ;;  %4803 = vmatprep.subr.bf16.mxu1 %v9111_v44  ;;  %v9183_v43 = vld [vmem:[#allocation9 + $0x5ac] ss:$16 sps:$4 sm:$0xff]   ;;  %v9178_v44 = vld [vmem:[#allocation9 + $0x5a0] ss:$16 sps:$4 sm:$0xff]  }
 0x285   :  { %9773 = vtanh.f32 %v1119_v38  ;;  %v9255_v38 = vld [vmem:[#allocation9 + $0x72c] ss:$16 sps:$4 sm:$0xff]  }
 0x286   :  { %4476 = vmatpush1.bf16.msra.mxu0 %v9106_v21  ;;  %v9181_v21 = vld [vmem:[#allocation9 + $0x5a8] ss:$16 sps:$4 sm:$0xff]  }
 0x287   :  { %4804 = vmatpush1.bf16.msra.mxu1 %v9109_v46  ;;  %4477 = vmatprep.subr.bf16.mxu0 %v9114_v51  ;;  %v9186_v46 = vld [vmem:[#allocation9 + $0x5c4] ss:$16 sps:$4 sm:$0xff]   ;;  %v9184_v51 = vld [vmem:[#allocation9 + $0x5c0] ss:$16 sps:$4 sm:$0xff]  }
 0x288   :  { %4805 = vmatprep.subr.bf16.mxu1 %v9117_v23  ;;  %v9187_v23 = vld [vmem:[#allocation9 + $0x5c8] ss:$16 sps:$4 sm:$0xff]  }
 0x28a   :  { %4478 = vmatpush1.bf16.msra.mxu0 %v9112_v4  ;;  %v9192_v4 = vld [vmem:[#allocation9 + $0x5e4] ss:$16 sps:$4 sm:$0xff]  }
 0x28b   :  { %4806 = vmatpush1.bf16.msra.mxu1 %v9115_v57  ;;  %4479 = vmatprep.subr.bf16.mxu0 %v9120_v52  ;;  %v9190_v57 = vld [vmem:[#allocation9 + $0x5e0] ss:$16 sps:$4 sm:$0xff]   ;;  %v9193_v52 = vld [vmem:[#allocation9 + $0x5e8] ss:$16 sps:$4 sm:$0xff]  }
 0x28c   :  { %4807 = vmatprep.subr.bf16.mxu1 %v9123_v7  ;;  %v9198_v7 = vld [vmem:[#allocation9 + $0x604] ss:$16 sps:$4 sm:$0xff]  }
 0x28e   :  { %4480 = vmatpush1.bf16.msra.mxu0 %v9118_v36  ;;  %v9772_v36 = vpop.eup %9771 }
 0x28f   :  { %4808 = vmatpush1.bf16.msra.mxu1 %v9121_v2  ;;  %4481 = vmatprep.subr.bf16.mxu0 %v9126_v18  ;;  %v9201_v2 = vld [vmem:[#allocation9 + $0x60c] ss:$16 sps:$4 sm:$0xff]   ;;  %v9774_v18 = vpop.eup %9773 }
 0x290   :  { %4809 = vmatprep.subr.bf16.mxu1 %v9129_v9  ;;  %v9196_v9 = vld [vmem:[#allocation9 + $0x600] ss:$16 sps:$4 sm:$0xff]  }
 0x292   :  { %4482 = vmatpush1.bf16.msra.mxu0 %v9124_v12  ;;  %v1307_v12 = vpack.c.bf16 %v9772_v36, %v9772_v36  ;;  %v1117_v36 = vadd.f32 %v10782_v5, %v10773_v45  ;;  %v9285_v5 = vld [vmem:[#allocation9 + $0x7cc] ss:$16 sps:$4 sm:$0xff]  }
 0x293   :  { %4810 = vmatpush1.bf16.msra.mxu1 %v9127_v24  ;;  %4483 = vmatprep.subr.bf16.mxu0 %v9132_v17  ;;  %v9199_v24 = vld [vmem:[#allocation9 + $0x608] ss:$16 sps:$4 sm:$0xff]   ;;  %v9204_v17 = vld [vmem:[#allocation9 + $0x624] ss:$16 sps:$4 sm:$0xff]  }
 0x294   :  { %4811 = vmatprep.subr.bf16.mxu1 %v9135_v14  ;;  %v1310_v14 = vpack.c.bf16 %v9774_v18, %v9774_v18  ;;  %v9271_v18 = vld [vmem:[#allocation9 + $0x788] ss:$16 sps:$4 sm:$0xff]   ;;  %9775 = vtanh.f32 %v1117_v36 }
 0x295   :  { %v9343_v36 = vld [vmem:[#allocation9 + $0x908] ss:$16 sps:$4 sm:$0xff]  }
 0x296   :  { %4484 = vmatpush1.bf16.msra.mxu0 %v9130_v49  ;;  %v9207_v49 = vld [vmem:[#allocation9 + $0x62c] ss:$16 sps:$4 sm:$0xff]  }
 0x297   :  { %4812 = vmatpush1.bf16.msra.mxu1 %v9133_v16  ;;  %4485 = vmatprep.subr.bf16.mxu0 %v9138_v33  ;;  %v9202_v16 = vld [vmem:[#allocation9 + $0x620] ss:$16 sps:$4 sm:$0xff]   ;;  %v9205_v33 = vld [vmem:[#allocation9 + $0x628] ss:$16 sps:$4 sm:$0xff]  }
 0x298   :  { %4813 = vmatprep.subr.bf16.mxu1 %v9141_v20  ;;  %v9210_v20 = vld [vmem:[#allocation9 + $0x644] ss:$16 sps:$4 sm:$0xff]  }
 0x29a   :  { %4486 = vmatpush1.bf16.msra.mxu0 %v9136_v34  ;;  %v9213_v34 = vld [vmem:[#allocation9 + $0x64c] ss:$16 sps:$4 sm:$0xff]  }
 0x29b   :  { %4814 = vmatpush1.bf16.msra.mxu1 %v9139_v42  ;;  %4487 = vmatprep.subr.bf16.mxu0 %v9144_v59  ;;  %v9208_v42 = vld [vmem:[#allocation9 + $0x640] ss:$16 sps:$4 sm:$0xff]   ;;  %v9211_v59 = vld [vmem:[#allocation9 + $0x648] ss:$16 sps:$4 sm:$0xff]  }
 0x29c   :  { %4815 = vmatprep.subr.bf16.mxu1 %v9147_v32  ;;  %v9216_v32 = vld [vmem:[#allocation9 + $0x664] ss:$16 sps:$4 sm:$0xff]  }
 0x29e   :  { %4488 = vmatpush1.bf16.msra.mxu0 %v9142_v40  ;;  %v9219_v40 = vld [vmem:[#allocation9 + $0x66c] ss:$16 sps:$4 sm:$0xff]  }
 0x29f   :  { %4816 = vmatpush1.bf16.msra.mxu1 %v9145_v26  ;;  %4489 = vmatprep.subr.bf16.mxu0 %v9150_v27  ;;  %v9214_v26 = vld [vmem:[#allocation9 + $0x660] ss:$16 sps:$4 sm:$0xff]   ;;  %v9217_v27 = vld [vmem:[#allocation9 + $0x668] ss:$16 sps:$4 sm:$0xff]  }
 0x2a0   :  { %4817 = vmatprep.subr.bf16.mxu1 %v9153_v30  ;;  %v9222_v30 = vld [vmem:[#allocation9 + $0x684] ss:$16 sps:$4 sm:$0xff]  }
 0x2a2   :  { %4490 = vmatpush1.bf16.msra.mxu0 %v9148_v62  ;;  %v9225_v62 = vld [vmem:[#allocation9 + $0x68c] ss:$16 sps:$4 sm:$0xff]  }
 0x2a3   :  { %4818 = vmatpush1.bf16.msra.mxu1 %v9151_v55  ;;  %4491 = vmatprep.subr.bf16.mxu0 %v9156_v58  ;;  %v9220_v55 = vld [vmem:[#allocation9 + $0x680] ss:$16 sps:$4 sm:$0xff]   ;;  %v9223_v58 = vld [vmem:[#allocation9 + $0x688] ss:$16 sps:$4 sm:$0xff]  }
 0x2a4   :  { %4819 = vmatprep.subr.bf16.mxu1 %v9159_v50  ;;  %v9228_v50 = vld [vmem:[#allocation9 + $0x6a4] ss:$16 sps:$4 sm:$0xff]  }
 0x2a6   :  { %4492 = vmatpush1.bf16.msra.mxu0 %v9154_v61  ;;  %v9231_v61 = vld [vmem:[#allocation9 + $0x6ac] ss:$16 sps:$4 sm:$0xff]  }
 0x2a7   :  { %4820 = vmatpush1.bf16.msra.mxu1 %v9157_v54  ;;  %4493 = vmatprep.subr.bf16.mxu0 %v9162_v56  ;;  %v9226_v54 = vld [vmem:[#allocation9 + $0x6a0] ss:$16 sps:$4 sm:$0xff]   ;;  %v9229_v56 = vld [vmem:[#allocation9 + $0x6a8] ss:$16 sps:$4 sm:$0xff]  }
 0x2a8   :  { %4821 = vmatprep.subr.bf16.mxu1 %v9165_v48  ;;  %v9234_v48 = vld [vmem:[#allocation9 + $0x6c4] ss:$16 sps:$4 sm:$0xff]  }
 0x2aa   :  { %4494 = vmatpush1.bf16.msra.mxu0 %v9160_v6  ;;  %v9237_v6 = vld [vmem:[#allocation9 + $0x6cc] ss:$16 sps:$4 sm:$0xff]  }
 0x2ab   :  { %4822 = vmatpush1.bf16.msra.mxu1 %v9163_v29  ;;  %4495 = vmatprep.subr.bf16.mxu0 %v9168_v31  ;;  %v9232_v29 = vld [vmem:[#allocation9 + $0x6c0] ss:$16 sps:$4 sm:$0xff]   ;;  %v9235_v31 = vld [vmem:[#allocation9 + $0x6c8] ss:$16 sps:$4 sm:$0xff]  }
 0x2ac   :  { %4823 = vmatprep.subr.bf16.mxu1 %v9171_v37  ;;  %v9240_v37 = vld [vmem:[#allocation9 + $0x6e4] ss:$16 sps:$4 sm:$0xff]  }
 0x2ae   :  { %4496 = vmatpush1.bf16.msra.mxu0 %v9166_v47  ;;  %v9243_v47 = vld [vmem:[#allocation9 + $0x6ec] ss:$16 sps:$4 sm:$0xff]  }
 0x2af   :  { %4824 = vmatpush1.bf16.msra.mxu1 %v9169_v13  ;;  %4497 = vmatprep.subr.bf16.mxu0 %v9174_v3  ;;  %v9238_v13 = vld [vmem:[#allocation9 + $0x6e0] ss:$16 sps:$4 sm:$0xff]   ;;  %v9241_v3 = vld [vmem:[#allocation9 + $0x6e8] ss:$16 sps:$4 sm:$0xff]  }
 0x2b0   :  { %4825 = vmatprep.subr.bf16.mxu1 %v9177_v10  ;;  %v9246_v10 = vld [vmem:[#allocation9 + $0x704] ss:$16 sps:$4 sm:$0xff]  }
 0x2b2   :  { %4498 = vmatpush1.bf16.msra.mxu0 %v9172_v60  ;;  %v9244_v60 = vld [vmem:[#allocation9 + $0x700] ss:$16 sps:$4 sm:$0xff]  }
 0x2b3   :  { %4826 = vmatpush1.bf16.msra.mxu1 %v9175_v41  ;;  %4499 = vmatprep.subr.bf16.mxu0 %v9180_v53  ;;  %v9247_v41 = vld [vmem:[#allocation9 + $0x708] ss:$16 sps:$4 sm:$0xff]   ;;  %v9252_v53 = vld [vmem:[#allocation9 + $0x724] ss:$16 sps:$4 sm:$0xff]  }
 0x2b4   :  { %4827 = vmatprep.subr.bf16.mxu1 %v9183_v43  ;;  %v9250_v43 = vld [vmem:[#allocation9 + $0x720] ss:$16 sps:$4 sm:$0xff]  }
 0x2b6   :  { %4500 = vmatpush1.bf16.msra.mxu0 %v9178_v44  ;;  %v9253_v44 = vld [vmem:[#allocation9 + $0x728] ss:$16 sps:$4 sm:$0xff]  }
 0x2b7   :  { %4828 = vmatpush1.bf16.msra.mxu1 %v9181_v21  ;;  %4501 = vmatprep.subr.bf16.mxu0 %v9186_v46  ;;  %v9258_v21 = vld [vmem:[#allocation9 + $0x744] ss:$16 sps:$4 sm:$0xff]   ;;  %v9261_v46 = vld [vmem:[#allocation9 + $0x74c] ss:$16 sps:$4 sm:$0xff]  }
 0x2b8   :  { %4829 = vmatprep.subr.bf16.mxu1 %v9189_v1  ;;  %v9256_v1 = vld [vmem:[#allocation9 + $0x740] ss:$16 sps:$4 sm:$0xff]  }
 0x2ba   :  { %4502 = vmatpush1.bf16.msra.mxu0 %v9184_v51  ;;  %v9259_v51 = vld [vmem:[#allocation9 + $0x748] ss:$16 sps:$4 sm:$0xff]  }
 0x2bb   :  { %4830 = vmatpush1.bf16.msra.mxu1 %v9187_v23  ;;  %4503 = vmatprep.subr.bf16.mxu0 %v9192_v4  ;;  %v9264_v23 = vld [vmem:[#allocation9 + $0x764] ss:$16 sps:$4 sm:$0xff]   ;;  %v9267_v4 = vld [vmem:[#allocation9 + $0x76c] ss:$16 sps:$4 sm:$0xff]  }
 0x2bc   :  { %4831 = vmatprep.subr.bf16.mxu1 %v9195_v25  ;;  %v9262_v25 = vld [vmem:[#allocation9 + $0x760] ss:$16 sps:$4 sm:$0xff]  }
 0x2be   :  { %4504 = vmatpush1.bf16.msra.mxu0 %v9190_v57  ;;  %v9265_v57 = vld [vmem:[#allocation9 + $0x768] ss:$16 sps:$4 sm:$0xff]  }
 0x2bf   :  { %4832 = vmatpush1.bf16.msra.mxu1 %v9193_v52  ;;  %4514 = vmatprep.subr.bf16.mxu0 %v9198_v7  ;;  %v9270_v52 = vld [vmem:[#allocation9 + $0x784] ss:$16 sps:$4 sm:$0xff]   ;;  %v9273_v7 = vld [vmem:[#allocation9 + $0x78c] ss:$16 sps:$4 sm:$0xff]  }
 0x2c0   :  { %4842 = vmatprep.subr.bf16.mxu1 %v9201_v2  ;;  %v9268_v2 = vld [vmem:[#allocation9 + $0x780] ss:$16 sps:$4 sm:$0xff]  }
 0x2c1   :  { %4506 = vmatmul.mubr.bf16.vlgmr.msra.gmra.mrb[16].mxu0 %v1307_v12 }
 0x2c2   :  { %4834 = vmatmul.mubr.bf16.vlgmr.msra.gmra.mrb[16].mxu1 %v1307_v12  ;;  %4515 = vmatpush1.bf16.msra.mxu0 %v9196_v9  ;;  %v9276_v9 = vld [vmem:[#allocation9 + $0x7a4] ss:$16 sps:$4 sm:$0xff]   ;;  %v1160_v12 = vadd.f32 %v10792_v39, %v10773_v45  ;;  %v9291_v39 = vld [vmem:[#allocation9 + $0x7ec] ss:$16 sps:$4 sm:$0xff]  }
 0x2c3   :  { %4546 = vmatprep.mubr.bf16.mxu0 %v1310_v14  ;;  %4843 = vmatpush1.bf16.msra.mxu1 %v9199_v24  ;;  %v9279_v24 = vld [vmem:[#allocation9 + $0x7ac] ss:$16 sps:$4 sm:$0xff]  }
 0x2c4   :  { %4874 = vmatprep.mubr.bf16.mxu1 %v1310_v14  ;;  %4516 = vmatprep.subr.bf16.mxu0 %v9204_v17  ;;  %v9274_v17 = vld [vmem:[#allocation9 + $0x7a0] ss:$16 sps:$4 sm:$0xff]   ;;  %v9277_v14 = vld [vmem:[#allocation9 + $0x7a8] ss:$16 sps:$4 sm:$0xff]   ;;  %9777 = vtanh.f32 %v1160_v12 }
 0x2c5   :  { %4844 = vmatprep.subr.bf16.mxu1 %v9207_v49  ;;  %v9282_v49 = vld [vmem:[#allocation9 + $0x7c4] ss:$16 sps:$4 sm:$0xff]   ;;  %v9349_v12 = vld [vmem:[#allocation9 + $0x928] ss:$16 sps:$4 sm:$0xff]  }
 0x2c6   :  { %4517 = vmatpush1.bf16.msra.mxu0 %v9202_v16  ;;  %v9280_v16 = vld [vmem:[#allocation9 + $0x7c0] ss:$16 sps:$4 sm:$0xff]  }
 0x2c7   :  { %4845 = vmatpush1.bf16.msra.mxu1 %v9205_v33  ;;  %4518 = vmatprep.subr.bf16.mxu0 %v9210_v20  ;;  %v9283_v33 = vld [vmem:[#allocation9 + $0x7c8] ss:$16 sps:$4 sm:$0xff]   ;;  %v9288_v20 = vld [vmem:[#allocation9 + $0x7e4] ss:$16 sps:$4 sm:$0xff]  }
 0x2c8   :  { %4846 = vmatprep.subr.bf16.mxu1 %v9213_v34  ;;  %v9286_v34 = vld [vmem:[#allocation9 + $0x7e0] ss:$16 sps:$4 sm:$0xff]  }
 0x2ca   :  { %4519 = vmatpush1.bf16.msra.mxu0 %v9208_v42  ;;  %v9289_v42 = vld [vmem:[#allocation9 + $0x7e8] ss:$16 sps:$4 sm:$0xff]  }
 0x2cb   :  { %4847 = vmatpush1.bf16.msra.mxu1 %v9211_v59  ;;  %4520 = vmatprep.subr.bf16.mxu0 %v9216_v32  ;;  %v9294_v59 = vld [vmem:[#allocation9 + $0x804] ss:$16 sps:$4 sm:$0xff]   ;;  %v9776_v32 = vpop.eup %9775 }
 0x2cc   :  { %4848 = vmatprep.subr.bf16.mxu1 %v9219_v40  ;;  %v9297_v40 = vld [vmem:[#allocation9 + $0x80c] ss:$16 sps:$4 sm:$0xff]  }
 0x2ce   :  { %4521 = vmatpush1.bf16.msra.mxu0 %v9214_v26  ;;  %v9778_v26 = vpop.eup %9777 }
 0x2cf   :  { %4849 = vmatpush1.bf16.msra.mxu1 %v9217_v27  ;;  %4522 = vmatprep.subr.bf16.mxu0 %v9222_v30  ;;  %v9292_v27 = vld [vmem:[#allocation9 + $0x800] ss:$16 sps:$4 sm:$0xff]   ;;  %v1309_v30 = vpack.c.bf16 %v9776_v32, %v9776_v32  ;;  %v9367_v32 = vld [vmem:[#allocation9 + $0x988] ss:$16 sps:$4 sm:$0xff]  }
 0x2d0   :  { %4850 = vmatprep.subr.bf16.mxu1 %v9225_v62  ;;  %v9295_v62 = vld [vmem:[#allocation9 + $0x808] ss:$16 sps:$4 sm:$0xff]  }
 0x2d2   :  { %4523 = vmatpush1.bf16.msra.mxu0 %v9220_v55  ;;  %v9300_v55 = vld [vmem:[#allocation9 + $0x824] ss:$16 sps:$4 sm:$0xff]  }
 0x2d3   :  { %4851 = vmatpush1.bf16.msra.mxu1 %v9223_v58  ;;  %4524 = vmatprep.subr.bf16.mxu0 %v9228_v50  ;;  %v1312_v58 = vpack.c.bf16 %v9778_v26, %v9778_v26  ;;  %v9303_v50 = vld [vmem:[#allocation9 + $0x82c] ss:$16 sps:$4 sm:$0xff]   ;;  %v1201_v26 = vadd.f32 %v10794_v11, %v10773_v45 }
 0x2d4   :  { %4852 = vmatprep.subr.bf16.mxu1 %v9231_v61  ;;  %v9298_v61 = vld [vmem:[#allocation9 + $0x820] ss:$16 sps:$4 sm:$0xff]   ;;  %v9387_v11 = vld [vmem:[#allocation9 + $0x9ec] ss:$16 sps:$4 sm:$0xff]  }
 0x2d6   :  { %4525 = vmatpush1.bf16.msra.mxu0 %v9226_v54  ;;  %v9301_v54 = vld [vmem:[#allocation9 + $0x828] ss:$16 sps:$4 sm:$0xff]  }
 0x2d7   :  { %4853 = vmatpush1.bf16.msra.mxu1 %v9229_v56  ;;  %4526 = vmatprep.subr.bf16.mxu0 %v9234_v48  ;;  %v9306_v56 = vld [vmem:[#allocation9 + $0x844] ss:$16 sps:$4 sm:$0xff]   ;;  %v9309_v48 = vld [vmem:[#allocation9 + $0x84c] ss:$16 sps:$4 sm:$0xff]  }
 0x2d8   :  { %4854 = vmatprep.subr.bf16.mxu1 %v9237_v6  ;;  %v9304_v6 = vld [vmem:[#allocation9 + $0x840] ss:$16 sps:$4 sm:$0xff]  }
 0x2da   :  { %4527 = vmatpush1.bf16.msra.mxu0 %v9232_v29  ;;  %v9307_v29 = vld [vmem:[#allocation9 + $0x848] ss:$16 sps:$4 sm:$0xff]  }
 0x2db   :  { %4855 = vmatpush1.bf16.msra.mxu1 %v9235_v31  ;;  %4528 = vmatprep.subr.bf16.mxu0 %v9240_v37  ;;  %v9312_v31 = vld [vmem:[#allocation9 + $0x864] ss:$16 sps:$4 sm:$0xff]   ;;  %v9315_v37 = vld [vmem:[#allocation9 + $0x86c] ss:$16 sps:$4 sm:$0xff]  }
 0x2dc   :  { %4856 = vmatprep.subr.bf16.mxu1 %v9243_v47  ;;  %v9310_v47 = vld [vmem:[#allocation9 + $0x860] ss:$16 sps:$4 sm:$0xff]  }
 0x2de   :  { %4529 = vmatpush1.bf16.msra.mxu0 %v9238_v13  ;;  %v9313_v13 = vld [vmem:[#allocation9 + $0x868] ss:$16 sps:$4 sm:$0xff]  }
 0x2df   :  { %4857 = vmatpush1.bf16.msra.mxu1 %v9241_v3  ;;  %4530 = vmatprep.subr.bf16.mxu0 %v9246_v10  ;;  %v9318_v3 = vld [vmem:[#allocation9 + $0x884] ss:$16 sps:$4 sm:$0xff]   ;;  %v9321_v10 = vld [vmem:[#allocation9 + $0x88c] ss:$16 sps:$4 sm:$0xff]  }
 0x2e0   :  { %4858 = vmatprep.subr.bf16.mxu1 %v9249_v0  ;;  %v9316_v0 = vld [vmem:[#allocation9 + $0x880] ss:$16 sps:$4 sm:$0xff]  }
 0x2e2   :  { %4531 = vmatpush1.bf16.msra.mxu0 %v9244_v60  ;;  %v9319_v60 = vld [vmem:[#allocation9 + $0x888] ss:$16 sps:$4 sm:$0xff]  }
 0x2e3   :  { %4859 = vmatpush1.bf16.msra.mxu1 %v9247_v41  ;;  %4532 = vmatprep.subr.bf16.mxu0 %v9252_v53  ;;  %v9324_v41 = vld [vmem:[#allocation9 + $0x8a4] ss:$16 sps:$4 sm:$0xff]   ;;  %v9327_v53 = vld [vmem:[#allocation9 + $0x8ac] ss:$16 sps:$4 sm:$0xff]  }
 0x2e4   :  { %4860 = vmatprep.subr.bf16.mxu1 %v9255_v38  ;;  %v9322_v38 = vld [vmem:[#allocation9 + $0x8a0] ss:$16 sps:$4 sm:$0xff]  }
 0x2e6   :  { %4533 = vmatpush1.bf16.msra.mxu0 %v9250_v43  ;;  %v9325_v43 = vld [vmem:[#allocation9 + $0x8a8] ss:$16 sps:$4 sm:$0xff]  }
 0x2e7   :  { %4861 = vmatpush1.bf16.msra.mxu1 %v9253_v44  ;;  %4534 = vmatprep.subr.bf16.mxu0 %v9258_v21  ;;  %v9330_v44 = vld [vmem:[#allocation9 + $0x8c4] ss:$16 sps:$4 sm:$0xff]   ;;  %v9333_v21 = vld [vmem:[#allocation9 + $0x8cc] ss:$16 sps:$4 sm:$0xff]  }
 0x2e8   :  { %4862 = vmatprep.subr.bf16.mxu1 %v9261_v46  ;;  %v9328_v46 = vld [vmem:[#allocation9 + $0x8c0] ss:$16 sps:$4 sm:$0xff]  }
 0x2ea   :  { %4535 = vmatpush1.bf16.msra.mxu0 %v9256_v1  ;;  %v9331_v1 = vld [vmem:[#allocation9 + $0x8c8] ss:$16 sps:$4 sm:$0xff]  }
 0x2eb   :  { %4863 = vmatpush1.bf16.msra.mxu1 %v9259_v51  ;;  %4536 = vmatprep.subr.bf16.mxu0 %v9264_v23  ;;  %v9336_v51 = vld [vmem:[#allocation9 + $0x8e4] ss:$16 sps:$4 sm:$0xff]   ;;  %v9339_v23 = vld [vmem:[#allocation9 + $0x8ec] ss:$16 sps:$4 sm:$0xff]  }
 0x2ec   :  { %4864 = vmatprep.subr.bf16.mxu1 %v9267_v4  ;;  %v9334_v4 = vld [vmem:[#allocation9 + $0x8e0] ss:$16 sps:$4 sm:$0xff]  }
 0x2ee   :  { %4537 = vmatpush1.bf16.msra.mxu0 %v9262_v25  ;;  %v9337_v25 = vld [vmem:[#allocation9 + $0x8e8] ss:$16 sps:$4 sm:$0xff]  }
 0x2ef   :  { %4865 = vmatpush1.bf16.msra.mxu1 %v9265_v57  ;;  %4538 = vmatprep.subr.bf16.mxu0 %v9270_v52  ;;  %v9342_v57 = vld [vmem:[#allocation9 + $0x904] ss:$16 sps:$4 sm:$0xff]   ;;  %v9345_v52 = vld [vmem:[#allocation9 + $0x90c] ss:$16 sps:$4 sm:$0xff]  }
 0x2f0   :  { %4866 = vmatprep.subr.bf16.mxu1 %v9273_v7  ;;  %v9340_v7 = vld [vmem:[#allocation9 + $0x900] ss:$16 sps:$4 sm:$0xff]  }
 0x2f2   :  { %4539 = vmatpush1.bf16.msra.mxu0 %v9268_v2  ;;  %v9348_v2 = vld [vmem:[#allocation9 + $0x924] ss:$16 sps:$4 sm:$0xff]  }
 0x2f3   :  { %4867 = vmatpush1.bf16.msra.mxu1 %v9271_v18  ;;  %4540 = vmatprep.subr.bf16.mxu0 %v9276_v9  ;;  %v9351_v18 = vld [vmem:[#allocation9 + $0x92c] ss:$16 sps:$4 sm:$0xff]   ;;  %v9346_v9 = vld [vmem:[#allocation9 + $0x920] ss:$16 sps:$4 sm:$0xff]  }
 0x2f4   :  { %4868 = vmatprep.subr.bf16.mxu1 %v9279_v24  ;;  %v9354_v24 = vld [vmem:[#allocation9 + $0x944] ss:$16 sps:$4 sm:$0xff]  }
 0x2f6   :  { %4541 = vmatpush1.bf16.msra.mxu0 %v9274_v17  ;;  %v9357_v17 = vld [vmem:[#allocation9 + $0x94c] ss:$16 sps:$4 sm:$0xff]  }
 0x2f7   :  { %4869 = vmatpush1.bf16.msra.mxu1 %v9277_v14  ;;  %4542 = vmatprep.subr.bf16.mxu0 %v9282_v49  ;;  %v9352_v14 = vld [vmem:[#allocation9 + $0x940] ss:$16 sps:$4 sm:$0xff]   ;;  %v9355_v49 = vld [vmem:[#allocation9 + $0x948] ss:$16 sps:$4 sm:$0xff]  }
 0x2f8   :  { %4870 = vmatprep.subr.bf16.mxu1 %v9285_v5  ;;  %v9360_v5 = vld [vmem:[#allocation9 + $0x964] ss:$16 sps:$4 sm:$0xff]  }
 0x2fa   :  { %4543 = vmatpush1.bf16.msra.mxu0 %v9280_v16  ;;  %v9363_v16 = vld [vmem:[#allocation9 + $0x96c] ss:$16 sps:$4 sm:$0xff]  }
 0x2fb   :  { %4871 = vmatpush1.bf16.msra.mxu1 %v9283_v33  ;;  %4544 = vmatprep.subr.bf16.mxu0 %v9288_v20  ;;  %v9358_v33 = vld [vmem:[#allocation9 + $0x960] ss:$16 sps:$4 sm:$0xff]   ;;  %v9361_v20 = vld [vmem:[#allocation9 + $0x968] ss:$16 sps:$4 sm:$0xff]  }
 0x2fc   :  { %4872 = vmatprep.subr.bf16.mxu1 %v9291_v39  ;;  %v9366_v39 = vld [vmem:[#allocation9 + $0x984] ss:$16 sps:$4 sm:$0xff]  }
 0x2fe   :  { %4545 = vmatpush1.bf16.msra.mxu0 %v9286_v34  ;;  %v9369_v34 = vld [vmem:[#allocation9 + $0x98c] ss:$16 sps:$4 sm:$0xff]  }
 0x2ff   :  { %4873 = vmatpush1.bf16.msra.mxu1 %v9289_v42  ;;  %4555 = vmatprep.subr.bf16.mxu0 %v9294_v59  ;;  %v1158_v42 = vadd.f32 %v10788_v35, %v10773_v45  ;;  %v9364_v59 = vld [vmem:[#allocation9 + $0x980] ss:$16 sps:$4 sm:$0xff]   ;;  %v9381_v35 = vld [vmem:[#allocation9 + $0x9cc] ss:$16 sps:$4 sm:$0xff]  }
 0x300   :  { %4883 = vmatprep.subr.bf16.mxu1 %v9297_v40  ;;  %v9372_v40 = vld [vmem:[#allocation9 + $0x9a4] ss:$16 sps:$4 sm:$0xff]  }
 0x301   :  { %4547 = vmatmul.mubr.bf16.vlgmr.msra.gmra.mrb[16].mxu0 %v1309_v30  ;;  %9779 = vtanh.f32 %v1158_v42  ;;  %v9447_v42 = vld [vmem:[#allocation9 + $0xb2c] ss:$16 sps:$4 sm:$0xff]  }
 0x302   :  { %4875 = vmatmul.mubr.bf16.vlgmr.msra.gmra.mrb[16].mxu1 %v1309_v30  ;;  %4556 = vmatpush1.bf16.msra.mxu0 %v9292_v27  ;;  %v9375_v27 = vld [vmem:[#allocation9 + $0x9ac] ss:$16 sps:$4 sm:$0xff]   ;;  %v9370_v30 = vld [vmem:[#allocation9 + $0x9a0] ss:$16 sps:$4 sm:$0xff]   ;;  %9781 = vtanh.f32 %v1201_v26 }
 0x303   :  { %4587 = vmatprep.mubr.bf16.mxu0 %v1312_v58  ;;  %4884 = vmatpush1.bf16.msra.mxu1 %v9295_v62  ;;  %v9373_v62 = vld [vmem:[#allocation9 + $0x9a8] ss:$16 sps:$4 sm:$0xff]   ;;  %v9453_v26 = vld [vmem:[#allocation9 + $0xb4c] ss:$16 sps:$4 sm:$0xff]  }
 0x304   :  { %4915 = vmatprep.mubr.bf16.mxu1 %v1312_v58  ;;  %4557 = vmatprep.subr.bf16.mxu0 %v9300_v55  ;;  %v9378_v55 = vld [vmem:[#allocation9 + $0x9c4] ss:$16 sps:$4 sm:$0xff]   ;;  %v9376_v58 = vld [vmem:[#allocation9 + $0x9c0] ss:$16 sps:$4 sm:$0xff]  }
 0x305   :  { %4885 = vmatprep.subr.bf16.mxu1 %v9303_v50  ;;  %v9379_v50 = vld [vmem:[#allocation9 + $0x9c8] ss:$16 sps:$4 sm:$0xff]  }
 0x306   :  { %4558 = vmatpush1.bf16.msra.mxu0 %v9298_v61  ;;  %v9384_v61 = vld [vmem:[#allocation9 + $0x9e4] ss:$16 sps:$4 sm:$0xff]  }
 0x307   :  { %4886 = vmatpush1.bf16.msra.mxu1 %v9301_v54  ;;  %4559 = vmatprep.subr.bf16.mxu0 %v9306_v56  ;;  %v9382_v54 = vld [vmem:[#allocation9 + $0x9e0] ss:$16 sps:$4 sm:$0xff]   ;;  %v9385_v56 = vld [vmem:[#allocation9 + $0x9e8] ss:$16 sps:$4 sm:$0xff]  }
 0x308   :  { %4887 = vmatprep.subr.bf16.mxu1 %v9309_v48  ;;  %v9390_v48 = vld [vmem:[#allocation9 + $0xa04] ss:$16 sps:$4 sm:$0xff]  }
 0x30a   :  { %4560 = vmatpush1.bf16.msra.mxu0 %v9304_v6 }
 0x30b   :  { %4888 = vmatpush1.bf16.msra.mxu1 %v9307_v29  ;;  %4561 = vmatprep.subr.bf16.mxu0 %v9312_v31  ;;  %v9780_v6 = vpop.eup %9779  ;;  %v9393_v29 = vld [vmem:[#allocation9 + $0xa0c] ss:$16 sps:$4 sm:$0xff]  }
 0x30c   :  { %4889 = vmatprep.subr.bf16.mxu1 %v9315_v37  ;;  %v9782_v31 = vpop.eup %9781  ;;  %v9388_v37 = vld [vmem:[#allocation9 + $0xa00] ss:$16 sps:$4 sm:$0xff]  }
 0x30e   :  { %4562 = vmatpush1.bf16.msra.mxu0 %v9310_v47  ;;  %v1311_v47 = vpack.c.bf16 %v9780_v6, %v9780_v6  ;;  %v1242_v6 = vadd.f32 %v10800_v22, %v10773_v45  ;;  %v9483_v22 = vld [vmem:[#allocation9 + $0xbec] ss:$16 sps:$4 sm:$0xff]  }
 0x30f   :  { %4890 = vmatpush1.bf16.msra.mxu1 %v9313_v13  ;;  %4563 = vmatprep.subr.bf16.mxu0 %v9318_v3  ;;  %v9391_v13 = vld [vmem:[#allocation9 + $0xa08] ss:$16 sps:$4 sm:$0xff]   ;;  %v9396_v3 = vld [vmem:[#allocation9 + $0xa24] ss:$16 sps:$4 sm:$0xff]  }
 0x310   :  { %4891 = vmatprep.subr.bf16.mxu1 %v9321_v10  ;;  %v1314_v10 = vpack.c.bf16 %v9782_v31, %v9782_v31  ;;  %v9466_v31 = vld [vmem:[#allocation9 + $0xba0] ss:$16 sps:$4 sm:$0xff]  }
 0x312   :  { %4564 = vmatpush1.bf16.msra.mxu0 %v9316_v0  ;;  %v9399_v0 = vld [vmem:[#allocation9 + $0xa2c] ss:$16 sps:$4 sm:$0xff]  }
 0x313   :  { %4892 = vmatpush1.bf16.msra.mxu1 %v9319_v60  ;;  %4565 = vmatprep.subr.bf16.mxu0 %v9324_v41  ;;  %v9394_v60 = vld [vmem:[#allocation9 + $0xa20] ss:$16 sps:$4 sm:$0xff]   ;;  %v9397_v41 = vld [vmem:[#allocation9 + $0xa28] ss:$16 sps:$4 sm:$0xff]  }
 0x314   :  { %4893 = vmatprep.subr.bf16.mxu1 %v9327_v53  ;;  %v9402_v53 = vld [vmem:[#allocation9 + $0xa44] ss:$16 sps:$4 sm:$0xff]  }
 0x316   :  { %4566 = vmatpush1.bf16.msra.mxu0 %v9322_v38  ;;  %v9405_v38 = vld [vmem:[#allocation9 + $0xa4c] ss:$16 sps:$4 sm:$0xff]  }
 0x317   :  { %4894 = vmatpush1.bf16.msra.mxu1 %v9325_v43  ;;  %4567 = vmatprep.subr.bf16.mxu0 %v9330_v44  ;;  %v9400_v43 = vld [vmem:[#allocation9 + $0xa40] ss:$16 sps:$4 sm:$0xff]   ;;  %v9403_v44 = vld [vmem:[#allocation9 + $0xa48] ss:$16 sps:$4 sm:$0xff]  }
 0x318   :  { %4895 = vmatprep.subr.bf16.mxu1 %v9333_v21  ;;  %v9408_v21 = vld [vmem:[#allocation9 + $0xa64] ss:$16 sps:$4 sm:$0xff]  }
 0x31a   :  { %4568 = vmatpush1.bf16.msra.mxu0 %v9328_v46  ;;  %v9411_v46 = vld [vmem:[#allocation9 + $0xa6c] ss:$16 sps:$4 sm:$0xff]  }
 0x31b   :  { %4896 = vmatpush1.bf16.msra.mxu1 %v9331_v1  ;;  %4569 = vmatprep.subr.bf16.mxu0 %v9336_v51  ;;  %v9406_v1 = vld [vmem:[#allocation9 + $0xa60] ss:$16 sps:$4 sm:$0xff]   ;;  %v9409_v51 = vld [vmem:[#allocation9 + $0xa68] ss:$16 sps:$4 sm:$0xff]  }
 0x31c   :  { %4897 = vmatprep.subr.bf16.mxu1 %v9339_v23  ;;  %v9414_v23 = vld [vmem:[#allocation9 + $0xa84] ss:$16 sps:$4 sm:$0xff]  }
 0x31e   :  { %4570 = vmatpush1.bf16.msra.mxu0 %v9334_v4  ;;  %v9417_v4 = vld [vmem:[#allocation9 + $0xa8c] ss:$16 sps:$4 sm:$0xff]  }
 0x31f   :  { %4898 = vmatpush1.bf16.msra.mxu1 %v9337_v25  ;;  %4571 = vmatprep.subr.bf16.mxu0 %v9342_v57  ;;  %v9412_v25 = vld [vmem:[#allocation9 + $0xa80] ss:$16 sps:$4 sm:$0xff]   ;;  %v9415_v57 = vld [vmem:[#allocation9 + $0xa88] ss:$16 sps:$4 sm:$0xff]  }
 0x320   :  { %4899 = vmatprep.subr.bf16.mxu1 %v9345_v52  ;;  %v9420_v52 = vld [vmem:[#allocation9 + $0xaa4] ss:$16 sps:$4 sm:$0xff]  }
 0x322   :  { %4572 = vmatpush1.bf16.msra.mxu0 %v9340_v7  ;;  %v9423_v7 = vld [vmem:[#allocation9 + $0xaac] ss:$16 sps:$4 sm:$0xff]  }
 0x323   :  { %4900 = vmatpush1.bf16.msra.mxu1 %v9343_v36  ;;  %4573 = vmatprep.subr.bf16.mxu0 %v9348_v2  ;;  %v9418_v36 = vld [vmem:[#allocation9 + $0xaa0] ss:$16 sps:$4 sm:$0xff]   ;;  %v9421_v2 = vld [vmem:[#allocation9 + $0xaa8] ss:$16 sps:$4 sm:$0xff]  }
 0x324   :  { %4901 = vmatprep.subr.bf16.mxu1 %v9351_v18  ;;  %v9426_v18 = vld [vmem:[#allocation9 + $0xac4] ss:$16 sps:$4 sm:$0xff]  }
 0x326   :  { %4574 = vmatpush1.bf16.msra.mxu0 %v9346_v9  ;;  %v9429_v9 = vld [vmem:[#allocation9 + $0xacc] ss:$16 sps:$4 sm:$0xff]  }
 0x327   :  { %4902 = vmatpush1.bf16.msra.mxu1 %v9349_v12  ;;  %4575 = vmatprep.subr.bf16.mxu0 %v9354_v24  ;;  %v9424_v12 = vld [vmem:[#allocation9 + $0xac0] ss:$16 sps:$4 sm:$0xff]   ;;  %v9427_v24 = vld [vmem:[#allocation9 + $0xac8] ss:$16 sps:$4 sm:$0xff]  }
 0x328   :  { %4903 = vmatprep.subr.bf16.mxu1 %v9357_v17  ;;  %v9432_v17 = vld [vmem:[#allocation9 + $0xae4] ss:$16 sps:$4 sm:$0xff]  }
 0x32a   :  { %4576 = vmatpush1.bf16.msra.mxu0 %v9352_v14  ;;  %v9435_v14 = vld [vmem:[#allocation9 + $0xaec] ss:$16 sps:$4 sm:$0xff]  }
 0x32b   :  { %4904 = vmatpush1.bf16.msra.mxu1 %v9355_v49  ;;  %4577 = vmatprep.subr.bf16.mxu0 %v9360_v5  ;;  %v9430_v49 = vld [vmem:[#allocation9 + $0xae0] ss:$16 sps:$4 sm:$0xff]   ;;  %v9433_v5 = vld [vmem:[#allocation9 + $0xae8] ss:$16 sps:$4 sm:$0xff]  }
 0x32c   :  { %4905 = vmatprep.subr.bf16.mxu1 %v9363_v16  ;;  %v9438_v16 = vld [vmem:[#allocation9 + $0xb04] ss:$16 sps:$4 sm:$0xff]  }
 0x32e   :  { %4578 = vmatpush1.bf16.msra.mxu0 %v9358_v33  ;;  %v9441_v33 = vld [vmem:[#allocation9 + $0xb0c] ss:$16 sps:$4 sm:$0xff]  }
 0x32f   :  { %4906 = vmatpush1.bf16.msra.mxu1 %v9361_v20  ;;  %4579 = vmatprep.subr.bf16.mxu0 %v9366_v39  ;;  %v9436_v20 = vld [vmem:[#allocation9 + $0xb00] ss:$16 sps:$4 sm:$0xff]   ;;  %v9439_v39 = vld [vmem:[#allocation9 + $0xb08] ss:$16 sps:$4 sm:$0xff]  }
 0x330   :  { %4907 = vmatprep.subr.bf16.mxu1 %v9369_v34  ;;  %v9444_v34 = vld [vmem:[#allocation9 + $0xb24] ss:$16 sps:$4 sm:$0xff]  }
 0x332   :  { %4580 = vmatpush1.bf16.msra.mxu0 %v9364_v59  ;;  %v9442_v59 = vld [vmem:[#allocation9 + $0xb20] ss:$16 sps:$4 sm:$0xff]  }
 0x333   :  { %4908 = vmatpush1.bf16.msra.mxu1 %v9367_v32  ;;  %4581 = vmatprep.subr.bf16.mxu0 %v9372_v40  ;;  %v9445_v32 = vld [vmem:[#allocation9 + $0xb28] ss:$16 sps:$4 sm:$0xff]   ;;  %v9450_v40 = vld [vmem:[#allocation9 + $0xb44] ss:$16 sps:$4 sm:$0xff]  }
 0x334   :  { %4909 = vmatprep.subr.bf16.mxu1 %v9375_v27  ;;  %v9448_v27 = vld [vmem:[#allocation9 + $0xb40] ss:$16 sps:$4 sm:$0xff]  }
 0x336   :  { %4582 = vmatpush1.bf16.msra.mxu0 %v9370_v30  ;;  %v9451_v30 = vld [vmem:[#allocation9 + $0xb48] ss:$16 sps:$4 sm:$0xff]  }
 0x337   :  { %4910 = vmatpush1.bf16.msra.mxu1 %v9373_v62  ;;  %4583 = vmatprep.subr.bf16.mxu0 %v9378_v55  ;;  %v9456_v62 = vld [vmem:[#allocation9 + $0xb64] ss:$16 sps:$4 sm:$0xff]   ;;  %v9459_v55 = vld [vmem:[#allocation9 + $0xb6c] ss:$16 sps:$4 sm:$0xff]  }
 0x338   :  { %4911 = vmatprep.subr.bf16.mxu1 %v9381_v35  ;;  %v9454_v35 = vld [vmem:[#allocation9 + $0xb60] ss:$16 sps:$4 sm:$0xff]  }
 0x33a   :  { %4584 = vmatpush1.bf16.msra.mxu0 %v9376_v58  ;;  %v9457_v58 = vld [vmem:[#allocation9 + $0xb68] ss:$16 sps:$4 sm:$0xff]  }
 0x33b   :  { %4912 = vmatpush1.bf16.msra.mxu1 %v9379_v50  ;;  %4585 = vmatprep.subr.bf16.mxu0 %v9384_v61  ;;  %v9462_v50 = vld [vmem:[#allocation9 + $0xb84] ss:$16 sps:$4 sm:$0xff]   ;;  %v9465_v61 = vld [vmem:[#allocation9 + $0xb8c] ss:$16 sps:$4 sm:$0xff]  }
 0x33c   :  { %4913 = vmatprep.subr.bf16.mxu1 %v9387_v11  ;;  %v1199_v11 = vadd.f32 %v10790_v19, %v10773_v45  ;;  %v9477_v19 = vld [vmem:[#allocation9 + $0xbcc] ss:$16 sps:$4 sm:$0xff]  }
 0x33e   :  { %4586 = vmatpush1.bf16.msra.mxu0 %v9382_v54  ;;  %v9460_v54 = vld [vmem:[#allocation9 + $0xb80] ss:$16 sps:$4 sm:$0xff]   ;;  %9783 = vtanh.f32 %v1199_v11  ;;  %v9541_v11 = vld [vmem:[#allocation9 + $0xd28] ss:$16 sps:$4 sm:$0xff]  }
 0x33f   :  { %4914 = vmatpush1.bf16.msra.mxu1 %v9385_v56  ;;  %4596 = vmatprep.subr.bf16.mxu0 %v9390_v48  ;;  %v9463_v56 = vld [vmem:[#allocation9 + $0xb88] ss:$16 sps:$4 sm:$0xff]   ;;  %v9468_v48 = vld [vmem:[#allocation9 + $0xba4] ss:$16 sps:$4 sm:$0xff]   ;;  %9785 = vtanh.f32 %v1242_v6 }
 0x340   :  { %4924 = vmatprep.subr.bf16.mxu1 %v9393_v29  ;;  %v9471_v29 = vld [vmem:[#allocation9 + $0xbac] ss:$16 sps:$4 sm:$0xff]   ;;  %v9547_v6 = vld [vmem:[#allocation9 + $0xd48] ss:$16 sps:$4 sm:$0xff]  }
 0x341   :  { %4588 = vmatmul.mubr.bf16.vlgmr.msra.gmra.mrb[16].mxu0 %v1311_v47 }
 0x342   :  { %4916 = vmatmul.mubr.bf16.vlgmr.msra.gmra.mrb[16].mxu1 %v1311_v47  ;;  %4597 = vmatpush1.bf16.msra.mxu0 %v9388_v37  ;;  %v9469_v37 = vld [vmem:[#allocation9 + $0xba8] ss:$16 sps:$4 sm:$0xff]   ;;  %v9474_v47 = vld [vmem:[#allocation9 + $0xbc4] ss:$16 sps:$4 sm:$0xff]  }
 0x343   :  { %4628 = vmatprep.mubr.bf16.mxu0 %v1314_v10  ;;  %4925 = vmatpush1.bf16.msra.mxu1 %v9391_v13  ;;  %v9472_v13 = vld [vmem:[#allocation9 + $0xbc0] ss:$16 sps:$4 sm:$0xff]  }
 0x344   :  { %4956 = vmatprep.mubr.bf16.mxu1 %v1314_v10  ;;  %4598 = vmatprep.subr.bf16.mxu0 %v9396_v3  ;;  %v9475_v3 = vld [vmem:[#allocation9 + $0xbc8] ss:$16 sps:$4 sm:$0xff]   ;;  %v9480_v10 = vld [vmem:[#allocation9 + $0xbe4] ss:$16 sps:$4 sm:$0xff]  }
 0x345   :  { %4926 = vmatprep.subr.bf16.mxu1 %v9399_v0  ;;  %v9478_v0 = vld [vmem:[#allocation9 + $0xbe0] ss:$16 sps:$4 sm:$0xff]  }
 0x346   :  { %4599 = vmatpush1.bf16.msra.mxu0 %v9394_v60  ;;  %v9481_v60 = vld [vmem:[#allocation9 + $0xbe8] ss:$16 sps:$4 sm:$0xff]  }
 0x347   :  { %4927 = vmatpush1.bf16.msra.mxu1 %v9397_v41  ;;  %4600 = vmatprep.subr.bf16.mxu0 %v9402_v53  ;;  %v9486_v41 = vld [vmem:[#allocation9 + $0xc04] ss:$16 sps:$4 sm:$0xff]  }
 0x348   :  { %4928 = vmatprep.subr.bf16.mxu1 %v9405_v38  ;;  %v9784_v53 = vpop.eup %9783  ;;  %v9489_v38 = vld [vmem:[#allocation9 + $0xc0c] ss:$16 sps:$4 sm:$0xff]  }
 0x34a   :  { %4601 = vmatpush1.bf16.msra.mxu0 %v9400_v43  ;;  %v9786_v43 = vpop.eup %9785 }
 0x34b   :  { %4929 = vmatpush1.bf16.msra.mxu1 %v9403_v44  ;;  %4602 = vmatprep.subr.bf16.mxu0 %v9408_v21  ;;  %v9484_v44 = vld [vmem:[#allocation9 + $0xc00] ss:$16 sps:$4 sm:$0xff]   ;;  %v1313_v21 = vpack.c.bf16 %v9784_v53, %v9784_v53 }
 0x34c   :  { %4930 = vmatprep.subr.bf16.mxu1 %v9411_v46  ;;  %v9487_v46 = vld [vmem:[#allocation9 + $0xc08] ss:$16 sps:$4 sm:$0xff]   ;;  %v9562_v53 = vld [vmem:[#allocation9 + $0xda0] ss:$16 sps:$4 sm:$0xff]  }
 0x34e   :  { %4603 = vmatpush1.bf16.msra.mxu0 %v9406_v1  ;;  %v9492_v1 = vld [vmem:[#allocation9 + $0xc24] ss:$16 sps:$4 sm:$0xff]  }
 0x34f   :  { %4931 = vmatpush1.bf16.msra.mxu1 %v9409_v51  ;;  %4604 = vmatprep.subr.bf16.mxu0 %v9414_v23  ;;  %v1316_v51 = vpack.c.bf16 %v9786_v43, %v9786_v43  ;;  %v9495_v23 = vld [vmem:[#allocation9 + $0xc2c] ss:$16 sps:$4 sm:$0xff]   ;;  %v9570_v43 = vld [vmem:[#allocation9 + $0xdc4] ss:$16 sps:$4 sm:$0xff]  }
 0x350   :  { %4932 = vmatprep.subr.bf16.mxu1 %v9417_v4  ;;  %v9490_v4 = vld [vmem:[#allocation9 + $0xc20] ss:$16 sps:$4 sm:$0xff]  }
 0x352   :  { %4605 = vmatpush1.bf16.msra.mxu0 %v9412_v25  ;;  %v9493_v25 = vld [vmem:[#allocation9 + $0xc28] ss:$16 sps:$4 sm:$0xff]  }
 0x353   :  { %4933 = vmatpush1.bf16.msra.mxu1 %v9415_v57  ;;  %4606 = vmatprep.subr.bf16.mxu0 %v9420_v52  ;;  %v9498_v57 = vld [vmem:[#allocation9 + $0xc44] ss:$16 sps:$4 sm:$0xff]   ;;  %v9501_v52 = vld [vmem:[#allocation9 + $0xc4c] ss:$16 sps:$4 sm:$0xff]  }
 0x354   :  { %4934 = vmatprep.subr.bf16.mxu1 %v9423_v7  ;;  %v9496_v7 = vld [vmem:[#allocation9 + $0xc40] ss:$16 sps:$4 sm:$0xff]  }
 0x356   :  { %4607 = vmatpush1.bf16.msra.mxu0 %v9418_v36  ;;  %v9499_v36 = vld [vmem:[#allocation9 + $0xc48] ss:$16 sps:$4 sm:$0xff]  }
 0x357   :  { %4935 = vmatpush1.bf16.msra.mxu1 %v9421_v2  ;;  %4608 = vmatprep.subr.bf16.mxu0 %v9426_v18  ;;  %v9504_v2 = vld [vmem:[#allocation9 + $0xc64] ss:$16 sps:$4 sm:$0xff]   ;;  %v9507_v18 = vld [vmem:[#allocation9 + $0xc6c] ss:$16 sps:$4 sm:$0xff]  }
 0x358   :  { %4936 = vmatprep.subr.bf16.mxu1 %v9429_v9  ;;  %v9502_v9 = vld [vmem:[#allocation9 + $0xc60] ss:$16 sps:$4 sm:$0xff]  }
 0x35a   :  { %4609 = vmatpush1.bf16.msra.mxu0 %v9424_v12  ;;  %v9505_v12 = vld [vmem:[#allocation9 + $0xc68] ss:$16 sps:$4 sm:$0xff]  }
 0x35b   :  { %4937 = vmatpush1.bf16.msra.mxu1 %v9427_v24  ;;  %4610 = vmatprep.subr.bf16.mxu0 %v9432_v17  ;;  %v9510_v24 = vld [vmem:[#allocation9 + $0xc84] ss:$16 sps:$4 sm:$0xff]   ;;  %v9513_v17 = vld [vmem:[#allocation9 + $0xc8c] ss:$16 sps:$4 sm:$0xff]  }
 0x35c   :  { %4938 = vmatprep.subr.bf16.mxu1 %v9435_v14  ;;  %v9508_v14 = vld [vmem:[#allocation9 + $0xc80] ss:$16 sps:$4 sm:$0xff]  }
 0x35e   :  { %4611 = vmatpush1.bf16.msra.mxu0 %v9430_v49  ;;  %v9511_v49 = vld [vmem:[#allocation9 + $0xc88] ss:$16 sps:$4 sm:$0xff]  }
 0x35f   :  { %4939 = vmatpush1.bf16.msra.mxu1 %v9433_v5  ;;  %4612 = vmatprep.subr.bf16.mxu0 %v9438_v16  ;;  %v9516_v5 = vld [vmem:[#allocation9 + $0xca4] ss:$16 sps:$4 sm:$0xff]   ;;  %v9519_v16 = vld [vmem:[#allocation9 + $0xcac] ss:$16 sps:$4 sm:$0xff]  }
 0x360   :  { %4940 = vmatprep.subr.bf16.mxu1 %v9441_v33  ;;  %v9514_v33 = vld [vmem:[#allocation9 + $0xca0] ss:$16 sps:$4 sm:$0xff]  }
 0x362   :  { %4613 = vmatpush1.bf16.msra.mxu0 %v9436_v20  ;;  %v9517_v20 = vld [vmem:[#allocation9 + $0xca8] ss:$16 sps:$4 sm:$0xff]  }
 0x363   :  { %4941 = vmatpush1.bf16.msra.mxu1 %v9439_v39  ;;  %4614 = vmatprep.subr.bf16.mxu0 %v9444_v34  ;;  %v9522_v39 = vld [vmem:[#allocation9 + $0xcc4] ss:$16 sps:$4 sm:$0xff]   ;;  %v9525_v34 = vld [vmem:[#allocation9 + $0xccc] ss:$16 sps:$4 sm:$0xff]  }
 0x364   :  { %4942 = vmatprep.subr.bf16.mxu1 %v9447_v42  ;;  %v9520_v42 = vld [vmem:[#allocation9 + $0xcc0] ss:$16 sps:$4 sm:$0xff]  }
 0x366   :  { %4615 = vmatpush1.bf16.msra.mxu0 %v9442_v59  ;;  %v9523_v59 = vld [vmem:[#allocation9 + $0xcc8] ss:$16 sps:$4 sm:$0xff]  }
 0x367   :  { %4943 = vmatpush1.bf16.msra.mxu1 %v9445_v32  ;;  %4616 = vmatprep.subr.bf16.mxu0 %v9450_v40  ;;  %v9528_v32 = vld [vmem:[#allocation9 + $0xce4] ss:$16 sps:$4 sm:$0xff]   ;;  %v9531_v40 = vld [vmem:[#allocation9 + $0xcec] ss:$16 sps:$4 sm:$0xff]  }
 0x368   :  { %4944 = vmatprep.subr.bf16.mxu1 %v9453_v26  ;;  %v9526_v26 = vld [vmem:[#allocation9 + $0xce0] ss:$16 sps:$4 sm:$0xff]  }
 0x36a   :  { %4617 = vmatpush1.bf16.msra.mxu0 %v9448_v27  ;;  %v9529_v27 = vld [vmem:[#allocation9 + $0xce8] ss:$16 sps:$4 sm:$0xff]  }
 0x36b   :  { %4945 = vmatpush1.bf16.msra.mxu1 %v9451_v30  ;;  %4618 = vmatprep.subr.bf16.mxu0 %v9456_v62  ;;  %v9534_v30 = vld [vmem:[#allocation9 + $0xd04] ss:$16 sps:$4 sm:$0xff]   ;;  %v9537_v62 = vld [vmem:[#allocation9 + $0xd0c] ss:$16 sps:$4 sm:$0xff]  }
 0x36c   :  { %4946 = vmatprep.subr.bf16.mxu1 %v9459_v55  ;;  %v9532_v55 = vld [vmem:[#allocation9 + $0xd00] ss:$16 sps:$4 sm:$0xff]  }
 0x36e   :  { %4619 = vmatpush1.bf16.msra.mxu0 %v9454_v35  ;;  %v9535_v35 = vld [vmem:[#allocation9 + $0xd08] ss:$16 sps:$4 sm:$0xff]  }
 0x36f   :  { %4947 = vmatpush1.bf16.msra.mxu1 %v9457_v58  ;;  %4620 = vmatprep.subr.bf16.mxu0 %v9462_v50  ;;  %v9540_v58 = vld [vmem:[#allocation9 + $0xd24] ss:$16 sps:$4 sm:$0xff]   ;;  %v9543_v50 = vld [vmem:[#allocation9 + $0xd2c] ss:$16 sps:$4 sm:$0xff]  }
 0x370   :  { %4948 = vmatprep.subr.bf16.mxu1 %v9465_v61  ;;  %v9538_v61 = vld [vmem:[#allocation9 + $0xd20] ss:$16 sps:$4 sm:$0xff]  }
 0x372   :  { %4621 = vmatpush1.bf16.msra.mxu0 %v9460_v54  ;;  %v9546_v54 = vld [vmem:[#allocation9 + $0xd44] ss:$16 sps:$4 sm:$0xff]  }
 0x373   :  { %4949 = vmatpush1.bf16.msra.mxu1 %v9463_v56  ;;  %4622 = vmatprep.subr.bf16.mxu0 %v9468_v48  ;;  %v9549_v56 = vld [vmem:[#allocation9 + $0xd4c] ss:$16 sps:$4 sm:$0xff]   ;;  %v9544_v48 = vld [vmem:[#allocation9 + $0xd40] ss:$16 sps:$4 sm:$0xff]  }
 0x374   :  { %4950 = vmatprep.subr.bf16.mxu1 %v9471_v29  ;;  %v9552_v29 = vld [vmem:[#allocation9 + $0xd64] ss:$16 sps:$4 sm:$0xff]  }
 0x376   :  { %4623 = vmatpush1.bf16.msra.mxu0 %v9466_v31  ;;  %v9555_v31 = vld [vmem:[#allocation9 + $0xd6c] ss:$16 sps:$4 sm:$0xff]  }
 0x377   :  { %4951 = vmatpush1.bf16.msra.mxu1 %v9469_v37  ;;  %4624 = vmatprep.subr.bf16.mxu0 %v9474_v47  ;;  %v9550_v37 = vld [vmem:[#allocation9 + $0xd60] ss:$16 sps:$4 sm:$0xff]   ;;  %v9553_v47 = vld [vmem:[#allocation9 + $0xd68] ss:$16 sps:$4 sm:$0xff]  }
 0x378   :  { %4952 = vmatprep.subr.bf16.mxu1 %v9477_v19  ;;  %v9558_v19 = vld [vmem:[#allocation9 + $0xd84] ss:$16 sps:$4 sm:$0xff]  }
 0x37a   :  { %4625 = vmatpush1.bf16.msra.mxu0 %v9472_v13  ;;  %v9561_v13 = vld [vmem:[#allocation9 + $0xd8c] ss:$16 sps:$4 sm:$0xff]  }
 0x37b   :  { %4953 = vmatpush1.bf16.msra.mxu1 %v9475_v3  ;;  %4626 = vmatprep.subr.bf16.mxu0 %v9480_v10  ;;  %v1240_v3 = vadd.f32 %v10796_v28, %v10773_v45  ;;  %v9556_v10 = vld [vmem:[#allocation9 + $0xd80] ss:$16 sps:$4 sm:$0xff]   ;;  %v9573_v28 = vld [vmem:[#allocation9 + $0xdcc] ss:$16 sps:$4 sm:$0xff]  }
 0x37c   :  { %4954 = vmatprep.subr.bf16.mxu1 %v9483_v22  ;;  %v9559_v22 = vld [vmem:[#allocation9 + $0xd88] ss:$16 sps:$4 sm:$0xff]  }
 0x37d   :  { %9787 = vtanh.f32 %v1240_v3  ;;  %v9645_v3 = vld [vmem:[#allocation9 + $0xf4c] ss:$16 sps:$4 sm:$0xff]  }
 0x37e   :  { %4627 = vmatpush1.bf16.msra.mxu0 %v9478_v0  ;;  %v9564_v0 = vld [vmem:[#allocation9 + $0xda4] ss:$16 sps:$4 sm:$0xff]  }
 0x37f   :  { %4955 = vmatpush1.bf16.msra.mxu1 %v9481_v60  ;;  %4637 = vmatprep.subr.bf16.mxu0 %v9486_v41  ;;  %v1283_v60 = vadd.f32 %v10802_v15, %v10773_v45  ;;  %v9567_v41 = vld [vmem:[#allocation9 + $0xdac] ss:$16 sps:$4 sm:$0xff]  }
 0x380   :  { %4965 = vmatprep.subr.bf16.mxu1 %v9489_v38  ;;  %v9565_v38 = vld [vmem:[#allocation9 + $0xda8] ss:$16 sps:$4 sm:$0xff]   ;;  %v9579_v15 = vld [vmem:[#allocation9 + $0xdec] ss:$16 sps:$4 sm:$0xff]  }
 0x381   :  { %4629 = vmatmul.mubr.bf16.vlgmr.msra.gmra.mrb[16].mxu0 %v1313_v21  ;;  %9789 = vtanh.f32 %v1283_v60  ;;  %v9651_v60 = vld [vmem:[#allocation9 + $0xf6c] ss:$16 sps:$4 sm:$0xff]  }
 0x382   :  { %4957 = vmatmul.mubr.bf16.vlgmr.msra.gmra.mrb[16].mxu1 %v1313_v21  ;;  %4638 = vmatpush1.bf16.msra.mxu0 %v9484_v44  ;;  %v9568_v44 = vld [vmem:[#allocation9 + $0xdc0] ss:$16 sps:$4 sm:$0xff]   ;;  %v9571_v21 = vld [vmem:[#allocation9 + $0xdc8] ss:$16 sps:$4 sm:$0xff]  }
 0x383   :  { %4669 = vmatprep.mubr.bf16.mxu0 %v1316_v51  ;;  %4966 = vmatpush1.bf16.msra.mxu1 %v9487_v46  ;;  %v9576_v46 = vld [vmem:[#allocation9 + $0xde4] ss:$16 sps:$4 sm:$0xff]  }
 0x384   :  { %4997 = vmatprep.mubr.bf16.mxu1 %v1316_v51  ;;  %4639 = vmatprep.subr.bf16.mxu0 %v9492_v1  ;;  %v9574_v1 = vld [vmem:[#allocation9 + $0xde0] ss:$16 sps:$4 sm:$0xff]   ;;  %v9577_v51 = vld [vmem:[#allocation9 + $0xde8] ss:$16 sps:$4 sm:$0xff]  }
 0x385   :  { %4967 = vmatprep.subr.bf16.mxu1 %v9495_v23  ;;  %v9582_v23 = vld [vmem:[#allocation9 + $0xe04] ss:$16 sps:$4 sm:$0xff]  }
 0x386   :  { %4640 = vmatpush1.bf16.msra.mxu0 %v9490_v4 }
 0x387   :  { %4968 = vmatpush1.bf16.msra.mxu1 %v9493_v25  ;;  %4641 = vmatprep.subr.bf16.mxu0 %v9498_v57  ;;  %v9788_v4 = vpop.eup %9787  ;;  %v9585_v25 = vld [vmem:[#allocation9 + $0xe0c] ss:$16 sps:$4 sm:$0xff]  }
 0x388   :  { %4969 = vmatprep.subr.bf16.mxu1 %v9501_v52  ;;  %v9580_v52 = vld [vmem:[#allocation9 + $0xe00] ss:$16 sps:$4 sm:$0xff]  }
 0x38a   :  { %4642 = vmatpush1.bf16.msra.mxu0 %v9496_v7  ;;  %v1315_v7 = vpack.c.bf16 %v9788_v4, %v9788_v4  ;;  %v9669_v4 = vld [vmem:[#allocation9 + $0xfcc] ss:$16 sps:$4 sm:$0xff]  }
 0x38b   :  { %4970 = vmatpush1.bf16.msra.mxu1 %v9499_v36  ;;  %4643 = vmatprep.subr.bf16.mxu0 %v9504_v2  ;;  %v9790_v57 = vpop.eup %9789  ;;  %v9583_v36 = vld [vmem:[#allocation9 + $0xe08] ss:$16 sps:$4 sm:$0xff]   ;;  %v9588_v2 = vld [vmem:[#allocation9 + $0xe24] ss:$16 sps:$4 sm:$0xff]  }
 0x38c   :  { %4971 = vmatprep.subr.bf16.mxu1 %v9507_v18  ;;  %v1318_v18 = vpack.c.bf16 %v9790_v57, %v9790_v57  ;;  %v9675_v57 = vld [vmem:[#allocation9 + $0xfec] ss:$16 sps:$4 sm:$0xff]  }
 0x38e   :  { %4644 = vmatpush1.bf16.msra.mxu0 %v9502_v9  ;;  %v9591_v9 = vld [vmem:[#allocation9 + $0xe2c] ss:$16 sps:$4 sm:$0xff]  }
 0x38f   :  { %4972 = vmatpush1.bf16.msra.mxu1 %v9505_v12  ;;  %4645 = vmatprep.subr.bf16.mxu0 %v9510_v24  ;;  %v9586_v12 = vld [vmem:[#allocation9 + $0xe20] ss:$16 sps:$4 sm:$0xff]   ;;  %v9589_v24 = vld [vmem:[#allocation9 + $0xe28] ss:$16 sps:$4 sm:$0xff]  }
 0x390   :  { %4973 = vmatprep.subr.bf16.mxu1 %v9513_v17  ;;  %v9594_v17 = vld [vmem:[#allocation9 + $0xe44] ss:$16 sps:$4 sm:$0xff]  }
 0x392   :  { %4646 = vmatpush1.bf16.msra.mxu0 %v9508_v14  ;;  %v9597_v14 = vld [vmem:[#allocation9 + $0xe4c] ss:$16 sps:$4 sm:$0xff]  }
 0x393   :  { %4974 = vmatpush1.bf16.msra.mxu1 %v9511_v49  ;;  %4647 = vmatprep.subr.bf16.mxu0 %v9516_v5  ;;  %v9592_v49 = vld [vmem:[#allocation9 + $0xe40] ss:$16 sps:$4 sm:$0xff]   ;;  %v9595_v5 = vld [vmem:[#allocation9 + $0xe48] ss:$16 sps:$4 sm:$0xff]  }
 0x394   :  { %4975 = vmatprep.subr.bf16.mxu1 %v9519_v16  ;;  %v9600_v16 = vld [vmem:[#allocation9 + $0xe64] ss:$16 sps:$4 sm:$0xff]  }
 0x396   :  { %4648 = vmatpush1.bf16.msra.mxu0 %v9514_v33  ;;  %v9603_v33 = vld [vmem:[#allocation9 + $0xe6c] ss:$16 sps:$4 sm:$0xff]  }
 0x397   :  { %4976 = vmatpush1.bf16.msra.mxu1 %v9517_v20  ;;  %4649 = vmatprep.subr.bf16.mxu0 %v9522_v39  ;;  %v9598_v20 = vld [vmem:[#allocation9 + $0xe60] ss:$16 sps:$4 sm:$0xff]   ;;  %v9601_v39 = vld [vmem:[#allocation9 + $0xe68] ss:$16 sps:$4 sm:$0xff]  }
 0x398   :  { %4977 = vmatprep.subr.bf16.mxu1 %v9525_v34  ;;  %v9606_v34 = vld [vmem:[#allocation9 + $0xe84] ss:$16 sps:$4 sm:$0xff]  }
 0x39a   :  { %4650 = vmatpush1.bf16.msra.mxu0 %v9520_v42  ;;  %v9609_v42 = vld [vmem:[#allocation9 + $0xe8c] ss:$16 sps:$4 sm:$0xff]  }
 0x39b   :  { %4978 = vmatpush1.bf16.msra.mxu1 %v9523_v59  ;;  %4651 = vmatprep.subr.bf16.mxu0 %v9528_v32  ;;  %v9604_v59 = vld [vmem:[#allocation9 + $0xe80] ss:$16 sps:$4 sm:$0xff]   ;;  %v9607_v32 = vld [vmem:[#allocation9 + $0xe88] ss:$16 sps:$4 sm:$0xff]  }
 0x39c   :  { %4979 = vmatprep.subr.bf16.mxu1 %v9531_v40  ;;  %v9612_v40 = vld [vmem:[#allocation9 + $0xea4] ss:$16 sps:$4 sm:$0xff]  }
 0x39e   :  { %4652 = vmatpush1.bf16.msra.mxu0 %v9526_v26  ;;  %v9615_v26 = vld [vmem:[#allocation9 + $0xeac] ss:$16 sps:$4 sm:$0xff]  }
 0x39f   :  { %4980 = vmatpush1.bf16.msra.mxu1 %v9529_v27  ;;  %4653 = vmatprep.subr.bf16.mxu0 %v9534_v30  ;;  %v9610_v27 = vld [vmem:[#allocation9 + $0xea0] ss:$16 sps:$4 sm:$0xff]   ;;  %v9613_v30 = vld [vmem:[#allocation9 + $0xea8] ss:$16 sps:$4 sm:$0xff]  }
 0x3a0   :  { %4981 = vmatprep.subr.bf16.mxu1 %v9537_v62  ;;  %v9618_v62 = vld [vmem:[#allocation9 + $0xec4] ss:$16 sps:$4 sm:$0xff]  }
 0x3a2   :  { %4654 = vmatpush1.bf16.msra.mxu0 %v9532_v55  ;;  %v9621_v55 = vld [vmem:[#allocation9 + $0xecc] ss:$16 sps:$4 sm:$0xff]  }
 0x3a3   :  { %4982 = vmatpush1.bf16.msra.mxu1 %v9535_v35  ;;  %4655 = vmatprep.subr.bf16.mxu0 %v9540_v58  ;;  %v9616_v35 = vld [vmem:[#allocation9 + $0xec0] ss:$16 sps:$4 sm:$0xff]   ;;  %v9619_v58 = vld [vmem:[#allocation9 + $0xec8] ss:$16 sps:$4 sm:$0xff]  }
 0x3a4   :  { %4983 = vmatprep.subr.bf16.mxu1 %v9543_v50  ;;  %v9624_v50 = vld [vmem:[#allocation9 + $0xee4] ss:$16 sps:$4 sm:$0xff]  }
 0x3a6   :  { %4656 = vmatpush1.bf16.msra.mxu0 %v9538_v61  ;;  %v9627_v61 = vld [vmem:[#allocation9 + $0xeec] ss:$16 sps:$4 sm:$0xff]  }
 0x3a7   :  { %4984 = vmatpush1.bf16.msra.mxu1 %v9541_v11  ;;  %4657 = vmatprep.subr.bf16.mxu0 %v9546_v54  ;;  %v9622_v11 = vld [vmem:[#allocation9 + $0xee0] ss:$16 sps:$4 sm:$0xff]   ;;  %v9625_v54 = vld [vmem:[#allocation9 + $0xee8] ss:$16 sps:$4 sm:$0xff]  }
 0x3a8   :  { %4985 = vmatprep.subr.bf16.mxu1 %v9549_v56  ;;  %v9630_v56 = vld [vmem:[#allocation9 + $0xf04] ss:$16 sps:$4 sm:$0xff]  }
 0x3aa   :  { %4658 = vmatpush1.bf16.msra.mxu0 %v9544_v48  ;;  %v9633_v48 = vld [vmem:[#allocation9 + $0xf0c] ss:$16 sps:$4 sm:$0xff]  }
 0x3ab   :  { %4986 = vmatpush1.bf16.msra.mxu1 %v9547_v6  ;;  %4659 = vmatprep.subr.bf16.mxu0 %v9552_v29  ;;  %v9628_v6 = vld [vmem:[#allocation9 + $0xf00] ss:$16 sps:$4 sm:$0xff]   ;;  %v9631_v29 = vld [vmem:[#allocation9 + $0xf08] ss:$16 sps:$4 sm:$0xff]  }
 0x3ac   :  { %4987 = vmatprep.subr.bf16.mxu1 %v9555_v31  ;;  %v9636_v31 = vld [vmem:[#allocation9 + $0xf24] ss:$16 sps:$4 sm:$0xff]  }
 0x3ae   :  { %4660 = vmatpush1.bf16.msra.mxu0 %v9550_v37  ;;  %v9639_v37 = vld [vmem:[#allocation9 + $0xf2c] ss:$16 sps:$4 sm:$0xff]  }
 0x3af   :  { %4988 = vmatpush1.bf16.msra.mxu1 %v9553_v47  ;;  %4661 = vmatprep.subr.bf16.mxu0 %v9558_v19  ;;  %v9634_v47 = vld [vmem:[#allocation9 + $0xf20] ss:$16 sps:$4 sm:$0xff]   ;;  %v9637_v19 = vld [vmem:[#allocation9 + $0xf28] ss:$16 sps:$4 sm:$0xff]  }
 0x3b0   :  { %4989 = vmatprep.subr.bf16.mxu1 %v9561_v13  ;;  %v9642_v13 = vld [vmem:[#allocation9 + $0xf44] ss:$16 sps:$4 sm:$0xff]  }
 0x3b2   :  { %4662 = vmatpush1.bf16.msra.mxu0 %v9556_v10  ;;  %v9640_v10 = vld [vmem:[#allocation9 + $0xf40] ss:$16 sps:$4 sm:$0xff]  }
 0x3b3   :  { %4990 = vmatpush1.bf16.msra.mxu1 %v9559_v22  ;;  %4663 = vmatprep.subr.bf16.mxu0 %v9564_v0  ;;  %v9643_v22 = vld [vmem:[#allocation9 + $0xf48] ss:$16 sps:$4 sm:$0xff]   ;;  %v9648_v0 = vld [vmem:[#allocation9 + $0xf64] ss:$16 sps:$4 sm:$0xff]  }
 0x3b4   :  { %4991 = vmatprep.subr.bf16.mxu1 %v9567_v41  ;;  %v9646_v41 = vld [vmem:[#allocation9 + $0xf60] ss:$16 sps:$4 sm:$0xff]  }
 0x3b6   :  { %4664 = vmatpush1.bf16.msra.mxu0 %v9562_v53  ;;  %v9649_v53 = vld [vmem:[#allocation9 + $0xf68] ss:$16 sps:$4 sm:$0xff]  }
 0x3b7   :  { %4992 = vmatpush1.bf16.msra.mxu1 %v9565_v38  ;;  %4665 = vmatprep.subr.bf16.mxu0 %v9570_v43  ;;  %v9654_v38 = vld [vmem:[#allocation9 + $0xf84] ss:$16 sps:$4 sm:$0xff]   ;;  %v9657_v43 = vld [vmem:[#allocation9 + $0xf8c] ss:$16 sps:$4 sm:$0xff]  }
 0x3b8   :  { %4993 = vmatprep.subr.bf16.mxu1 %v9573_v28  ;;  %v1281_v28 = vadd.f32 %v10798_v63, %v10773_v45  ;;  %v9667_v45 = vld [vmem:[#allocation9 + $0xfc8] ss:$16 sps:$4 sm:$0xff]   ;;  %v9672_v63 = vld [vmem:[#allocation9 + $0xfe4] ss:$16 sps:$4 sm:$0xff]  }
 0x3ba   :  { %4666 = vmatpush1.bf16.msra.mxu0 %v9568_v44  ;;  %v9652_v44 = vld [vmem:[#allocation9 + $0xf80] ss:$16 sps:$4 sm:$0xff]   ;;  %9791 = vtanh.f32 %v1281_v28 }
 0x3bb   :  { %4994 = vmatpush1.bf16.msra.mxu1 %v9571_v21  ;;  %4667 = vmatprep.subr.bf16.mxu0 %v9576_v46  ;;  %v9655_v21 = vld [vmem:[#allocation9 + $0xf88] ss:$16 sps:$4 sm:$0xff]   ;;  %v9660_v46 = vld [vmem:[#allocation9 + $0xfa4] ss:$16 sps:$4 sm:$0xff]  }
 0x3bc   :  { %4995 = vmatprep.subr.bf16.mxu1 %v9579_v15  ;;  %v9663_v15 = vld [vmem:[#allocation9 + $0xfac] ss:$16 sps:$4 sm:$0xff]  }
 0x3be   :  { %4668 = vmatpush1.bf16.msra.mxu0 %v9574_v1  ;;  %v9658_v1 = vld [vmem:[#allocation9 + $0xfa0] ss:$16 sps:$4 sm:$0xff]  }
 0x3bf   :  { %4996 = vmatpush1.bf16.msra.mxu1 %v9577_v51  ;;  %4678 = vmatprep.subr.bf16.mxu0 %v9582_v23  ;;  %v9661_v51 = vld [vmem:[#allocation9 + $0xfa8] ss:$16 sps:$4 sm:$0xff]   ;;  %v9666_v23 = vld [vmem:[#allocation9 + $0xfc4] ss:$16 sps:$4 sm:$0xff]  }
 0x3c0   :  { %5006 = vmatprep.subr.bf16.mxu1 %v9585_v25  ;;  %v9664_v25 = vld [vmem:[#allocation9 + $0xfc0] ss:$16 sps:$4 sm:$0xff]  }
 0x3c1   :  { %4670 = vmatmul.mubr.bf16.vlgmr.msra.gmra.mrb[16].mxu0 %v1315_v7 }
 0x3c2   :  { %4998 = vmatmul.mubr.bf16.vlgmr.msra.gmra.mrb[16].mxu1 %v1315_v7  ;;  %4679 = vmatpush1.bf16.msra.mxu0 %v9580_v52  ;;  %v9670_v52 = vld [vmem:[#allocation9 + $0xfe0] ss:$16 sps:$4 sm:$0xff]   ;;  %v9673_v7 = vld [vmem:[#allocation9 + $0xfe8] ss:$16 sps:$4 sm:$0xff]  }
 0x3c3   :  { %4710 = vmatprep.mubr.bf16.mxu0 %v1318_v18  ;;  %5007 = vmatpush1.bf16.msra.mxu1 %v9583_v36 }
 0x3c4   :  { %5038 = vmatprep.mubr.bf16.mxu1 %v1318_v18  ;;  %4680 = vmatprep.subr.bf16.mxu0 %v9588_v2  ;;  %v9792_v36 = vpop.eup %9791 }
 0x3c5   :  { %5008 = vmatprep.subr.bf16.mxu1 %v9591_v9  ;;  %v1317_v2 = vpack.c.bf16 %v9792_v36, %v9792_v36 }
 0x3c6   :  { %4681 = vmatpush1.bf16.msra.mxu0 %v9586_v12 }
 0x3c7   :  { %5009 = vmatpush1.bf16.msra.mxu1 %v9589_v24  ;;  %4682 = vmatprep.subr.bf16.mxu0 %v9594_v17 }
 0x3c8   :  { %5010 = vmatprep.subr.bf16.mxu1 %v9597_v14 }
 0x3ca   :  { %4683 = vmatpush1.bf16.msra.mxu0 %v9592_v49 }
 0x3cb   :  { %5011 = vmatpush1.bf16.msra.mxu1 %v9595_v5  ;;  %4684 = vmatprep.subr.bf16.mxu0 %v9600_v16 }
 0x3cc   :  { %5012 = vmatprep.subr.bf16.mxu1 %v9603_v33 }
 0x3ce   :  { %4685 = vmatpush1.bf16.msra.mxu0 %v9598_v20 }
 0x3cf   :  { %5013 = vmatpush1.bf16.msra.mxu1 %v9601_v39  ;;  %4686 = vmatprep.subr.bf16.mxu0 %v9606_v34 }
 0x3d0   :  { %5014 = vmatprep.subr.bf16.mxu1 %v9609_v42 }
 0x3d2   :  { %4687 = vmatpush1.bf16.msra.mxu0 %v9604_v59 }
 0x3d3   :  { %5015 = vmatpush1.bf16.msra.mxu1 %v9607_v32  ;;  %4688 = vmatprep.subr.bf16.mxu0 %v9612_v40 }
 0x3d4   :  { %5016 = vmatprep.subr.bf16.mxu1 %v9615_v26 }
 0x3d6   :  { %4689 = vmatpush1.bf16.msra.mxu0 %v9610_v27 }
 0x3d7   :  { %5017 = vmatpush1.bf16.msra.mxu1 %v9613_v30  ;;  %4690 = vmatprep.subr.bf16.mxu0 %v9618_v62 }
 0x3d8   :  { %5018 = vmatprep.subr.bf16.mxu1 %v9621_v55 }
 0x3da   :  { %4691 = vmatpush1.bf16.msra.mxu0 %v9616_v35 }
 0x3db   :  { %5019 = vmatpush1.bf16.msra.mxu1 %v9619_v58  ;;  %4692 = vmatprep.subr.bf16.mxu0 %v9624_v50 }
 0x3dc   :  { %5020 = vmatprep.subr.bf16.mxu1 %v9627_v61 }
 0x3de   :  { %4693 = vmatpush1.bf16.msra.mxu0 %v9622_v11 }
 0x3df   :  { %5021 = vmatpush1.bf16.msra.mxu1 %v9625_v54  ;;  %4694 = vmatprep.subr.bf16.mxu0 %v9630_v56 }
 0x3e0   :  { %5022 = vmatprep.subr.bf16.mxu1 %v9633_v48 }
 0x3e2   :  { %4695 = vmatpush1.bf16.msra.mxu0 %v9628_v6 }
 0x3e3   :  { %5023 = vmatpush1.bf16.msra.mxu1 %v9631_v29  ;;  %4696 = vmatprep.subr.bf16.mxu0 %v9636_v31 }
 0x3e4   :  { %5024 = vmatprep.subr.bf16.mxu1 %v9639_v37 }
 0x3e6   :  { %4697 = vmatpush1.bf16.msra.mxu0 %v9634_v47 }
 0x3e7   :  { %5025 = vmatpush1.bf16.msra.mxu1 %v9637_v19  ;;  %4698 = vmatprep.subr.bf16.mxu0 %v9642_v13 }
 0x3e8   :  { %5026 = vmatprep.subr.bf16.mxu1 %v9645_v3 }
 0x3ea   :  { %4699 = vmatpush1.bf16.msra.mxu0 %v9640_v10 }
 0x3eb   :  { %5027 = vmatpush1.bf16.msra.mxu1 %v9643_v22  ;;  %4700 = vmatprep.subr.bf16.mxu0 %v9648_v0 }
 0x3ec   :  { %5028 = vmatprep.subr.bf16.mxu1 %v9651_v60 }
 0x3ee   :  { %4701 = vmatpush1.bf16.msra.mxu0 %v9646_v41 }
 0x3ef   :  { %5029 = vmatpush1.bf16.msra.mxu1 %v9649_v53  ;;  %4702 = vmatprep.subr.bf16.mxu0 %v9654_v38 }
 0x3f0   :  { %5030 = vmatprep.subr.bf16.mxu1 %v9657_v43 }
 0x3f2   :  { %4703 = vmatpush1.bf16.msra.mxu0 %v9652_v44 }
 0x3f3   :  { %5031 = vmatpush1.bf16.msra.mxu1 %v9655_v21  ;;  %4704 = vmatprep.subr.bf16.mxu0 %v9660_v46 }
 0x3f4   :  { %5032 = vmatprep.subr.bf16.mxu1 %v9663_v15 }
 0x3f6   :  { %4705 = vmatpush1.bf16.msra.mxu0 %v9658_v1 }
 0x3f7   :  { %5033 = vmatpush1.bf16.msra.mxu1 %v9661_v51  ;;  %4706 = vmatprep.subr.bf16.mxu0 %v9666_v23 }
 0x3f8   :  { %5034 = vmatprep.subr.bf16.mxu1 %v9669_v4 }
 0x3fa   :  { %4707 = vmatpush1.bf16.msra.mxu0 %v9664_v25 }
 0x3fb   :  { %5035 = vmatpush1.bf16.msra.mxu1 %v9667_v45  ;;  %4708 = vmatprep.subr.bf16.mxu0 %v9672_v63 }
 0x3fc   :  { %5036 = vmatprep.subr.bf16.mxu1 %v9675_v57 }
 0x3fe   :  { %4709 = vmatpush1.bf16.msra.mxu0 %v9670_v52 }
 0x3ff   :  { %5037 = vmatpush1.bf16.msra.mxu1 %v9673_v7 }
 0x401   :  { %4711 = vmatmul.mubr.bf16.vlgmr.msra.gmra.mrb[16].mxu0 %v1317_v2 }
 0x402   :  { %5039 = vmatmul.mubr.bf16.vlgmr.msra.gmra.mrb[16].mxu1 %v1317_v2 }
 0x4d4   :  { %v4712_v18 = vpop.f32.mrb[16].mxu0 }
 0x4d5   :  { %5047 = vst [vmem:[#allocation5] sm:$0x3f] %v4712_v18  ;;  %v5040_v9 = vpop.f32.mrb[16].mxu1  ;;  %v4714_v12 = vpop.f32.mrb[17].mxu0 }
 0x4d6   :  { %5049 = vst [vmem:[#allocation5 + $0x10] sm:$0x3f] %v5040_v9  ;;  %5048 = vst [vmem:[#allocation5 + $0x8] sm:$0x3f] %v4714_v12  ;;  %v5042_v24 = vpop.f32.mrb[17].mxu1  ;;  %v4716_v17 = vpop.f32.mrb[18].mxu0 }
 0x4d7   :  { %5050 = vst [vmem:[#allocation5 + $0x18] sm:$0x3f] %v5042_v24  ;;  %v5044_v14 = vpop.f32.mrb[18].mxu1  ;;  %v4717_v49 = vpop.f32.mrb[19].mxu0 }
 0x4d8   :  { %v5045_v5 = vpop.f32.mrb[19].mxu1 }
 0x4dc   :  { %v5297_v16 = vld [vmem:[#allocation5] sm:$0x3f] }
 0x4dd   :  { %v5168_v33 = vld [vmem:[#allocation5 + $0x10] sm:$0x3f]  ;;  %5305 = vrot.lane.b32.xlu0 %v5297_v16, %s10055_s2  ;;  %v5560_v20 = vld [vmem:[#allocation5] sm:$0x3f]  ;;  %v5167_v34 = vld [vmem:[#allocation5 + $0x8] sm:$0x3f] }
 0x4de   :  { %5178 = vrot.lane.b32.xlu1 %v5168_v33, %s11512_s0  ;;  %v5166_v39 = vld [vmem:[#allocation5] sm:$0x3f]  ;;  %v5299_v42 = vld [vmem:[#allocation5 + $0x10] sm:$0x3f]  ;;  %v5169_v59 = vld [vmem:[#allocation5 + $0x18] sm:$0x3f] }
 0x4df   :  { %v5431_v32 = vld [vmem:[#allocation5 + $0x10] sm:$0x3f]  ;;  %v5298_v40 = vld [vmem:[#allocation5 + $0x8] sm:$0x3f]  ;;  %v5429_v26 = vld [vmem:[#allocation5] sm:$0x3f] }
 0x4e0   :  { %v5430_v27 = vld [vmem:[#allocation5 + $0x8] sm:$0x3f]  ;;  %v5562_v30 = vld [vmem:[#allocation5 + $0x10] sm:$0x3f]  ;;  %v5432_v62 = vld [vmem:[#allocation5 + $0x18] sm:$0x3f] }
 0x4e1   :  { %5568 = vrot.lane.b32.xlu0 %v5560_v20, %s10056_s28  ;;  %v5694_v55 = vld [vmem:[#allocation5 + $0x10] sm:$0x3f]  ;;  %v5561_v35 = vld [vmem:[#allocation5 + $0x8] sm:$0x3f]  ;;  %v5054_v58 = vld [vmem:[#allocation5 + $0x18] sm:$0x3f] }
 0x4e2   :  { %5174 = vrot.lane.b32.xlu1 %v5166_v39, %s11512_s0  ;;  %v5923_v50 = vld [vmem:[#allocation5 + $0x18] sm:$0x3f]  ;;  %v5692_v61 = vld [vmem:[#allocation5] sm:$0x3f]  ;;  %5059 = vst.msk [vmem:[#allocation3 + $0x18] sm:$0x3f] %vm5058_vm0, %v5054_v58 }
 0x4e3   :  { %5927 = vst.msk [vmem:[#allocation3 + $0x2b8] sm:$0x3f] %vm5058_vm0, %v5923_v50  ;;  %v5693_v11 = vld [vmem:[#allocation5 + $0x8] sm:$0x3f]  ;;  %v5826_v54 = vld [vmem:[#allocation5 + $0x10] sm:$0x3f] }
 0x4e4   :  { %v5695_v56 = vld [vmem:[#allocation5 + $0x18] sm:$0x3f]  ;;  %v5825_v6 = vld [vmem:[#allocation5 + $0x8] sm:$0x3f]  ;;  %v5060_v29 = vld [vmem:[#allocation5] sm:$0x3f] }
 0x4e5   :  { %5176 = vrot.lane.b32.xlu0 %v5167_v34, %s11512_s0  ;;  %v5300_v48 = vld [vmem:[#allocation5 + $0x18] sm:$0x3f]  ;;  %v5062_v37 = vld [vmem:[#allocation5 + $0x10] sm:$0x3f]  ;;  %v5134_v19 = vld [vmem:[#allocation5] sm:$0x3f] }
 0x4e6   :  { %5309 = vrot.lane.b32.xlu1 %v5299_v42, %s10055_s2  ;;  %v5563_v31 = vld [vmem:[#allocation5 + $0x18] sm:$0x3f]  ;;  %v5099_v47 = vld [vmem:[#allocation5 + $0x10] sm:$0x3f]  ;;  %v5068_v13 = vrot.slane %v5060_v29, 2  ;;  %v5070_v3 = vrot.slane %v5062_v37, 2 }
 0x4e7   :  { %v5097_v10 = vld [vmem:[#allocation5] sm:$0x3f]  ;;  %v5107_v22 = vrot.slane %v5099_v47, 4  ;;  %v5142_v0 = vrot.slane %v5134_v19, 6  ;;  %v5052_v41 = vld [vmem:[#allocation5 + $0x8] sm:$0x3f] }
 0x4e8   :  { %v5193_v60 = vld [vmem:[#allocation5] sm:$0x3f]  ;;  %v5903_v38 = vld [vmem:[#allocation5 + $0x18] sm:$0x3f]  ;;  %v5105_v43 = vrot.slane %v5097_v10, 4 }
 0x4e9   :  { %5180 = vrot.lane.b32.xlu0 %v5169_v59, %s11512_s0  ;;  %v5051_v53 = vld [vmem:[#allocation5] sm:$0x3f]  ;;  %5056 = vst [vmem:[#allocation3 + $0x8] sm:$0x3f] %v5052_v41  ;;  %v5911_v28 = vrot.slane %v5903_v38, 6  ;;  %v5201_v46 = vrot.slane %v5193_v60, 2 }
 0x4ea   :  { %5441 = vrot.lane.b32.xlu1 %v5431_v32, %s10057_s12  ;;  %5055 = vst [vmem:[#allocation3] sm:$0x3f] %v5051_v53  ;;  %v5979_v44 = vld [vmem:[#allocation5 + $0x18] sm:$0x3f]  ;;  %v5053_v21 = vld [vmem:[#allocation5 + $0x10] sm:$0x3f] }
 0x4eb   :  { %v10848_v15 = vld [vmem:[#allocation5 + $0x10] sm:$0x3f]  ;;  %v5987_v1 = vrot.slane %v5979_v44, 6  ;;  %5057 = vst [vmem:[#allocation3 + $0x10] sm:$0x3f] %v5053_v21 }
 0x4ec   :  { %v5853_v51 = vld [vmem:[#allocation5 + $0x8] sm:$0x3f]  ;;  %5919 = vst.msk [vmem:[#allocation3 + $0x298] sm:$0xfc] %vm5164_vm15, %v5911_v28  ;;  %v5855_v45 = vld [vmem:[#allocation5 + $0x18] sm:$0x3f] }
 0x4ed   :  { %5307 = vrot.lane.b32.xlu0 %v5298_v40, %s10055_s2  ;;  %v5877_v23 = vld [vmem:[#allocation5 + $0x8] sm:$0x3f]  ;;  %v5861_v4 = vrot.slane %v5853_v51, 2  ;;  %v5879_v63 = vld [vmem:[#allocation5 + $0x18] sm:$0x3f]  ;;  %v5863_v52 = vrot.slane %v5855_v45, 2 }
 0x4ee   :  { %5437 = vrot.lane.b32.xlu1 %v5429_v26, %s10057_s12  ;;  %v5885_v25 = vrot.slane %v5877_v23, 4  ;;  %v5229_v57 = vld [vmem:[#allocation5] sm:$0x3f]  ;;  %5995 = vst.msk [vmem:[#allocation3 + $0x2f8] sm:$0xfc] %vm5164_vm15, %v5987_v1  ;;  %v5887_v7 = vrot.slane %v5879_v63, 4 }
 0x4ef   :  { %v5852_v36 = vld [vmem:[#allocation5] sm:$0x3f]  ;;  %5869 = vst [vmem:[#allocation3 + $0x268] ss:$-28 sps:$4 sm:$0xcf] %v5861_v4   ;;  %v5144_v16 = vrot.slane %v10848_v15, 6 }
 0x4f0   :  { %v5876_v2 = vld [vmem:[#allocation5] sm:$0x3f]  ;;  %5893 = vst [vmem:[#allocation3 + $0x288] ss:$-28 sps:$4 sm:$0xf3] %v5885_v25   ;;  %v5860_v18 = vrot.slane %v5852_v36, 2 }
 0x4f1   :  { %5439 = vrot.lane.b32.xlu0 %v5430_v27, %s10057_s12  ;;  %v5884_v9 = vrot.slane %v5876_v2, 4  ;;  %v5854_v12 = vld [vmem:[#allocation5 + $0x10] sm:$0x3f]  ;;  %5871 = vst.msk [vmem:[#allocation3 + $0x258] sm:$0xc0] %vm5090_vm11, %v5863_v52  ;;  %v5237_v26 = vrot.slane %v5229_v57, 4 }
 0x4f2   :  { %5572 = vrot.lane.b32.xlu1 %v5562_v30, %s10056_s28  ;;  %v5878_v24 = vld [vmem:[#allocation5 + $0x10] sm:$0x3f]  ;;  %5875 = vst.msk [vmem:[#allocation3 + $0x278] sm:$0xf] %vm5095_vm12, %v5863_v52  ;;  %v5862_v17 = vrot.slane %v5854_v12, 2 }
 0x4f3   :  { %5895 = vst.msk [vmem:[#allocation3 + $0x278] sm:$0xf0] %vm5127_vm13, %v5887_v7  ;;  %v5886_v14 = vrot.slane %v5878_v24, 4  ;;  %v5901_v49 = vld [vmem:[#allocation5 + $0x8] sm:$0x3f] }
 0x4f4   :  { %5899 = vst.msk [vmem:[#allocation3 + $0x298] sm:$0x3] %vm5132_vm14, %v5887_v7  ;;  %v5921_v5 = vld [vmem:[#allocation5 + $0x8] sm:$0x3f]  ;;  %v5909_v33 = vrot.slane %v5901_v49, 6 }
 0x4f5   :  { %5443 = vrot.lane.b32.xlu0 %v5432_v62, %s10057_s12  ;;  %5868 = vst [vmem:[#allocation3 + $0x260] ss:$-28 sps:$4 sm:$0xcf] %v5860_v18   ;;  %5892 = vst [vmem:[#allocation3 + $0x280] ss:$-28 sps:$4 sm:$0xf3] %v5884_v9  }
 0x4f6   :  { %5704 = vrot.lane.b32.xlu1 %v5694_v55, %s10058_s6  ;;  %5925 = vst [vmem:[#allocation3 + $0x2a8] sm:$0x3f] %v5921_v5  ;;  %v5929_v20 = vld [vmem:[#allocation5 + $0x8] sm:$0x3f]  ;;  %v5931_v39 = vld [vmem:[#allocation5 + $0x18] sm:$0x3f] }
 0x4f7   :  { %v5361_v34 = vld [vmem:[#allocation5] sm:$0x3f]  ;;  %5870 = vst [vmem:[#allocation3 + $0x270] ss:$-28 sps:$4 sm:$0xcf] %v5862_v17   ;;  %v5937_v42 = vrot.slane %v5929_v20, 2 }
 0x4f8   :  { %5894 = vst [vmem:[#allocation3 + $0x290] ss:$-28 sps:$4 sm:$0xf3] %v5886_v14   ;;  %v5939_v59 = vrot.slane %v5931_v39, 2  ;;  %v5900_v32 = vld [vmem:[#allocation5] sm:$0x3f] }
 0x4f9   :  { %5570 = vrot.lane.b32.xlu0 %v5561_v35, %s10056_s28  ;;  %v5920_v40 = vld [vmem:[#allocation5] sm:$0x3f]  ;;  %v5195_v27 = vld [vmem:[#allocation5 + $0x10] sm:$0x3f]  ;;  %5917 = vst [vmem:[#allocation3 + $0x288] sm:$0xfc] %v5909_v33 }
 0x4fa   :  { %5700 = vrot.lane.b32.xlu1 %v5692_v61, %s10058_s6  ;;  %v5908_v30 = vrot.slane %v5900_v32, 6  ;;  %5924 = vst [vmem:[#allocation3 + $0x2a0] sm:$0x3f] %v5920_v40  ;;  %v5928_v62 = vld [vmem:[#allocation5] sm:$0x3f] }
 0x4fb   :  { %v5902_v55 = vld [vmem:[#allocation5 + $0x10] sm:$0x3f]  ;;  %5945 = vst [vmem:[#allocation3 + $0x2c8] ss:$-28 sps:$4 sm:$0xcf] %v5937_v42   ;;  %v5936_v35 = vrot.slane %v5928_v62, 2 }
 0x4fc   :  { %5947 = vst.msk [vmem:[#allocation3 + $0x2b8] sm:$0xc0] %vm5090_vm11, %v5939_v59  ;;  %v5910_v58 = vrot.slane %v5902_v55, 6  ;;  %v5922_v50 = vld [vmem:[#allocation5 + $0x10] sm:$0x3f] }
 0x4fd   :  { %5702 = vrot.lane.b32.xlu0 %v5693_v11, %s10058_s6  ;;  %5951 = vst.msk [vmem:[#allocation3 + $0x2d8] sm:$0xf] %vm5095_vm12, %v5939_v59  ;;  %v5930_v61 = vld [vmem:[#allocation5 + $0x10] sm:$0x3f]  ;;  %5916 = vst [vmem:[#allocation3 + $0x280] sm:$0xfc] %v5908_v30 }
 0x4fe   :  { %5836 = vrot.lane.b32.xlu1 %v5826_v54, %s10059_s22  ;;  %5926 = vst [vmem:[#allocation3 + $0x2b0] sm:$0x3f] %v5922_v50  ;;  %v5938_v11 = vrot.slane %v5930_v61, 2  ;;  %v5953_v54 = vld [vmem:[#allocation5 + $0x8] sm:$0x3f] }
 0x4ff   :  { %5944 = vst [vmem:[#allocation3 + $0x2c0] ss:$-28 sps:$4 sm:$0xcf] %v5936_v35   ;;  %5918 = vst [vmem:[#allocation3 + $0x290] sm:$0xfc] %v5910_v58 }
 0x500   :  { %v5955_v29 = vld [vmem:[#allocation5 + $0x18] sm:$0x3f]  ;;  %v5397_v37 = vld [vmem:[#allocation5] sm:$0x3f]  ;;  %v5978_v53 = vld [vmem:[#allocation5 + $0x10] sm:$0x3f] }
 0x501   :  { %5706 = vrot.lane.b32.xlu0 %v5695_v56, %s10058_s6  ;;  %v5977_v56 = vld [vmem:[#allocation5 + $0x8] sm:$0x3f]  ;;  %5946 = vst [vmem:[#allocation3 + $0x2d0] ss:$-28 sps:$4 sm:$0xcf] %v5938_v11   ;;  %v5963_v47 = vrot.slane %v5955_v29, 4 }
 0x502   :  { %5311 = vrot.lane.b32.xlu1 %v5300_v48, %s10055_s2  ;;  %v5961_v48 = vrot.slane %v5953_v54, 4  ;;  %v5952_v19 = vld [vmem:[#allocation5] sm:$0x3f]  ;;  %v5986_v38 = vrot.slane %v5978_v53, 6  ;;  %v5267_v21 = vld [vmem:[#allocation5 + $0x10] sm:$0x3f] }
 0x503   :  { %v5976_v10 = vld [vmem:[#allocation5] sm:$0x3f]  ;;  %5971 = vst.msk [vmem:[#allocation3 + $0x2d8] sm:$0xf0] %vm5127_vm13, %v5963_v47  ;;  %v5275_v15 = vrot.slane %v5267_v21, 6  ;;  %s10075_s6 = smov 104  }
 0x504   :  { %5969 = vst [vmem:[#allocation3 + $0x2e8] ss:$-28 sps:$4 sm:$0xf3] %v5961_v48   ;;  %5975 = vst.msk [vmem:[#allocation3 + $0x2f8] sm:$0x3] %vm5132_vm14, %v5963_v47  ;;  %v5984_v60 = vrot.slane %v5976_v10, 6 }
 0x505   :  { %5834 = vrot.lane.b32.xlu0 %v5825_v6, %s10059_s22  ;;  %v5985_v6 = vrot.slane %v5977_v56, 6  ;;  %v5457_v44 = vld [vmem:[#allocation5] sm:$0x3f]  ;;  %5994 = vst [vmem:[#allocation3 + $0x2f0] sm:$0xfc] %v5986_v38 }
 0x506   :  { %5574 = vrot.lane.b32.xlu1 %v5563_v31, %s10056_s28  ;;  %v5369_v31 = vrot.slane %v5361_v34, 4  ;;  %5992 = vst [vmem:[#allocation3 + $0x2e0] sm:$0xfc] %v5984_v60  ;;  %v5493_v1 = vld [vmem:[#allocation5] sm:$0x3f] }
 0x507   :  { %5993 = vst [vmem:[#allocation3 + $0x2e8] sm:$0xfc] %v5985_v6  ;;  %v5265_v51 = vld [vmem:[#allocation5] sm:$0x3f]  ;;  %v5501_v23 = vrot.slane %v5493_v1, 4 }
 0x508   :  { %v5273_v4 = vrot.slane %v5265_v51, 6  ;;  %v5624_v25 = vld [vmem:[#allocation5] sm:$0x3f]  ;;  %v5327_v45 = vld [vmem:[#allocation5 + $0x10] sm:$0x3f] }
 0x509   :  { %5072 = vrot.lane.b32.xlu0 %v5068_v13, %s10037_s23  ;;  %v5203_v13 = vrot.slane %v5195_v27, 2  ;;  %v5632_v63 = vrot.slane %v5624_v25, 4  ;;  %v5335_v57 = vrot.slane %v5327_v45, 2  ;;  %v5660_v52 = vld [vmem:[#allocation5] sm:$0x3f] }
 0x50a   :  { %5076 = vrot.lane.b32.xlu1 %v5070_v3, %s10037_s23  ;;  %v5960_v3 = vrot.slane %v5952_v19, 4  ;;  %v5363_v7 = vld [vmem:[#allocation5 + $0x10] sm:$0x3f]  ;;  %v5668_v36 = vrot.slane %v5660_v52, 6  ;;  %v5720_v18 = vld [vmem:[#allocation5] sm:$0x3f] }
 0x50b   :  { %v5371_v2 = vrot.slane %v5363_v7, 4  ;;  %v5325_v9 = vld [vmem:[#allocation5] sm:$0x3f]  ;;  %v5728_v12 = vrot.slane %v5720_v18, 2  ;;  %v5399_v14 = vld [vmem:[#allocation5 + $0x10] sm:$0x3f] }
 0x50c   :  { %5968 = vst [vmem:[#allocation3 + $0x2e0] ss:$-28 sps:$4 sm:$0xf3] %v5960_v3   ;;  %v5333_v24 = vrot.slane %v5325_v9, 2  ;;  %v5756_v17 = vld [vmem:[#allocation5] sm:$0x3f] }
 0x50d   :  { %5146 = vrot.lane.b32.xlu0 %v5142_v0, %s10038_s4  ;;  %v5231_v0 = vld [vmem:[#allocation5 + $0x10] sm:$0x3f]  ;;  %v5764_v49 = vrot.slane %v5756_v17, 4  ;;  %v5407_v5 = vrot.slane %v5399_v14, 6  ;;  %v5098_v34 = vld [vmem:[#allocation5 + $0x8] sm:$0x3f] }
 0x50e   :  { %5113 = vrot.lane.b32.xlu1 %v5107_v22, %s10036_s26  ;;  %v5954_v22 = vld [vmem:[#allocation5 + $0x10] sm:$0x3f]  ;;  %v5239_v28 = vrot.slane %v5231_v0, 4  ;;  %v5106_v59 = vrot.slane %v5098_v34, 4  ;;  %v5063_v40 = vld [vmem:[#allocation5 + $0x18] sm:$0x3f] }
 0x50f   :  { %v5962_v41 = vrot.slane %v5954_v22, 4  ;;  %v5459_v33 = vld [vmem:[#allocation5 + $0x10] sm:$0x3f]  ;;  %v5071_v27 = vrot.slane %v5063_v40, 2  ;;  %v5135_v62 = vld [vmem:[#allocation5 + $0x8] sm:$0x3f] }
 0x510   :  { %v5467_v39 = vrot.slane %v5459_v33, 2  ;;  %v5495_v42 = vld [vmem:[#allocation5 + $0x10] sm:$0x3f]  ;;  %v5528_v55 = vld [vmem:[#allocation5] sm:$0x3f]  ;;  %v5143_v35 = vrot.slane %v5135_v62, 6 }
 0x511   :  { %5205 = vrot.lane.b32.xlu0 %v5201_v46, %s10060_s7  ;;  %5970 = vst [vmem:[#allocation3 + $0x2f0] ss:$-28 sps:$4 sm:$0xf3] %v5962_v41   ;;  %v5465_v46 = vrot.slane %v5457_v44, 2  ;;  %v5503_v32 = vrot.slane %v5495_v42, 4  ;;  %v5536_v58 = vrot.slane %v5528_v55, 6 }
 0x512   :  { %5109 = vrot.lane.b32.xlu1 %v5105_v43, %s10036_s26  ;;  %v5405_v43 = vrot.slane %v5397_v37, 6  ;;  %v5194_v50 = vld [vmem:[#allocation5 + $0x8] sm:$0x3f]  ;;  %v5590_v61 = vld [vmem:[#allocation5 + $0x10] sm:$0x3f] }
 0x513   :  { %v5202_v11 = vrot.slane %v5194_v50, 2  ;;  %v5598_v54 = vrot.slane %v5590_v61, 2  ;;  %v5230_v56 = vld [vmem:[#allocation5 + $0x8] sm:$0x3f]  ;;  %v5626_v48 = vld [vmem:[#allocation5 + $0x10] sm:$0x3f] }
 0x514   :  { %v5238_v6 = vrot.slane %v5230_v56, 4  ;;  %v5634_v29 = vrot.slane %v5626_v48, 4  ;;  %v5588_v37 = vld [vmem:[#allocation5] sm:$0x3f]  ;;  %v5232_v10 = vld [vmem:[#allocation5 + $0x18] sm:$0x3f] }
 0x515   :  { %5241 = vrot.lane.b32.xlu0 %v5237_v26, %s10061_s20  ;;  %v5530_v26 = vld [vmem:[#allocation5 + $0x10] sm:$0x3f]  ;;  %v5596_v3 = vrot.slane %v5588_v37, 2  ;;  %v5240_v60 = vrot.slane %v5232_v10, 4  ;;  %v5326_v38 = vld [vmem:[#allocation5 + $0x8] sm:$0x3f] }
 0x516   :  { %5150 = vrot.lane.b32.xlu1 %v5144_v16, %s10038_s4  ;;  %v5061_v16 = vld [vmem:[#allocation5 + $0x8] sm:$0x3f]  ;;  %v5538_v30 = vrot.slane %v5530_v26, 6  ;;  %v5662_v22 = vld [vmem:[#allocation5 + $0x10] sm:$0x3f]  ;;  %v5334_v44 = vrot.slane %v5326_v38, 2 }
 0x517   :  { %v5069_v20 = vrot.slane %v5061_v16, 2  ;;  %v5670_v53 = vrot.slane %v5662_v22, 6  ;;  %v5362_v51 = vld [vmem:[#allocation5 + $0x8] sm:$0x3f]  ;;  %v5328_v52 = vld [vmem:[#allocation5 + $0x18] sm:$0x3f] }
 0x518   :  { %v5370_v25 = vrot.slane %v5362_v51, 4  ;;  %v5794_v7 = vld [vmem:[#allocation5 + $0x10] sm:$0x3f]  ;;  %v5398_v17 = vld [vmem:[#allocation5 + $0x8] sm:$0x3f] }
 0x519   :  { %5373 = vrot.lane.b32.xlu0 %v5369_v31, %s10062_s29  ;;  %v5266_v31 = vld [vmem:[#allocation5 + $0x8] sm:$0x3f]  ;;  %v5792_v14 = vld [vmem:[#allocation5] sm:$0x3f]  ;;  %v5100_v42 = vld [vmem:[#allocation5 + $0x18] sm:$0x3f] }
 0x51a   :  { %5209 = vrot.lane.b32.xlu1 %v5203_v13, %s10060_s7  ;;  %v5274_v19 = vrot.slane %v5266_v31, 6  ;;  %v5458_v34 = vld [vmem:[#allocation5 + $0x8] sm:$0x3f]  ;;  %v5137_v62 = vld [vmem:[#allocation5 + $0x18] sm:$0x3f] }
 0x51b   :  { %v5196_v56 = vld [vmem:[#allocation5 + $0x18] sm:$0x3f] }
 0x51c   :  { %v5364_v38 = vld [vmem:[#allocation5 + $0x18] sm:$0x3f] }
 0x51d   :  { %5409 = vrot.lane.b32.xlu0 %v5405_v43, %s10063_s24  ;;  %v5722_v43 = vld [vmem:[#allocation5 + $0x10] sm:$0x3f]  ;;  %v5400_v51 = vld [vmem:[#allocation5 + $0x18] sm:$0x3f] }
 0x51e   :  { %5245 = vrot.lane.b32.xlu1 %v5239_v28, %s10061_s20  ;;  %v5730_v1 = vrot.slane %v5722_v43, 2 }
 0x521   :  { %5469 = vrot.lane.b32.xlu0 %v5465_v46, %s10064_s1 }
 0x522   :  { %5281 = vrot.lane.b32.xlu1 %v5275_v15, %s10065_s30 }
 0x525   :  { %5505 = vrot.lane.b32.xlu0 %v5501_v23, %s10040_s16  ;;  %v5758_v23 = vld [vmem:[#allocation5 + $0x10] sm:$0x3f] }
 0x526   :  { %5277 = vrot.lane.b32.xlu1 %v5273_v4, %s10065_s30 }
 0x529   :  { %5636 = vrot.lane.b32.xlu0 %v5632_v63, %s10066_s25 }
 0x52a   :  { %5341 = vrot.lane.b32.xlu1 %v5335_v57, %s10067_s21  ;;  %v5766_v57 = vrot.slane %v5758_v23, 4 }
 0x52d   :  { %5672 = vrot.lane.b32.xlu0 %v5668_v36, %s10068_s17 }
 0x52e   :  { %5377 = vrot.lane.b32.xlu1 %v5371_v2, %s10062_s29  ;;  %v5336_v2 = vrot.slane %v5328_v52, 2 }
 0x531   :  { %5732 = vrot.lane.b32.xlu0 %v5728_v12, %s10069_s15 }
 0x532   :  { %5337 = vrot.lane.b32.xlu1 %v5333_v24, %s10067_s21  ;;  %v5802_v24 = vrot.slane %v5794_v7, 6 }
 0x535   :  { %5768 = vrot.lane.b32.xlu0 %v5764_v49, %s10070_s10 }
 0x536   :  { %5413 = vrot.lane.b32.xlu1 %v5407_v5, %s10063_s24  ;;  %v5406_v5 = vrot.slane %v5398_v17, 6 }
 0x539   :  { %5074 = vrot.lane.b32.xlu0 %v5069_v20, %s10037_s23 }
 0x53a   :  { %5473 = vrot.lane.b32.xlu1 %v5467_v39, %s10064_s1  ;;  %v5800_v39 = vrot.slane %v5792_v14, 6 }
 0x53d   :  { %5111 = vrot.lane.b32.xlu0 %v5106_v59, %s10036_s26 }
 0x53e   :  { %5509 = vrot.lane.b32.xlu1 %v5503_v32, %s10040_s16  ;;  %v5466_v32 = vrot.slane %v5458_v34, 2  ;;  %v5757_v34 = vld [vmem:[#allocation5 + $0x8] sm:$0x3f] }
 0x541   :  { %5078 = vrot.lane.b32.xlu0 %v5071_v27, %s10037_s23  ;;  %v5108_v27 = vrot.slane %v5100_v42, 4  ;;  %v5663_v42 = vld [vmem:[#allocation5 + $0x18] sm:$0x3f] }
 0x542   :  { %5544 = vrot.lane.b32.xlu1 %v5538_v30, %s10071_s3  ;;  %v5494_v30 = vld [vmem:[#allocation5 + $0x8] sm:$0x3f] }
 0x545   :  { %5148 = vrot.lane.b32.xlu0 %v5143_v35, %s10038_s4  ;;  %v5502_v35 = vrot.slane %v5494_v30, 4  ;;  %v5723_v30 = vld [vmem:[#allocation5 + $0x18] sm:$0x3f] }
 0x546   :  { %5540 = vrot.lane.b32.xlu1 %v5536_v58, %s10071_s3 }
 0x549   :  { %5207 = vrot.lane.b32.xlu0 %v5202_v11, %s10060_s7  ;;  %v5145_v11 = vrot.slane %v5137_v62, 6 }
 0x54a   :  { %5604 = vrot.lane.b32.xlu1 %v5598_v54, %s10072_s18  ;;  %v5529_v54 = vld [vmem:[#allocation5 + $0x8] sm:$0x3f] }
 0x54d   :  { %5243 = vrot.lane.b32.xlu0 %v5238_v6, %s10061_s20  ;;  %v5537_v6 = vrot.slane %v5529_v54, 6 }
 0x54e   :  { %5640 = vrot.lane.b32.xlu1 %v5634_v29, %s10066_s25 }
 0x54f   :  { %v5306_v47 = vpop.permute.xlu0 %5305 }
 0x550   :  { %v5179_v13 = vpop.permute.xlu1 %5178 }
 0x551   :  { %5279 = vrot.lane.b32.xlu0 %v5274_v19, %s10065_s30  ;;  %v5496_v19 = vld [vmem:[#allocation5 + $0x18] sm:$0x3f] }
 0x552   :  { %5600 = vrot.lane.b32.xlu1 %v5596_v3, %s10072_s18  ;;  %v5504_v10 = vrot.slane %v5496_v19, 4 }
 0x553   :  { %v10897_v0 = vpop.permute.xlu0 %5568 }
 0x554   :  { %v5175_v41 = vpop.permute.xlu1 %5174 }
 0x555   :  { %5247 = vrot.lane.b32.xlu0 %v5240_v60, %s10061_s20 }
 0x556   :  { %5676 = vrot.lane.b32.xlu1 %v5670_v53, %s10068_s17 }
 0x557   :  { %v5177_v28 = vpop.permute.xlu0 %5176 }
 0x558   :  { %v10901_v21 = vpop.permute.xlu1 %5309  ;;  %v5182_v46 = vsel %vm249_vm4, %v5175_v41, %v5177_v28  ;;  %v5183_v15 = vsel %vm249_vm4, %v5177_v28, %v5179_v13  ;;  %v5589_v41 = vld [vmem:[#allocation5 + $0x8] sm:$0x3f] }
 0x559   :  { %5189 = vst [vmem:[#allocation3 + $0x60] sm:$0x3f] %v5182_v46  ;;  %5190 = vst [vmem:[#allocation3 + $0x68] sm:$0x3f] %v5183_v15  ;;  %5339 = vrot.lane.b32.xlu0 %v5334_v44, %s10067_s21  ;;  %v5597_v28 = vrot.slane %v5589_v41, 2  ;;  %v5372_v15 = vrot.slane %v5364_v38, 4 }
 0x55a   :  { %5736 = vrot.lane.b32.xlu1 %v5730_v1, %s10069_s15  ;;  %v6142_v41 = vld [vmem:[%s11485_s5] sm:$0xff] }
 0x55b   :  { %v5181_v4 = vpop.permute.xlu0 %5180 }
 0x55c   :  { %v5442_v45 = vpop.permute.xlu1 %5441  ;;  %v5184_v63 = vsel %vm249_vm4, %v5179_v13, %v5181_v4  ;;  %5192 = vst.msk [vmem:[#allocation3 + $0x78] sm:$0x3f] %vm5058_vm0, %v5181_v4  ;;  %vm5445_vm4 = vcmask 801792   ;;  %v5268_v13 = vld [vmem:[#allocation5 + $0x18] sm:$0x3f] }
 0x55d   :  { %5191 = vst [vmem:[#allocation3 + $0x70] sm:$0x3f] %v5184_v63  ;;  %5375 = vrot.lane.b32.xlu0 %v5370_v25, %s10062_s29  ;;  %v5276_v60 = vrot.slane %v5268_v13, 6  ;;  %v5591_v63 = vld [vmem:[#allocation5 + $0x18] sm:$0x3f]  ;;  %v6143_v13 = vld [vmem:[%s11485_s5 + $0x8] sm:$0xff] }
 0x55e   :  { %5772 = vrot.lane.b32.xlu1 %v5766_v57, %s10070_s10  ;;  %v5460_v57 = vld [vmem:[#allocation5 + $0x18] sm:$0x3f]  ;;  %v5599_v7 = vrot.slane %v5591_v63, 2  ;;  %s10074_s5 = smov 120  }
 0x55f   :  { %v5308_v36 = vpop.permute.xlu0 %5307 }
 0x560   :  { %v5438_v18 = vpop.permute.xlu1 %5437  ;;  %v5314_v9 = vsel %vm5313_vm6, %v5306_v47, %v5308_v36  ;;  %v5315_v12 = vsel %vm5313_vm6, %v5308_v36, %v10901_v21  ;;  %v5204_v47 = vrot.slane %v5196_v56, 2 }
 0x561   :  { %5321 = vst [vmem:[#allocation3 + $0xc0] sm:$0x3f] %v5314_v9  ;;  %5322 = vst [vmem:[#allocation3 + $0xc8] sm:$0x3f] %v5315_v12  ;;  %5343 = vrot.lane.b32.xlu0 %v5336_v2, %s10067_s21  ;;  %v5468_v2 = vrot.slane %v5460_v57, 2 }
 0x562   :  { %5808 = vrot.lane.b32.xlu1 %v5802_v24, %s10073_s19  ;;  %v5531_v9 = vld [vmem:[#allocation5 + $0x18] sm:$0x3f] }
 0x563   :  { %v5440_v49 = vpop.permute.xlu0 %5439  ;;  %v5539_v14 = vrot.slane %v5531_v9, 6 }
 0x564   :  { %v10916_v16 = vpop.permute.xlu1 %5572  ;;  %v5446_v33 = vsel %vm5445_vm4, %v5438_v18, %v5440_v49  ;;  %v5447_v20 = vsel %vm5445_vm4, %v5440_v49, %v5442_v45  ;;  %v5661_v18 = vld [vmem:[#allocation5 + $0x8] sm:$0x3f] }
 0x565   :  { %5453 = vst [vmem:[#allocation3 + $0x120] sm:$0x3f] %v5446_v33  ;;  %5454 = vst [vmem:[#allocation3 + $0x128] sm:$0x3f] %v5447_v20  ;;  %5411 = vrot.lane.b32.xlu0 %v5406_v5, %s10063_s24  ;;  %v5669_v24 = vrot.slane %v5661_v18, 6 }
 0x566   :  { %5804 = vrot.lane.b32.xlu1 %v5800_v39, %s10073_s19  ;;  %v5721_v49 = vld [vmem:[#allocation5 + $0x8] sm:$0x3f]  ;;  %v5627_v5 = vld [vmem:[#allocation5 + $0x18] sm:$0x3f] }
 0x567   :  { %v5444_v59 = vpop.permute.xlu0 %5443  ;;  %v5729_v33 = vrot.slane %v5721_v49, 2  ;;  %v5635_v39 = vrot.slane %v5627_v5, 4 }
 0x568   :  { %v5705_v40 = vpop.permute.xlu1 %5704  ;;  %v5448_v26 = vsel %vm5445_vm4, %v5442_v45, %v5444_v59  ;;  %5456 = vst.msk [vmem:[#allocation3 + $0x138] sm:$0x3f] %vm5058_vm0, %v5444_v59  ;;  %v5408_v45 = vrot.slane %v5400_v51, 6  ;;  %vm5345_vm4 = vcmask 900096  }
 0x569   :  { %5455 = vst [vmem:[#allocation3 + $0x130] sm:$0x3f] %v5448_v26  ;;  %5471 = vrot.lane.b32.xlu0 %v5466_v32, %s10064_s1  ;;  %v5765_v32 = vrot.slane %v5757_v34, 4  ;;  %v5671_v26 = vrot.slane %v5663_v42, 6 }
 0x56a   :  { %5115 = vrot.lane.b32.xlu1 %v5108_v27, %s10036_s26  ;;  %v5793_v27 = vld [vmem:[#allocation5 + $0x8] sm:$0x3f] }
 0x56b   :  { %v5571_v55 = vpop.permute.xlu0 %5570 }
 0x56c   :  { %v5701_v58 = vpop.permute.xlu1 %5700  ;;  %v5577_v50 = vsel %vm5576_vm7, %v10897_v0, %v5571_v55  ;;  %v5578_v61 = vsel %vm5576_vm7, %v5571_v55, %v10916_v16  ;;  %v5801_v55 = vrot.slane %v5793_v27, 6 }
 0x56d   :  { %5584 = vst [vmem:[#allocation3 + $0x180] sm:$0x3f] %v5577_v50  ;;  %5585 = vst [vmem:[#allocation3 + $0x188] sm:$0x3f] %v5578_v61  ;;  %5507 = vrot.lane.b32.xlu0 %v5502_v35, %s10040_s16  ;;  %v5759_v50 = vld [vmem:[#allocation5 + $0x18] sm:$0x3f] }
 0x56e   :  { %5152 = vrot.lane.b32.xlu1 %v5145_v11, %s10038_s4  ;;  %v5795_v61 = vld [vmem:[#allocation5 + $0x18] sm:$0x3f]  ;;  %v5767_v54 = vrot.slane %v5759_v50, 4 }
 0x56f   :  { %v5703_v48 = vpop.permute.xlu0 %5702 }
 0x570   :  { %v10932_v29 = vpop.permute.xlu1 %5836  ;;  %v5709_v31 = vsel %vm5708_vm8, %v5701_v58, %v5703_v48  ;;  %v5710_v37 = vsel %vm5708_vm8, %v5703_v48, %v5705_v40  ;;  %v5731_v58 = vrot.slane %v5723_v30, 2  ;;  %v5803_v48 = vrot.slane %v5795_v61, 6 }
 0x571   :  { %5716 = vst [vmem:[#allocation3 + $0x1e0] sm:$0x3f] %v5709_v31  ;;  %5717 = vst [vmem:[#allocation3 + $0x1e8] sm:$0x3f] %v5710_v37  ;;  %5542 = vrot.lane.b32.xlu0 %v5537_v6, %s10071_s3  ;;  %v5824_v37 = vld [vmem:[#allocation5] sm:$0x3f] }
 0x572   :  { %5211 = vrot.lane.b32.xlu1 %v5204_v47, %s10060_s7  ;;  %v5827_v47 = vld [vmem:[#allocation5 + $0x18] sm:$0x3f] }
 0x573   :  { %v5707_v3 = vpop.permute.xlu0 %5706 }
 0x574   :  { %v5312_v22 = vpop.permute.xlu1 %5311  ;;  %v5711_v0 = vsel %vm5708_vm8, %v5705_v40, %v5707_v3  ;;  %5719 = vst.msk [vmem:[#allocation3 + $0x1f8] sm:$0x3f] %vm5058_vm0, %v5707_v3  ;;  %vm5417_vm8 = vcmask 809984  }
 0x575   :  { %v5316_v53 = vsel %vm5313_vm6, %v10901_v21, %v5312_v22  ;;  %5324 = vst.msk [vmem:[#allocation3 + $0xd8] sm:$0x3f] %vm5058_vm0, %v5312_v22  ;;  %5718 = vst [vmem:[#allocation3 + $0x1f0] sm:$0x3f] %v5711_v0  ;;  %5511 = vrot.lane.b32.xlu0 %v5504_v10, %s10040_s16  ;;  %v5625_v21 = vld [vmem:[#allocation5 + $0x8] sm:$0x3f] }
 0x576   :  { %5323 = vst [vmem:[#allocation3 + $0xd0] sm:$0x3f] %v5316_v53  ;;  %5283 = vrot.lane.b32.xlu1 %v5276_v60, %s10065_s30  ;;  %v5633_v4 = vrot.slane %v5625_v21, 4  ;;  %v9676_v0 = vld [vmem:[#allocation11 + $0x4] ss:$8 sps:$4 sm:$0xff]   ;;  %vm5285_vm6 = vcmask 916480  }
 0x577   :  { %v10945_v43 = vpop.permute.xlu0 %5834  ;;  %8443 = vmatprep.mubr.msk.bf16.mxu0 %vm417_vm10, %v9676_v0  ;;  %8444 = vmatprep.mubr.msk.bf16.mxu1 %vm417_vm10, %v9676_v0  ;;  %vm5249_vm10 = vcmask 924672  }
 0x578   :  { %v5575_v44 = vpop.permute.xlu1 %5574  ;;  %v5842_v46 = vsel %vm5840_vm9, %v10945_v43, %v10932_v29 }
 0x579   :  { %v5579_v1 = vsel %vm5576_vm7, %v10916_v16, %v5575_v44  ;;  %5587 = vst.msk [vmem:[#allocation3 + $0x198] sm:$0x3f] %vm5058_vm0, %v5575_v44  ;;  %5849 = vst [vmem:[#allocation3 + $0x248] sm:$0x3f] %v5842_v46  ;;  %5602 = vrot.lane.b32.xlu0 %v5597_v28, %s10072_s18  ;;  %vm5381_vm7 = vcmask 818176  }
 0x57a   :  { %5586 = vst [vmem:[#allocation3 + $0x190] sm:$0x3f] %v5579_v1  ;;  %5379 = vrot.lane.b32.xlu1 %v5372_v15, %s10062_s29  ;;  %s10077_s29 = smov 118  }
 0x57b   :  { %v10955_v23 = vpop.permute.xlu0 %5072 }
 0x57c   :  { %v10957_v25 = vpop.permute.xlu1 %5076 }
 0x57d   :  { %5638 = vrot.lane.b32.xlu0 %v5633_v4, %s10066_s25 }
 0x57e   :  { %5415 = vrot.lane.b32.xlu1 %v5408_v45, %s10063_s24  ;;  %s10081_s24 = smov 108  }
 0x57f   :  { %v10961_v52 = vpop.permute.xlu0 %5146 }
 0x580   :  { %v10963_v36 = vpop.permute.xlu1 %5113 }
 0x581   :  { %5606 = vrot.lane.b32.xlu0 %v5599_v7, %s10072_s18 }
 0x582   :  { %5475 = vrot.lane.b32.xlu1 %v5468_v2, %s10064_s1  ;;  %s10083_s1 = smov 123  }
 0x583   :  { %v10967_v12 = vpop.permute.xlu0 %5205 }
 0x584   :  { %v10969_v17 = vpop.permute.xlu1 %5109 }
 0x585   :  { %5674 = vrot.lane.b32.xlu0 %v5669_v24, %s10068_s17 }
 0x586   :  { %5546 = vrot.lane.b32.xlu1 %v5539_v14, %s10071_s3 }
 0x587   :  { %v10973_v16 = vpop.permute.xlu0 %5241 }
 0x588   :  { %v10975_v20 = vpop.permute.xlu1 %5150 }
 0x589   :  { %5734 = vrot.lane.b32.xlu0 %v5729_v33, %s10069_s15 }
 0x58a   :  { %5642 = vrot.lane.b32.xlu1 %v5635_v39, %s10066_s25  ;;  %s10086_s25 = smov 106  }
 0x58b   :  { %v10979_v59 = vpop.permute.xlu0 %5373 }
 0x58c   :  { %v10981_v40 = vpop.permute.xlu1 %5209 }
 0x58d   :  { %5770 = vrot.lane.b32.xlu0 %v5765_v32, %s10070_s10 }
 0x58e   :  { %5678 = vrot.lane.b32.xlu1 %v5671_v26, %s10068_s17 }
 0x58f   :  { %v10985_v62 = vpop.permute.xlu0 %5409 }
 0x590   :  { %v10987_v35 = vpop.permute.xlu1 %5245 }
 0x591   :  { %5806 = vrot.lane.b32.xlu0 %v5801_v55, %s10073_s19 }
 0x592   :  { %5738 = vrot.lane.b32.xlu1 %v5731_v58, %s10069_s15 }
 0x593   :  { %v10991_v11 = vpop.permute.xlu0 %5469 }
 0x594   :  { %v10993_v56 = vpop.permute.xlu1 %5281 }
 0x595   :  { %5774 = vrot.lane.b32.xlu0 %v5767_v54, %s10070_s10 }
 0x596   :  { %5810 = vrot.lane.b32.xlu1 %v5803_v48, %s10073_s19 }
 0x597   :  { %v10997_v6 = vpop.permute.xlu0 %5505 }
 0x598   :  { %v10999_v31 = vpop.permute.xlu1 %5277 }
 0x599   :  { %5832 = vrot.lane.b32.xlu0 %v5824_v37, %s10059_s22 }
 0x59a   :  { %5838 = vrot.lane.b32.xlu1 %v5827_v47, %s10059_s22  ;;  %s10076_s22 = smov 119  }
 0x59b   :  { %v11003_v19 = vpop.permute.xlu0 %5636 }
 0x59c   :  { %v11008_v3 = vpop.permute.xlu1 %5341 }
 0x59d   :  { %6146 = vperm.xlu0 %8907, %v6142_v41  }
 0x59e   :  { %6151 = vperm.xlu1 %8906, %v6143_v13  }
 0x59f   :  { %v11010_v10 = vpop.permute.xlu0 %5672 }
 0x5a0   :  { %v11012_v22 = vpop.permute.xlu1 %5377 }
 0x5a3   :  { %v11016_v60 = vpop.permute.xlu0 %5732 }
 0x5a4   :  { %v11021_v53 = vpop.permute.xlu1 %5337 }
 0x5a7   :  { %v11023_v38 = vpop.permute.xlu0 %5768 }
 0x5a8   :  { %v11025_v28 = vpop.permute.xlu1 %5413 }
 0x5ab   :  { %v5075_v44 = vpop.permute.xlu0 %5074 }
 0x5ac   :  { %v11027_v46 = vpop.permute.xlu1 %5473  ;;  %v5080_v15 = vsel %vm165_vm2, %v10955_v23, %v5075_v44  ;;  %v5081_v21 = vsel %vm165_vm2, %v5075_v44, %v10957_v25 }
 0x5ad   :  { %5087 = vst [vmem:[#allocation3 + $0x20] ss:$-28 sps:$4 sm:$0xcf] %v5080_v15   ;;  %5088 = vst [vmem:[#allocation3 + $0x28] ss:$-28 sps:$4 sm:$0xcf] %v5081_v21  }
 0x5af   :  { %v5112_v1 = vpop.permute.xlu0 %5111 }
 0x5b0   :  { %v11033_v51 = vpop.permute.xlu1 %5509  ;;  %v5117_v4 = vsel %vm193_vm1, %v10969_v17, %v5112_v1  ;;  %v5118_v45 = vsel %vm193_vm1, %v5112_v1, %v10963_v36 }
 0x5b1   :  { %5124 = vst [vmem:[#allocation3 + $0x40] ss:$-28 sps:$4 sm:$0xf3] %v5117_v4   ;;  %5125 = vst [vmem:[#allocation3 + $0x48] ss:$-28 sps:$4 sm:$0xf3] %v5118_v45  }
 0x5b3   :  { %v5079_v63 = vpop.permute.xlu0 %5078 }
 0x5b4   :  { %v11039_v57 = vpop.permute.xlu1 %5544  ;;  %v5082_v23 = vsel %vm165_vm2, %v10957_v25, %v5079_v63  ;;  %5091 = vst.msk [vmem:[#allocation3 + $0x18] sm:$0xc0] %vm5090_vm11, %v5079_v63  ;;  %v5999_v2 = vld [vmem:[#allocation3 + $0x8] sm:$0xff]  ;;  %v5998_v14 = vld [vmem:[#allocation3] sm:$0xff]  ;;  %vm5213_vm2 = vcmask 932864  }
 0x5b5   :  { %5096 = vst.msk [vmem:[#allocation3 + $0x38] sm:$0xf] %vm5095_vm12, %v5079_v63  ;;  %5089 = vst [vmem:[#allocation3 + $0x30] ss:$-28 sps:$4 sm:$0xcf] %v5082_v23  }
 0x5b7   :  { %v5149_v7 = vpop.permute.xlu0 %5148 }
 0x5b8   :  { %v11045_v18 = vpop.permute.xlu1 %5540  ;;  %v5154_v9 = vsel %vm221_vm3, %v10961_v52, %v5149_v7  ;;  %v5155_v24 = vsel %vm221_vm3, %v5149_v7, %v10975_v20  ;;  %v6003_v17 = vld [vmem:[#allocation3 + $0x28] sm:$0xff]  ;;  %v6002_v49 = vld [vmem:[#allocation3 + $0x20] sm:$0xff] }
 0x5b9   :  { %5161 = vst [vmem:[#allocation3 + $0x40] sm:$0xfc] %v5154_v9  ;;  %5162 = vst [vmem:[#allocation3 + $0x48] sm:$0xfc] %v5155_v24  ;;  %v6095_v25 = vpack.c.bf16 %v6003_v17, %v5999_v2  ;;  %v6094_v5 = vpack.c.bf16 %v6002_v49, %v5998_v14 }
 0x5bb   :  { %v5208_v33 = vpop.permute.xlu0 %5207  ;;  %6166 = vmatprep.subr.bf16.mxu0 %v6095_v25 }
 0x5bc   :  { %v11051_v39 = vpop.permute.xlu1 %5604  ;;  %v5214_v34 = vsel %vm5213_vm2, %v10967_v12, %v5208_v33  ;;  %v5215_v52 = vsel %vm5213_vm2, %v5208_v33, %v10981_v40  ;;  %6167 = vmatpush1.bf16.msra.mxu0 %v6094_v5 }
 0x5bd   :  { %5221 = vst [vmem:[#allocation3 + $0x80] ss:$-28 sps:$4 sm:$0xcf] %v5214_v34   ;;  %5222 = vst [vmem:[#allocation3 + $0x88] ss:$-28 sps:$4 sm:$0xcf] %v5215_v52  }
 0x5bf   :  { %v5244_v42 = vpop.permute.xlu0 %5243 }
 0x5c0   :  { %v11057_v32 = vpop.permute.xlu1 %5640  ;;  %v5250_v26 = vsel %vm5249_vm10, %v10973_v16, %v5244_v42  ;;  %v5251_v27 = vsel %vm5249_vm10, %v5244_v42, %v10987_v35  ;;  %v6007_v30 = vld [vmem:[#allocation3 + $0x48] sm:$0xff]  ;;  %v6006_v54 = vld [vmem:[#allocation3 + $0x40] sm:$0xff] }
 0x5c1   :  { %5257 = vst [vmem:[#allocation3 + $0xa0] ss:$-28 sps:$4 sm:$0xf3] %v5250_v26   ;;  %5258 = vst [vmem:[#allocation3 + $0xa8] ss:$-28 sps:$4 sm:$0xf3] %v5251_v27  }
 0x5c3   :  { %v5280_v12 = vpop.permute.xlu0 %5279 }
 0x5c4   :  { %v11063_v55 = vpop.permute.xlu1 %5600  ;;  %v5286_v58 = vsel %vm5285_vm6, %v10999_v31, %v5280_v12  ;;  %v5287_v50 = vsel %vm5285_vm6, %v5280_v12, %v10993_v56  ;;  %v6011_v61 = vld [vmem:[#allocation3 + $0x68] sm:$0xff]  ;;  %v6010_v48 = vld [vmem:[#allocation3 + $0x60] sm:$0xff] }
 0x5c5   :  { %5293 = vst [vmem:[#allocation3 + $0xa0] sm:$0xfc] %v5286_v58  ;;  %5294 = vst [vmem:[#allocation3 + $0xa8] sm:$0xfc] %v5287_v50  ;;  %v6099_v16 = vpack.c.bf16 %v6011_v61, %v6007_v30  ;;  %v6098_v37 = vpack.c.bf16 %v6010_v48, %v6006_v54  ;;  %v6001_v48 = vld [vmem:[#allocation3 + $0x18] sm:$0xff] }
 0x5c7   :  { %v5248_v47 = vpop.permute.xlu0 %5247  ;;  %6168 = vmatprep.subr.bf16.mxu0 %v6099_v16 }
 0x5c8   :  { %v11069_v13 = vpop.permute.xlu1 %5676  ;;  %v5252_v0 = vsel %vm5249_vm10, %v10987_v35, %v5248_v47  ;;  %5260 = vst.msk [vmem:[#allocation3 + $0x98] sm:$0xf0] %vm5127_vm13, %v5248_v47  ;;  %6169 = vmatpush1.bf16.msra.mxu0 %v6098_v37  ;;  %v6015_v41 = vld [vmem:[#allocation3 + $0x88] sm:$0xff]  ;;  %v6014_v4 = vld [vmem:[#allocation3 + $0x80] sm:$0xff]  ;;  %vm5477_vm10 = vcmask 793600  }
 0x5c9   :  { %5264 = vst.msk [vmem:[#allocation3 + $0xb8] sm:$0x3] %vm5132_vm14, %v5248_v47  ;;  %5259 = vst [vmem:[#allocation3 + $0xb0] ss:$-28 sps:$4 sm:$0xf3] %v5252_v0  }
 0x5cb   :  { %v5340_v31 = vpop.permute.xlu0 %5339 }
 0x5cc   :  { %v11075_v44 = vpop.permute.xlu1 %5736  ;;  %v5346_v15 = vsel %vm5345_vm4, %v11021_v53, %v5340_v31  ;;  %v5347_v21 = vsel %vm5345_vm4, %v5340_v31, %v11008_v3  ;;  %v6019_v1 = vld [vmem:[#allocation3 + $0xa8] sm:$0xff]  ;;  %v6018_v35 = vld [vmem:[#allocation3 + $0xa0] sm:$0xff] }
 0x5cd   :  { %5353 = vst [vmem:[#allocation3 + $0xe0] ss:$-28 sps:$4 sm:$0xcf] %v5346_v15   ;;  %5354 = vst [vmem:[#allocation3 + $0xe8] ss:$-28 sps:$4 sm:$0xcf] %v5347_v21   ;;  %v6103_v45 = vpack.c.bf16 %v6019_v1, %v6015_v41  ;;  %v6102_v63 = vpack.c.bf16 %v6018_v35, %v6014_v4 }
 0x5ce   :  { %v6000_v1 = vld [vmem:[#allocation3 + $0x10] sm:$0xff] }
 0x5cf   :  { %v5376_v23 = vpop.permute.xlu0 %5375  ;;  %6170 = vmatprep.subr.bf16.mxu0 %v6103_v45 }
 0x5d0   :  { %v11081_v7 = vpop.permute.xlu1 %5772  ;;  %v5382_v2 = vsel %vm5381_vm7, %v10979_v59, %v5376_v23  ;;  %v5383_v53 = vsel %vm5381_vm7, %v5376_v23, %v11012_v22  ;;  %6171 = vmatpush1.bf16.msra.mxu0 %v6102_v63 }
 0x5d1   :  { %5389 = vst [vmem:[#allocation3 + $0x100] ss:$-28 sps:$4 sm:$0xf3] %v5382_v2   ;;  %5390 = vst [vmem:[#allocation3 + $0x108] ss:$-28 sps:$4 sm:$0xf3] %v5383_v53  }
 0x5d3   :  { %v5344_v9 = vpop.permute.xlu0 %5343 }
 0x5d4   :  { %v11087_v24 = vpop.permute.xlu1 %5808  ;;  %v5348_v17 = vsel %vm5345_vm4, %v11008_v3, %v5344_v9  ;;  %5356 = vst.msk [vmem:[#allocation3 + $0xd8] sm:$0xc0] %vm5090_vm11, %v5344_v9  ;;  %v6023_v59 = vld [vmem:[#allocation3 + $0xc8] sm:$0xff]  ;;  %v6022_v34 = vld [vmem:[#allocation3 + $0xc0] sm:$0xff]  ;;  %vm5776_vm4 = vcmask 572416  }
 0x5d5   :  { %5360 = vst.msk [vmem:[#allocation3 + $0xf8] sm:$0xf] %vm5095_vm12, %v5344_v9  ;;  %5355 = vst [vmem:[#allocation3 + $0xf0] ss:$-28 sps:$4 sm:$0xcf] %v5348_v17  }
 0x5d7   :  { %v5412_v14 = vpop.permute.xlu0 %5411 }
 0x5d8   :  { %v11093_v49 = vpop.permute.xlu1 %5804  ;;  %v5418_v25 = vsel %vm5417_vm8, %v10985_v62, %v5412_v14  ;;  %v5419_v5 = vsel %vm5417_vm8, %v5412_v14, %v11025_v28  ;;  %v6027_v33 = vld [vmem:[#allocation3 + $0xe8] sm:$0xff]  ;;  %v6026_v52 = vld [vmem:[#allocation3 + $0xe0] sm:$0xff] }
 0x5d9   :  { %5425 = vst [vmem:[#allocation3 + $0x100] sm:$0xfc] %v5418_v25  ;;  %5426 = vst [vmem:[#allocation3 + $0x108] sm:$0xfc] %v5419_v5  ;;  %v6107_v3 = vpack.c.bf16 %v6027_v33, %v6023_v59  ;;  %v6106_v42 = vpack.c.bf16 %v6026_v52, %v6022_v34 }
 0x5db   :  { %v5472_v26 = vpop.permute.xlu0 %5471  ;;  %6172 = vmatprep.subr.bf16.mxu0 %v6107_v3 }
 0x5dc   :  { %v5116_v27 = vpop.permute.xlu1 %5115  ;;  %v5478_v12 = vsel %vm5477_vm10, %v10991_v11, %v5472_v26  ;;  %v5479_v62 = vsel %vm5477_vm10, %v5472_v26, %v11027_v46  ;;  %6173 = vmatpush1.bf16.msra.mxu0 %v6106_v42 }
 0x5dd   :  { %v5119_v30 = vsel %vm193_vm1, %v10963_v36, %v5116_v27  ;;  %5128 = vst.msk [vmem:[#allocation3 + $0x38] sm:$0xf0] %vm5127_vm13, %v5116_v27  ;;  %5485 = vst [vmem:[#allocation3 + $0x140] ss:$-28 sps:$4 sm:$0xcf] %v5478_v12   ;;  %vm5548_vm1 = vcmask 703488  }
 0x5de   :  { %5133 = vst.msk [vmem:[#allocation3 + $0x58] sm:$0x3] %vm5132_vm14, %v5116_v27  ;;  %5486 = vst [vmem:[#allocation3 + $0x148] ss:$-28 sps:$4 sm:$0xcf] %v5479_v62  }
 0x5df   :  { %5126 = vst [vmem:[#allocation3 + $0x50] ss:$-28 sps:$4 sm:$0xf3] %v5119_v30   ;;  %v5508_v58 = vpop.permute.xlu0 %5507 }
 0x5e0   :  { %v5153_v50 = vpop.permute.xlu1 %5152  ;;  %v5513_v61 = vsel %vm277_vm5, %v10997_v6, %v5508_v58  ;;  %v5514_v11 = vsel %vm277_vm5, %v5508_v58, %v11033_v51  ;;  %v6031_v16 = vld [vmem:[#allocation3 + $0x108] sm:$0xff]  ;;  %v6030_v37 = vld [vmem:[#allocation3 + $0x100] sm:$0xff] }
 0x5e1   :  { %v5156_v54 = vsel %vm221_vm3, %v10975_v20, %v5153_v50  ;;  %5165 = vst.msk [vmem:[#allocation3 + $0x58] sm:$0xfc] %vm5164_vm15, %v5153_v50  ;;  %5520 = vst [vmem:[#allocation3 + $0x160] ss:$-28 sps:$4 sm:$0xf3] %v5513_v61   ;;  %vm5608_vm3 = vcmask 687104  }
 0x5e2   :  { %5521 = vst [vmem:[#allocation3 + $0x168] ss:$-28 sps:$4 sm:$0xf3] %v5514_v11   ;;  %5163 = vst [vmem:[#allocation3 + $0x50] sm:$0xfc] %v5156_v54 }
 0x5e3   :  { %v5543_v36 = vpop.permute.xlu0 %5542 }
 0x5e4   :  { %v5212_v47 = vpop.permute.xlu1 %5211  ;;  %v5549_v6 = vsel %vm5548_vm1, %v11045_v18, %v5543_v36  ;;  %v5550_v0 = vsel %vm5548_vm1, %v5543_v36, %v11039_v57  ;;  %v6005_v31 = vld [vmem:[#allocation3 + $0x38] sm:$0xff]  ;;  %v6034_v20 = vld [vmem:[#allocation3 + $0x120] sm:$0xff] }
 0x5e5   :  { %v6035_v41 = vld [vmem:[#allocation3 + $0x128] sm:$0xff]  ;;  %v5216_v15 = vsel %vm5213_vm2, %v10981_v40, %v5212_v47  ;;  %5224 = vst.msk [vmem:[#allocation3 + $0x78] sm:$0xc0] %vm5090_vm11, %v5212_v47  ;;  %5556 = vst [vmem:[#allocation3 + $0x160] sm:$0xfc] %v5549_v6  ;;  %v6097_v21 = vpack.c.bf16 %v6005_v31, %v6001_v48  ;;  %v6110_v18 = vpack.c.bf16 %v6034_v20, %v6030_v37  ;;  %v6024_v31 = vld [vmem:[#allocation3 + $0xd0] sm:$0xff] }
 0x5e6   :  { %5228 = vst.msk [vmem:[#allocation3 + $0x98] sm:$0xf] %vm5095_vm12, %v5212_v47  ;;  %5557 = vst [vmem:[#allocation3 + $0x168] sm:$0xfc] %v5550_v0  ;;  %v6004_v4 = vld [vmem:[#allocation3 + $0x30] sm:$0xff]  ;;  %v6111_v35 = vpack.c.bf16 %v6035_v41, %v6031_v16  ;;  %vm5680_vm2 = vcmask 670720  }
 0x5e7   :  { %5223 = vst [vmem:[#allocation3 + $0x90] ss:$-28 sps:$4 sm:$0xcf] %v5216_v15   ;;  %v6096_v45 = vpack.c.bf16 %v6004_v4, %v6000_v1  ;;  %6209 = vmatprep.subr.bf16.mxu1 %v6097_v21  ;;  %v5512_v63 = vpop.permute.xlu0 %5511 }
 0x5e8   :  { %6174 = vmatprep.subr.bf16.mxu0 %v6111_v35  ;;  %v5284_v23 = vpop.permute.xlu1 %5283  ;;  %v5515_v40 = vsel %vm277_vm5, %v11033_v51, %v5512_v63  ;;  %5523 = vst.msk [vmem:[#allocation3 + $0x158] sm:$0xf0] %vm5127_vm13, %v5512_v63  ;;  %v6009_v9 = vld [vmem:[#allocation3 + $0x58] sm:$0xff]  ;;  %v6038_v14 = vld [vmem:[#allocation3 + $0x140] sm:$0xff]  ;;  %vm5644_vm5 = vcmask 678912  }
 0x5e9   :  { %6210 = vmatpush1.bf16.msra.mxu1 %v6096_v45  ;;  %5527 = vst.msk [vmem:[#allocation3 + $0x178] sm:$0x3] %vm5132_vm14, %v5512_v63  ;;  %6175 = vmatpush1.bf16.msra.mxu0 %v6110_v18  ;;  %v5288_v2 = vsel %vm5285_vm6, %v10993_v56, %v5284_v23  ;;  %5522 = vst [vmem:[#allocation3 + $0x170] ss:$-28 sps:$4 sm:$0xf3] %v5515_v40   ;;  %v6039_v17 = vld [vmem:[#allocation3 + $0x148] sm:$0xff] }
 0x5ea   :  { %5296 = vst.msk [vmem:[#allocation3 + $0xb8] sm:$0xfc] %vm5164_vm15, %v5284_v23  ;;  %5295 = vst [vmem:[#allocation3 + $0xb0] sm:$0xfc] %v5288_v2  ;;  %v6008_v3 = vld [vmem:[#allocation3 + $0x50] sm:$0xff]  ;;  %vm5740_vm6 = vcmask 580608  }
 0x5eb   :  { %v5603_v53 = vpop.permute.xlu0 %5602 }
 0x5ec   :  { %v5380_v59 = vpop.permute.xlu1 %5379  ;;  %v5609_v51 = vsel %vm5608_vm3, %v11063_v55, %v5603_v53  ;;  %v5610_v25 = vsel %vm5608_vm3, %v5603_v53, %v11051_v39  ;;  %v6013_v5 = vld [vmem:[#allocation3 + $0x78] sm:$0xff]  ;;  %v6042_v56 = vld [vmem:[#allocation3 + $0x160] sm:$0xff] }
 0x5ed   :  { %v6043_v33 = vld [vmem:[#allocation3 + $0x168] sm:$0xff]  ;;  %v5384_v34 = vsel %vm5381_vm7, %v11012_v22, %v5380_v59  ;;  %5392 = vst.msk [vmem:[#allocation3 + $0xf8] sm:$0xf0] %vm5127_vm13, %v5380_v59  ;;  %5616 = vst [vmem:[#allocation3 + $0x1a0] ss:$-28 sps:$4 sm:$0xcf] %v5609_v51   ;;  %v6101_v52 = vpack.c.bf16 %v6013_v5, %v6009_v9  ;;  %v6114_v26 = vpack.c.bf16 %v6042_v56, %v6038_v14 }
 0x5ee   :  { %5396 = vst.msk [vmem:[#allocation3 + $0x118] sm:$0x3] %vm5132_vm14, %v5380_v59  ;;  %5617 = vst [vmem:[#allocation3 + $0x1a8] ss:$-28 sps:$4 sm:$0xcf] %v5610_v25   ;;  %v6012_v42 = vld [vmem:[#allocation3 + $0x70] sm:$0xff]  ;;  %v6115_v55 = vpack.c.bf16 %v6043_v33, %v6039_v17 }
 0x5ef   :  { %5391 = vst [vmem:[#allocation3 + $0x110] ss:$-28 sps:$4 sm:$0xf3] %v5384_v34   ;;  %v6100_v27 = vpack.c.bf16 %v6012_v42, %v6008_v3  ;;  %6211 = vmatprep.subr.bf16.mxu1 %v6101_v52  ;;  %v5639_v12 = vpop.permute.xlu0 %5638  ;;  %v6017_v58 = vld [vmem:[#allocation3 + $0x98] sm:$0xff]  ;;  %v6016_v54 = vld [vmem:[#allocation3 + $0x90] sm:$0xff]  ;;  %vm5812_vm7 = vcmask 564224  }
 0x5f0   :  { %6176 = vmatprep.subr.bf16.mxu0 %v6115_v55  ;;  %v5416_v62 = vpop.permute.xlu1 %5415  ;;  %v5645_v22 = vsel %vm5644_vm5, %v11003_v19, %v5639_v12  ;;  %v5646_v30 = vsel %vm5644_vm5, %v5639_v12, %v11057_v32 }
 0x5f1   :  { %6212 = vmatpush1.bf16.msra.mxu1 %v6100_v27  ;;  %6177 = vmatpush1.bf16.msra.mxu0 %v6114_v26  ;;  %v6021_v50 = vld [vmem:[#allocation3 + $0xb8] sm:$0xff]  ;;  %v5420_v61 = vsel %vm5417_vm8, %v11025_v28, %v5416_v62  ;;  %5428 = vst.msk [vmem:[#allocation3 + $0x118] sm:$0xfc] %vm5164_vm15, %v5416_v62  ;;  %5652 = vst [vmem:[#allocation3 + $0x1c0] ss:$-28 sps:$4 sm:$0xf3] %v5645_v22  }
 0x5f2   :  { %5653 = vst [vmem:[#allocation3 + $0x1c8] ss:$-28 sps:$4 sm:$0xf3] %v5646_v30   ;;  %v6105_v11 = vpack.c.bf16 %v6021_v50, %v6017_v58  ;;  %v6020_v36 = vld [vmem:[#allocation3 + $0xb0] sm:$0xff]  ;;  %5427 = vst [vmem:[#allocation3 + $0x110] sm:$0xfc] %v5420_v61 }
 0x5f3   :  { %v6104_v48 = vpack.c.bf16 %v6020_v36, %v6016_v54  ;;  %v5607_v19 = vpop.permute.xlu0 %5606  ;;  %v6025_v28 = vld [vmem:[#allocation3 + $0xd8] sm:$0xff]  ;;  %vm7909_vm8 = vcmask 15360  }
 0x5f4   :  { %6213 = vmatprep.subr.bf16.mxu1 %v6105_v11  ;;  %v5476_v16 = vpop.permute.xlu1 %5475  ;;  %v5611_v37 = vsel %vm5608_vm3, %v11051_v39, %v5607_v19  ;;  %5619 = vst.msk [vmem:[#allocation3 + $0x198] sm:$0xc0] %vm5090_vm11, %v5607_v19  ;;  %v6029_v47 = vld [vmem:[#allocation3 + $0xf8] sm:$0xff]  ;;  %v6046_v35 = vld [vmem:[#allocation3 + $0x180] sm:$0xff] }
 0x5f5   :  { %6214 = vmatpush1.bf16.msra.mxu1 %v6104_v48  ;;  %5623 = vst.msk [vmem:[#allocation3 + $0x1b8] sm:$0xf] %vm5095_vm12, %v5607_v19  ;;  %v5480_v6 = vsel %vm5477_vm10, %v11027_v46, %v5476_v16  ;;  %5492 = vst.msk [vmem:[#allocation3 + $0x158] sm:$0xf] %vm5095_vm12, %v5476_v16  ;;  %v6109_v0 = vpack.c.bf16 %v6029_v47, %v6025_v28  ;;  %v6047_v15 = vld [vmem:[#allocation3 + $0x188] sm:$0xff]  ;;  %vm7911_vm10 = vcmask 9216  }
 0x5f6   :  { %5488 = vst.msk [vmem:[#allocation3 + $0x138] sm:$0xc0] %vm5090_vm11, %v5476_v16  ;;  %5618 = vst [vmem:[#allocation3 + $0x1b0] ss:$-28 sps:$4 sm:$0xcf] %v5611_v37   ;;  %v6028_v41 = vld [vmem:[#allocation3 + $0xf0] sm:$0xff] }
 0x5f7   :  { %5487 = vst [vmem:[#allocation3 + $0x150] ss:$-28 sps:$4 sm:$0xcf] %v5480_v6   ;;  %v6108_v39 = vpack.c.bf16 %v6028_v41, %v6024_v31  ;;  %6215 = vmatprep.subr.bf16.mxu1 %v6109_v0  ;;  %v5675_v20 = vpop.permute.xlu0 %5674  ;;  %v6071_v6 = vld [vmem:[#allocation3 + $0x248] sm:$0xff] }
 0x5f8   :  { %v5547_v21 = vpop.permute.xlu1 %5546  ;;  %v5681_v1 = vsel %vm5680_vm2, %v11010_v10, %v5675_v20  ;;  %v5682_v46 = vsel %vm5680_vm2, %v5675_v20, %v11069_v13  ;;  %v6050_v18 = vld [vmem:[#allocation3 + $0x1a0] sm:$0xff]  ;;  %v6033_v9 = vld [vmem:[#allocation3 + $0x118] sm:$0xff] }
 0x5f9   :  { %6216 = vmatpush1.bf16.msra.mxu1 %v6108_v39  ;;  %v6051_v4 = vld [vmem:[#allocation3 + $0x1a8] sm:$0xff]  ;;  %v5551_v45 = vsel %vm5548_vm1, %v11039_v57, %v5547_v21  ;;  %5559 = vst.msk [vmem:[#allocation3 + $0x178] sm:$0xfc] %vm5164_vm15, %v5547_v21  ;;  %5688 = vst [vmem:[#allocation3 + $0x1c0] sm:$0xfc] %v5681_v1  ;;  %v6118_v23 = vpack.c.bf16 %v6050_v18, %v6046_v35  ;;  %v6032_v59 = vld [vmem:[#allocation3 + $0x110] sm:$0xff] }
 0x5fa   :  { %5689 = vst [vmem:[#allocation3 + $0x1c8] sm:$0xfc] %v5682_v46  ;;  %v6119_v63 = vpack.c.bf16 %v6051_v4, %v6047_v15  ;;  %5558 = vst [vmem:[#allocation3 + $0x170] sm:$0xfc] %v5551_v45 }
 0x5fb   :  { %v5735_v40 = vpop.permute.xlu0 %5734  ;;  %v6049_v27 = vld [vmem:[#allocation3 + $0x198] sm:$0xff] }
 0x5fc   :  { %6178 = vmatprep.subr.bf16.mxu0 %v6119_v63  ;;  %v5643_v10 = vpop.permute.xlu1 %5642  ;;  %v5741_v2 = vsel %vm5740_vm6, %v11016_v60, %v5735_v40  ;;  %v5742_v53 = vsel %vm5740_vm6, %v5735_v40, %v11075_v44  ;;  %v6041_v56 = vld [vmem:[#allocation3 + $0x158] sm:$0xff] }
 0x5fd   :  { %6179 = vmatpush1.bf16.msra.mxu0 %v6118_v23  ;;  %v6037_v57 = vld [vmem:[#allocation3 + $0x138] sm:$0xff]  ;;  %v5647_v17 = vsel %vm5644_vm5, %v11057_v32, %v5643_v10  ;;  %5655 = vst.msk [vmem:[#allocation3 + $0x1b8] sm:$0xf0] %vm5127_vm13, %v5643_v10  ;;  %5748 = vst [vmem:[#allocation3 + $0x200] ss:$-28 sps:$4 sm:$0xcf] %v5741_v2  }
 0x5fe   :  { %5659 = vst.msk [vmem:[#allocation3 + $0x1d8] sm:$0x3] %vm5132_vm14, %v5643_v10  ;;  %5749 = vst [vmem:[#allocation3 + $0x208] ss:$-28 sps:$4 sm:$0xcf] %v5742_v53   ;;  %v6113_v14 = vpack.c.bf16 %v6037_v57, %v6033_v9  ;;  %v6036_v51 = vld [vmem:[#allocation3 + $0x130] sm:$0xff] }
 0x5ff   :  { %5654 = vst [vmem:[#allocation3 + $0x1d0] ss:$-28 sps:$4 sm:$0xf3] %v5647_v17   ;;  %v6112_v60 = vpack.c.bf16 %v6036_v51, %v6032_v59  ;;  %v5771_v25 = vpop.permute.xlu0 %5770  ;;  %v6040_v42 = vld [vmem:[#allocation3 + $0x150] sm:$0xff]  ;;  %v6075_v23 = vld [vmem:[#allocation3 + $0x268] sm:$0xff]  ;;  %v6077_v57 = vld [vmem:[#allocation3 + $0x278] sm:$0xff] }
 0x600   :  { %6217 = vmatprep.subr.bf16.mxu1 %v6113_v14  ;;  %v5679_v5 = vpop.permute.xlu1 %5678  ;;  %v5777_v33 = vsel %vm5776_vm4, %v11023_v38, %v5771_v25  ;;  %v5778_v32 = vsel %vm5776_vm4, %v5771_v25, %v11081_v7  ;;  %v6045_v34 = vld [vmem:[#allocation3 + $0x178] sm:$0xff]  ;;  %v6054_v62 = vld [vmem:[#allocation3 + $0x1c0] sm:$0xff]  ;;  %v6048_v36 = vld [vmem:[#allocation3 + $0x190] sm:$0xff] }
 0x601   :  { %6218 = vmatpush1.bf16.msra.mxu1 %v6112_v60  ;;  %v5683_v52 = vsel %vm5680_vm2, %v11069_v13, %v5679_v5  ;;  %5691 = vst.msk [vmem:[#allocation3 + $0x1d8] sm:$0xfc] %vm5164_vm15, %v5679_v5  ;;  %5784 = vst [vmem:[#allocation3 + $0x220] ss:$-28 sps:$4 sm:$0xf3] %v5777_v33   ;;  %v6117_v3 = vpack.c.bf16 %v6045_v34, %v6041_v56  ;;  %v6044_v55 = vld [vmem:[#allocation3 + $0x170] sm:$0xff] }
 0x602   :  { %5785 = vst [vmem:[#allocation3 + $0x228] ss:$-28 sps:$4 sm:$0xf3] %v5778_v32   ;;  %5690 = vst [vmem:[#allocation3 + $0x1d0] sm:$0xfc] %v5683_v52  ;;  %v6116_v26 = vpack.c.bf16 %v6044_v55, %v6040_v42  ;;  %v6055_v12 = vld [vmem:[#allocation3 + $0x1c8] sm:$0xff] }
 0x603   :  { %6219 = vmatprep.subr.bf16.mxu1 %v6117_v3  ;;  %v5807_v38 = vpop.permute.xlu0 %5806  ;;  %v6081_v17 = vld [vmem:[#allocation3 + $0x298] sm:$0xff]  ;;  %v6074_v14 = vld [vmem:[#allocation3 + $0x260] sm:$0xff]  ;;  %v6079_v59 = vld [vmem:[#allocation3 + $0x288] sm:$0xff] }
 0x604   :  { %v5739_v22 = vpop.permute.xlu1 %5738  ;;  %v5813_v13 = vsel %vm5812_vm7, %v11093_v49, %v5807_v38  ;;  %v5814_v30 = vsel %vm5812_vm7, %v5807_v38, %v11087_v24  ;;  %v6053_v58 = vld [vmem:[#allocation3 + $0x1b8] sm:$0xff]  ;;  %v6058_v61 = vld [vmem:[#allocation3 + $0x1e0] sm:$0xff]  ;;  %v6083_v51 = vld [vmem:[#allocation3 + $0x2a8] sm:$0xff] }
 0x605   :  { %6220 = vmatpush1.bf16.msra.mxu1 %v6116_v26  ;;  %v6059_v50 = vld [vmem:[#allocation3 + $0x1e8] sm:$0xff]  ;;  %v5743_v11 = vsel %vm5740_vm6, %v11075_v44, %v5739_v22  ;;  %5751 = vst.msk [vmem:[#allocation3 + $0x1f8] sm:$0xc0] %vm5090_vm11, %v5739_v22  ;;  %5820 = vst [vmem:[#allocation3 + $0x220] sm:$0xfc] %v5813_v13  ;;  %v6121_v54 = vpack.c.bf16 %v6053_v58, %v6049_v27  ;;  %v6122_v49 = vpack.c.bf16 %v6058_v61, %v6054_v62  ;;  %v6085_v5 = vld [vmem:[#allocation3 + $0x2b8] sm:$0xff] }
 0x606   :  { %5755 = vst.msk [vmem:[#allocation3 + $0x218] sm:$0xf] %vm5095_vm12, %v5739_v22  ;;  %5821 = vst [vmem:[#allocation3 + $0x228] sm:$0xfc] %v5814_v30  ;;  %v6052_v48 = vld [vmem:[#allocation3 + $0x1b0] sm:$0xff]  ;;  %v6123_v19 = vpack.c.bf16 %v6059_v50, %v6055_v12  ;;  %v6135_v3 = vpack.c.bf16 %v6083_v51, %v6079_v59  ;;  %v6078_v42 = vld [vmem:[#allocation3 + $0x280] sm:$0xff]  ;;  %v6137_v38 = vpack.c.bf16 %v6085_v5, %v6081_v17 }
 0x607   :  { %5750 = vst [vmem:[#allocation3 + $0x210] ss:$-28 sps:$4 sm:$0xcf] %v5743_v11   ;;  %v6120_v16 = vpack.c.bf16 %v6052_v48, %v6048_v36  ;;  %6221 = vmatprep.subr.bf16.mxu1 %v6121_v54  ;;  %v5775_v37 = vpop.permute.xlu0 %5774  ;;  %v6076_v34 = vld [vmem:[#allocation3 + $0x270] sm:$0xff]  ;;  %v6082_v55 = vld [vmem:[#allocation3 + $0x2a0] sm:$0xff]  ;;  %v6087_v12 = vld [vmem:[#allocation3 + $0x2c8] sm:$0xff] }
 0x608   :  { %6180 = vmatprep.subr.bf16.mxu0 %v6123_v19  ;;  %v5811_v28 = vpop.permute.xlu1 %5810  ;;  %v5779_v44 = vsel %vm5776_vm4, %v11081_v7, %v5775_v37  ;;  %5787 = vst.msk [vmem:[#allocation3 + $0x218] sm:$0xf0] %vm5127_vm13, %v5775_v37  ;;  %v6057_v31 = vld [vmem:[#allocation3 + $0x1d8] sm:$0xff]  ;;  %v6062_v39 = vld [vmem:[#allocation3 + $0x200] sm:$0xff]  ;;  %v6080_v26 = vld [vmem:[#allocation3 + $0x290] sm:$0xff]  ;;  %v6134_v30 = vpack.c.bf16 %v6082_v55, %v6078_v42  ;;  %vm6460_vm11 = vcmask 64512  }
 0x609   :  { %6222 = vmatpush1.bf16.msra.mxu1 %v6120_v16  ;;  %5791 = vst.msk [vmem:[#allocation3 + $0x238] sm:$0x3] %vm5132_vm14, %v5775_v37  ;;  %6181 = vmatpush1.bf16.msra.mxu0 %v6122_v49  ;;  %v5815_v47 = vsel %vm5812_vm7, %v11087_v24, %v5811_v28  ;;  %5786 = vst [vmem:[#allocation3 + $0x230] ss:$-28 sps:$4 sm:$0xf3] %v5779_v44   ;;  %v6063_v41 = vld [vmem:[#allocation3 + $0x208] sm:$0xff] }
 0x60a   :  { %5823 = vst.msk [vmem:[#allocation3 + $0x238] sm:$0xfc] %vm5164_vm15, %v5811_v28  ;;  %5822 = vst [vmem:[#allocation3 + $0x230] sm:$0xfc] %v5815_v47  ;;  %v6056_v35 = vld [vmem:[#allocation3 + $0x1d0] sm:$0xff]  ;;  %v6091_v62 = vld [vmem:[#allocation3 + $0x2e8] sm:$0xff] }
 0x60b   :  { %v5833_v0 = vpop.permute.xlu0 %5832  ;;  %v6084_v27 = vld [vmem:[#allocation3 + $0x2b0] sm:$0xff]  ;;  %v6089_v22 = vld [vmem:[#allocation3 + $0x2d8] sm:$0xff]  ;;  %v6139_v50 = vpack.c.bf16 %v6091_v62, %v6087_v12  ;;  %v6086_v61 = vld [vmem:[#allocation3 + $0x2c0] sm:$0xff]  ;;  %vm6554_vm12 = vcmask 408576   ;;  %vm7510_vm13 = vcmask 1040384   ;;  %vm7723_vm14 = vcmask 982016  }
 0x60c   :  { %v5839_v20 = vpop.permute.xlu1 %5838  ;;  %v5841_v7 = vsel %vm5840_vm9, %v5833_v0, %v10945_v43  ;;  %v6061_v15 = vld [vmem:[#allocation3 + $0x1f8] sm:$0xff]  ;;  %v6066_v1 = vld [vmem:[#allocation3 + $0x220] sm:$0xff]  ;;  %v6131_v43 = vpack.c.bf16 %v6075_v23, %v6071_v6  ;;  %v6136_v58 = vpack.c.bf16 %v6084_v27, %v6080_v26  ;;  %v6088_v36 = vld [vmem:[#allocation3 + $0x2d0] sm:$0xff]  ;;  %vm10090_vm15 = vmmov 0  }
 0x60d   :  { %v6067_v21 = vld [vmem:[#allocation3 + $0x228] sm:$0xff]  ;;  %v5843_v46 = vsel %vm5840_vm9, %v10932_v29, %v5839_v20  ;;  %5851 = vst.msk [vmem:[#allocation3 + $0x258] sm:$0x3f] %vm5058_vm0, %v5839_v20  ;;  %5848 = vst [vmem:[#allocation3 + $0x240] sm:$0x3f] %v5841_v7  ;;  %v6125_v24 = vpack.c.bf16 %v6061_v15, %v6057_v31  ;;  %v6126_v45 = vpack.c.bf16 %v6066_v1, %v6062_v39  ;;  %v6093_v13 = vld [vmem:[#allocation3 + $0x2f8] sm:$0xff] }
 0x60e   :  { %v6127_v4 = vpack.c.bf16 %v6067_v21, %v6063_v41  ;;  %v6060_v18 = vld [vmem:[#allocation3 + $0x1f0] sm:$0xff]  ;;  %5850 = vst [vmem:[#allocation3 + $0x250] sm:$0x3f] %v5843_v46  ;;  %v6090_v11 = vld [vmem:[#allocation3 + $0x2e0] sm:$0xff]  ;;  %v6141_v54 = vpack.c.bf16 %v6093_v13, %v6089_v22  ;;  %vm6464_vm0 = vcmask 1043456   ;;  %vm7864_vm9 = vcmask 1041408  }
 0x60f   :  { %v6124_v63 = vpack.c.bf16 %v6060_v18, %v6056_v35  ;;  %6223 = vmatprep.subr.bf16.mxu1 %v6125_v24  ;;  %v6065_v40 = vld [vmem:[#allocation3 + $0x218] sm:$0xff]  ;;  %v6092_v48 = vld [vmem:[#allocation3 + $0x2f0] sm:$0xff]  ;;  %v6138_v49 = vpack.c.bf16 %v6090_v11, %v6086_v61  ;;  %v9678_v37 = vld [vmem:[#allocation11] ss:$8 sps:$4 sm:$0xff]  }
 0x610   :  { %6182 = vmatprep.subr.bf16.mxu0 %v6127_v4  ;;  %v6064_v2 = vld [vmem:[#allocation3 + $0x210] sm:$0xff]  ;;  %v6140_v16 = vpack.c.bf16 %v6092_v48, %v6088_v36  ;;  %v9683_v47 = vld [vmem:[#allocation12 + $0x48] sm:$0xff]   ;;  %v9686_v31 = vld [vmem:[#allocation12 + $0x50] sm:$0xff]  }
 0x611   :  { %6224 = vmatpush1.bf16.msra.mxu1 %v6124_v63  ;;  %6183 = vmatpush1.bf16.msra.mxu0 %v6126_v45  ;;  %v6069_v10 = vld [vmem:[#allocation3 + $0x238] sm:$0xff]  ;;  %v6068_v53 = vld [vmem:[#allocation3 + $0x230] sm:$0xff]  ;;  %v9687_v41 = vld [vmem:[#allocation12 + $0x10] sm:$0xff]  }
 0x612   :  { %6184 = vmatprep.subr.bf16.mxu0 %v6131_v43  ;;  %v6129_v29 = vpack.c.bf16 %v6069_v10, %v6065_v40  ;;  %v6128_v9 = vpack.c.bf16 %v6068_v53, %v6064_v2  ;;  %v9680_v19 = vld [vmem:[#allocation12 + $0x40] sm:$0xff]   ;;  %v9684_v6 = vld [vmem:[#allocation12 + $0x8] sm:$0xff]   ;;  %v9685_v39 = vld [vmem:[#allocation12 + $0x90] sm:$0xff]  }
 0x613   :  { %v9681_v28 = vld [vmem:[#allocation12] sm:$0xff]   ;;  %v9682_v0 = vld [vmem:[#allocation12 + $0x88] sm:$0xff]   ;;  %v9688_v20 = vld [vmem:[#allocation12 + $0x98] sm:$0xff]  }
 0x614   :  { %6225 = vmatprep.subr.bf16.mxu1 %v6129_v29  ;;  %v6073_v60 = vld [vmem:[#allocation3 + $0x258] sm:$0xff]  ;;  %v6070_v25 = vld [vmem:[#allocation3 + $0x240] sm:$0xff]  ;;  %v9689_v7 = vld [vmem:[#allocation12 + $0x58] sm:$0xff]  }
 0x615   :  { %6226 = vmatpush1.bf16.msra.mxu1 %v6128_v9  ;;  %v6133_v33 = vpack.c.bf16 %v6077_v57, %v6073_v60  ;;  %v6130_v32 = vpack.c.bf16 %v6074_v14, %v6070_v25  ;;  %v6072_v56 = vld [vmem:[#allocation3 + $0x250] sm:$0xff]  ;;  %v9694_v24 = vld [vmem:[#allocation12 + $0xa8] sm:$0xff]   ;;  %v9697_v35 = vld [vmem:[#allocation12 + $0xb0] sm:$0xff]  }
 0x616   :  { %v6132_v52 = vpack.c.bf16 %v6076_v34, %v6072_v56  ;;  %v9679_v44 = vld [vmem:[#allocation12 + $0x80] sm:$0xff]   ;;  %v9690_v15 = vld [vmem:[#allocation12 + $0x18] sm:$0xff]   ;;  %v9695_v4 = vld [vmem:[#allocation12 + $0x68] sm:$0xff]  }
 0x617   :  { %6227 = vmatprep.subr.bf16.mxu1 %v6133_v33  ;;  %6185 = vmatpush1.bf16.msra.mxu0 %v6130_v32  ;;  %v9691_v21 = vld [vmem:[#allocation12 + $0xa0] sm:$0xff]   ;;  %v9696_v18 = vld [vmem:[#allocation12 + $0x28] sm:$0xff]   ;;  %v9698_v45 = vld [vmem:[#allocation12 + $0x70] sm:$0xff]  }
 0x618   :  { %6186 = vmatprep.subr.bf16.mxu0 %v6135_v3  ;;  %v9692_v1 = vld [vmem:[#allocation12 + $0x60] sm:$0xff]   ;;  %v9700_v63 = vld [vmem:[#allocation12 + $0xb8] sm:$0xff]   ;;  %v9699_v23 = vld [vmem:[#allocation12 + $0x30] sm:$0xff]  }
 0x619   :  { %6228 = vmatpush1.bf16.msra.mxu1 %v6132_v52  ;;  %v9693_v46 = vld [vmem:[#allocation12 + $0x20] sm:$0xff]   ;;  %v9701_v40 = vld [vmem:[#allocation12 + $0x78] sm:$0xff]  }
 0x61a   :  { %6229 = vmatprep.subr.bf16.mxu1 %v6137_v38  ;;  %v9703_v43 = vld [vmem:[#allocation12 + $0xc0] ss:$0 sps:$4 sm:$0xff]   ;;  %v9702_v10 = vld [vmem:[#allocation12 + $0x38] sm:$0xff]  }
 0x61b   :  { %6187 = vmatpush1.bf16.msra.mxu0 %v6134_v30  ;;  %v6466_v2 = vsel %vm6464_vm0, %v9703_v43, 0  ;;  %v7012_v43 = vld [vmem:[%s11488_s8 + $0x68] sm:$0xff] }
 0x61c   :  { %6188 = vmatprep.subr.bf16.mxu0 %v6139_v50  ;;  %v6147_v29 = vpop.permute.xlu0 %6146 }
 0x61d   :  { %6230 = vmatpush1.bf16.msra.mxu1 %v6136_v58  ;;  %v6152_v53 = vpop.permute.xlu1 %6151 }
 0x61e   :  { %6231 = vmatprep.subr.bf16.mxu1 %v6141_v54 }
 0x61f   :  { %6189 = vmatpush1.bf16.msra.mxu0 %v6138_v49 }
 0x620   :  { %8529 = vmatprep.subr.bf16.mxu0 %v9680_v19 }
 0x621   :  { %6232 = vmatpush1.bf16.msra.mxu1 %v6140_v16 }
 0x622   :  { %6509 = vmatprep.subr.bf16.mxu1 %v10054_v8  ;;  %6199 = vmatmul.mubr.bf16.vlgmr.msra.gmra.mrb[20].mxu0 %v9678_v37 }
 0x623   :  { %8530 = vmatpush3.bf16.msra.mxu0 %v9681_v28 }
 0x624   :  { %6242 = vmatmul.mubr.bf16.vlgmr.msra.gmra.mrb[20].mxu1 %v9678_v37  ;;  %8531 = vmatprep.subr.bf16.mxu0 %v9683_v47 }
 0x625   :  { %6510 = vmatpush1.bf16.msra.mxu1 %v9679_v44 }
 0x626   :  { %6511 = vmatprep.subr.bf16.mxu1 %v10054_v8 }
 0x627   :  { %8532 = vmatpush3.bf16.msra.mxu0 %v9684_v6  ;;  %v9706_v6 = vld [vmem:[#allocation14 + $0x4] ss:$16 sps:$4 sm:$0xff]  }
 0x628   :  { %8533 = vmatprep.subr.bf16.mxu0 %v9686_v31  ;;  %v6999_v31 = vld [vmem:[%s11488_s8] sm:$0xff] }
 0x629   :  { %6512 = vmatpush1.bf16.msra.mxu1 %v9682_v0  ;;  %v9709_v0 = vld [vmem:[#allocation14 + $0xc] ss:$16 sps:$4 sm:$0xff]  }
 0x62a   :  { %6513 = vmatprep.subr.bf16.mxu1 %v10054_v8 }
 0x62b   :  { %8534 = vmatpush3.bf16.msra.mxu0 %v9687_v41  ;;  %v7000_v41 = vld [vmem:[%s11488_s8 + $0x8] sm:$0xff] }
 0x62c   :  { %8535 = vmatprep.subr.bf16.mxu0 %v9689_v7  ;;  %v7003_v7 = vld [vmem:[%s11488_s8 + $0x20] sm:$0xff] }
 0x62d   :  { %6514 = vmatpush1.bf16.msra.mxu1 %v9685_v39  ;;  %v7001_v39 = vld [vmem:[%s11488_s8 + $0x10] sm:$0xff] }
 0x62e   :  { %6515 = vmatprep.subr.bf16.mxu1 %v10054_v8 }
 0x62f   :  { %8536 = vmatpush3.bf16.msra.mxu0 %v9690_v15  ;;  %v7004_v15 = vld [vmem:[%s11488_s8 + $0x28] sm:$0xff] }
 0x630   :  { %8537 = vmatprep.subr.bf16.mxu0 %v9692_v1  ;;  %v7006_v1 = vld [vmem:[%s11488_s8 + $0x38] sm:$0xff] }
 0x631   :  { %6516 = vmatpush1.bf16.msra.mxu1 %v9688_v20  ;;  %v7002_v20 = vld [vmem:[%s11488_s8 + $0x18] sm:$0xff] }
 0x632   :  { %6517 = vmatprep.subr.bf16.mxu1 %v10054_v8 }
 0x633   :  { %8538 = vmatpush3.bf16.msra.mxu0 %v9693_v46  ;;  %v7007_v46 = vld [vmem:[%s11488_s8 + $0x40] sm:$0xff] }
 0x634   :  { %8539 = vmatprep.subr.bf16.mxu0 %v9695_v4  ;;  %v7009_v4 = vld [vmem:[%s11488_s8 + $0x50] sm:$0xff] }
 0x635   :  { %6518 = vmatpush1.bf16.msra.mxu1 %v9691_v21  ;;  %v7005_v21 = vld [vmem:[%s11488_s8 + $0x30] sm:$0xff] }
 0x636   :  { %6519 = vmatprep.subr.bf16.mxu1 %v10054_v8 }
 0x637   :  { %8540 = vmatpush3.bf16.msra.mxu0 %v9696_v18  ;;  %v7010_v18 = vld [vmem:[%s11488_s8 + $0x58] sm:$0xff] }
 0x638   :  { %8541 = vmatprep.subr.bf16.mxu0 %v9698_v45 }
 0x639   :  { %6520 = vmatpush1.bf16.msra.mxu1 %v9694_v24  ;;  %v7008_v24 = vld [vmem:[%s11488_s8 + $0x48] sm:$0xff] }
 0x63a   :  { %6521 = vmatprep.subr.bf16.mxu1 %v10054_v8 }
 0x63b   :  { %8542 = vmatpush3.bf16.msra.mxu0 %v9699_v23 }
 0x63c   :  { %8543 = vmatprep.subr.bf16.mxu0 %v9701_v40 }
 0x63d   :  { %6522 = vmatpush1.bf16.msra.mxu1 %v9697_v35 }
 0x63e   :  { %6523 = vmatprep.subr.bf16.mxu1 %v10054_v8 }
 0x63f   :  { %8544 = vmatpush3.bf16.msra.mxu0 %v9702_v10  ;;  %v7013_v10 = vld [vmem:[%s11488_s8 + $0x70] sm:$0xff] }
 0x641   :  { %6524 = vmatpush1.bf16.msra.mxu1 %v9700_v63  ;;  %v7011_v63 = vld [vmem:[%s11488_s8 + $0x60] sm:$0xff] }
 0x642   :  { %6525 = vmatprep.subr.bf16.mxu1 %v10054_v8 }
 0x645   :  { %6526 = vmatpush1.bf16.msra.mxu1 %v6466_v2 }
 0x6f5   :  { %v6200_v9 = vpop.f32.mrb[20].mxu0 }
 0x6f6   :  { %v6201_v17 = vadd.f32 %v6200_v9, %v6147_v29  ;;  %v6202_v14 = vpop.f32.mrb[21].mxu0 }
 0x6f7   :  { %v6243_v57 = vpop.f32.mrb[20].mxu1  ;;  %v6203_v51 = vadd.f32 %v6202_v14, %v6147_v29  ;;  %v6204_v25 = vpop.f32.mrb[22].mxu0 }
 0x6f8   :  { %v6244_v59 = vadd.f32 %v6243_v57, %v6147_v29  ;;  %v6245_v60 = vpop.f32.mrb[21].mxu1  ;;  %9793 = vtanh.f32 %v6201_v17  ;;  %v6205_v33 = vadd.f32 %v6204_v25, %v6152_v53  ;;  %v6206_v32 = vpop.f32.mrb[23].mxu0 }
 0x6f9   :  { %v6246_v5 = vadd.f32 %v6245_v60, %v6147_v29  ;;  %v6247_v8 = vpop.f32.mrb[22].mxu1  ;;  %v6207_v52 = vadd.f32 %v6206_v32, %v6152_v53  ;;  %v7629_v29 = vld [vmem:[%s11491_s11] sm:$0xff] }
 0x6fa   :  { %9795 = vtanh.f32 %v6244_v59  ;;  %v6248_v56 = vadd.f32 %v6247_v8, %v6152_v53  ;;  %v6249_v34 = vpop.f32.mrb[23].mxu1  ;;  %v7630_v59 = vld [vmem:[%s11491_s11 + $0x8] sm:$0xff] }
 0x6fb   :  { %9797 = vtanh.f32 %v6203_v51  ;;  %v6250_v3 = vadd.f32 %v6249_v34, %v6152_v53  ;;  %v7632_v34 = vld [vmem:[%s11491_s11 + $0x18] sm:$0xff] }
 0x6fc   :  { %9799 = vtanh.f32 %v6246_v5  ;;  %v7631_v5 = vld [vmem:[%s11491_s11 + $0x10] sm:$0xff] }
 0x6fd   :  { %9801 = vtanh.f32 %v6205_v33 }
 0x6fe   :  { %9803 = vtanh.f32 %v6248_v56 }
 0x6ff   :  { %9805 = vtanh.f32 %v6207_v52 }
 0x700   :  { %9807 = vtanh.f32 %v6250_v3  ;;  %v7633_v3 = vld [vmem:[%s11491_s11 + $0x20] sm:$0xff] }
 0x702   :  { %v9794_v42 = vpop.eup %9793 }
 0x704   :  { %v9796_v55 = vpop.eup %9795 }
 0x705   :  { %v9798_v26 = vpop.eup %9797 }
 0x706   :  { %v9800_v38 = vpop.eup %9799 }
 0x707   :  { %v9802_v27 = vpop.eup %9801 }
 0x708   :  { %v9804_v12 = vpop.eup %9803  ;;  %v6260_v62 = vpack.c.bf16 %v9802_v27, %v9794_v42 }
 0x709   :  { %v9806_v22 = vpop.eup %9805  ;;  %v6262_v13 = vpack.c.bf16 %v9804_v12, %v9796_v55  ;;  %v7634_v12 = vld [vmem:[%s11491_s11 + $0x28] sm:$0xff] }
 0x70a   :  { %v9808_v30 = vpop.eup %9807  ;;  %v6261_v58 = vpack.c.bf16 %v9806_v22, %v9798_v26 }
 0x70b   :  { %v6263_v50 = vpack.c.bf16 %v9808_v30, %v9800_v38  ;;  %v7635_v30 = vld [vmem:[%s11491_s11 + $0x30] sm:$0xff] }
 0x70c   :  { %6500 = vmatprep.mubr.bf16.mxu0 %v6261_v58 }
 0x70d   :  { %8470 = vmatprep.mubr.msk.bf16.mxu1 %vm6460_vm11, %v6263_v50  ;;  %6501 = vmatmul.mubr.bf16.vlgmr.msra.gmra.mrb[24].mxu0 %v6260_v62 }
 0x70e   :  { %6542 = vmatmul.mubr.bf16.vlgmr.msra.gmra.mrb[24].mxu1 %v6262_v13  ;;  %7275 = vmatprep.mubr.bf16.mxu0 %v9706_v6 }
 0x70f   :  { %7371 = vmatprep.mubr.bf16.mxu1 %v9709_v0 }
 0x7e0   :  { %v8545_v61 = vpop.f32.mrb[24].mxu0 }
 0x7e1   :  { %v6543_v11 = vpop.f32.mrb[24].mxu1  ;;  %v8546_v54 = vpop.f32.mrb[25].mxu0 }
 0x7e2   :  { %v8547_v36 = vadd.f32 %v8546_v54, %v8545_v61  ;;  %v6545_v48 = vpop.f32.mrb[25].mxu1  ;;  %v8548_v19 = vpop.f32.mrb[26].mxu0  ;;  %v7636_v54 = vld [vmem:[%s11491_s11 + $0x38] sm:$0xff] }
 0x7e3   :  { %v6546_v49 = vpop.f32.mrb[26].mxu1  ;;  %v8549_v16 = vpop.f32.mrb[27].mxu0  ;;  %v7637_v48 = vld [vmem:[%s11491_s11 + $0x40] sm:$0xff] }
 0x7e4   :  { %v11204_v37 = vadd.f32 %v8547_v36, %v6543_v11  ;;  %v8550_v28 = vadd.f32 %v8549_v16, %v8548_v19  ;;  %v6548_v44 = vpop.f32.mrb[27].mxu1 }
 0x7e6   :  { %v11206_v47 = vadd.f32 %v8550_v28, %v6546_v49  ;;  %6645 = vrot.lane.b32.xlu1 %v11204_v37, %s10074_s5  ;;  %6555 = vst.msk [vmem:[#allocation4] sm:$0xff] %vm6554_vm12, %v11204_v37  ;;  %6847 = vst.msk [vmem:[#allocation4 + $0x190] sm:$0xff] %vm6554_vm12, %v11204_v37  ;;  %v7638_v28 = vld [vmem:[%s11491_s11 + $0x48] sm:$0xff] }
 0x7e7   :  { %6851 = vst.msk [vmem:[#allocation4 + $0x1a0] sm:$0xff] %vm6554_vm12, %v11204_v37  ;;  %6855 = vst.msk [vmem:[#allocation4 + $0x1b0] sm:$0xff] %vm6554_vm12, %v11204_v37 }
 0x7e8   :  { %6859 = vst.msk [vmem:[#allocation4 + $0x1c0] sm:$0xff] %vm6554_vm12, %v11204_v37  ;;  %6863 = vst.msk [vmem:[#allocation4 + $0x1d0] sm:$0xff] %vm6554_vm12, %v11204_v37  ;;  %6647 = vrot.lane.b32.xlu0 %v11206_v47, %s10074_s5 }
 0x7e9   :  { %6867 = vst.msk [vmem:[#allocation4 + $0x1e0] sm:$0xff] %vm6554_vm12, %v11204_v37  ;;  %6871 = vst.msk [vmem:[#allocation4 + $0x1f0] sm:$0xff] %vm6554_vm12, %v11204_v37 }
 0x7ea   :  { %6556 = vst.msk [vmem:[#allocation4 + $0x8] sm:$0xff] %vm6554_vm12, %v11206_v47  ;;  %6848 = vst.msk [vmem:[#allocation4 + $0x198] sm:$0xff] %vm6554_vm12, %v11206_v47  ;;  %6837 = vrot.lane.b32.xlu1 %v11204_v37, %s10075_s6 }
 0x7eb   :  { %6852 = vst.msk [vmem:[#allocation4 + $0x1a8] sm:$0xff] %vm6554_vm12, %v11206_v47  ;;  %6856 = vst.msk [vmem:[#allocation4 + $0x1b8] sm:$0xff] %vm6554_vm12, %v11206_v47 }
 0x7ec   :  { %6860 = vst.msk [vmem:[#allocation4 + $0x1c8] sm:$0xff] %vm6554_vm12, %v11206_v47  ;;  %6864 = vst.msk [vmem:[#allocation4 + $0x1d8] sm:$0xff] %vm6554_vm12, %v11206_v47  ;;  %6839 = vrot.lane.b32.xlu0 %v11206_v47, %s10075_s6 }
 0x7ed   :  { %6868 = vst.msk [vmem:[#allocation4 + $0x1e8] sm:$0xff] %vm6554_vm12, %v11206_v47  ;;  %6872 = vst.msk [vmem:[#allocation4 + $0x1f8] sm:$0xff] %vm6554_vm12, %v11206_v47  ;;  %v6903_v51 = vld [vmem:[#allocation4] sm:$0xff]  ;;  %v6953_v62 = vld [vmem:[#allocation4 + $0x190] sm:$0xff] }
 0x7ee   :  { %6741 = vrot.lane.b32.xlu1 %v11204_v37, %s10065_s30 }
 0x7f0   :  { %6743 = vrot.lane.b32.xlu0 %v11206_v47, %s10065_s30  ;;  %s10084_s30 = smov 107  }
 0x7f1   :  { %v6904_v53 = vld [vmem:[#allocation4 + $0x8] sm:$0xff]  ;;  %v6954_v42 = vld [vmem:[#allocation4 + $0x198] sm:$0xff] }
 0x7f2   :  { %6657 = vrot.lane.b32.xlu1 %v11204_v37, %s10076_s22  ;;  %v6967_v25 = vpack.c.bf16 %v6904_v53, %v6903_v51  ;;  %v6992_v13 = vpack.c.bf16 %v6954_v42, %v6953_v62  ;;  %v6956_v6 = vld [vmem:[#allocation4 + $0x1a8] sm:$0xff] }
 0x7f4   :  { %6659 = vrot.lane.b32.xlu0 %v11206_v47, %s10076_s22 }
 0x7f6   :  { %6561 = vrot.lane.b32.xlu1 %v11204_v37, %s10037_s23 }
 0x7f8   :  { %6563 = vrot.lane.b32.xlu0 %v11206_v47, %s10037_s23  ;;  %s10078_s23 = smov 117  }
 0x7fa   :  { %6753 = vrot.lane.b32.xlu1 %v11204_v37, %s10055_s2 }
 0x7fc   :  { %6755 = vrot.lane.b32.xlu0 %v11206_v47, %s10055_s2  ;;  %s10079_s2 = smov 109  }
 0x7fe   :  { %6669 = vrot.lane.b32.xlu1 %v11204_v37, %s10077_s29 }
 0x800   :  { %6671 = vrot.lane.b32.xlu0 %v11206_v47, %s10077_s29 }
 0x802   :  { %6573 = vrot.lane.b32.xlu1 %v11204_v37, %s10036_s26 }
 0x804   :  { %6575 = vrot.lane.b32.xlu0 %v11206_v47, %s10036_s26  ;;  %s10080_s26 = smov 116  }
 0x806   :  { %6765 = vrot.lane.b32.xlu1 %v11204_v37, %s10067_s21 }
 0x808   :  { %6767 = vrot.lane.b32.xlu0 %v11206_v47, %s10067_s21  ;;  %s10087_s21 = smov 121  }
 0x80a   :  { %6681 = vrot.lane.b32.xlu1 %v11204_v37, %s10078_s23 }
 0x80c   :  { %6683 = vrot.lane.b32.xlu0 %v11206_v47, %s10078_s23 }
 0x80e   :  { %6585 = vrot.lane.b32.xlu1 %v11204_v37, %s10038_s4 }
 0x810   :  { %6587 = vrot.lane.b32.xlu0 %v11206_v47, %s10038_s4  ;;  %s10082_s4 = smov 115  }
 0x812   :  { %6777 = vrot.lane.b32.xlu1 %v11204_v37, %s10079_s2 }
 0x814   :  { %6779 = vrot.lane.b32.xlu0 %v11206_v47, %s10079_s2 }
 0x816   :  { %6693 = vrot.lane.b32.xlu1 %v11204_v37, %s10080_s26 }
 0x818   :  { %6695 = vrot.lane.b32.xlu0 %v11206_v47, %s10080_s26 }
 0x81a   :  { %6597 = vrot.lane.b32.xlu1 %v11204_v37, %s11512_s0 }
 0x81c   :  { %6599 = vrot.lane.b32.xlu0 %v11206_v47, %s11512_s0  ;;  %s10085_s0 = smov 122  }
 0x81e   :  { %6789 = vrot.lane.b32.xlu1 %v11204_v37, %s10081_s24 }
 0x820   :  { %6791 = vrot.lane.b32.xlu0 %v11206_v47, %s10081_s24 }
 0x822   :  { %6705 = vrot.lane.b32.xlu1 %v11204_v37, %s10082_s4 }
 0x824   :  { %6707 = vrot.lane.b32.xlu0 %v11206_v47, %s10082_s4 }
 0x826   :  { %6609 = vrot.lane.b32.xlu1 %v11204_v37, %s10083_s1 }
 0x828   :  { %6611 = vrot.lane.b32.xlu0 %v11206_v47, %s10083_s1 }
 0x82a   :  { %6801 = vrot.lane.b32.xlu1 %v11204_v37, %s10084_s30 }
 0x82c   :  { %6803 = vrot.lane.b32.xlu0 %v11206_v47, %s10084_s30 }
 0x82e   :  { %6717 = vrot.lane.b32.xlu1 %v11204_v37, %s10060_s7 }
 0x830   :  { %6719 = vrot.lane.b32.xlu0 %v11206_v47, %s10060_s7  ;;  %s10088_s7 = smov 105  }
 0x832   :  { %6621 = vrot.lane.b32.xlu1 %v11204_v37, %s10085_s0 }
 0x834   :  { %6623 = vrot.lane.b32.xlu0 %v11206_v47, %s10085_s0 }
 0x836   :  { %6813 = vrot.lane.b32.xlu1 %v11204_v37, %s10086_s25 }
 0x838   :  { %6815 = vrot.lane.b32.xlu0 %v11206_v47, %s10086_s25 }
 0x83a   :  { %6729 = vrot.lane.b32.xlu1 %v11204_v37, %s10061_s20 }
 0x83c   :  { %6731 = vrot.lane.b32.xlu0 %v11206_v47, %s10061_s20 }
 0x83e   :  { %6633 = vrot.lane.b32.xlu1 %v11204_v37, %s10087_s21 }
 0x840   :  { %6635 = vrot.lane.b32.xlu0 %v11206_v47, %s10087_s21 }
 0x842   :  { %6825 = vrot.lane.b32.xlu1 %v11204_v37, %s10088_s7 }
 0x844   :  { %6827 = vrot.lane.b32.xlu0 %v11206_v47, %s10088_s7  ;;  %v7639_v47 = vld [vmem:[%s11491_s11 + $0x50] sm:$0xf] }
 0x846   :  { %7016 = vperm.xlu1 %8906, %v6999_v31  }
 0x848   :  { %7021 = vperm.xlu0 %8907, %v7000_v41  }
 0x84a   :  { %7026 = vperm.xlu1 %8906, %v7001_v39  }
 0x84c   :  { %7031 = vperm.xlu0 %8907, %v7002_v20   ;;  %v7844_v20 = vld [vmem:[%s11493_s13] sm:$0xff] }
 0x84e   :  { %7036 = vperm.xlu1 %8906, %v7003_v7   ;;  %v6955_v7 = vld [vmem:[#allocation4 + $0x1a0] sm:$0xff] }
 0x850   :  { %7041 = vperm.xlu0 %8907, %v7004_v15  }
 0x852   :  { %7046 = vperm.xlu1 %8906, %v7005_v21   ;;  %v6993_v21 = vpack.c.bf16 %v6956_v6, %v6955_v7 }
 0x854   :  { %7051 = vperm.xlu0 %8907, %v7006_v1   ;;  %v7845_v1 = vld [vmem:[%s11493_s13 + $0x8] sm:$0x3] }
 0x856   :  { %7056 = vperm.xlu1 %8906, %v7007_v46  }
 0x858   :  { %7061 = vperm.xlu0 %8907, %v7008_v24   ;;  %v6646_v35 = vpop.permute.xlu1 %6645 }
 0x859   :  { %6651 = vst.msk [vmem:[#allocation4 + $0x80] sm:$0xff] %vm6554_vm12, %v6646_v35 }
 0x85a   :  { %v6648_v45 = vpop.permute.xlu0 %6647  ;;  %7066 = vperm.xlu1 %8906, %v7009_v4  }
 0x85b   :  { %6652 = vst.msk [vmem:[#allocation4 + $0x88] sm:$0xff] %vm6554_vm12, %v6648_v45 }
 0x85c   :  { %7071 = vperm.xlu0 %8907, %v7010_v18   ;;  %v6838_v23 = vpop.permute.xlu1 %6837 }
 0x85d   :  { %6843 = vst.msk [vmem:[#allocation4 + $0x180] sm:$0xff] %vm6554_vm12, %v6838_v23 }
 0x85e   :  { %v6840_v40 = vpop.permute.xlu0 %6839  ;;  %7076 = vperm.xlu1 %8906, %v7011_v63  }
 0x85f   :  { %6844 = vst.msk [vmem:[#allocation4 + $0x188] sm:$0xff] %vm6554_vm12, %v6840_v40 }
 0x860   :  { %7081 = vperm.xlu0 %8907, %v7012_v43   ;;  %v6742_v2 = vpop.permute.xlu1 %6741  ;;  %v6919_v57 = vld [vmem:[#allocation4 + $0x80] sm:$0xff] }
 0x861   :  { %6747 = vst.msk [vmem:[#allocation4 + $0x100] sm:$0xff] %vm6554_vm12, %v6742_v2 }
 0x862   :  { %v6744_v9 = vpop.permute.xlu0 %6743  ;;  %7086 = vperm.xlu1 %8906, %v7013_v10   ;;  %v6920_v17 = vld [vmem:[#allocation4 + $0x88] sm:$0xff]  ;;  %v6958_v10 = vld [vmem:[#allocation4 + $0x1b8] sm:$0xff] }
 0x863   :  { %6748 = vst.msk [vmem:[#allocation4 + $0x108] sm:$0xff] %vm6554_vm12, %v6744_v9  ;;  %v6975_v14 = vpack.c.bf16 %v6920_v17, %v6919_v57  ;;  %v6957_v57 = vld [vmem:[#allocation4 + $0x1b0] sm:$0xff] }
 0x864   :  { %7642 = vperm.xlu0 %8907, %v7629_v29   ;;  %v6658_v60 = vpop.permute.xlu1 %6657  ;;  %v6951_v8 = vld [vmem:[#allocation4 + $0x180] sm:$0xff] }
 0x865   :  { %6663 = vst.msk [vmem:[#allocation4 + $0x90] sm:$0xff] %vm6554_vm12, %v6658_v60  ;;  %8551 = vmatprep.subr.bf16.mxu0 %v6975_v14  ;;  %v6994_v14 = vpack.c.bf16 %v6958_v10, %v6957_v57 }
 0x866   :  { %v6660_v33 = vpop.permute.xlu0 %6659  ;;  %7647 = vperm.xlu1 %8906, %v7630_v59   ;;  %8552 = vmatpush3.bf16.msra.mxu0 %v6967_v25  ;;  %v6952_v32 = vld [vmem:[#allocation4 + $0x188] sm:$0xff] }
 0x867   :  { %6664 = vst.msk [vmem:[#allocation4 + $0x98] sm:$0xff] %vm6554_vm12, %v6660_v33  ;;  %v6991_v56 = vpack.c.bf16 %v6952_v32, %v6951_v8 }
 0x868   :  { %7652 = vperm.xlu0 %8907, %v7631_v5   ;;  %v6562_v52 = vpop.permute.xlu1 %6561  ;;  %v6935_v26 = vld [vmem:[#allocation4 + $0x100] sm:$0xff] }
 0x869   :  { %6567 = vst.msk [vmem:[#allocation4 + $0x10] sm:$0xff] %vm6554_vm12, %v6562_v52  ;;  %8615 = vmatprep.subr.bf16.mxu1 %v6991_v56  ;;  %v6960_v52 = vld [vmem:[#allocation4 + $0x1c8] sm:$0xff] }
 0x86a   :  { %v6564_v55 = vpop.permute.xlu0 %6563  ;;  %7657 = vperm.xlu1 %8906, %v7632_v34   ;;  %v6936_v38 = vld [vmem:[#allocation4 + $0x108] sm:$0xff] }
 0x86b   :  { %6568 = vst.msk [vmem:[#allocation4 + $0x18] sm:$0xff] %vm6554_vm12, %v6564_v55  ;;  %v6983_v27 = vpack.c.bf16 %v6936_v38, %v6935_v26  ;;  %v6959_v38 = vld [vmem:[#allocation4 + $0x1c0] sm:$0xff] }
 0x86c   :  { %7662 = vperm.xlu0 %8907, %v7633_v3   ;;  %v6754_v22 = vpop.permute.xlu1 %6753  ;;  %v6921_v50 = vld [vmem:[#allocation4 + $0x90] sm:$0xff] }
 0x86d   :  { %6759 = vst.msk [vmem:[#allocation4 + $0x110] sm:$0xff] %vm6554_vm12, %v6754_v22  ;;  %8616 = vmatpush3.bf16.msra.mxu1 %v6983_v27 }
 0x86e   :  { %v6756_v58 = vpop.permute.xlu0 %6755  ;;  %7667 = vperm.xlu1 %8906, %v7634_v12   ;;  %8617 = vmatprep.subr.bf16.mxu1 %v6992_v13  ;;  %v6922_v61 = vld [vmem:[#allocation4 + $0x98] sm:$0xff]  ;;  %v6995_v12 = vpack.c.bf16 %v6960_v52, %v6959_v38 }
 0x86f   :  { %6760 = vst.msk [vmem:[#allocation4 + $0x118] sm:$0xff] %vm6554_vm12, %v6756_v58  ;;  %v6976_v11 = vpack.c.bf16 %v6922_v61, %v6921_v50  ;;  %v9704_v38 = vld [vmem:[#allocation14] ss:$16 sps:$4 sm:$0xff]  }
 0x870   :  { %7672 = vperm.xlu0 %8907, %v7635_v30   ;;  %v6670_v36 = vpop.permute.xlu1 %6669  ;;  %v6905_v49 = vld [vmem:[#allocation4 + $0x10] sm:$0xff] }
 0x871   :  { %6675 = vst.msk [vmem:[#allocation4 + $0xa0] sm:$0xff] %vm6554_vm12, %v6670_v36  ;;  %8553 = vmatprep.subr.bf16.mxu0 %v6976_v11 }
 0x872   :  { %v6672_v19 = vpop.permute.xlu0 %6671  ;;  %7677 = vperm.xlu1 %8906, %v7636_v54   ;;  %v6906_v16 = vld [vmem:[#allocation4 + $0x18] sm:$0xff] }
 0x873   :  { %6676 = vst.msk [vmem:[#allocation4 + $0xa8] sm:$0xff] %vm6554_vm12, %v6672_v19  ;;  %v6968_v37 = vpack.c.bf16 %v6906_v16, %v6905_v49 }
 0x874   :  { %7682 = vperm.xlu0 %8907, %v7637_v48   ;;  %v6574_v44 = vpop.permute.xlu1 %6573  ;;  %v6937_v31 = vld [vmem:[#allocation4 + $0x110] sm:$0xff]  ;;  %v6962_v48 = vld [vmem:[#allocation4 + $0x1d8] sm:$0xff] }
 0x875   :  { %6579 = vst.msk [vmem:[#allocation4 + $0x20] sm:$0xff] %vm6554_vm12, %v6574_v44  ;;  %8554 = vmatpush3.bf16.msra.mxu0 %v6968_v37 }
 0x876   :  { %v6576_v0 = vpop.permute.xlu0 %6575  ;;  %7687 = vperm.xlu1 %8906, %v7638_v28   ;;  %v6938_v41 = vld [vmem:[#allocation4 + $0x118] sm:$0xff]  ;;  %v6961_v28 = vld [vmem:[#allocation4 + $0x1d0] sm:$0xff] }
 0x877   :  { %6580 = vst.msk [vmem:[#allocation4 + $0x28] sm:$0xff] %vm6554_vm12, %v6576_v0  ;;  %v6984_v39 = vpack.c.bf16 %v6938_v41, %v6937_v31 }
 0x878   :  { %7692 = vperm.xlu0 %8907, %v7639_v47   ;;  %v6766_v15 = vpop.permute.xlu1 %6765  ;;  %v6923_v24 = vld [vmem:[#allocation4 + $0xa0] sm:$0xff]  ;;  %v6996_v47 = vpack.c.bf16 %v6962_v48, %v6961_v28 }
 0x879   :  { %6771 = vst.msk [vmem:[#allocation4 + $0x120] sm:$0xff] %vm6554_vm12, %v6766_v15  ;;  %8618 = vmatpush3.bf16.msra.mxu1 %v6984_v39  ;;  %v9721_v48 = vld [vmem:[#allocation14 + $0x48] ss:$16 sps:$4 sm:$0xff]   ;;  %v9731_v28 = vld [vmem:[#allocation14 + $0x8c] ss:$16 sps:$4 sm:$0xff]  }
 0x87a   :  { %v6768_v46 = vpop.permute.xlu0 %6767  ;;  %7848 = vperm.xlu1 %8906, %v7844_v20   ;;  %8619 = vmatprep.subr.bf16.mxu1 %v6993_v21  ;;  %v6924_v4 = vld [vmem:[#allocation4 + $0xa8] sm:$0xff] }
 0x87b   :  { %6772 = vst.msk [vmem:[#allocation4 + $0x128] sm:$0xff] %vm6554_vm12, %v6768_v46  ;;  %v6977_v35 = vpack.c.bf16 %v6924_v4, %v6923_v24  ;;  %v6964_v46 = vld [vmem:[#allocation4 + $0x1e8] sm:$0xff] }
 0x87c   :  { %7853 = vperm.xlu0 %8907, %v7845_v1   ;;  %v6682_v18 = vpop.permute.xlu1 %6681  ;;  %v6907_v63 = vld [vmem:[#allocation4 + $0x20] sm:$0xff] }
 0x87d   :  { %6687 = vst.msk [vmem:[#allocation4 + $0xb0] sm:$0xff] %vm6554_vm12, %v6682_v18  ;;  %8555 = vmatprep.subr.bf16.mxu0 %v6977_v35 }
 0x87e   :  { %v6684_v45 = vpop.permute.xlu0 %6683  ;;  %v6908_v23 = vld [vmem:[#allocation4 + $0x28] sm:$0xff] }
 0x87f   :  { %6688 = vst.msk [vmem:[#allocation4 + $0xb8] sm:$0xff] %vm6554_vm12, %v6684_v45  ;;  %v6969_v43 = vpack.c.bf16 %v6908_v23, %v6907_v63  ;;  %v6963_v45 = vld [vmem:[#allocation4 + $0x1e0] sm:$0xff] }
 0x880   :  { %v6586_v40 = vpop.permute.xlu1 %6585  ;;  %v6939_v29 = vld [vmem:[#allocation4 + $0x120] sm:$0xff]  ;;  %v6997_v23 = vpack.c.bf16 %v6964_v46, %v6963_v45 }
 0x881   :  { %6591 = vst.msk [vmem:[#allocation4 + $0x30] sm:$0xff] %vm6554_vm12, %v6586_v40  ;;  %8556 = vmatpush3.bf16.msra.mxu0 %v6969_v43  ;;  %v9745_v46 = vld [vmem:[#allocation14 + $0xc8] ss:$16 sps:$4 sm:$0xff]  }
 0x882   :  { %v6588_v2 = vpop.permute.xlu0 %6587  ;;  %v6940_v53 = vld [vmem:[#allocation4 + $0x128] sm:$0xff]  ;;  %v9751_v45 = vld [vmem:[%s11489_s9 + $0x8] sm:$0xff]  }
 0x883   :  { %6592 = vst.msk [vmem:[#allocation4 + $0x38] sm:$0xff] %vm6554_vm12, %v6588_v2  ;;  %v6985_v9 = vpack.c.bf16 %v6940_v53, %v6939_v29 }
 0x884   :  { %v6778_v17 = vpop.permute.xlu1 %6777  ;;  %v6925_v51 = vld [vmem:[#allocation4 + $0xb0] sm:$0xff] }
 0x885   :  { %6783 = vst.msk [vmem:[#allocation4 + $0x130] sm:$0xff] %vm6554_vm12, %v6778_v17  ;;  %8620 = vmatpush3.bf16.msra.mxu1 %v6985_v9 }
 0x886   :  { %v6780_v59 = vpop.permute.xlu0 %6779  ;;  %8621 = vmatprep.subr.bf16.mxu1 %v6994_v14  ;;  %v6926_v60 = vld [vmem:[#allocation4 + $0xb8] sm:$0xff] }
 0x887   :  { %6784 = vst.msk [vmem:[#allocation4 + $0x138] sm:$0xff] %vm6554_vm12, %v6780_v59  ;;  %v6978_v25 = vpack.c.bf16 %v6926_v60, %v6925_v51  ;;  %v6966_v59 = vld [vmem:[#allocation4 + $0x1f8] sm:$0xff] }
 0x888   :  { %v6694_v5 = vpop.permute.xlu1 %6693  ;;  %v6909_v8 = vld [vmem:[#allocation4 + $0x30] sm:$0xff] }
 0x889   :  { %6699 = vst.msk [vmem:[#allocation4 + $0xc0] sm:$0xff] %vm6554_vm12, %v6694_v5  ;;  %8557 = vmatprep.subr.bf16.mxu0 %v6978_v25 }
 0x88a   :  { %v6696_v33 = vpop.permute.xlu0 %6695  ;;  %v6910_v32 = vld [vmem:[#allocation4 + $0x38] sm:$0xff] }
 0x88b   :  { %6700 = vst.msk [vmem:[#allocation4 + $0xc8] sm:$0xff] %vm6554_vm12, %v6696_v33  ;;  %v6970_v56 = vpack.c.bf16 %v6910_v32, %v6909_v8  ;;  %v6965_v33 = vld [vmem:[#allocation4 + $0x1f0] sm:$0xff] }
 0x88c   :  { %v6598_v34 = vpop.permute.xlu1 %6597  ;;  %v6941_v42 = vld [vmem:[#allocation4 + $0x130] sm:$0xff]  ;;  %v6998_v32 = vpack.c.bf16 %v6966_v59, %v6965_v33 }
 0x88d   :  { %6603 = vst.msk [vmem:[#allocation4 + $0x40] sm:$0xff] %vm6554_vm12, %v6598_v34  ;;  %8558 = vmatpush3.bf16.msra.mxu0 %v6970_v56 }
 0x88e   :  { %v6600_v3 = vpop.permute.xlu0 %6599  ;;  %v6942_v55 = vld [vmem:[#allocation4 + $0x138] sm:$0xff] }
 0x88f   :  { %6604 = vst.msk [vmem:[#allocation4 + $0x48] sm:$0xff] %vm6554_vm12, %v6600_v3  ;;  %v6986_v26 = vpack.c.bf16 %v6942_v55, %v6941_v42 }
 0x890   :  { %v6790_v27 = vpop.permute.xlu1 %6789  ;;  %v6927_v22 = vld [vmem:[#allocation4 + $0xc0] sm:$0xff] }
 0x891   :  { %6795 = vst.msk [vmem:[#allocation4 + $0x140] sm:$0xff] %vm6554_vm12, %v6790_v27  ;;  %8622 = vmatpush3.bf16.msra.mxu1 %v6986_v26  ;;  %v9710_v27 = vld [vmem:[#allocation14 + $0x24] ss:$16 sps:$4 sm:$0xff]  }
 0x892   :  { %v6792_v62 = vpop.permute.xlu0 %6791  ;;  %8623 = vmatprep.subr.bf16.mxu1 %v6995_v12  ;;  %v6928_v13 = vld [vmem:[#allocation4 + $0xc8] sm:$0xff] }
 0x893   :  { %6796 = vst.msk [vmem:[#allocation4 + $0x148] sm:$0xff] %vm6554_vm12, %v6792_v62  ;;  %v6979_v30 = vpack.c.bf16 %v6928_v13, %v6927_v22  ;;  %v9707_v13 = vld [vmem:[#allocation14 + $0x8] ss:$16 sps:$4 sm:$0xff]  }
 0x894   :  { %v6706_v58 = vpop.permute.xlu1 %6705  ;;  %v6911_v61 = vld [vmem:[#allocation4 + $0x40] sm:$0xff] }
 0x895   :  { %6711 = vst.msk [vmem:[#allocation4 + $0xd0] sm:$0xff] %vm6554_vm12, %v6706_v58  ;;  %8559 = vmatprep.subr.bf16.mxu0 %v6979_v30  ;;  %v9713_v30 = vld [vmem:[#allocation14 + $0x2c] ss:$16 sps:$4 sm:$0xff]   ;;  %v9712_v58 = vld [vmem:[#allocation14 + $0x20] ss:$16 sps:$4 sm:$0xff]  }
 0x896   :  { %v6708_v50 = vpop.permute.xlu0 %6707  ;;  %v6912_v11 = vld [vmem:[#allocation4 + $0x48] sm:$0xff] }
 0x897   :  { %6712 = vst.msk [vmem:[#allocation4 + $0xd8] sm:$0xff] %vm6554_vm12, %v6708_v50  ;;  %v6971_v54 = vpack.c.bf16 %v6912_v11, %v6911_v61  ;;  %v9716_v50 = vld [vmem:[#allocation14 + $0x44] ss:$16 sps:$4 sm:$0xff]   ;;  %v9715_v61 = vld [vmem:[#allocation14 + $0x28] ss:$16 sps:$4 sm:$0xff]  }
 0x898   :  { %v6610_v36 = vpop.permute.xlu1 %6609  ;;  %v6943_v49 = vld [vmem:[#allocation4 + $0x140] sm:$0xff] }
 0x899   :  { %6615 = vst.msk [vmem:[#allocation4 + $0x50] sm:$0xff] %vm6554_vm12, %v6610_v36  ;;  %8560 = vmatpush3.bf16.msra.mxu0 %v6971_v54  ;;  %v9719_v11 = vld [vmem:[#allocation14 + $0x4c] ss:$16 sps:$4 sm:$0xff]   ;;  %v9718_v54 = vld [vmem:[#allocation14 + $0x40] ss:$16 sps:$4 sm:$0xff]  }
 0x89a   :  { %v6612_v19 = vpop.permute.xlu0 %6611  ;;  %v6944_v16 = vld [vmem:[#allocation4 + $0x148] sm:$0xff] }
 0x89b   :  { %6616 = vst.msk [vmem:[#allocation4 + $0x58] sm:$0xff] %vm6554_vm12, %v6612_v19  ;;  %v6987_v37 = vpack.c.bf16 %v6944_v16, %v6943_v49  ;;  %v9722_v36 = vld [vmem:[#allocation14 + $0x64] ss:$16 sps:$4 sm:$0xff]   ;;  %v9725_v19 = vld [vmem:[#allocation14 + $0x6c] ss:$16 sps:$4 sm:$0xff]  }
 0x89c   :  { %v6802_v44 = vpop.permute.xlu1 %6801  ;;  %v6929_v0 = vld [vmem:[#allocation4 + $0xd0] sm:$0xff]  ;;  %v9724_v49 = vld [vmem:[#allocation14 + $0x60] ss:$16 sps:$4 sm:$0xff]   ;;  %v9728_v16 = vld [vmem:[#allocation14 + $0x84] ss:$16 sps:$4 sm:$0xff]  }
 0x89d   :  { %6807 = vst.msk [vmem:[#allocation4 + $0x150] sm:$0xff] %vm6554_vm12, %v6802_v44  ;;  %8624 = vmatpush3.bf16.msra.mxu1 %v6987_v37  ;;  %v9727_v37 = vld [vmem:[#allocation14 + $0x68] ss:$16 sps:$4 sm:$0xff]   ;;  %v9730_v44 = vld [vmem:[#allocation14 + $0x80] ss:$16 sps:$4 sm:$0xff]  }
 0x89e   :  { %v6804_v6 = vpop.permute.xlu0 %6803  ;;  %8625 = vmatprep.subr.bf16.mxu1 %v6996_v47  ;;  %v6930_v31 = vld [vmem:[#allocation4 + $0xd8] sm:$0xff] }
 0x89f   :  { %6808 = vst.msk [vmem:[#allocation4 + $0x158] sm:$0xff] %vm6554_vm12, %v6804_v6  ;;  %v6980_v41 = vpack.c.bf16 %v6930_v31, %v6929_v0  ;;  %v9734_v47 = vld [vmem:[#allocation14 + $0xa4] ss:$16 sps:$4 sm:$0xff]   ;;  %v9733_v6 = vld [vmem:[#allocation14 + $0x88] ss:$16 sps:$4 sm:$0xff]  }
 0x8a0   :  { %v6718_v39 = vpop.permute.xlu1 %6717  ;;  %v6913_v7 = vld [vmem:[#allocation4 + $0x50] sm:$0xff]  ;;  %v9736_v31 = vld [vmem:[#allocation14 + $0xa0] ss:$16 sps:$4 sm:$0xff]  }
 0x8a1   :  { %6723 = vst.msk [vmem:[#allocation4 + $0xe0] sm:$0xff] %vm6554_vm12, %v6718_v39  ;;  %8561 = vmatprep.subr.bf16.mxu0 %v6980_v41  ;;  %v9737_v0 = vld [vmem:[#allocation14 + $0xac] ss:$16 sps:$4 sm:$0xff]   ;;  %v9740_v41 = vld [vmem:[#allocation14 + $0xc4] ss:$16 sps:$4 sm:$0xff]  }
 0x8a2   :  { %v6720_v20 = vpop.permute.xlu0 %6719  ;;  %v6914_v15 = vld [vmem:[#allocation4 + $0x58] sm:$0xff]  ;;  %v9739_v39 = vld [vmem:[#allocation14 + $0xa8] ss:$16 sps:$4 sm:$0xff]  }
 0x8a3   :  { %6724 = vst.msk [vmem:[#allocation4 + $0xe8] sm:$0xff] %vm6554_vm12, %v6720_v20  ;;  %v6972_v21 = vpack.c.bf16 %v6914_v15, %v6913_v7  ;;  %v9743_v20 = vld [vmem:[#allocation14 + $0xcc] ss:$16 sps:$4 sm:$0xff]   ;;  %v6901_v7 = vld [vmem:[#allocation14 + $0xe0] sm:$0xff] }
 0x8a4   :  { %v6622_v1 = vpop.permute.xlu1 %6621  ;;  %v6945_v4 = vld [vmem:[#allocation4 + $0x150] sm:$0xff]  ;;  %v9742_v15 = vld [vmem:[#allocation14 + $0xc0] ss:$16 sps:$4 sm:$0xff]  }
 0x8a5   :  { %6627 = vst.msk [vmem:[#allocation4 + $0x60] sm:$0xff] %vm6554_vm12, %v6622_v1  ;;  %8562 = vmatpush3.bf16.msra.mxu0 %v6972_v21  ;;  %v8500_v21 = vcombine.high %v6901_v7, %v6901_v7  ;;  %v6902_v1 = vld [vmem:[#allocation14 + $0xe8] sm:$0xff] }
 0x8a6   :  { %v6624_v24 = vpop.permute.xlu0 %6623  ;;  %v6946_v35 = vld [vmem:[#allocation4 + $0x158] sm:$0xff] }
 0x8a7   :  { %6628 = vst.msk [vmem:[#allocation4 + $0x68] sm:$0xff] %vm6554_vm12, %v6624_v24  ;;  %v6988_v18 = vpack.c.bf16 %v6946_v35, %v6945_v4  ;;  %v8502_v24 = vcombine.high %v6902_v1, %v6902_v1  ;;  %v8499_v4 = vcombine.low %v6901_v7, %v6901_v7  ;;  %v8501_v35 = vcombine.low %v6902_v1, %v6902_v1 }
 0x8a8   :  { %v6814_v63 = vpop.permute.xlu1 %6813  ;;  %v6931_v40 = vld [vmem:[#allocation4 + $0xe0] sm:$0xff] }
 0x8a9   :  { %6819 = vst.msk [vmem:[#allocation4 + $0x160] sm:$0xff] %vm6554_vm12, %v6814_v63  ;;  %8626 = vmatpush3.bf16.msra.mxu1 %v6988_v18  ;;  %v9750_v18 = vld [vmem:[%s11489_s9] sm:$0xff]   ;;  %v9752_v63 = vld [vmem:[%s11489_s9 + $0x10] sm:$0xff]  }
 0x8aa   :  { %v6816_v43 = vpop.permute.xlu0 %6815  ;;  %8627 = vmatprep.subr.bf16.mxu1 %v6997_v23  ;;  %v6932_v10 = vld [vmem:[#allocation4 + $0xe8] sm:$0xff]  ;;  %v9753_v23 = vld [vmem:[%s11489_s9 + $0x18] ss:$0 sps:$4 sm:$0x11]  }
 0x8ab   :  { %6820 = vst.msk [vmem:[#allocation4 + $0x168] sm:$0xff] %vm6554_vm12, %v6816_v43  ;;  %v6981_v2 = vpack.c.bf16 %v6932_v10, %v6931_v40  ;;  %v7512_v43 = vsel %vm7510_vm13, %v9753_v23, 0 }
 0x8ac   :  { %v6730_v29 = vpop.permute.xlu1 %6729  ;;  %v6915_v9 = vld [vmem:[#allocation4 + $0x60] sm:$0xff] }
 0x8ad   :  { %6735 = vst.msk [vmem:[#allocation4 + $0xf0] sm:$0xff] %vm6554_vm12, %v6730_v29  ;;  %8563 = vmatprep.subr.bf16.mxu0 %v6981_v2 }
 0x8ae   :  { %v6732_v53 = vpop.permute.xlu0 %6731  ;;  %v6916_v57 = vld [vmem:[#allocation4 + $0x68] sm:$0xff] }
 0x8af   :  { %6736 = vst.msk [vmem:[#allocation4 + $0xf8] sm:$0xff] %vm6554_vm12, %v6732_v53  ;;  %v6973_v17 = vpack.c.bf16 %v6916_v57, %v6915_v9 }
 0x8b0   :  { %v6634_v14 = vpop.permute.xlu1 %6633  ;;  %v6947_v60 = vld [vmem:[#allocation4 + $0x160] sm:$0xff] }
 0x8b1   :  { %6639 = vst.msk [vmem:[#allocation4 + $0x70] sm:$0xff] %vm6554_vm12, %v6634_v14  ;;  %8564 = vmatpush3.bf16.msra.mxu0 %v6973_v17 }
 0x8b2   :  { %v6636_v51 = vpop.permute.xlu0 %6635  ;;  %v6948_v25 = vld [vmem:[#allocation4 + $0x168] sm:$0xff] }
 0x8b3   :  { %6640 = vst.msk [vmem:[#allocation4 + $0x78] sm:$0xff] %vm6554_vm12, %v6636_v51  ;;  %v6989_v5 = vpack.c.bf16 %v6948_v25, %v6947_v60 }
 0x8b4   :  { %v6826_v8 = vpop.permute.xlu1 %6825  ;;  %v6933_v34 = vld [vmem:[#allocation4 + $0xf0] sm:$0xff] }
 0x8b5   :  { %6831 = vst.msk [vmem:[#allocation4 + $0x170] sm:$0xff] %vm6554_vm12, %v6826_v8  ;;  %8628 = vmatpush3.bf16.msra.mxu1 %v6989_v5 }
 0x8b6   :  { %v6828_v56 = vpop.permute.xlu0 %6827  ;;  %8629 = vmatprep.subr.bf16.mxu1 %v6998_v32  ;;  %v6934_v52 = vld [vmem:[#allocation4 + $0xf8] sm:$0xff] }
 0x8b7   :  { %6832 = vst.msk [vmem:[#allocation4 + $0x178] sm:$0xff] %vm6554_vm12, %v6828_v56  ;;  %v6982_v3 = vpack.c.bf16 %v6934_v52, %v6933_v34 }
 0x8b8   :  { %v6917_v42 = vld [vmem:[#allocation4 + $0x70] sm:$0xff] }
 0x8b9   :  { %8565 = vmatprep.subr.bf16.mxu0 %v6982_v3 }
 0x8ba   :  { %v6918_v55 = vld [vmem:[#allocation4 + $0x78] sm:$0xff] }
 0x8bb   :  { %v6974_v26 = vpack.c.bf16 %v6918_v55, %v6917_v42 }
 0x8bc   :  { %v6949_v12 = vld [vmem:[#allocation4 + $0x170] sm:$0xff] }
 0x8bd   :  { %8566 = vmatpush3.bf16.msra.mxu0 %v6974_v26 }
 0x8be   :  { %v6950_v62 = vld [vmem:[#allocation4 + $0x178] sm:$0xff]  ;;  %8712 = vmatprep.subr.bf16.mxu0 %v9750_v18 }
 0x8bf   :  { %v6990_v22 = vpack.c.bf16 %v6950_v62, %v6949_v12 }
 0x8c0   :  { %7276 = vmatmul.mubr.bf16.vlgmr.msra.gmra.mrb[28].mxu0 %v9704_v38 }
 0x8c1   :  { %8630 = vmatpush3.bf16.msra.mxu1 %v6990_v22  ;;  %7283 = vmatprep.mubr.bf16.mxu0 %v9710_v27 }
 0x8c2   :  { %8713 = vmatpush3.bf16.msra.mxu0 %v9750_v18 }
 0x8c3   :  { %8714 = vmatprep.subr.bf16.mxu0 %v9751_v45 }
 0x8c4   :  { %7372 = vmatmul.mubr.bf16.vlgmr.msra.gmra.mrb[28].mxu1 %v9707_v13 }
 0x8c5   :  { %7379 = vmatprep.mubr.bf16.mxu1 %v9713_v30  ;;  %v7017_v17 = vpop.permute.xlu1 %7016 }
 0x8c6   :  { %8715 = vmatpush3.bf16.msra.mxu0 %v9751_v45 }
 0x8c7   :  { %8716 = vmatprep.subr.bf16.mxu0 %v9752_v63  ;;  %v7022_v25 = vpop.permute.xlu0 %7021 }
 0x8c8   :  { %7284 = vmatmul.mubr.bf16.gmra.mrb[32].mxu0 %v9712_v58 }
 0x8c9   :  { %7291 = vmatprep.mubr.bf16.mxu0 %v9716_v50  ;;  %v7027_v27 = vpop.permute.xlu1 %7026 }
 0x8ca   :  { %8717 = vmatpush3.bf16.msra.mxu0 %v9752_v63 }
 0x8cb   :  { %8836 = vmatprep.subr.msk.bf16.mxu0 %vm7510_vm13, %v9753_v23  ;;  %v7032_v30 = vpop.permute.xlu0 %7031 }
 0x8cc   :  { %7380 = vmatmul.mubr.bf16.gmra.mrb[32].mxu1 %v9715_v61 }
 0x8cd   :  { %7387 = vmatprep.mubr.bf16.mxu1 %v9719_v11 }
 0x8ce   :  { %8719 = vmatpush3.bf16.msra.mxu0 %v7512_v43 }
 0x8d0   :  { %7292 = vmatmul.mubr.bf16.gmra.mrb[36].mxu0 %v9718_v54 }
 0x8d1   :  { %7299 = vmatprep.mubr.bf16.mxu0 %v9722_v36 }
 0x8d4   :  { %7388 = vmatmul.mubr.bf16.gmra.mrb[36].mxu1 %v9721_v48 }
 0x8d5   :  { %7395 = vmatprep.mubr.bf16.mxu1 %v9725_v19 }
 0x8d8   :  { %7300 = vmatmul.mubr.bf16.gmra.mrb[40].mxu0 %v9724_v49 }
 0x8d9   :  { %7307 = vmatprep.mubr.bf16.mxu0 %v9728_v16 }
 0x8dc   :  { %7396 = vmatmul.mubr.bf16.gmra.mrb[40].mxu1 %v9727_v37 }
 0x8dd   :  { %7403 = vmatprep.mubr.bf16.mxu1 %v9731_v28 }
 0x8e0   :  { %7308 = vmatmul.mubr.bf16.gmra.mrb[44].mxu0 %v9730_v44 }
 0x8e1   :  { %7315 = vmatprep.mubr.bf16.mxu0 %v9734_v47  ;;  %v7037_v47 = vpop.permute.xlu1 %7036 }
 0x8e4   :  { %7404 = vmatmul.mubr.bf16.gmra.mrb[44].mxu1 %v9733_v6 }
 0x8e5   :  { %7411 = vmatprep.mubr.bf16.mxu1 %v9737_v0 }
 0x8e8   :  { %7316 = vmatmul.mubr.bf16.gmra.mrb[48].mxu0 %v9736_v31 }
 0x8e9   :  { %7323 = vmatprep.mubr.bf16.mxu0 %v9740_v41 }
 0x8ec   :  { %7412 = vmatmul.mubr.bf16.gmra.mrb[48].mxu1 %v9739_v39 }
 0x8ed   :  { %7419 = vmatprep.mubr.bf16.mxu1 %v9743_v20  ;;  %v7042_v20 = vpop.permute.xlu0 %7041 }
 0x8f0   :  { %7324 = vmatmul.mubr.bf16.gmra.mrb[52].mxu0 %v9742_v15 }
 0x8f1   :  { %7331 = vmatprep.mubr.bf16.mxu0 %v8500_v21 }
 0x8f4   :  { %7420 = vmatmul.mubr.bf16.gmra.mrb[52].mxu1 %v9745_v46 }
 0x8f5   :  { %7427 = vmatprep.mubr.bf16.mxu1 %v8502_v24 }
 0x8f8   :  { %7332 = vmatmul.mubr.bf16.gmra.mrb[56].mxu0 %v8499_v4 }
 0x8fc   :  { %7428 = vmatmul.mubr.bf16.gmra.mrb[56].mxu1 %v8501_v35 }
 0x993   :  { %v8567_v40 = vpop.f32.mrb[28].mxu0 }
 0x994   :  { %v8568_v10 = vpop.f32.mrb[29].mxu0 }
 0x995   :  { %v8569_v2 = vadd.f32 %v8568_v10, %v8567_v40  ;;  %v8570_v29 = vpop.f32.mrb[30].mxu0  ;;  %v7047_v10 = vpop.permute.xlu1 %7046 }
 0x996   :  { %v8571_v53 = vpop.f32.mrb[31].mxu0 }
 0x997   :  { %v8572_v9 = vadd.f32 %v8571_v53, %v8570_v29  ;;  %v8631_v57 = vpop.f32.mrb[28].mxu1  ;;  %v7278_v59 = vadd.f32 %v8569_v2, %v7017_v17  ;;  %v7052_v17 = vpop.permute.xlu0 %7051 }
 0x998   :  { %v8632_v14 = vpop.f32.mrb[29].mxu1 }
 0x999   :  { %v8633_v51 = vadd.f32 %v8632_v14, %v8631_v57  ;;  %v8634_v60 = vpop.f32.mrb[30].mxu1  ;;  %v7281_v33 = vadd.f32 %v8572_v9, %v7022_v25 }
 0x99a   :  { %v8635_v5 = vpop.f32.mrb[31].mxu1 }
 0x99b   :  { %v7374_v8 = vadd.f32 %v8633_v51, %v7278_v59  ;;  %v8636_v32 = vadd.f32 %v8635_v5, %v8634_v60  ;;  %v8573_v56 = vpop.f32.mrb[32].mxu0 }
 0x99c   :  { %v8574_v34 = vpop.f32.mrb[33].mxu0 }
 0x99d   :  { %v7377_v52 = vadd.f32 %v8636_v32, %v7281_v33  ;;  %v8575_v3 = vadd.f32 %v8574_v34, %v8573_v56  ;;  %v8576_v42 = vpop.f32.mrb[34].mxu0  ;;  %9809 = vtanh.f32 %v7374_v8 }
 0x99e   :  { %v8577_v55 = vpop.f32.mrb[35].mxu0 }
 0x99f   :  { %9811 = vtanh.f32 %v7377_v52  ;;  %v8578_v26 = vadd.f32 %v8577_v55, %v8576_v42  ;;  %v8637_v38 = vpop.f32.mrb[32].mxu1  ;;  %v7286_v62 = vadd.f32 %v8575_v3, %v7027_v27  ;;  %v7057_v55 = vpop.permute.xlu1 %7056 }
 0x9a0   :  { %v8638_v12 = vpop.f32.mrb[33].mxu1 }
 0x9a1   :  { %v8639_v22 = vadd.f32 %v8638_v12, %v8637_v38  ;;  %v8640_v13 = vpop.f32.mrb[34].mxu1  ;;  %v7289_v50 = vadd.f32 %v8578_v26, %v7032_v30 }
 0x9a2   :  { %v8641_v58 = vpop.f32.mrb[35].mxu1 }
 0x9a3   :  { %v7382_v61 = vadd.f32 %v8639_v22, %v7286_v62  ;;  %v8642_v11 = vadd.f32 %v8641_v58, %v8640_v13  ;;  %v8579_v54 = vpop.f32.mrb[36].mxu0  ;;  %v7062_v22 = vpop.permute.xlu0 %7061 }
 0x9a4   :  { %v8580_v36 = vpop.f32.mrb[37].mxu0 }
 0x9a5   :  { %v7385_v48 = vadd.f32 %v8642_v11, %v7289_v50  ;;  %v8581_v19 = vadd.f32 %v8580_v36, %v8579_v54  ;;  %v8582_v49 = vpop.f32.mrb[38].mxu0  ;;  %9813 = vtanh.f32 %v7382_v61 }
 0x9a6   :  { %v8583_v16 = vpop.f32.mrb[39].mxu0 }
 0x9a7   :  { %9815 = vtanh.f32 %v7385_v48  ;;  %v8584_v37 = vadd.f32 %v8583_v16, %v8582_v49  ;;  %v8643_v28 = vpop.f32.mrb[36].mxu1  ;;  %v9810_v44 = vpop.eup %9809  ;;  %v7294_v31 = vadd.f32 %v8581_v19, %v7037_v47 }
 0x9a8   :  { %v8644_v6 = vpop.f32.mrb[37].mxu1 }
 0x9a9   :  { %v9812_v0 = vpop.eup %9811  ;;  %v8645_v41 = vadd.f32 %v8644_v6, %v8643_v28  ;;  %v8646_v39 = vpop.f32.mrb[38].mxu1  ;;  %v7297_v21 = vadd.f32 %v8584_v37, %v7042_v20 }
 0x9aa   :  { %v8647_v7 = vpop.f32.mrb[39].mxu1  ;;  %v7450_v15 = vpack.c.bf16 %v9812_v0, %v9810_v44  ;;  %v7067_v44 = vpop.permute.xlu1 %7066 }
 0x9ab   :  { %v7390_v1 = vadd.f32 %v8645_v41, %v7294_v31  ;;  %v8648_v46 = vadd.f32 %v8647_v7, %v8646_v39  ;;  %v8585_v24 = vpop.f32.mrb[40].mxu0  ;;  %v7072_v39 = vpop.permute.xlu0 %7071 }
 0x9ac   :  { %v8586_v4 = vpop.f32.mrb[41].mxu0  ;;  %8720 = vmatprep.mubr.msk.bf16.mxu0 %vm6554_vm12, %v7450_v15 }
 0x9ad   :  { %v7393_v35 = vadd.f32 %v8648_v46, %v7297_v21  ;;  %v8587_v18 = vadd.f32 %v8586_v4, %v8585_v24  ;;  %v8588_v45 = vpop.f32.mrb[42].mxu0  ;;  %9817 = vtanh.f32 %v7390_v1 }
 0x9ae   :  { %v8589_v63 = vpop.f32.mrb[43].mxu0 }
 0x9af   :  { %9819 = vtanh.f32 %v7393_v35  ;;  %v8590_v23 = vadd.f32 %v8589_v63, %v8588_v45  ;;  %v8649_v43 = vpop.f32.mrb[40].mxu1  ;;  %v9814_v40 = vpop.eup %9813  ;;  %v7302_v53 = vadd.f32 %v8587_v18, %v7047_v10 }
 0x9b0   :  { %v8650_v2 = vpop.f32.mrb[41].mxu1 }
 0x9b1   :  { %v9816_v29 = vpop.eup %9815  ;;  %v8651_v9 = vadd.f32 %v8650_v2, %v8649_v43  ;;  %v8652_v57 = vpop.f32.mrb[42].mxu1  ;;  %v7305_v51 = vadd.f32 %v8590_v23, %v7052_v17 }
 0x9b2   :  { %v7451_v14 = vpack.c.bf16 %v9816_v29, %v9814_v40  ;;  %v8653_v59 = vpop.f32.mrb[43].mxu1  ;;  %v7077_v40 = vpop.permute.xlu1 %7076 }
 0x9b3   :  { %v7398_v60 = vadd.f32 %v8651_v9, %v7302_v53  ;;  %v8654_v25 = vadd.f32 %v8653_v59, %v8652_v57  ;;  %v8591_v5 = vpop.f32.mrb[44].mxu0  ;;  %v7082_v57 = vpop.permute.xlu0 %7081 }
 0x9b4   :  { %v8592_v33 = vpop.f32.mrb[45].mxu0  ;;  %8721 = vmatmul.mubr.msk.bf16.vlgmr.msra.gmra.mrb[60].mxu0 %vm6554_vm12, %v7451_v14 }
 0x9b5   :  { %v7401_v8 = vadd.f32 %v8654_v25, %v7305_v51  ;;  %v8593_v32 = vadd.f32 %v8592_v33, %v8591_v5  ;;  %v8594_v56 = vpop.f32.mrb[46].mxu0  ;;  %9821 = vtanh.f32 %v7398_v60 }
 0x9b6   :  { %v8595_v34 = vpop.f32.mrb[47].mxu0 }
 0x9b7   :  { %9823 = vtanh.f32 %v7401_v8  ;;  %v8596_v52 = vadd.f32 %v8595_v34, %v8594_v56  ;;  %v8655_v3 = vpop.f32.mrb[44].mxu1  ;;  %v9818_v42 = vpop.eup %9817  ;;  %v7310_v27 = vadd.f32 %v8593_v32, %v7057_v55 }
 0x9b8   :  { %v8656_v26 = vpop.f32.mrb[45].mxu1 }
 0x9b9   :  { %v9820_v38 = vpop.eup %9819  ;;  %v8657_v12 = vadd.f32 %v8656_v26, %v8655_v3  ;;  %v8658_v62 = vpop.f32.mrb[46].mxu1  ;;  %v7313_v58 = vadd.f32 %v8596_v52, %v7062_v22 }
 0x9ba   :  { %v8659_v13 = vpop.f32.mrb[47].mxu1  ;;  %v7452_v30 = vpack.c.bf16 %v9820_v38, %v9818_v42  ;;  %v7087_v3 = vpop.permute.xlu1 %7086 }
 0x9bb   :  { %v7406_v50 = vadd.f32 %v8657_v12, %v7310_v27  ;;  %v8660_v61 = vadd.f32 %v8659_v13, %v8658_v62  ;;  %v8597_v11 = vpop.f32.mrb[48].mxu0 }
 0x9bc   :  { %v8598_v54 = vpop.f32.mrb[49].mxu0  ;;  %8724 = vmatprep.mubr.msk.bf16.mxu0 %vm6554_vm12, %v7452_v30 }
 0x9bd   :  { %v7409_v36 = vadd.f32 %v8660_v61, %v7313_v58  ;;  %v8599_v48 = vadd.f32 %v8598_v54, %v8597_v11  ;;  %v8600_v19 = vpop.f32.mrb[50].mxu0  ;;  %9825 = vtanh.f32 %v7406_v50  ;;  %v9754_v11 = vld [vmem:[#allocation15] sm:$0xff]  }
 0x9be   :  { %v8601_v49 = vpop.f32.mrb[51].mxu0  ;;  %8752 = vmatprep.mubr.msk.bf16.mxu1 %vm7723_vm14, %v9754_v11 }
 0x9bf   :  { %9827 = vtanh.f32 %v7409_v36  ;;  %v8602_v16 = vadd.f32 %v8601_v49, %v8600_v19  ;;  %v8661_v37 = vpop.f32.mrb[48].mxu1  ;;  %v9822_v28 = vpop.eup %9821  ;;  %v7318_v0 = vadd.f32 %v8599_v48, %v7067_v44 }
 0x9c0   :  { %v8662_v47 = vpop.f32.mrb[49].mxu1 }
 0x9c1   :  { %v9824_v6 = vpop.eup %9823  ;;  %v8663_v31 = vadd.f32 %v8662_v47, %v8661_v37  ;;  %v8664_v41 = vpop.f32.mrb[50].mxu1  ;;  %v7321_v15 = vadd.f32 %v8602_v16, %v7072_v39 }
 0x9c2   :  { %v8665_v20 = vpop.f32.mrb[51].mxu1  ;;  %v7453_v7 = vpack.c.bf16 %v9824_v6, %v9822_v28 }
 0x9c3   :  { %v7414_v21 = vadd.f32 %v8663_v31, %v7318_v0  ;;  %v8666_v1 = vadd.f32 %v8665_v20, %v8664_v41  ;;  %v8603_v46 = vpop.f32.mrb[52].mxu0 }
 0x9c4   :  { %v8604_v24 = vpop.f32.mrb[53].mxu0  ;;  %8725 = vmatmul.mubr.msk.bf16.gmra.mrb[64].mxu0 %vm6554_vm12, %v7453_v7 }
 0x9c5   :  { %v7417_v4 = vadd.f32 %v8666_v1, %v7321_v15  ;;  %v8605_v35 = vadd.f32 %v8604_v24, %v8603_v46  ;;  %v8606_v18 = vpop.f32.mrb[54].mxu0  ;;  %9829 = vtanh.f32 %v7414_v21 }
 0x9c6   :  { %v8607_v45 = vpop.f32.mrb[55].mxu0 }
 0x9c7   :  { %9831 = vtanh.f32 %v7417_v4  ;;  %v8608_v63 = vadd.f32 %v8607_v45, %v8606_v18  ;;  %v8667_v23 = vpop.f32.mrb[52].mxu1  ;;  %v9826_v43 = vpop.eup %9825  ;;  %v7326_v29 = vadd.f32 %v8605_v35, %v7077_v40  ;;  %v9755_v45 = vld [vmem:[#allocation15 + $0x8] sm:$0xff]  }
 0x9c8   :  { %v8668_v10 = vpop.f32.mrb[53].mxu1  ;;  %v9759_v40 = vld [vmem:[#allocation15 + $0x28] ss:$0 sps:$4 sm:$0x33]  }
 0x9c9   :  { %v9828_v2 = vpop.eup %9827  ;;  %v8669_v53 = vadd.f32 %v8668_v10, %v8667_v23  ;;  %v8670_v9 = vpop.f32.mrb[54].mxu1  ;;  %v7329_v59 = vadd.f32 %v8608_v63, %v7082_v57  ;;  %v9756_v63 = vld [vmem:[#allocation15 + $0x10] sm:$0xff]   ;;  %v9757_v23 = vld [vmem:[#allocation15 + $0x18] sm:$0xff]   ;;  %v10089_v10 = vmov 0.0  }
 0x9ca   :  { %v8671_v17 = vpop.f32.mrb[55].mxu1  ;;  %v7454_v14 = vpack.c.bf16 %v9828_v2, %v9826_v43  ;;  %v9758_v43 = vld [vmem:[#allocation15 + $0x20] sm:$0xff]   ;;  %v7643_v2 = vpop.permute.xlu0 %7642 }
 0x9cb   :  { %v7422_v51 = vadd.f32 %v8669_v53, %v7326_v29  ;;  %v8672_v60 = vadd.f32 %v8671_v17, %v8670_v9  ;;  %v8609_v25 = vpop.f32.mrb[56].mxu0  ;;  %v7648_v29 = vpop.permute.xlu1 %7647 }
 0x9cc   :  { %v8610_v5 = vpop.f32.mrb[57].mxu0  ;;  %8728 = vmatprep.mubr.msk.bf16.mxu0 %vm6554_vm12, %v7454_v14 }
 0x9cd   :  { %v7425_v33 = vadd.f32 %v8672_v60, %v7329_v59  ;;  %v8611_v8 = vadd.f32 %v8610_v5, %v8609_v25  ;;  %v8612_v32 = vpop.f32.mrb[58].mxu0  ;;  %9833 = vtanh.f32 %v7422_v51 }
 0x9ce   :  { %v8613_v56 = vpop.f32.mrb[59].mxu0  ;;  %v7653_v53 = vpop.permute.xlu0 %7652 }
 0x9cf   :  { %9835 = vtanh.f32 %v7425_v33  ;;  %v8673_v34 = vpop.f32.mrb[56].mxu1  ;;  %v9830_v52 = vpop.eup %9829  ;;  %v7334_v26 = vadd.f32 %v8611_v8, %v7087_v3 }
 0x9d0   :  { %v8674_v42 = vpop.f32.mrb[57].mxu1  ;;  %v7658_v9 = vpop.permute.xlu1 %7657 }
 0x9d1   :  { %v9832_v55 = vpop.eup %9831  ;;  %v8675_v38 = vadd.f32 %v8674_v42, %v8673_v34  ;;  %v8676_v27 = vpop.f32.mrb[58].mxu1 }
 0x9d2   :  { %v8677_v12 = vpop.f32.mrb[59].mxu1  ;;  %v7455_v62 = vpack.c.bf16 %v9832_v55, %v9830_v52  ;;  %v7663_v57 = vpop.permute.xlu0 %7662 }
 0x9d3   :  { %v7430_v22 = vadd.f32 %v8675_v38, %v7334_v26 }
 0x9d4   :  { %8729 = vmatmul.mubr.msk.bf16.gmra.mrb[68].mxu0 %vm6554_vm12, %v7455_v62  ;;  %v7668_v25 = vpop.permute.xlu1 %7667 }
 0x9d5   :  { %9837 = vtanh.f32 %v7430_v22 }
 0x9d6   :  { %v7673_v8 = vpop.permute.xlu0 %7672 }
 0x9d7   :  { %v9834_v13 = vpop.eup %9833 }
 0x9d8   :  { %v7678_v34 = vpop.permute.xlu1 %7677 }
 0x9d9   :  { %v9836_v30 = vpop.eup %9835 }
 0x9da   :  { %v7456_v58 = vpack.c.bf16 %v9836_v30, %v9834_v13  ;;  %v7683_v42 = vpop.permute.xlu0 %7682 }
 0x9dc   :  { %8732 = vmatprep.mubr.msk.bf16.mxu0 %vm6554_vm12, %v7456_v58 }
 0x9de   :  { %v7693_v58 = vpop.permute.xlu0 %7692 }
 0x9df   :  { %v9838_v50 = vpop.eup %9837 }
 0x9e0   :  { %v7457_v61 = vpack.c.bf16 %v9838_v50, %v9838_v50 }
 0x9e2   :  { %8733 = vmatmul.mubr.msk.bf16.gmra.mrb[72].mxu0 %vm6554_vm12, %v7457_v61 }
 0xa87   :  { %v8722_v54 = vpop.f32.mrb[60].mxu0 }
 0xa88   :  { %v7548_v36 = vpop.f32.mrb[61].mxu0 }
 0xa89   :  { %v8723_v48 = vpop.f32.mrb[62].mxu0 }
 0xa8a   :  { %v7622_v19 = vpack.c.bf16 %v8723_v48, %v8722_v54  ;;  %v7551_v49 = vpop.f32.mrb[63].mxu0 }
 0xa8b   :  { %v7621_v16 = vpack.c.bf16 %v7551_v49, %v7548_v36  ;;  %v7688_v49 = vpop.permute.xlu1 %7687 }
 0xa8d   :  { %8736 = vmatprep.subr.bf16.mxu1 %v7621_v16 }
 0xa8e   :  { %8737 = vmatpush3.bf16.msra.mxu1 %v7621_v16 }
 0xa8f   :  { %8738 = vmatprep.subr.bf16.mxu1 %v7622_v19 }
 0xa92   :  { %8739 = vmatpush3.bf16.msra.mxu1 %v7622_v19 }
 0xa97   :  { %v8726_v37 = vpop.f32.mrb[64].mxu0 }
 0xa98   :  { %v7564_v28 = vpop.f32.mrb[65].mxu0 }
 0xa99   :  { %v8727_v44 = vpop.f32.mrb[66].mxu0 }
 0xa9a   :  { %v7624_v47 = vpack.c.bf16 %v8727_v44, %v8726_v37  ;;  %v7567_v6 = vpop.f32.mrb[67].mxu0 }
 0xa9b   :  { %v7623_v0 = vpack.c.bf16 %v7567_v6, %v7564_v28 }
 0xa9d   :  { %8740 = vmatprep.subr.bf16.mxu1 %v7623_v0 }
 0xa9e   :  { %8741 = vmatpush3.bf16.msra.mxu1 %v7623_v0 }
 0xa9f   :  { %8742 = vmatprep.subr.bf16.mxu1 %v7624_v47 }
 0xaa2   :  { %8743 = vmatpush3.bf16.msra.mxu1 %v7624_v47 }
 0xaa7   :  { %v8730_v31 = vpop.f32.mrb[68].mxu0 }
 0xaa8   :  { %v7580_v41 = vpop.f32.mrb[69].mxu0 }
 0xaa9   :  { %v8731_v39 = vpop.f32.mrb[70].mxu0 }
 0xaaa   :  { %v7626_v20 = vpack.c.bf16 %v8731_v39, %v8730_v31  ;;  %v7583_v7 = vpop.f32.mrb[71].mxu0 }
 0xaab   :  { %v7625_v15 = vpack.c.bf16 %v7583_v7, %v7580_v41 }
 0xaad   :  { %8744 = vmatprep.subr.bf16.mxu1 %v7625_v15 }
 0xaae   :  { %8745 = vmatpush3.bf16.msra.mxu1 %v7625_v15 }
 0xaaf   :  { %8746 = vmatprep.subr.bf16.mxu1 %v7626_v20 }
 0xab2   :  { %8747 = vmatpush3.bf16.msra.mxu1 %v7626_v20 }
 0xab5   :  { %v8734_v21 = vpop.f32.mrb[72].mxu0 }
 0xab6   :  { %v7596_v1 = vpop.f32.mrb[73].mxu0  ;;  %v7628_v35 = vpack.c.bf16 %v8734_v21, %v8734_v21 }
 0xab7   :  { %v8735_v46 = vpop.f32.mrb[74].mxu0 }
 0xab8   :  { %v7599_v24 = vpop.f32.mrb[75].mxu0  ;;  %v7743_v18 = vsel %vm6464_vm0, %v7628_v35, 0  ;;  %v7849_v46 = vpop.permute.xlu1 %7848 }
 0xab9   :  { %v7627_v4 = vpack.c.bf16 %v7599_v24, %v7596_v1  ;;  %v9760_v1 = vld [vmem:[#allocation17] sm:$0x1f]  }
 0xabb   :  { %8748 = vmatprep.subr.bf16.mxu1 %v7627_v4 }
 0xabc   :  { %8749 = vmatpush3.bf16.msra.mxu1 %v7627_v4 }
 0xabd   :  { %8837 = vmatprep.subr.msk.bf16.mxu1 %vm6464_vm0, %v7628_v35 }
 0xac0   :  { %8751 = vmatpush3.bf16.msra.mxu1 %v7743_v18  ;;  %v7854_v18 = vpop.permute.xlu0 %7853 }
 0xac1   :  { %8764 = vmatprep.subr.bf16.mxu1 %v10089_v10 }
 0xac3   :  { %8753 = vmatmul.mubr.msk.bf16.vlgmr.msra.gmra.mrb[60].mxu1 %vm7723_vm14, %v9755_v45 }
 0xac4   :  { %8756 = vmatprep.mubr.msk.bf16.mxu1 %vm7723_vm14, %v9756_v63 }
 0xacb   :  { %8757 = vmatmul.mubr.msk.bf16.gmra.mrb[64].mxu1 %vm7723_vm14, %v9757_v23 }
 0xacc   :  { %8760 = vmatprep.mubr.msk.bf16.mxu1 %vm7723_vm14, %v9758_v43 }
 0xad3   :  { %8761 = vmatmul.mubr.msk.bf16.gmra.mrb[68].mxu1 %vm7723_vm14, %v9759_v40 }
 0xad4   :  { %8776 = vmatprep.mubr.msk.bf16.mxu1 %vm10090_vm15, %v10089_v10 }
 0xb96   :  { %v8754_v17 = vpop.f32.mrb[60].mxu1 }
 0xb97   :  { %v7788_v14 = vadd.f32 %v8754_v17, %v7653_v53  ;;  %v7779_v59 = vpop.f32.mrb[61].mxu1 }
 0xb98   :  { %v7780_v51 = vadd.f32 %v7779_v59, %v7643_v2  ;;  %v8755_v60 = vpop.f32.mrb[62].mxu1 }
 0xb99   :  { %9839 = vtanh.f32 %v7788_v14  ;;  %v7791_v5 = vadd.f32 %v8755_v60, %v7658_v9  ;;  %v7782_v33 = vpop.f32.mrb[63].mxu1 }
 0xb9a   :  { %9841 = vtanh.f32 %v7780_v51  ;;  %v7783_v32 = vadd.f32 %v7782_v33, %v7648_v29 }
 0xb9b   :  { %9843 = vtanh.f32 %v7791_v5 }
 0xb9c   :  { %9845 = vtanh.f32 %v7783_v32 }
 0xb9e   :  { %v8758_v56 = vpop.f32.mrb[64].mxu1 }
 0xb9f   :  { %v7804_v52 = vadd.f32 %v8758_v56, %v7673_v8  ;;  %v7795_v3 = vpop.f32.mrb[65].mxu1 }
 0xba0   :  { %v7796_v55 = vadd.f32 %v7795_v3, %v7663_v57  ;;  %v8759_v26 = vpop.f32.mrb[66].mxu1 }
 0xba1   :  { %9847 = vtanh.f32 %v7804_v52  ;;  %v7807_v38 = vadd.f32 %v8759_v26, %v7678_v34  ;;  %v7798_v27 = vpop.f32.mrb[67].mxu1 }
 0xba2   :  { %9849 = vtanh.f32 %v7796_v55  ;;  %v7799_v12 = vadd.f32 %v7798_v27, %v7668_v25 }
 0xba3   :  { %v9840_v62 = vpop.eup %9839  ;;  %9851 = vtanh.f32 %v7807_v38 }
 0xba4   :  { %v9842_v22 = vpop.eup %9841  ;;  %9853 = vtanh.f32 %v7799_v12 }
 0xba5   :  { %v9844_v13 = vpop.eup %9843 }
 0xba6   :  { %v9846_v30 = vpop.eup %9845  ;;  %v8762_v50 = vpop.f32.mrb[68].mxu1  ;;  %v7839_v61 = vpack.c.bf16 %v9844_v13, %v9840_v62 }
 0xba7   :  { %v7820_v11 = vadd.f32 %v8762_v50, %v7693_v58  ;;  %v7811_v54 = vpop.f32.mrb[69].mxu1  ;;  %v7838_v36 = vpack.c.bf16 %v9846_v30, %v9842_v22 }
 0xba8   :  { %v7812_v48 = vadd.f32 %v7811_v54, %v7683_v42  ;;  %v8763_v19 = vpop.f32.mrb[70].mxu1 }
 0xba9   :  { %v7814_v16 = vpop.f32.mrb[71].mxu1  ;;  %8765 = vmatpush3.bf16.msra.mxu1 %v7838_v36  ;;  %9855 = vtanh.f32 %v7820_v11 }
 0xbaa   :  { %v7815_v37 = vadd.f32 %v7814_v16, %v7688_v49  ;;  %8766 = vmatprep.subr.bf16.mxu1 %v10089_v10  ;;  %9857 = vtanh.f32 %v7812_v48 }
 0xbab   :  { %v9848_v28 = vpop.eup %9847 }
 0xbac   :  { %v9850_v44 = vpop.eup %9849  ;;  %9859 = vtanh.f32 %v7815_v37 }
 0xbad   :  { %v9852_v47 = vpop.eup %9851  ;;  %8767 = vmatpush3.bf16.msra.mxu1 %v7839_v61 }
 0xbae   :  { %v9854_v6 = vpop.eup %9853  ;;  %8768 = vmatprep.subr.bf16.mxu1 %v10089_v10  ;;  %v7841_v0 = vpack.c.bf16 %v9852_v47, %v9848_v28 }
 0xbaf   :  { %v7840_v31 = vpack.c.bf16 %v9854_v6, %v9850_v44 }
 0xbb1   :  { %8769 = vmatpush3.bf16.msra.mxu1 %v7840_v31 }
 0xbb2   :  { %8770 = vmatprep.subr.bf16.mxu1 %v10089_v10 }
 0xbb3   :  { %v9856_v41 = vpop.eup %9855 }
 0xbb4   :  { %v9858_v39 = vpop.eup %9857  ;;  %v7843_v15 = vpack.c.bf16 %v9856_v41, %v9856_v41 }
 0xbb5   :  { %8771 = vmatpush3.bf16.msra.mxu1 %v7841_v0 }
 0xbb6   :  { %v9860_v20 = vpop.eup %9859  ;;  %8772 = vmatprep.subr.bf16.mxu1 %v10089_v10  ;;  %v7866_v21 = vsel %vm7864_vm9, %v7843_v15, 0 }
 0xbb7   :  { %v7842_v7 = vpack.c.bf16 %v9860_v20, %v9858_v39 }
 0xbb9   :  { %8773 = vmatpush3.bf16.msra.mxu1 %v7842_v7 }
 0xbba   :  { %8774 = vmatprep.subr.bf16.mxu1 %v10089_v10 }
 0xbbd   :  { %8775 = vmatpush3.bf16.msra.mxu1 %v7866_v21 }
 0xbc0   :  { %8777 = vmatmul.mubr.msk.bf16.vlgmr.msra.gmra.mrb[72].mxu1 %vm5608_vm3, %v9760_v1 }
 0xc93   :  { %v7902_v24 = vpop.f32.mrb[72].mxu1 }
 0xc94   :  { %v7903_v4 = vadd.f32 %v7902_v24, %v7849_v46  ;;  %v8778_v35 = vpop.f32.mrb[73].mxu1 }
 0xc95   :  { %v7905_v45 = vpop.f32.mrb[74].mxu1 }
 0xc96   :  { %7910 = vst.msk [vmem:[%s11494_s14] sm:$0xff] %vm7909_vm8, %v7903_v4  ;;  %v7906_v63 = vadd.f32 %v7905_v45, %v7854_v18  ;;  %v8779_v23 = vpop.f32.mrb[75].mxu1 }
 0xc98   :  { %7912 = vst.msk [vmem:[%s11494_s14 + $0x8] sm:$0x3] %vm7911_vm10, %v7906_v63 }
 0xc99   :  { %7917 = vsyncpa [#allocation8], 1 }
 0xc9a   :  { %7918 = vsyncpa [#allocation10], 1 }
 0xc9b   :  { %7919 = vsyncpa [#allocation13], 1 }
 0xc9c   :  { %7920 = vsyncpa [#allocation16], 1 }

</bundles_post_ra>
